<compile_context>
chip_gen: v7x
topology: tpu7x:2x2x1
jax: 0.10.0
libtpu: 0.0.40
codegen_flags: <defaults>
</compile_context>

<pallas_src>
import functools

import jax
import jax.numpy as jnp
from jax.experimental import pallas as pl
from jax.experimental.pallas import tpu as pltpu

EPS = 1e-5
LANE = 128


# ----------------------------------------------------------------------------
# Kernel
# ----------------------------------------------------------------------------
def _resnet3x3_kernel(x_ref, mask_ref, w1_ref, b1_ref, w2_ref, b2_ref, o_ref,
                      act_ref, tmp_ref, *col_scratch,
                      height, width, num_blocks, pad, use_im2col):
    p_pix = height * width
    c = x_ref.shape[-1]
    f32 = jnp.float32
    adt = act_ref.dtype                      # bf16 activation scratch dtype
    col_ref = col_scratch[0] if use_im2col else None

    # Zero the halo rows once per tile (interior rows are always overwritten).
    halo = jnp.zeros((pad, c), adt)
    for buf in (act_ref, tmp_ref):
        buf[pl.ds(0, pad), :] = halo
        buf[pl.ds(pad + p_pix, pad), :] = halo
    act_ref[pl.ds(pad, p_pix), :] = x_ref[...].astype(adt)

    # mask_ref (input, (2, P, C) bf16, pre-broadcast in the wrapper):
    #   mask_ref[0] == 0 where w == 0          (kills wrapped dx == -1 taps)
    #   mask_ref[1] == 0 where w == width - 1  (kills wrapped dx == +1 taps)
    # Row (H) boundaries are handled by the zeroed halo rows.

    # Tap order matches PyTorch OIHW kernel order: k = (dy+1)*3 + (dx+1).
    taps = [(dy, dx) for dy in (-1, 0, 1) for dx in (-1, 0, 1)]

    def load_tap(src_ref, k):
        dy, dx = taps[k]
        tap = src_ref[pl.ds(pad + dy * width + dx, p_pix), :]
        if dx == -1:
            tap = tap * mask_ref[0]
        elif dx == 1:
            tap = tap * mask_ref[1]
        return tap

    def conv3x3(src_ref, w_ref, b_ref, blk):
        if use_im2col:
            # Wide-K path (256x256 MXU on v6e/v7x): gather the 9 shifted taps on
            # the lane axis and do ONE (P, 9C) @ (9C, C) matmul so the MXU
            # accumulates along K internally.
            for k in range(9):
                col_ref[:, pl.ds(k * c, c)] = load_tap(src_ref, k)
            acc = jnp.dot(col_ref[...], w_ref[blk], preferred_element_type=f32)
            return acc + b_ref[blk]
        # Narrow-K path (v5e / v4-class 128x128 MXUs are already full at
        # K = N = 128): 9 per-tap matmuls, accumulator initialised with bias.
        acc = jnp.broadcast_to(b_ref[blk], (p_pix, c)).astype(f32)
        for k in range(9):
            acc = acc + jnp.dot(load_tap(src_ref, k),
                                w_ref[blk, pl.ds(k * c, c), :],
                                preferred_element_type=f32)
        return acc

    # NOTE: layer_num is small here (2); for deep stacks move this unroll to an
    # extra "arbitrary" grid axis that streams one block's weights at a time.
    for blk in range(num_blocks):
        y = jnp.maximum(conv3x3(act_ref, w1_ref, b1_ref, blk), 0.0)   # conv1+bn1+relu
        tmp_ref[pl.ds(pad, p_pix), :] = y.astype(adt)
        z = conv3x3(tmp_ref, w2_ref, b2_ref, blk)                     # conv2+bn2
        out = jnp.maximum(z + act_ref[pl.ds(pad, p_pix), :].astype(f32), 0.0)
        if blk == num_blocks - 1:
            o_ref[...] = out.astype(o_ref.dtype)      # last block: straight to HBM tile
        else:
            act_ref[pl.ds(pad, p_pix), :] = out.astype(adt)


# ----------------------------------------------------------------------------
# Wrapper
# ----------------------------------------------------------------------------
def _column_masks(height, width, channels, dtype):
    """Pre-broadcast (P, C) left/right edge masks (hoisted out of the kernel)."""
    col = (jnp.arange(height * width, dtype=jnp.int32) % width)[:, None]
    masks = jnp.stack([col != 0, col != width - 1], axis=0)        # (2, P, 1)
    return jnp.broadcast_to(masks, (2, height * width, channels)).astype(dtype)


def _prefers_wide_k():
    """True on chips with a 256-wide MXU (v6e / v7x); False -> per-tap matmuls."""
    try:
        kind = jax.devices()[0].device_kind.lower()
    except Exception:
        return False
    return any(tag in kind for tag in ("v6", "v7", "tpu7", "7x"))


def resnet3x3_forward(x_nchw, packed, *, im2col=None):
    n, c_in, h, w = x_nchw.shape
    w1, b1, w2, b2 = packed["w1"], packed["b1"], packed["w2"], packed["b2"]
    layer_num = b1.shape[0]
    assert layer_num >= 1
    c = w1.shape[-1]                                 # lane-padded channel count
    assert w1.shape == (layer_num, 9 * c, c) and w2.shape == w1.shape
    assert c % LANE == 0 and c >= c_in

    p_pix = h * w
    assert p_pix % 16 == 0, "H*W must be a multiple of 16 (bf16 sublane tiling)"
    pad = -(-(w + 1) // 16) * 16                     # halo rows, multiple of 16
    assert pad >= w + 1, "halo must cover the full +-1 row / +-1 col tap reach"

    if im2col is None:
        im2col = _prefers_wide_k()
    compute_dtype = w1.dtype                         # bf16

    # NCHW -> NHWC -> (pixels, C): channels on the lane axis, pixels on sublanes.
    # TODO(synk): keep NHWC end-to-end in the surrounding model to avoid these
    # wrapper-side layout passes at production feature-map sizes.
    x2d = jnp.transpose(x_nchw, (0, 2, 3, 1)).reshape(n * p_pix, c_in)
    if c != c_in:
        x2d = jnp.pad(x2d, ((0, 0), (0, c - c_in)))  # zero-pad channels to a lane multiple
    x2d = x2d.astype(compute_dtype)
    cmask = _column_masks(h, w, c, compute_dtype)

    nbytes = lambda a: a.size * a.dtype.itemsize
    it_cd = jnp.dtype(compute_dtype).itemsize
    in_tile = p_pix * c * it_cd
    out_tile = p_pix * c * x_nchw.dtype.itemsize
    const_bytes = sum(nbytes(a) for a in (w1, b1, w2, b2, cmask))
    scratch_bytes = 2 * (p_pix + 2 * pad) * c * it_cd
    if im2col:
        scratch_bytes += p_pix * 9 * c * it_cd
    need = (2 * (in_tile + out_tile)      # double-buffered I/O blocks
            + 2 * const_bytes             # grid-invariant operands
            + scratch_bytes
            + (8 << 20))                  # slack for compiler temporaries / spills
    vmem_budget = min(100 << 20, max(16 << 20, need))

    flops = 2 * n * p_pix * c * c * 9 * 2 * layer_num
    cost = pl.CostEstimate(flops=flops, transcendentals=0,
                           bytes_accessed=nbytes(x2d) + n * p_pix * c * 4 + const_bytes)

    kernel = functools.partial(
        _resnet3x3_kernel, height=h, width=w, num_blocks=layer_num, pad=pad,
        use_im2col=im2col)

    # Grid-invariant operands.  (pipeline_mode=pl.Buffered(1) would shave ~1 MiB
    # of double-buffering here; skipped as low value at these sizes.)
    grid_const = lambda shape: pl.BlockSpec(shape, lambda i: (0,) * len(shape))

    scratch = [
        pltpu.VMEM((p_pix + 2 * pad, c), compute_dtype),  # running act (haloed)
        pltpu.VMEM((p_pix + 2 * pad, c), compute_dtype),  # conv1 output (haloed)
    ]
    if im2col:
        scratch.append(pltpu.VMEM((p_pix, 9 * c), compute_dtype))  # im2col buffer

    out2d = pl.pallas_call(
        kernel,
        out_shape=jax.ShapeDtypeStruct((n * p_pix, c), x_nchw.dtype),
        grid_spec=pltpu.PrefetchScalarGridSpec(
            num_scalar_prefetch=0,
            grid=(n,),                                       # one image / step
            in_specs=[
                pl.BlockSpec((p_pix, c), lambda i: (i, 0)),  # image i pixels
                grid_const(cmask.shape),                     # (2, P, C) edge masks
                grid_const(w1.shape),                        # folded conv1 W
                grid_const(b1.shape),                        # folded conv1 b
                grid_const(w2.shape),                        # folded conv2 W
                grid_const(b2.shape),                        # folded conv2 b
            ],
            out_specs=pl.BlockSpec((p_pix, c), lambda i: (i, 0)),
            scratch_shapes=scratch,
        ),
        compiler_params=pltpu.CompilerParams(
            dimension_semantics=("parallel",),   # megacore / v7x TC sharding
            vmem_limit_bytes=int(vmem_budget),
        ),
        cost_estimate=cost,
    )(x2d, cmask, w1, b1, w2, b2)

    if c != c_in:
        out2d = out2d[:, :c_in]
    return jnp.transpose(out2d.reshape(n, h, w, c_in), (0, 3, 1, 2))


# ----------------------------------------------------------------------------
# Parameters: PyTorch-style raw params, folding, and a pure-JAX reference.
# ----------------------------------------------------------------------------
def make_raw_params(key, c, layer_num):
    ks = jax.random.split(key, 12)
    bound = 1.0 / (9 * c) ** 0.5
    uni = lambda k, s, lo, hi: jax.random.uniform(k, s, jnp.float32, lo, hi)
    nrm = lambda k, s, sc: sc * jax.random.normal(k, s, jnp.float32)
    L = layer_num
    return {
        "w1": uni(ks[0], (L, c, c, 3, 3), -bound, bound),   # OIHW, like nn.Conv2d
        "b1": uni(ks[1], (L, c), -bound, bound),
        "w2": uni(ks[2], (L, c, c, 3, 3), -bound, bound),
        "b2": uni(ks[3], (L, c), -bound, bound),
        "g1": uni(ks[4], (L, c), 0.75, 1.25), "be1": nrm(ks[5], (L, c), 0.1),
        "mu1": nrm(ks[6], (L, c), 0.1),       "v1": uni(ks[7], (L, c), 0.75, 1.25),
        "g2": uni(ks[8], (L, c), 0.75, 1.25), "be2": nrm(ks[9], (L, c), 0.1),
        "mu2": nrm(ks[10], (L, c), 0.1),      "v2": uni(ks[11], (L, c), 0.75, 1.25),
    }


def fold_and_pack(raw, compute_dtype=jnp.bfloat16):
    """Fold inference-mode BN + conv bias into the weights; pack for the kernel.

    Output weights: (L, 9*Cp, Cp) with tap k occupying rows [k*Cp, (k+1)*Cp),
    already transposed for `x @ W` and zero-padded to a lane multiple Cp.
    """
    layers, c = raw["b1"].shape
    c_pad = max(LANE, -(-c // LANE) * LANE)

    def fold(w, b, gamma, beta, mean, var):
        scale = gamma * jax.lax.rsqrt(var + EPS)            # per output channel
        w = w * scale[:, :, None, None, None]
        b = (b - mean) * scale + beta
        # (L, O, I, kh, kw) -> (L, kh, kw, I, O) -> (L, 9, C_in, C_out)
        w = jnp.transpose(w, (0, 3, 4, 2, 1)).reshape(layers, 9, c, c)
        if c_pad != c:
            w = jnp.pad(w, ((0, 0), (0, 0), (0, c_pad - c), (0, c_pad - c)))
            b = jnp.pad(b, ((0, 0), (0, c_pad - c)))
        w = w.reshape(layers, 9 * c_pad, c_pad).astype(compute_dtype)
        b = b.reshape(layers, 1, c_pad).astype(jnp.float32)
        return w, b

    w1, b1 = fold(raw["w1"], raw["b1"], raw["g1"], raw["be1"], raw["mu1"], raw["v1"])
    w2, b2 = fold(raw["w2"], raw["b2"], raw["g2"], raw["be2"], raw["mu2"], raw["v2"])
    return {"w1": w1, "b1": b1, "w2": w2, "b2": b2}


def reference(x_nchw, raw):
    """Pure-JAX reference of the PyTorch forward (BN in eval mode)."""
    layers = raw["b1"].shape[0]

    def conv(v, w, b):
        y = jax.lax.conv_general_dilated(
            v, w, window_strides=(1, 1), padding=((1, 1), (1, 1)),
            dimension_numbers=("NCHW", "OIHW", "NCHW"))
        return y + b[None, :, None, None]

    def bn(v, gamma, beta, mean, var):
        scale = gamma * jax.lax.rsqrt(var + EPS)
        return ((v - mean[None, :, None, None]) * scale[None, :, None, None]
                + beta[None, :, None, None])

    x = x_nchw
    for l in range(layers):
        y = jax.nn.relu(bn(conv(x, raw["w1"][l], raw["b1"][l]),
                           raw["g1"][l], raw["be1"][l], raw["mu1"][l], raw["v1"][l]))
        z = bn(conv(y, raw["w2"][l], raw["b2"][l]),
               raw["g2"][l], raw["be2"][l], raw["mu2"][l], raw["v2"][l])
        x = jax.nn.relu(z + x)
    return x


# ----------------------------------------------------------------------------
if __name__ == "__main__":
    key = jax.random.PRNGKey(0)
    kx, kp = jax.random.split(key)

    # Resnet3x3(args={'in_ch': 128, 'layer_num': 2}) on a (2, 128, 16, 16) input.
    N, C, H, W = 2, 128, 16, 16
    LAYER_NUM = 2

    x = jax.random.normal(kx, (N, C, H, W), jnp.float32)
    raw = make_raw_params(kp, C, LAYER_NUM)
    packed = fold_and_pack(raw, compute_dtype=jnp.bfloat16)

    fwd = jax.jit(resnet3x3_forward)
    out = jax.block_until_ready(fwd(x, packed))

    ref = reference(x, raw)
    assert out.shape == (N, C, H, W)
    # bf16 weights + bf16 activation scratches -> loosened tolerance.
    err = jnp.max(jnp.abs(out - ref))
    assert jnp.allclose(out, ref, atol=5e-2, rtol=5e-2), f"mismatch, max|err|={err}"
    print("KERNEL_OK")
</pallas_src>

<mosaic_0001>
module attributes {stable_mosaic.version = 11 : i64} {
  func.func @_resnet3x3_kernel(%arg0: i32, %arg1: memref<256x128xbf16, #tpu.memory_space<vmem>>, %arg2: memref<2x256x128xbf16, #tpu.memory_space<vmem>>, %arg3: memref<2x1152x128xbf16, #tpu.memory_space<vmem>>, %arg4: memref<2x1x128xf32, #tpu.memory_space<vmem>>, %arg5: memref<2x1152x128xbf16, #tpu.memory_space<vmem>>, %arg6: memref<2x1x128xf32, #tpu.memory_space<vmem>>, %arg7: memref<256x128xf32, #tpu.memory_space<vmem>>, %arg8: memref<320x128xbf16, #tpu.memory_space<vmem>>, %arg9: memref<320x128xbf16, #tpu.memory_space<vmem>>) attributes {dimension_semantics = [#tpu.dimension_semantics<parallel>], iteration_bounds = array<i64: 2>, scalar_prefetch = 0 : i64, scratch_operands = 2 : i64, tpu.core_type = #tpu.core_type<tc>, window_params = [{transform_indices = @transform_0, window_bounds = array<i64: 256, 128>}, {pipeline_mode = #tpu.pipeline_mode<synchronous>, transform_indices = @transform_1, window_bounds = array<i64: 2, 256, 128>}, {pipeline_mode = #tpu.pipeline_mode<synchronous>, transform_indices = @transform_2, window_bounds = array<i64: 2, 1152, 128>}, {pipeline_mode = #tpu.pipeline_mode<synchronous>, transform_indices = @transform_3, window_bounds = array<i64: 2, 1, 128>}, {pipeline_mode = #tpu.pipeline_mode<synchronous>, transform_indices = @transform_4, window_bounds = array<i64: 2, 1152, 128>}, {pipeline_mode = #tpu.pipeline_mode<synchronous>, transform_indices = @transform_5, window_bounds = array<i64: 2, 1, 128>}, {transform_indices = @transform_6, window_bounds = array<i64: 256, 128>}]} {
    %cst = arith.constant 0.000000e+00 : bf16
    %0 = vector.broadcast %cst : bf16 to vector<32x128xbf16>
    %c0 = arith.constant 0 : index
    %c0_0 = arith.constant 0 : index
    %1 = vector.load %arg8[%c0, %c0_0] : memref<320x128xbf16, #tpu.memory_space<vmem>>, vector<32x128xbf16>
    tpu.vector_store %arg8[%c0, %c0_0], %0 {strides = array<i32>} : memref<320x128xbf16, #tpu.memory_space<vmem>>, vector<32x128xbf16>,
    %c288 = arith.constant 288 : index
    %c0_1 = arith.constant 0 : index
    %2 = vector.load %arg8[%c288, %c0_1] : memref<320x128xbf16, #tpu.memory_space<vmem>>, vector<32x128xbf16>
    tpu.vector_store %arg8[%c288, %c0_1], %0 {strides = array<i32>} : memref<320x128xbf16, #tpu.memory_space<vmem>>, vector<32x128xbf16>,
    %c0_2 = arith.constant 0 : index
    %c0_3 = arith.constant 0 : index
    %3 = vector.load %arg9[%c0_2, %c0_3] : memref<320x128xbf16, #tpu.memory_space<vmem>>, vector<32x128xbf16>
    tpu.vector_store %arg9[%c0_2, %c0_3], %0 {strides = array<i32>} : memref<320x128xbf16, #tpu.memory_space<vmem>>, vector<32x128xbf16>,
    %c288_4 = arith.constant 288 : index
    %c0_5 = arith.constant 0 : index
    %4 = vector.load %arg9[%c288_4, %c0_5] : memref<320x128xbf16, #tpu.memory_space<vmem>>, vector<32x128xbf16>
    tpu.vector_store %arg9[%c288_4, %c0_5], %0 {strides = array<i32>} : memref<320x128xbf16, #tpu.memory_space<vmem>>, vector<32x128xbf16>,
    %c0_6 = arith.constant 0 : index
    %c0_7 = arith.constant 0 : index
    %5 = vector.load %arg1[%c0_6, %c0_7] : memref<256x128xbf16, #tpu.memory_space<vmem>>, vector<256x128xbf16>
    %c32 = arith.constant 32 : index
    %c0_8 = arith.constant 0 : index
    %6 = vector.load %arg8[%c32, %c0_8] : memref<320x128xbf16, #tpu.memory_space<vmem>>, vector<256x128xbf16>
    tpu.vector_store %arg8[%c32, %c0_8], %5 {strides = array<i32>} : memref<320x128xbf16, #tpu.memory_space<vmem>>, vector<256x128xbf16>,
    %c0_9 = arith.constant 0 : index
    %c0_10 = arith.constant 0 : index
    %c0_11 = arith.constant 0 : index
    %7 = vector.load %arg4[%c0_9, %c0_10, %c0_11] : memref<2x1x128xf32, #tpu.memory_space<vmem>>, vector<1x1x128xf32>
    %8 = vector.shape_cast %7 : vector<1x1x128xf32> to vector<1x128xf32>
    %9 = vector.shape_cast %8 : vector<1x128xf32> to vector<1x128xf32>
    %10 = vector.broadcast %9 : vector<1x128xf32> to vector<256x128xf32>
    %c15 = arith.constant 15 : index
    %c0_12 = arith.constant 0 : index
    %11 = vector.load %arg8[%c15, %c0_12] : memref<320x128xbf16, #tpu.memory_space<vmem>>, vector<256x128xbf16>
    %c0_13 = arith.constant 0 : index
    %c0_14 = arith.constant 0 : index
    %c0_15 = arith.constant 0 : index
    %12 = vector.load %arg2[%c0_13, %c0_14, %c0_15] : memref<2x256x128xbf16, #tpu.memory_space<vmem>>, vector<1x256x128xbf16>
    %13 = vector.shape_cast %12 : vector<1x256x128xbf16> to vector<256x128xbf16>
    %14 = arith.mulf %11, %13 : vector<256x128xbf16>
    %c0_16 = arith.constant 0 : index
    %c0_17 = arith.constant 0 : index
    %c0_18 = arith.constant 0 : index
    %15 = vector.load %arg3[%c0_16, %c0_17, %c0_18] : memref<2x1152x128xbf16, #tpu.memory_space<vmem>>, vector<1x128x128xbf16>
    %16 = vector.shape_cast %15 : vector<1x128x128xbf16> to vector<128x128xbf16>
    %cst_19 = arith.constant dense<0.000000e+00> : vector<256x128xf32>
    %17 = tpu.matmul %14, %16, %cst_19 {dimension_numbers = #tpu.dot_dimension_numbers<[1], [0], [0], [1], [0, 0, 1, 1], [], []>} : vector<256x128xbf16>, vector<128x128xbf16>, vector<256x128xf32> -> vector<256x128xf32>
    %18 = arith.addf %10, %17 : vector<256x128xf32>
    %c16 = arith.constant 16 : index
    %c0_20 = arith.constant 0 : index
    %19 = vector.load %arg8[%c16, %c0_20] : memref<320x128xbf16, #tpu.memory_space<vmem>>, vector<256x128xbf16>
    %c0_21 = arith.constant 0 : index
    %c128 = arith.constant 128 : index
    %c0_22 = arith.constant 0 : index
    %20 = vector.load %arg3[%c0_21, %c128, %c0_22] : memref<2x1152x128xbf16, #tpu.memory_space<vmem>>, vector<1x128x128xbf16>
    %21 = vector.shape_cast %20 : vector<1x128x128xbf16> to vector<128x128xbf16>
    %cst_23 = arith.constant dense<0.000000e+00> : vector<256x128xf32>
    %22 = tpu.matmul %19, %21, %cst_23 {dimension_numbers = #tpu.dot_dimension_numbers<[1], [0], [0], [1], [0, 0, 1, 1], [], []>} : vector<256x128xbf16>, vector<128x128xbf16>, vector<256x128xf32> -> vector<256x128xf32>
    %23 = arith.addf %18, %22 : vector<256x128xf32>
    %c17 = arith.constant 17 : index
    %c0_24 = arith.constant 0 : index
    %24 = vector.load %arg8[%c17, %c0_24] : memref<320x128xbf16, #tpu.memory_space<vmem>>, vector<256x128xbf16>
    %c1 = arith.constant 1 : index
    %c0_25 = arith.constant 0 : index
    %c0_26 = arith.constant 0 : index
    %25 = vector.load %arg2[%c1, %c0_25, %c0_26] : memref<2x256x128xbf16, #tpu.memory_space<vmem>>, vector<1x256x128xbf16>
    %26 = vector.shape_cast %25 : vector<1x256x128xbf16> to vector<256x128xbf16>
    %27 = arith.mulf %24, %26 : vector<256x128xbf16>
    %c0_27 = arith.constant 0 : index
    %c256 = arith.constant 256 : index
    %c0_28 = arith.constant 0 : index
    %28 = vector.load %arg3[%c0_27, %c256, %c0_28] : memref<2x1152x128xbf16, #tpu.memory_space<vmem>>, vector<1x128x128xbf16>
    %29 = vector.shape_cast %28 : vector<1x128x128xbf16> to vector<128x128xbf16>
    %cst_29 = arith.constant dense<0.000000e+00> : vector<256x128xf32>
    %30 = tpu.matmul %27, %29, %cst_29 {dimension_numbers = #tpu.dot_dimension_numbers<[1], [0], [0], [1], [0, 0, 1, 1], [], []>} : vector<256x128xbf16>, vector<128x128xbf16>, vector<256x128xf32> -> vector<256x128xf32>
    %31 = arith.addf %23, %30 : vector<256x128xf32>
    %c31 = arith.constant 31 : index
    %c0_30 = arith.constant 0 : index
    %32 = vector.load %arg8[%c31, %c0_30] : memref<320x128xbf16, #tpu.memory_space<vmem>>, vector<256x128xbf16>
    %c0_31 = arith.constant 0 : index
    %c0_32 = arith.constant 0 : index
    %c0_33 = arith.constant 0 : index
    %33 = vector.load %arg2[%c0_31, %c0_32, %c0_33] : memref<2x256x128xbf16, #tpu.memory_space<vmem>>, vector<1x256x128xbf16>
    %34 = vector.shape_cast %33 : vector<1x256x128xbf16> to vector<256x128xbf16>
    %35 = arith.mulf %32, %34 : vector<256x128xbf16>
    %c0_34 = arith.constant 0 : index
    %c384 = arith.constant 384 : index
    %c0_35 = arith.constant 0 : index
    %36 = vector.load %arg3[%c0_34, %c384, %c0_35] : memref<2x1152x128xbf16, #tpu.memory_space<vmem>>, vector<1x128x128xbf16>
    %37 = vector.shape_cast %36 : vector<1x128x128xbf16> to vector<128x128xbf16>
    %cst_36 = arith.constant dense<0.000000e+00> : vector<256x128xf32>
    %38 = tpu.matmul %35, %37, %cst_36 {dimension_numbers = #tpu.dot_dimension_numbers<[1], [0], [0], [1], [0, 0, 1, 1], [], []>} : vector<256x128xbf16>, vector<128x128xbf16>, vector<256x128xf32> -> vector<256x128xf32>
    %39 = arith.addf %31, %38 : vector<256x128xf32>
    %c32_37 = arith.constant 32 : index
    %c0_38 = arith.constant 0 : index
    %40 = vector.load %arg8[%c32_37, %c0_38] : memref<320x128xbf16, #tpu.memory_space<vmem>>, vector<256x128xbf16>
    %c0_39 = arith.constant 0 : index
    %c512 = arith.constant 512 : index
    %c0_40 = arith.constant 0 : index
    %41 = vector.load %arg3[%c0_39, %c512, %c0_40] : memref<2x1152x128xbf16, #tpu.memory_space<vmem>>, vector<1x128x128xbf16>
    %42 = vector.shape_cast %41 : vector<1x128x128xbf16> to vector<128x128xbf16>
    %cst_41 = arith.constant dense<0.000000e+00> : vector<256x128xf32>
    %43 = tpu.matmul %40, %42, %cst_41 {dimension_numbers = #tpu.dot_dimension_numbers<[1], [0], [0], [1], [0, 0, 1, 1], [], []>} : vector<256x128xbf16>, vector<128x128xbf16>, vector<256x128xf32> -> vector<256x128xf32>
    %44 = arith.addf %39, %43 : vector<256x128xf32>
    %c33 = arith.constant 33 : index
    %c0_42 = arith.constant 0 : index
    %45 = vector.load %arg8[%c33, %c0_42] : memref<320x128xbf16, #tpu.memory_space<vmem>>, vector<256x128xbf16>
    %c1_43 = arith.constant 1 : index
    %c0_44 = arith.constant 0 : index
    %c0_45 = arith.constant 0 : index
    %46 = vector.load %arg2[%c1_43, %c0_44, %c0_45] : memref<2x256x128xbf16, #tpu.memory_space<vmem>>, vector<1x256x128xbf16>
    %47 = vector.shape_cast %46 : vector<1x256x128xbf16> to vector<256x128xbf16>
    %48 = arith.mulf %45, %47 : vector<256x128xbf16>
    %c0_46 = arith.constant 0 : index
    %c640 = arith.constant 640 : index
    %c0_47 = arith.constant 0 : index
    %49 = vector.load %arg3[%c0_46, %c640, %c0_47] : memref<2x1152x128xbf16, #tpu.memory_space<vmem>>, vector<1x128x128xbf16>
    %50 = vector.shape_cast %49 : vector<1x128x128xbf16> to vector<128x128xbf16>
    %cst_48 = arith.constant dense<0.000000e+00> : vector<256x128xf32>
    %51 = tpu.matmul %48, %50, %cst_48 {dimension_numbers = #tpu.dot_dimension_numbers<[1], [0], [0], [1], [0, 0, 1, 1], [], []>} : vector<256x128xbf16>, vector<128x128xbf16>, vector<256x128xf32> -> vector<256x128xf32>
    %52 = arith.addf %44, %51 : vector<256x128xf32>
    %c47 = arith.constant 47 : index
    %c0_49 = arith.constant 0 : index
    %53 = vector.load %arg8[%c47, %c0_49] : memref<320x128xbf16, #tpu.memory_space<vmem>>, vector<256x128xbf16>
    %c0_50 = arith.constant 0 : index
    %c0_51 = arith.constant 0 : index
    %c0_52 = arith.constant 0 : index
    %54 = vector.load %arg2[%c0_50, %c0_51, %c0_52] : memref<2x256x128xbf16, #tpu.memory_space<vmem>>, vector<1x256x128xbf16>
    %55 = vector.shape_cast %54 : vector<1x256x128xbf16> to vector<256x128xbf16>
    %56 = arith.mulf %53, %55 : vector<256x128xbf16>
    %c0_53 = arith.constant 0 : index
    %c768 = arith.constant 768 : index
    %c0_54 = arith.constant 0 : index
    %57 = vector.load %arg3[%c0_53, %c768, %c0_54] : memref<2x1152x128xbf16, #tpu.memory_space<vmem>>, vector<1x128x128xbf16>
    %58 = vector.shape_cast %57 : vector<1x128x128xbf16> to vector<128x128xbf16>
    %cst_55 = arith.constant dense<0.000000e+00> : vector<256x128xf32>
    %59 = tpu.matmul %56, %58, %cst_55 {dimension_numbers = #tpu.dot_dimension_numbers<[1], [0], [0], [1], [0, 0, 1, 1], [], []>} : vector<256x128xbf16>, vector<128x128xbf16>, vector<256x128xf32> -> vector<256x128xf32>
    %60 = arith.addf %52, %59 : vector<256x128xf32>
    %c48 = arith.constant 48 : index
    %c0_56 = arith.constant 0 : index
    %61 = vector.load %arg8[%c48, %c0_56] : memref<320x128xbf16, #tpu.memory_space<vmem>>, vector<256x128xbf16>
    %c0_57 = arith.constant 0 : index
    %c896 = arith.constant 896 : index
    %c0_58 = arith.constant 0 : index
    %62 = vector.load %arg3[%c0_57, %c896, %c0_58] : memref<2x1152x128xbf16, #tpu.memory_space<vmem>>, vector<1x128x128xbf16>
    %63 = vector.shape_cast %62 : vector<1x128x128xbf16> to vector<128x128xbf16>
    %cst_59 = arith.constant dense<0.000000e+00> : vector<256x128xf32>
    %64 = tpu.matmul %61, %63, %cst_59 {dimension_numbers = #tpu.dot_dimension_numbers<[1], [0], [0], [1], [0, 0, 1, 1], [], []>} : vector<256x128xbf16>, vector<128x128xbf16>, vector<256x128xf32> -> vector<256x128xf32>
    %65 = arith.addf %60, %64 : vector<256x128xf32>
    %c49 = arith.constant 49 : index
    %c0_60 = arith.constant 0 : index
    %66 = vector.load %arg8[%c49, %c0_60] : memref<320x128xbf16, #tpu.memory_space<vmem>>, vector<256x128xbf16>
    %c1_61 = arith.constant 1 : index
    %c0_62 = arith.constant 0 : index
    %c0_63 = arith.constant 0 : index
    %67 = vector.load %arg2[%c1_61, %c0_62, %c0_63] : memref<2x256x128xbf16, #tpu.memory_space<vmem>>, vector<1x256x128xbf16>
    %68 = vector.shape_cast %67 : vector<1x256x128xbf16> to vector<256x128xbf16>
    %69 = arith.mulf %66, %68 : vector<256x128xbf16>
    %c0_64 = arith.constant 0 : index
    %c1024 = arith.constant 1024 : index
    %c0_65 = arith.constant 0 : index
    %70 = vector.load %arg3[%c0_64, %c1024, %c0_65] : memref<2x1152x128xbf16, #tpu.memory_space<vmem>>, vector<1x128x128xbf16>
    %71 = vector.shape_cast %70 : vector<1x128x128xbf16> to vector<128x128xbf16>
    %cst_66 = arith.constant dense<0.000000e+00> : vector<256x128xf32>
    %72 = tpu.matmul %69, %71, %cst_66 {dimension_numbers = #tpu.dot_dimension_numbers<[1], [0], [0], [1], [0, 0, 1, 1], [], []>} : vector<256x128xbf16>, vector<128x128xbf16>, vector<256x128xf32> -> vector<256x128xf32>
    %73 = arith.addf %65, %72 : vector<256x128xf32>
    %cst_67 = arith.constant 0.000000e+00 : f32
    %74 = vector.broadcast %cst_67 : f32 to vector<256x128xf32>
    %75 = arith.maximumf %73, %74 : vector<256x128xf32>
    %76 = arith.truncf %75 : vector<256x128xf32> to vector<256x128xbf16>
    %c32_68 = arith.constant 32 : index
    %c0_69 = arith.constant 0 : index
    %77 = vector.load %arg9[%c32_68, %c0_69] : memref<320x128xbf16, #tpu.memory_space<vmem>>, vector<256x128xbf16>
    tpu.vector_store %arg9[%c32_68, %c0_69], %76 {strides = array<i32>} : memref<320x128xbf16, #tpu.memory_space<vmem>>, vector<256x128xbf16>,
    %c0_70 = arith.constant 0 : index
    %c0_71 = arith.constant 0 : index
    %c0_72 = arith.constant 0 : index
    %78 = vector.load %arg6[%c0_70, %c0_71, %c0_72] : memref<2x1x128xf32, #tpu.memory_space<vmem>>, vector<1x1x128xf32>
    %79 = vector.shape_cast %78 : vector<1x1x128xf32> to vector<1x128xf32>
    %80 = vector.shape_cast %79 : vector<1x128xf32> to vector<1x128xf32>
    %81 = vector.broadcast %80 : vector<1x128xf32> to vector<256x128xf32>
    %c15_73 = arith.constant 15 : index
    %c0_74 = arith.constant 0 : index
    %82 = vector.load %arg9[%c15_73, %c0_74] : memref<320x128xbf16, #tpu.memory_space<vmem>>, vector<256x128xbf16>
    %c0_75 = arith.constant 0 : index
    %c0_76 = arith.constant 0 : index
    %c0_77 = arith.constant 0 : index
    %83 = vector.load %arg2[%c0_75, %c0_76, %c0_77] : memref<2x256x128xbf16, #tpu.memory_space<vmem>>, vector<1x256x128xbf16>
    %84 = vector.shape_cast %83 : vector<1x256x128xbf16> to vector<256x128xbf16>
    %85 = arith.mulf %82, %84 : vector<256x128xbf16>
    %c0_78 = arith.constant 0 : index
    %c0_79 = arith.constant 0 : index
    %c0_80 = arith.constant 0 : index
    %86 = vector.load %arg5[%c0_78, %c0_79, %c0_80] : memref<2x1152x128xbf16, #tpu.memory_space<vmem>>, vector<1x128x128xbf16>
    %87 = vector.shape_cast %86 : vector<1x128x128xbf16> to vector<128x128xbf16>
    %cst_81 = arith.constant dense<0.000000e+00> : vector<256x128xf32>
    %88 = tpu.matmul %85, %87, %cst_81 {dimension_numbers = #tpu.dot_dimension_numbers<[1], [0], [0], [1], [0, 0, 1, 1], [], []>} : vector<256x128xbf16>, vector<128x128xbf16>, vector<256x128xf32> -> vector<256x128xf32>
    %89 = arith.addf %81, %88 : vector<256x128xf32>
    %c16_82 = arith.constant 16 : index
    %c0_83 = arith.constant 0 : index
    %90 = vector.load %arg9[%c16_82, %c0_83] : memref<320x128xbf16, #tpu.memory_space<vmem>>, vector<256x128xbf16>
    %c0_84 = arith.constant 0 : index
    %c128_85 = arith.constant 128 : index
    %c0_86 = arith.constant 0 : index
    %91 = vector.load %arg5[%c0_84, %c128_85, %c0_86] : memref<2x1152x128xbf16, #tpu.memory_space<vmem>>, vector<1x128x128xbf16>
    %92 = vector.shape_cast %91 : vector<1x128x128xbf16> to vector<128x128xbf16>
    %cst_87 = arith.constant dense<0.000000e+00> : vector<256x128xf32>
    %93 = tpu.matmul %90, %92, %cst_87 {dimension_numbers = #tpu.dot_dimension_numbers<[1], [0], [0], [1], [0, 0, 1, 1], [], []>} : vector<256x128xbf16>, vector<128x128xbf16>, vector<256x128xf32> -> vector<256x128xf32>
    %94 = arith.addf %89, %93 : vector<256x128xf32>
    %c17_88 = arith.constant 17 : index
    %c0_89 = arith.constant 0 : index
    %95 = vector.load %arg9[%c17_88, %c0_89] : memref<320x128xbf16, #tpu.memory_space<vmem>>, vector<256x128xbf16>
    %c1_90 = arith.constant 1 : index
    %c0_91 = arith.constant 0 : index
    %c0_92 = arith.constant 0 : index
    %96 = vector.load %arg2[%c1_90, %c0_91, %c0_92] : memref<2x256x128xbf16, #tpu.memory_space<vmem>>, vector<1x256x128xbf16>
    %97 = vector.shape_cast %96 : vector<1x256x128xbf16> to vector<256x128xbf16>
    %98 = arith.mulf %95, %97 : vector<256x128xbf16>
    %c0_93 = arith.constant 0 : index
    %c256_94 = arith.constant 256 : index
    %c0_95 = arith.constant 0 : index
    %99 = vector.load %arg5[%c0_93, %c256_94, %c0_95] : memref<2x1152x128xbf16, #tpu.memory_space<vmem>>, vector<1x128x128xbf16>
    %100 = vector.shape_cast %99 : vector<1x128x128xbf16> to vector<128x128xbf16>
    %cst_96 = arith.constant dense<0.000000e+00> : vector<256x128xf32>
    %101 = tpu.matmul %98, %100, %cst_96 {dimension_numbers = #tpu.dot_dimension_numbers<[1], [0], [0], [1], [0, 0, 1, 1], [], []>} : vector<256x128xbf16>, vector<128x128xbf16>, vector<256x128xf32> -> vector<256x128xf32>
    %102 = arith.addf %94, %101 : vector<256x128xf32>
    %c31_97 = arith.constant 31 : index
    %c0_98 = arith.constant 0 : index
    %103 = vector.load %arg9[%c31_97, %c0_98] : memref<320x128xbf16, #tpu.memory_space<vmem>>, vector<256x128xbf16>
    %c0_99 = arith.constant 0 : index
    %c0_100 = arith.constant 0 : index
    %c0_101 = arith.constant 0 : index
    %104 = vector.load %arg2[%c0_99, %c0_100, %c0_101] : memref<2x256x128xbf16, #tpu.memory_space<vmem>>, vector<1x256x128xbf16>
    %105 = vector.shape_cast %104 : vector<1x256x128xbf16> to vector<256x128xbf16>
    %106 = arith.mulf %103, %105 : vector<256x128xbf16>
    %c0_102 = arith.constant 0 : index
    %c384_103 = arith.constant 384 : index
    %c0_104 = arith.constant 0 : index
    %107 = vector.load %arg5[%c0_102, %c384_103, %c0_104] : memref<2x1152x128xbf16, #tpu.memory_space<vmem>>, vector<1x128x128xbf16>
    %108 = vector.shape_cast %107 : vector<1x128x128xbf16> to vector<128x128xbf16>
    %cst_105 = arith.constant dense<0.000000e+00> : vector<256x128xf32>
    %109 = tpu.matmul %106, %108, %cst_105 {dimension_numbers = #tpu.dot_dimension_numbers<[1], [0], [0], [1], [0, 0, 1, 1], [], []>} : vector<256x128xbf16>, vector<128x128xbf16>, vector<256x128xf32> -> vector<256x128xf32>
    %110 = arith.addf %102, %109 : vector<256x128xf32>
    %c32_106 = arith.constant 32 : index
    %c0_107 = arith.constant 0 : index
    %111 = vector.load %arg9[%c32_106, %c0_107] : memref<320x128xbf16, #tpu.memory_space<vmem>>, vector<256x128xbf16>
    %c0_108 = arith.constant 0 : index
    %c512_109 = arith.constant 512 : index
    %c0_110 = arith.constant 0 : index
    %112 = vector.load %arg5[%c0_108, %c512_109, %c0_110] : memref<2x1152x128xbf16, #tpu.memory_space<vmem>>, vector<1x128x128xbf16>
    %113 = vector.shape_cast %112 : vector<1x128x128xbf16> to vector<128x128xbf16>
    %cst_111 = arith.constant dense<0.000000e+00> : vector<256x128xf32>
    %114 = tpu.matmul %111, %113, %cst_111 {dimension_numbers = #tpu.dot_dimension_numbers<[1], [0], [0], [1], [0, 0, 1, 1], [], []>} : vector<256x128xbf16>, vector<128x128xbf16>, vector<256x128xf32> -> vector<256x128xf32>
    %115 = arith.addf %110, %114 : vector<256x128xf32>
    %c33_112 = arith.constant 33 : index
    %c0_113 = arith.constant 0 : index
    %116 = vector.load %arg9[%c33_112, %c0_113] : memref<320x128xbf16, #tpu.memory_space<vmem>>, vector<256x128xbf16>
    %c1_114 = arith.constant 1 : index
    %c0_115 = arith.constant 0 : index
    %c0_116 = arith.constant 0 : index
    %117 = vector.load %arg2[%c1_114, %c0_115, %c0_116] : memref<2x256x128xbf16, #tpu.memory_space<vmem>>, vector<1x256x128xbf16>
    %118 = vector.shape_cast %117 : vector<1x256x128xbf16> to vector<256x128xbf16>
    %119 = arith.mulf %116, %118 : vector<256x128xbf16>
    %c0_117 = arith.constant 0 : index
    %c640_118 = arith.constant 640 : index
    %c0_119 = arith.constant 0 : index
    %120 = vector.load %arg5[%c0_117, %c640_118, %c0_119] : memref<2x1152x128xbf16, #tpu.memory_space<vmem>>, vector<1x128x128xbf16>
    %121 = vector.shape_cast %120 : vector<1x128x128xbf16> to vector<128x128xbf16>
    %cst_120 = arith.constant dense<0.000000e+00> : vector<256x128xf32>
    %122 = tpu.matmul %119, %121, %cst_120 {dimension_numbers = #tpu.dot_dimension_numbers<[1], [0], [0], [1], [0, 0, 1, 1], [], []>} : vector<256x128xbf16>, vector<128x128xbf16>, vector<256x128xf32> -> vector<256x128xf32>
    %123 = arith.addf %115, %122 : vector<256x128xf32>
    %c47_121 = arith.constant 47 : index
    %c0_122 = arith.constant 0 : index
    %124 = vector.load %arg9[%c47_121, %c0_122] : memref<320x128xbf16, #tpu.memory_space<vmem>>, vector<256x128xbf16>
    %c0_123 = arith.constant 0 : index
    %c0_124 = arith.constant 0 : index
    %c0_125 = arith.constant 0 : index
    %125 = vector.load %arg2[%c0_123, %c0_124, %c0_125] : memref<2x256x128xbf16, #tpu.memory_space<vmem>>, vector<1x256x128xbf16>
    %126 = vector.shape_cast %125 : vector<1x256x128xbf16> to vector<256x128xbf16>
    %127 = arith.mulf %124, %126 : vector<256x128xbf16>
    %c0_126 = arith.constant 0 : index
    %c768_127 = arith.constant 768 : index
    %c0_128 = arith.constant 0 : index
    %128 = vector.load %arg5[%c0_126, %c768_127, %c0_128] : memref<2x1152x128xbf16, #tpu.memory_space<vmem>>, vector<1x128x128xbf16>
    %129 = vector.shape_cast %128 : vector<1x128x128xbf16> to vector<128x128xbf16>
    %cst_129 = arith.constant dense<0.000000e+00> : vector<256x128xf32>
    %130 = tpu.matmul %127, %129, %cst_129 {dimension_numbers = #tpu.dot_dimension_numbers<[1], [0], [0], [1], [0, 0, 1, 1], [], []>} : vector<256x128xbf16>, vector<128x128xbf16>, vector<256x128xf32> -> vector<256x128xf32>
    %131 = arith.addf %123, %130 : vector<256x128xf32>
    %c48_130 = arith.constant 48 : index
    %c0_131 = arith.constant 0 : index
    %132 = vector.load %arg9[%c48_130, %c0_131] : memref<320x128xbf16, #tpu.memory_space<vmem>>, vector<256x128xbf16>
    %c0_132 = arith.constant 0 : index
    %c896_133 = arith.constant 896 : index
    %c0_134 = arith.constant 0 : index
    %133 = vector.load %arg5[%c0_132, %c896_133, %c0_134] : memref<2x1152x128xbf16, #tpu.memory_space<vmem>>, vector<1x128x128xbf16>
    %134 = vector.shape_cast %133 : vector<1x128x128xbf16> to vector<128x128xbf16>
    %cst_135 = arith.constant dense<0.000000e+00> : vector<256x128xf32>
    %135 = tpu.matmul %132, %134, %cst_135 {dimension_numbers = #tpu.dot_dimension_numbers<[1], [0], [0], [1], [0, 0, 1, 1], [], []>} : vector<256x128xbf16>, vector<128x128xbf16>, vector<256x128xf32> -> vector<256x128xf32>
    %136 = arith.addf %131, %135 : vector<256x128xf32>
    %c49_136 = arith.constant 49 : index
    %c0_137 = arith.constant 0 : index
    %137 = vector.load %arg9[%c49_136, %c0_137] : memref<320x128xbf16, #tpu.memory_space<vmem>>, vector<256x128xbf16>
    %c1_138 = arith.constant 1 : index
    %c0_139 = arith.constant 0 : index
    %c0_140 = arith.constant 0 : index
    %138 = vector.load %arg2[%c1_138, %c0_139, %c0_140] : memref<2x256x128xbf16, #tpu.memory_space<vmem>>, vector<1x256x128xbf16>
    %139 = vector.shape_cast %138 : vector<1x256x128xbf16> to vector<256x128xbf16>
    %140 = arith.mulf %137, %139 : vector<256x128xbf16>
    %c0_141 = arith.constant 0 : index
    %c1024_142 = arith.constant 1024 : index
    %c0_143 = arith.constant 0 : index
    %141 = vector.load %arg5[%c0_141, %c1024_142, %c0_143] : memref<2x1152x128xbf16, #tpu.memory_space<vmem>>, vector<1x128x128xbf16>
    %142 = vector.shape_cast %141 : vector<1x128x128xbf16> to vector<128x128xbf16>
    %cst_144 = arith.constant dense<0.000000e+00> : vector<256x128xf32>
    %143 = tpu.matmul %140, %142, %cst_144 {dimension_numbers = #tpu.dot_dimension_numbers<[1], [0], [0], [1], [0, 0, 1, 1], [], []>} : vector<256x128xbf16>, vector<128x128xbf16>, vector<256x128xf32> -> vector<256x128xf32>
    %144 = arith.addf %136, %143 : vector<256x128xf32>
    %c32_145 = arith.constant 32 : index
    %c0_146 = arith.constant 0 : index
    %145 = vector.load %arg8[%c32_145, %c0_146] : memref<320x128xbf16, #tpu.memory_space<vmem>>, vector<256x128xbf16>
    %146 = arith.extf %145 : vector<256x128xbf16> to vector<256x128xf32>
    %147 = arith.addf %144, %146 : vector<256x128xf32>
    %cst_147 = arith.constant 0.000000e+00 : f32
    %148 = vector.broadcast %cst_147 : f32 to vector<256x128xf32>
    %149 = arith.maximumf %147, %148 : vector<256x128xf32>
    %150 = arith.truncf %149 : vector<256x128xf32> to vector<256x128xbf16>
    %c32_148 = arith.constant 32 : index
    %c0_149 = arith.constant 0 : index
    %151 = vector.load %arg8[%c32_148, %c0_149] : memref<320x128xbf16, #tpu.memory_space<vmem>>, vector<256x128xbf16>
    tpu.vector_store %arg8[%c32_148, %c0_149], %150 {strides = array<i32>} : memref<320x128xbf16, #tpu.memory_space<vmem>>, vector<256x128xbf16>,
    %c1_150 = arith.constant 1 : index
    %c0_151 = arith.constant 0 : index
    %c0_152 = arith.constant 0 : index
    %152 = vector.load %arg4[%c1_150, %c0_151, %c0_152] : memref<2x1x128xf32, #tpu.memory_space<vmem>>, vector<1x1x128xf32>
    %153 = vector.shape_cast %152 : vector<1x1x128xf32> to vector<1x128xf32>
    %154 = vector.shape_cast %153 : vector<1x128xf32> to vector<1x128xf32>
    %155 = vector.broadcast %154 : vector<1x128xf32> to vector<256x128xf32>
    %c15_153 = arith.constant 15 : index
    %c0_154 = arith.constant 0 : index
    %156 = vector.load %arg8[%c15_153, %c0_154] : memref<320x128xbf16, #tpu.memory_space<vmem>>, vector<256x128xbf16>
    %c0_155 = arith.constant 0 : index
    %c0_156 = arith.constant 0 : index
    %c0_157 = arith.constant 0 : index
    %157 = vector.load %arg2[%c0_155, %c0_156, %c0_157] : memref<2x256x128xbf16, #tpu.memory_space<vmem>>, vector<1x256x128xbf16>
    %158 = vector.shape_cast %157 : vector<1x256x128xbf16> to vector<256x128xbf16>
    %159 = arith.mulf %156, %158 : vector<256x128xbf16>
    %c1_158 = arith.constant 1 : index
    %c0_159 = arith.constant 0 : index
    %c0_160 = arith.constant 0 : index
    %160 = vector.load %arg3[%c1_158, %c0_159, %c0_160] : memref<2x1152x128xbf16, #tpu.memory_space<vmem>>, vector<1x128x128xbf16>
    %161 = vector.shape_cast %160 : vector<1x128x128xbf16> to vector<128x128xbf16>
    %cst_161 = arith.constant dense<0.000000e+00> : vector<256x128xf32>
    %162 = tpu.matmul %159, %161, %cst_161 {dimension_numbers = #tpu.dot_dimension_numbers<[1], [0], [0], [1], [0, 0, 1, 1], [], []>} : vector<256x128xbf16>, vector<128x128xbf16>, vector<256x128xf32> -> vector<256x128xf32>
    %163 = arith.addf %155, %162 : vector<256x128xf32>
    %c16_162 = arith.constant 16 : index
    %c0_163 = arith.constant 0 : index
    %164 = vector.load %arg8[%c16_162, %c0_163] : memref<320x128xbf16, #tpu.memory_space<vmem>>, vector<256x128xbf16>
    %c1_164 = arith.constant 1 : index
    %c128_165 = arith.constant 128 : index
    %c0_166 = arith.constant 0 : index
    %165 = vector.load %arg3[%c1_164, %c128_165, %c0_166] : memref<2x1152x128xbf16, #tpu.memory_space<vmem>>, vector<1x128x128xbf16>
    %166 = vector.shape_cast %165 : vector<1x128x128xbf16> to vector<128x128xbf16>
    %cst_167 = arith.constant dense<0.000000e+00> : vector<256x128xf32>
    %167 = tpu.matmul %164, %166, %cst_167 {dimension_numbers = #tpu.dot_dimension_numbers<[1], [0], [0], [1], [0, 0, 1, 1], [], []>} : vector<256x128xbf16>, vector<128x128xbf16>, vector<256x128xf32> -> vector<256x128xf32>
    %168 = arith.addf %163, %167 : vector<256x128xf32>
    %c17_168 = arith.constant 17 : index
    %c0_169 = arith.constant 0 : index
    %169 = vector.load %arg8[%c17_168, %c0_169] : memref<320x128xbf16, #tpu.memory_space<vmem>>, vector<256x128xbf16>
    %c1_170 = arith.constant 1 : index
    %c0_171 = arith.constant 0 : index
    %c0_172 = arith.constant 0 : index
    %170 = vector.load %arg2[%c1_170, %c0_171, %c0_172] : memref<2x256x128xbf16, #tpu.memory_space<vmem>>, vector<1x256x128xbf16>
    %171 = vector.shape_cast %170 : vector<1x256x128xbf16> to vector<256x128xbf16>
    %172 = arith.mulf %169, %171 : vector<256x128xbf16>
    %c1_173 = arith.constant 1 : index
    %c256_174 = arith.constant 256 : index
    %c0_175 = arith.constant 0 : index
    %173 = vector.load %arg3[%c1_173, %c256_174, %c0_175] : memref<2x1152x128xbf16, #tpu.memory_space<vmem>>, vector<1x128x128xbf16>
    %174 = vector.shape_cast %173 : vector<1x128x128xbf16> to vector<128x128xbf16>
    %cst_176 = arith.constant dense<0.000000e+00> : vector<256x128xf32>
    %175 = tpu.matmul %172, %174, %cst_176 {dimension_numbers = #tpu.dot_dimension_numbers<[1], [0], [0], [1], [0, 0, 1, 1], [], []>} : vector<256x128xbf16>, vector<128x128xbf16>, vector<256x128xf32> -> vector<256x128xf32>
    %176 = arith.addf %168, %175 : vector<256x128xf32>
    %c31_177 = arith.constant 31 : index
    %c0_178 = arith.constant 0 : index
    %177 = vector.load %arg8[%c31_177, %c0_178] : memref<320x128xbf16, #tpu.memory_space<vmem>>, vector<256x128xbf16>
    %c0_179 = arith.constant 0 : index
    %c0_180 = arith.constant 0 : index
    %c0_181 = arith.constant 0 : index
    %178 = vector.load %arg2[%c0_179, %c0_180, %c0_181] : memref<2x256x128xbf16, #tpu.memory_space<vmem>>, vector<1x256x128xbf16>
    %179 = vector.shape_cast %178 : vector<1x256x128xbf16> to vector<256x128xbf16>
    %180 = arith.mulf %177, %179 : vector<256x128xbf16>
    %c1_182 = arith.constant 1 : index
    %c384_183 = arith.constant 384 : index
    %c0_184 = arith.constant 0 : index
    %181 = vector.load %arg3[%c1_182, %c384_183, %c0_184] : memref<2x1152x128xbf16, #tpu.memory_space<vmem>>, vector<1x128x128xbf16>
    %182 = vector.shape_cast %181 : vector<1x128x128xbf16> to vector<128x128xbf16>
    %cst_185 = arith.constant dense<0.000000e+00> : vector<256x128xf32>
    %183 = tpu.matmul %180, %182, %cst_185 {dimension_numbers = #tpu.dot_dimension_numbers<[1], [0], [0], [1], [0, 0, 1, 1], [], []>} : vector<256x128xbf16>, vector<128x128xbf16>, vector<256x128xf32> -> vector<256x128xf32>
    %184 = arith.addf %176, %183 : vector<256x128xf32>
    %c32_186 = arith.constant 32 : index
    %c0_187 = arith.constant 0 : index
    %185 = vector.load %arg8[%c32_186, %c0_187] : memref<320x128xbf16, #tpu.memory_space<vmem>>, vector<256x128xbf16>
    %c1_188 = arith.constant 1 : index
    %c512_189 = arith.constant 512 : index
    %c0_190 = arith.constant 0 : index
    %186 = vector.load %arg3[%c1_188, %c512_189, %c0_190] : memref<2x1152x128xbf16, #tpu.memory_space<vmem>>, vector<1x128x128xbf16>
    %187 = vector.shape_cast %186 : vector<1x128x128xbf16> to vector<128x128xbf16>
    %cst_191 = arith.constant dense<0.000000e+00> : vector<256x128xf32>
    %188 = tpu.matmul %185, %187, %cst_191 {dimension_numbers = #tpu.dot_dimension_numbers<[1], [0], [0], [1], [0, 0, 1, 1], [], []>} : vector<256x128xbf16>, vector<128x128xbf16>, vector<256x128xf32> -> vector<256x128xf32>
    %189 = arith.addf %184, %188 : vector<256x128xf32>
    %c33_192 = arith.constant 33 : index
    %c0_193 = arith.constant 0 : index
    %190 = vector.load %arg8[%c33_192, %c0_193] : memref<320x128xbf16, #tpu.memory_space<vmem>>, vector<256x128xbf16>
    %c1_194 = arith.constant 1 : index
    %c0_195 = arith.constant 0 : index
    %c0_196 = arith.constant 0 : index
    %191 = vector.load %arg2[%c1_194, %c0_195, %c0_196] : memref<2x256x128xbf16, #tpu.memory_space<vmem>>, vector<1x256x128xbf16>
    %192 = vector.shape_cast %191 : vector<1x256x128xbf16> to vector<256x128xbf16>
    %193 = arith.mulf %190, %192 : vector<256x128xbf16>
    %c1_197 = arith.constant 1 : index
    %c640_198 = arith.constant 640 : index
    %c0_199 = arith.constant 0 : index
    %194 = vector.load %arg3[%c1_197, %c640_198, %c0_199] : memref<2x1152x128xbf16, #tpu.memory_space<vmem>>, vector<1x128x128xbf16>
    %195 = vector.shape_cast %194 : vector<1x128x128xbf16> to vector<128x128xbf16>
    %cst_200 = arith.constant dense<0.000000e+00> : vector<256x128xf32>
    %196 = tpu.matmul %193, %195, %cst_200 {dimension_numbers = #tpu.dot_dimension_numbers<[1], [0], [0], [1], [0, 0, 1, 1], [], []>} : vector<256x128xbf16>, vector<128x128xbf16>, vector<256x128xf32> -> vector<256x128xf32>
    %197 = arith.addf %189, %196 : vector<256x128xf32>
    %c47_201 = arith.constant 47 : index
    %c0_202 = arith.constant 0 : index
    %198 = vector.load %arg8[%c47_201, %c0_202] : memref<320x128xbf16, #tpu.memory_space<vmem>>, vector<256x128xbf16>
    %c0_203 = arith.constant 0 : index
    %c0_204 = arith.constant 0 : index
    %c0_205 = arith.constant 0 : index
    %199 = vector.load %arg2[%c0_203, %c0_204, %c0_205] : memref<2x256x128xbf16, #tpu.memory_space<vmem>>, vector<1x256x128xbf16>
    %200 = vector.shape_cast %199 : vector<1x256x128xbf16> to vector<256x128xbf16>
    %201 = arith.mulf %198, %200 : vector<256x128xbf16>
    %c1_206 = arith.constant 1 : index
    %c768_207 = arith.constant 768 : index
    %c0_208 = arith.constant 0 : index
    %202 = vector.load %arg3[%c1_206, %c768_207, %c0_208] : memref<2x1152x128xbf16, #tpu.memory_space<vmem>>, vector<1x128x128xbf16>
    %203 = vector.shape_cast %202 : vector<1x128x128xbf16> to vector<128x128xbf16>
    %cst_209 = arith.constant dense<0.000000e+00> : vector<256x128xf32>
    %204 = tpu.matmul %201, %203, %cst_209 {dimension_numbers = #tpu.dot_dimension_numbers<[1], [0], [0], [1], [0, 0, 1, 1], [], []>} : vector<256x128xbf16>, vector<128x128xbf16>, vector<256x128xf32> -> vector<256x128xf32>
    %205 = arith.addf %197, %204 : vector<256x128xf32>
    %c48_210 = arith.constant 48 : index
    %c0_211 = arith.constant 0 : index
    %206 = vector.load %arg8[%c48_210, %c0_211] : memref<320x128xbf16, #tpu.memory_space<vmem>>, vector<256x128xbf16>
    %c1_212 = arith.constant 1 : index
    %c896_213 = arith.constant 896 : index
    %c0_214 = arith.constant 0 : index
    %207 = vector.load %arg3[%c1_212, %c896_213, %c0_214] : memref<2x1152x128xbf16, #tpu.memory_space<vmem>>, vector<1x128x128xbf16>
    %208 = vector.shape_cast %207 : vector<1x128x128xbf16> to vector<128x128xbf16>
    %cst_215 = arith.constant dense<0.000000e+00> : vector<256x128xf32>
    %209 = tpu.matmul %206, %208, %cst_215 {dimension_numbers = #tpu.dot_dimension_numbers<[1], [0], [0], [1], [0, 0, 1, 1], [], []>} : vector<256x128xbf16>, vector<128x128xbf16>, vector<256x128xf32> -> vector<256x128xf32>
    %210 = arith.addf %205, %209 : vector<256x128xf32>
    %c49_216 = arith.constant 49 : index
    %c0_217 = arith.constant 0 : index
    %211 = vector.load %arg8[%c49_216, %c0_217] : memref<320x128xbf16, #tpu.memory_space<vmem>>, vector<256x128xbf16>
    %c1_218 = arith.constant 1 : index
    %c0_219 = arith.constant 0 : index
    %c0_220 = arith.constant 0 : index
    %212 = vector.load %arg2[%c1_218, %c0_219, %c0_220] : memref<2x256x128xbf16, #tpu.memory_space<vmem>>, vector<1x256x128xbf16>
    %213 = vector.shape_cast %212 : vector<1x256x128xbf16> to vector<256x128xbf16>
    %214 = arith.mulf %211, %213 : vector<256x128xbf16>
    %c1_221 = arith.constant 1 : index
    %c1024_222 = arith.constant 1024 : index
    %c0_223 = arith.constant 0 : index
    %215 = vector.load %arg3[%c1_221, %c1024_222, %c0_223] : memref<2x1152x128xbf16, #tpu.memory_space<vmem>>, vector<1x128x128xbf16>
    %216 = vector.shape_cast %215 : vector<1x128x128xbf16> to vector<128x128xbf16>
    %cst_224 = arith.constant dense<0.000000e+00> : vector<256x128xf32>
    %217 = tpu.matmul %214, %216, %cst_224 {dimension_numbers = #tpu.dot_dimension_numbers<[1], [0], [0], [1], [0, 0, 1, 1], [], []>} : vector<256x128xbf16>, vector<128x128xbf16>, vector<256x128xf32> -> vector<256x128xf32>
    %218 = arith.addf %210, %217 : vector<256x128xf32>
    %cst_225 = arith.constant 0.000000e+00 : f32
    %219 = vector.broadcast %cst_225 : f32 to vector<256x128xf32>
    %220 = arith.maximumf %218, %219 : vector<256x128xf32>
    %221 = arith.truncf %220 : vector<256x128xf32> to vector<256x128xbf16>
    %c32_226 = arith.constant 32 : index
    %c0_227 = arith.constant 0 : index
    %222 = vector.load %arg9[%c32_226, %c0_227] : memref<320x128xbf16, #tpu.memory_space<vmem>>, vector<256x128xbf16>
    tpu.vector_store %arg9[%c32_226, %c0_227], %221 {strides = array<i32>} : memref<320x128xbf16, #tpu.memory_space<vmem>>, vector<256x128xbf16>,
    %c1_228 = arith.constant 1 : index
    %c0_229 = arith.constant 0 : index
    %c0_230 = arith.constant 0 : index
    %223 = vector.load %arg6[%c1_228, %c0_229, %c0_230] : memref<2x1x128xf32, #tpu.memory_space<vmem>>, vector<1x1x128xf32>
    %224 = vector.shape_cast %223 : vector<1x1x128xf32> to vector<1x128xf32>
    %225 = vector.shape_cast %224 : vector<1x128xf32> to vector<1x128xf32>
    %226 = vector.broadcast %225 : vector<1x128xf32> to vector<256x128xf32>
    %c15_231 = arith.constant 15 : index
    %c0_232 = arith.constant 0 : index
    %227 = vector.load %arg9[%c15_231, %c0_232] : memref<320x128xbf16, #tpu.memory_space<vmem>>, vector<256x128xbf16>
    %c0_233 = arith.constant 0 : index
    %c0_234 = arith.constant 0 : index
    %c0_235 = arith.constant 0 : index
    %228 = vector.load %arg2[%c0_233, %c0_234, %c0_235] : memref<2x256x128xbf16, #tpu.memory_space<vmem>>, vector<1x256x128xbf16>
    %229 = vector.shape_cast %228 : vector<1x256x128xbf16> to vector<256x128xbf16>
    %230 = arith.mulf %227, %229 : vector<256x128xbf16>
    %c1_236 = arith.constant 1 : index
    %c0_237 = arith.constant 0 : index
    %c0_238 = arith.constant 0 : index
    %231 = vector.load %arg5[%c1_236, %c0_237, %c0_238] : memref<2x1152x128xbf16, #tpu.memory_space<vmem>>, vector<1x128x128xbf16>
    %232 = vector.shape_cast %231 : vector<1x128x128xbf16> to vector<128x128xbf16>
    %cst_239 = arith.constant dense<0.000000e+00> : vector<256x128xf32>
    %233 = tpu.matmul %230, %232, %cst_239 {dimension_numbers = #tpu.dot_dimension_numbers<[1], [0], [0], [1], [0, 0, 1, 1], [], []>} : vector<256x128xbf16>, vector<128x128xbf16>, vector<256x128xf32> -> vector<256x128xf32>
    %234 = arith.addf %226, %233 : vector<256x128xf32>
    %c16_240 = arith.constant 16 : index
    %c0_241 = arith.constant 0 : index
    %235 = vector.load %arg9[%c16_240, %c0_241] : memref<320x128xbf16, #tpu.memory_space<vmem>>, vector<256x128xbf16>
    %c1_242 = arith.constant 1 : index
    %c128_243 = arith.constant 128 : index
    %c0_244 = arith.constant 0 : index
    %236 = vector.load %arg5[%c1_242, %c128_243, %c0_244] : memref<2x1152x128xbf16, #tpu.memory_space<vmem>>, vector<1x128x128xbf16>
    %237 = vector.shape_cast %236 : vector<1x128x128xbf16> to vector<128x128xbf16>
    %cst_245 = arith.constant dense<0.000000e+00> : vector<256x128xf32>
    %238 = tpu.matmul %235, %237, %cst_245 {dimension_numbers = #tpu.dot_dimension_numbers<[1], [0], [0], [1], [0, 0, 1, 1], [], []>} : vector<256x128xbf16>, vector<128x128xbf16>, vector<256x128xf32> -> vector<256x128xf32>
    %239 = arith.addf %234, %238 : vector<256x128xf32>
    %c17_246 = arith.constant 17 : index
    %c0_247 = arith.constant 0 : index
    %240 = vector.load %arg9[%c17_246, %c0_247] : memref<320x128xbf16, #tpu.memory_space<vmem>>, vector<256x128xbf16>
    %c1_248 = arith.constant 1 : index
    %c0_249 = arith.constant 0 : index
    %c0_250 = arith.constant 0 : index
    %241 = vector.load %arg2[%c1_248, %c0_249, %c0_250] : memref<2x256x128xbf16, #tpu.memory_space<vmem>>, vector<1x256x128xbf16>
    %242 = vector.shape_cast %241 : vector<1x256x128xbf16> to vector<256x128xbf16>
    %243 = arith.mulf %240, %242 : vector<256x128xbf16>
    %c1_251 = arith.constant 1 : index
    %c256_252 = arith.constant 256 : index
    %c0_253 = arith.constant 0 : index
    %244 = vector.load %arg5[%c1_251, %c256_252, %c0_253] : memref<2x1152x128xbf16, #tpu.memory_space<vmem>>, vector<1x128x128xbf16>
    %245 = vector.shape_cast %244 : vector<1x128x128xbf16> to vector<128x128xbf16>
    %cst_254 = arith.constant dense<0.000000e+00> : vector<256x128xf32>
    %246 = tpu.matmul %243, %245, %cst_254 {dimension_numbers = #tpu.dot_dimension_numbers<[1], [0], [0], [1], [0, 0, 1, 1], [], []>} : vector<256x128xbf16>, vector<128x128xbf16>, vector<256x128xf32> -> vector<256x128xf32>
    %247 = arith.addf %239, %246 : vector<256x128xf32>
    %c31_255 = arith.constant 31 : index
    %c0_256 = arith.constant 0 : index
    %248 = vector.load %arg9[%c31_255, %c0_256] : memref<320x128xbf16, #tpu.memory_space<vmem>>, vector<256x128xbf16>
    %c0_257 = arith.constant 0 : index
    %c0_258 = arith.constant 0 : index
    %c0_259 = arith.constant 0 : index
    %249 = vector.load %arg2[%c0_257, %c0_258, %c0_259] : memref<2x256x128xbf16, #tpu.memory_space<vmem>>, vector<1x256x128xbf16>
    %250 = vector.shape_cast %249 : vector<1x256x128xbf16> to vector<256x128xbf16>
    %251 = arith.mulf %248, %250 : vector<256x128xbf16>
    %c1_260 = arith.constant 1 : index
    %c384_261 = arith.constant 384 : index
    %c0_262 = arith.constant 0 : index
    %252 = vector.load %arg5[%c1_260, %c384_261, %c0_262] : memref<2x1152x128xbf16, #tpu.memory_space<vmem>>, vector<1x128x128xbf16>
    %253 = vector.shape_cast %252 : vector<1x128x128xbf16> to vector<128x128xbf16>
    %cst_263 = arith.constant dense<0.000000e+00> : vector<256x128xf32>
    %254 = tpu.matmul %251, %253, %cst_263 {dimension_numbers = #tpu.dot_dimension_numbers<[1], [0], [0], [1], [0, 0, 1, 1], [], []>} : vector<256x128xbf16>, vector<128x128xbf16>, vector<256x128xf32> -> vector<256x128xf32>
    %255 = arith.addf %247, %254 : vector<256x128xf32>
    %c32_264 = arith.constant 32 : index
    %c0_265 = arith.constant 0 : index
    %256 = vector.load %arg9[%c32_264, %c0_265] : memref<320x128xbf16, #tpu.memory_space<vmem>>, vector<256x128xbf16>
    %c1_266 = arith.constant 1 : index
    %c512_267 = arith.constant 512 : index
    %c0_268 = arith.constant 0 : index
    %257 = vector.load %arg5[%c1_266, %c512_267, %c0_268] : memref<2x1152x128xbf16, #tpu.memory_space<vmem>>, vector<1x128x128xbf16>
    %258 = vector.shape_cast %257 : vector<1x128x128xbf16> to vector<128x128xbf16>
    %cst_269 = arith.constant dense<0.000000e+00> : vector<256x128xf32>
    %259 = tpu.matmul %256, %258, %cst_269 {dimension_numbers = #tpu.dot_dimension_numbers<[1], [0], [0], [1], [0, 0, 1, 1], [], []>} : vector<256x128xbf16>, vector<128x128xbf16>, vector<256x128xf32> -> vector<256x128xf32>
    %260 = arith.addf %255, %259 : vector<256x128xf32>
    %c33_270 = arith.constant 33 : index
    %c0_271 = arith.constant 0 : index
    %261 = vector.load %arg9[%c33_270, %c0_271] : memref<320x128xbf16, #tpu.memory_space<vmem>>, vector<256x128xbf16>
    %c1_272 = arith.constant 1 : index
    %c0_273 = arith.constant 0 : index
    %c0_274 = arith.constant 0 : index
    %262 = vector.load %arg2[%c1_272, %c0_273, %c0_274] : memref<2x256x128xbf16, #tpu.memory_space<vmem>>, vector<1x256x128xbf16>
    %263 = vector.shape_cast %262 : vector<1x256x128xbf16> to vector<256x128xbf16>
    %264 = arith.mulf %261, %263 : vector<256x128xbf16>
    %c1_275 = arith.constant 1 : index
    %c640_276 = arith.constant 640 : index
    %c0_277 = arith.constant 0 : index
    %265 = vector.load %arg5[%c1_275, %c640_276, %c0_277] : memref<2x1152x128xbf16, #tpu.memory_space<vmem>>, vector<1x128x128xbf16>
    %266 = vector.shape_cast %265 : vector<1x128x128xbf16> to vector<128x128xbf16>
    %cst_278 = arith.constant dense<0.000000e+00> : vector<256x128xf32>
    %267 = tpu.matmul %264, %266, %cst_278 {dimension_numbers = #tpu.dot_dimension_numbers<[1], [0], [0], [1], [0, 0, 1, 1], [], []>} : vector<256x128xbf16>, vector<128x128xbf16>, vector<256x128xf32> -> vector<256x128xf32>
    %268 = arith.addf %260, %267 : vector<256x128xf32>
    %c47_279 = arith.constant 47 : index
    %c0_280 = arith.constant 0 : index
    %269 = vector.load %arg9[%c47_279, %c0_280] : memref<320x128xbf16, #tpu.memory_space<vmem>>, vector<256x128xbf16>
    %c0_281 = arith.constant 0 : index
    %c0_282 = arith.constant 0 : index
    %c0_283 = arith.constant 0 : index
    %270 = vector.load %arg2[%c0_281, %c0_282, %c0_283] : memref<2x256x128xbf16, #tpu.memory_space<vmem>>, vector<1x256x128xbf16>
    %271 = vector.shape_cast %270 : vector<1x256x128xbf16> to vector<256x128xbf16>
    %272 = arith.mulf %269, %271 : vector<256x128xbf16>
    %c1_284 = arith.constant 1 : index
    %c768_285 = arith.constant 768 : index
    %c0_286 = arith.constant 0 : index
    %273 = vector.load %arg5[%c1_284, %c768_285, %c0_286] : memref<2x1152x128xbf16, #tpu.memory_space<vmem>>, vector<1x128x128xbf16>
    %274 = vector.shape_cast %273 : vector<1x128x128xbf16> to vector<128x128xbf16>
    %cst_287 = arith.constant dense<0.000000e+00> : vector<256x128xf32>
    %275 = tpu.matmul %272, %274, %cst_287 {dimension_numbers = #tpu.dot_dimension_numbers<[1], [0], [0], [1], [0, 0, 1, 1], [], []>} : vector<256x128xbf16>, vector<128x128xbf16>, vector<256x128xf32> -> vector<256x128xf32>
    %276 = arith.addf %268, %275 : vector<256x128xf32>
    %c48_288 = arith.constant 48 : index
    %c0_289 = arith.constant 0 : index
    %277 = vector.load %arg9[%c48_288, %c0_289] : memref<320x128xbf16, #tpu.memory_space<vmem>>, vector<256x128xbf16>
    %c1_290 = arith.constant 1 : index
    %c896_291 = arith.constant 896 : index
    %c0_292 = arith.constant 0 : index
    %278 = vector.load %arg5[%c1_290, %c896_291, %c0_292] : memref<2x1152x128xbf16, #tpu.memory_space<vmem>>, vector<1x128x128xbf16>
    %279 = vector.shape_cast %278 : vector<1x128x128xbf16> to vector<128x128xbf16>
    %cst_293 = arith.constant dense<0.000000e+00> : vector<256x128xf32>
    %280 = tpu.matmul %277, %279, %cst_293 {dimension_numbers = #tpu.dot_dimension_numbers<[1], [0], [0], [1], [0, 0, 1, 1], [], []>} : vector<256x128xbf16>, vector<128x128xbf16>, vector<256x128xf32> -> vector<256x128xf32>
    %281 = arith.addf %276, %280 : vector<256x128xf32>
    %c49_294 = arith.constant 49 : index
    %c0_295 = arith.constant 0 : index
    %282 = vector.load %arg9[%c49_294, %c0_295] : memref<320x128xbf16, #tpu.memory_space<vmem>>, vector<256x128xbf16>
    %c1_296 = arith.constant 1 : index
    %c0_297 = arith.constant 0 : index
    %c0_298 = arith.constant 0 : index
    %283 = vector.load %arg2[%c1_296, %c0_297, %c0_298] : memref<2x256x128xbf16, #tpu.memory_space<vmem>>, vector<1x256x128xbf16>
    %284 = vector.shape_cast %283 : vector<1x256x128xbf16> to vector<256x128xbf16>
    %285 = arith.mulf %282, %284 : vector<256x128xbf16>
    %c1_299 = arith.constant 1 : index
    %c1024_300 = arith.constant 1024 : index
    %c0_301 = arith.constant 0 : index
    %286 = vector.load %arg5[%c1_299, %c1024_300, %c0_301] : memref<2x1152x128xbf16, #tpu.memory_space<vmem>>, vector<1x128x128xbf16>
    %287 = vector.shape_cast %286 : vector<1x128x128xbf16> to vector<128x128xbf16>
    %cst_302 = arith.constant dense<0.000000e+00> : vector<256x128xf32>
    %288 = tpu.matmul %285, %287, %cst_302 {dimension_numbers = #tpu.dot_dimension_numbers<[1], [0], [0], [1], [0, 0, 1, 1], [], []>} : vector<256x128xbf16>, vector<128x128xbf16>, vector<256x128xf32> -> vector<256x128xf32>
    %289 = arith.addf %281, %288 : vector<256x128xf32>
    %c32_303 = arith.constant 32 : index
    %c0_304 = arith.constant 0 : index
    %290 = vector.load %arg8[%c32_303, %c0_304] : memref<320x128xbf16, #tpu.memory_space<vmem>>, vector<256x128xbf16>
    %291 = arith.extf %290 : vector<256x128xbf16> to vector<256x128xf32>
    %292 = arith.addf %289, %291 : vector<256x128xf32>
    %cst_305 = arith.constant 0.000000e+00 : f32
    %293 = vector.broadcast %cst_305 : f32 to vector<256x128xf32>
    %294 = arith.maximumf %292, %293 : vector<256x128xf32>
    %c0_306 = arith.constant 0 : index
    %c0_307 = arith.constant 0 : index
    %295 = vector.load %arg7[%c0_306, %c0_307] : memref<256x128xf32, #tpu.memory_space<vmem>>, vector<256x128xf32>
    tpu.vector_store %arg7[%c0_306, %c0_307], %294 {strides = array<i32>} : memref<256x128xf32, #tpu.memory_space<vmem>>, vector<256x128xf32>,
    return
  }
  func.func @transform_0(%arg0: i32) -> (i32, i32) {
    %c0_i32 = arith.constant 0 : i32
    %c0_i32_0 = arith.constant 0 : i32
    return %arg0, %c0_i32 : i32, i32
  }
  func.func @transform_1(%arg0: i32) -> (i32, i32, i32) {
    %c0_i32 = arith.constant 0 : i32
    %c0_i32_0 = arith.constant 0 : i32
    %c0_i32_1 = arith.constant 0 : i32
    %c0_i32_2 = arith.constant 0 : i32
    return %c0_i32, %c0_i32_0, %c0_i32_1 : i32, i32, i32
  }
  func.func @transform_2(%arg0: i32) -> (i32, i32, i32) {
    %c0_i32 = arith.constant 0 : i32
    %c0_i32_0 = arith.constant 0 : i32
    %c0_i32_1 = arith.constant 0 : i32
    %c0_i32_2 = arith.constant 0 : i32
    return %c0_i32, %c0_i32_0, %c0_i32_1 : i32, i32, i32
  }
  func.func @transform_3(%arg0: i32) -> (i32, i32, i32) {
    %c0_i32 = arith.constant 0 : i32
    %c0_i32_0 = arith.constant 0 : i32
    %c0_i32_1 = arith.constant 0 : i32
    %c0_i32_2 = arith.constant 0 : i32
    return %c0_i32, %c0_i32_0, %c0_i32_1 : i32, i32, i32
  }
  func.func @transform_4(%arg0: i32) -> (i32, i32, i32) {
    %c0_i32 = arith.constant 0 : i32
    %c0_i32_0 = arith.constant 0 : i32
    %c0_i32_1 = arith.constant 0 : i32
    %c0_i32_2 = arith.constant 0 : i32
    return %c0_i32, %c0_i32_0, %c0_i32_1 : i32, i32, i32
  }
  func.func @transform_5(%arg0: i32) -> (i32, i32, i32) {
    %c0_i32 = arith.constant 0 : i32
    %c0_i32_0 = arith.constant 0 : i32
    %c0_i32_1 = arith.constant 0 : i32
    %c0_i32_2 = arith.constant 0 : i32
    return %c0_i32, %c0_i32_0, %c0_i32_1 : i32, i32, i32
  }
  func.func @transform_6(%arg0: i32) -> (i32, i32) {
    %c0_i32 = arith.constant 0 : i32
    %c0_i32_0 = arith.constant 0 : i32
    return %arg0, %c0_i32 : i32, i32
  }
}

</mosaic_0001>

<bundles_post_ra>
// kernel: resnet3x3_forward.1
= control target key start
LH: loop header
LB: loop body
LE: loop exit
PB: predicated region body
PF: predicated region fallthrough
CT: control target
= control target key end

     0   :  { %11 = vsyncpa [#allocation5], 0  ;;  %s25169_s0 = inlined_call_operand.vmem [shape: bf16[512,128], index: 0, kind: input, shape index: {}]   ;;  %s25170_s1 = inlined_call_operand.vmem [shape: bf16[2,256,128], index: 1, kind: input, shape index: {}]   ;;  %s25171_s2 = inlined_call_operand.hbm [shape: bf16[2,1152,128], index: 2, kind: input, shape index: {}]   ;;  %s25172_s3 = inlined_call_operand.vmem [shape: f32[2,1,128], index: 3, kind: input, shape index: {}]   ;;  %s25173_s4 = inlined_call_operand.hbm [shape: bf16[2,1152,128], index: 4, kind: input, shape index: {}]   ;;  %s25174_s5 = inlined_call_operand.vmem [shape: f32[2,1,128], index: 5, kind: input, shape index: {}]   ;;  %s25175_s6 = inlined_call_operand.hbm [shape: f32[512,128], index: 6, kind: output, shape index: {}]  }
   0x1   :  { %12 = vsyncpa [#allocation8], 0 }
   0x2   :  { %13 = vsyncpa [#allocation6], 0 }
   0x3   :  { %15 = vsyncpa [#allocation6 + $0x1], 0  ;;  %s21599_s21 = smov 0   ;;  %s21601_s22 = smov 0  }
   0x4   :  { %s21603_s23 = smov 0   ;;  %s21605_s24 = smov 0  }
   0x5 LB: > { %s21620_s25 = sadd.s32 4294967295, %s21554_s24   ;;  %s16533_s26 = sadd.s32 4294967294, %s21554_s24   ;;  %s21554_s24 = sphi %s21605_s24, %s25441_s24   ;;  %s21550_s23 = sphi %s21603_s23, %s25440_s23   ;;  %s21546_s22 = sphi %s21601_s22, %s25439_s22   ;;  %s21542_s21 = sphi %s21599_s21, %s25438_s21  }
   0x6   : > { %s21624_s27 = sadd.s32 1, %s21554_s24   ;;  %s159_s28 = sadd.s32 1, %s21550_s23 }
   0x7   : > { %s156_s29 = ssub.s32 %s21554_s24, %s21624_s27  ;;  %p169_p0 = scmp.ne.s32.totalorder %s21550_s23, %s21546_s22 }
   0x8   : > { %p157_p1 = scmp.eq.s32.totalorder %s156_s29, 0  ;;  %p170_p2 = scmp.eq.s32.totalorder %s21620_s25, 1 }
   0x9   : > { %p175_p3 = scmp.ne.s32.totalorder %s21546_s22, %s21542_s21  ;;  %p176_p4 = scmp.eq.s32.totalorder %s16533_s26, 1 }
   0xa   : > { %s21635_s30 = scalar_select %p157_p1, %s21550_s23, %s159_s28  }
   0xb   : > { %p21637_p5 = por %p170_p2, %p169_p0  ;;  %p21641_p6 = por %p176_p4, %p175_p3 }
   0xc   : > { %p16534_p7 = scmp.ge.s32.totalorder %s21554_s24, 1  ;;  %p183_p8 = scmp.lt.s32.totalorder %s21554_s24, 3 }
   0xd   : > { %s25275_s7 = scalar_select %p21637_p5, 1, 0 }
   0xe   : > { %s25276_s8 = scalar_select %p21641_p6, 1, 0 }
   0xf   : > { %p25176_p9 = scmp.eq.s32.totalorder %s21620_s25, 0  ;;  %p21648_p10 = pnand %p16534_p7, %p183_p8 }
  0x10   : > { %s21556_s10 = smov [#allocation4]   ;;  %s21557_s13 = smov [#allocation7]  }
  0x11   : > { %s25277_s9 = scalar_select %p21648_p10, 1, 0 }
  0x12   : > { %s198_s11 = sshll.u32 %s21556_s10, 4  ;;  %p20870_p11 = pneg %p21648_p10  ;;  %s199_s11 = int_to_ptr.vmem [resolvable:$true] %s198_s11 }
  0x13   : > { %s214_s14 = sshll.u32 %s21557_s13, 4  ;;  %s21428_s17 = scalar_lea.hbm %s25171_s2, 18432  ;;  %s21660_s14 = int_to_ptr.vmem [resolvable:$true] %s214_s14 }
  0x14   : > { %p21656_p12 = pnand %p25176_p9, %p20870_p11  ;;  %p21429_p13 = scmp.ne.s32.totalorder %s25171_s2, %s21428_s17 }
  0x15   : > { %p21435_p3 = scmp.lt.u32.totalorder %s21428_s17, %s25171_s2 }
  0x16   : > { %p21430_p0 = pneg %p21656_p12 }
  0x18   : > { %p21431_p1 = pnand %p21430_p0, %p21429_p13 }
  0x1a   : > { %p21432_p2 = pneg %p21431_p1 }
  0x1c   : > { %p21437_p4 = pnand %p21435_p3, %p21432_p2 }
  0x1e   : > { %21440 = shalt.err (!%p21437_p4)
}
  0x1f   : > { %s21441_s28 = scalar_lea.vmem %s199_s11, 18432  ;;  %p21449_p9 = scmp.lt.s32.totalorder %s199_s11, %s199_s11 }
  0x20   : > { %p21442_p7 = scmp.ne.s32.totalorder %s199_s11, %s21441_s28  ;;  %p21450_p6 = scmp.lt.s32.totalorder %s21441_s28, %s21441_s28 }
  0x22   : > { %p21444_p8 = pnand %p21442_p7, %p21430_p0  ;;  %p21451_p5 = por %p21450_p6, %p21449_p9 }
  0x24   : > { %p21445_p11 = pneg %p21444_p8 }
  0x26   : > { %p21452_p10 = pnand %p21451_p5, %p21445_p11 }
  0x28   : > { %21455 = shalt.err (!%p21452_p10)
}
  0x29   : > { %s21558_s29 = smov 64   ;;  %s21559_s10 = smov 4  }
  0x2a   : > { %20873 = dma.hbm_to_vmem [thread:$0]  (!%p21656_p12), %s25171_s2, 18432, %s199_s11, [#allocation5], %s21558_s29, %s21558_s29, %s21559_s10  }
  0x2b   : > { %s21456_s18 = scalar_lea.hbm %s25173_s4, 18432 }
  0x2c   : > { %p21457_p13 = scmp.ne.s32.totalorder %s25173_s4, %s21456_s18  ;;  %p21463_p9 = scmp.lt.u32.totalorder %s21456_s18, %s25173_s4 }
  0x2e   : > { %p21459_p5 = pnand %p21457_p13, %p21430_p0 }
  0x30   : > { %p21460_p6 = pneg %p21459_p5 }
  0x32   : > { %p21465_p10 = pnand %p21463_p9, %p21460_p6 }
  0x34   : > { %21468 = shalt.err (!%p21465_p10)
}
  0x35   : > { %s21469_s11 = scalar_lea.vmem %s21660_s14, 18432  ;;  %p21477_p4 = scmp.lt.s32.totalorder %s21660_s14, %s21660_s14 }
  0x36   : > { %p21470_p1 = scmp.ne.s32.totalorder %s21660_s14, %s21469_s11  ;;  %p21478_p7 = scmp.lt.s32.totalorder %s21469_s11, %s21469_s11 }
  0x38   : > { %p21472_p2 = pnand %p21470_p1, %p21430_p0  ;;  %p21479_p8 = por %p21478_p7, %p21477_p4 }
  0x3a   : > { %p21473_p3 = pneg %p21472_p2 }
  0x3c   : > { %p21480_p11 = pnand %p21479_p8, %p21473_p3 }
  0x3e   : > { %21483 = shalt.err (!%p21480_p11)
}
  0x3f   : > { %20876 = dma.hbm_to_vmem [thread:$0]  (!%p21656_p12), %s25173_s4, 18432, %s21660_s14, [#allocation8], %s21558_s29, %s21558_s29, %s21559_s10  }
  0x40   : > { %p25279_p13 = scmp.ne.s32.totalorder %s25277_s9, 0 }
  0x42   : > { %242 = sbr.rel (%p25279_p13) target bundleno = 3148 (0xc4c), region = 44 }
  0x49   : > { %p25280_p5 = scmp.eq.s32.totalorder %s21620_s25, 0 }
  0x4b   : > { %21529 = dma.done.wait (%p25280_p5), [#allocation5], 18432   ;;  %p25281_p0 = pmov %p25280_p5 }
  0x4d   : > { %21531 = vsyncadd (%p25281_p0), [#allocation5], 4294948864  ;;  %p25282_p6 = pmov %p25281_p0 }
  0x4e   : > { %p25283_p9 = pmov %p25281_p0 }
  0x4f   : > { %21533 = dma.done.wait (%p25282_p6), [#allocation8], 18432  }
  0x50   : > { %21535 = vsyncadd (%p25283_p9), [#allocation8], 4294948864  ;;  %v21560_v0 = vmov 0   ;;  %s16542_s9 = sshll.u32 %s21620_s25, 5  ;;  %v20925_v1 = vld [vmem:[#allocation4] sm:$0xff]   ;;  %v20926_v2 = vld [vmem:[#allocation4 + $0x8] sm:$0xff]  }
  0x51   : > { %284 = vst [vmem:[#allocation2] sm:$0xff] %v21560_v0  ;;  %285 = vst [vmem:[#allocation2 + $0x8] sm:$0xff] %v21560_v0  ;;  %p277_p12 = scmp.lt.s32.totalorder %s16542_s9, 63  ;;  %17980 = vmatprep.subr.bf16.mxu0 %v20925_v1  ;;  %v20927_v3 = vld [vmem:[#allocation4 + $0x10] sm:$0xff]   ;;  %vm572_vm0 = vsmask.f32 7424 }
  0x52   : > { %286 = vst [vmem:[#allocation2 + $0x90] sm:$0xff] %v21560_v0  ;;  %287 = vst [vmem:[#allocation2 + $0x98] sm:$0xff] %v21560_v0  ;;  %17981 = vmatpush3.bf16.msra.mxu0 %v20925_v1  ;;  %v20928_v4 = vld [vmem:[#allocation4 + $0x18] sm:$0xff]   ;;  %v20933_v5 = vld [vmem:[%s25170_s1] sm:$0xff]   ;;  %vm750_vm1 = vsmask.f32 256 }
  0x53   : > { %288 = vst [vmem:[#allocation3] sm:$0xff] %v21560_v0  ;;  %289 = vst [vmem:[#allocation3 + $0x8] sm:$0xff] %v21560_v0  ;;  %s25443_s9 = smov (!%p277_p12, %s16542_s9), 63  ;;  %17982 = vmatprep.subr.bf16.mxu0 %v20926_v2  ;;  %v20929_v6 = vld [vmem:[#allocation4 + $0x20] sm:$0xff]   ;;  %v20934_v8 = vld [vmem:[%s25170_s1 + $0x8] sm:$0xff]   ;;  %v574_v9 = vshll.u32 %v20933_v5, 16 }
  0x54   : > { %290 = vst [vmem:[#allocation3 + $0x90] sm:$0xff] %v21560_v0  ;;  %291 = vst [vmem:[#allocation3 + $0x98] sm:$0xff] %v21560_v0  ;;  %s16543_s12 = sshll.u32 %s25443_s9, 2  ;;  %v577_v10 = vshrl.u32 %v20933_v5, 16  ;;  %v20936_v12 = vld [vmem:[%s25170_s1 + $0x10] sm:$0xff]   ;;  %v581_v13 = vshll.u32 %v20934_v8, 16 }
  0x55   : > { %s21731_s10 = scalar_lea.vmem %s25169_s0, %s16543_s12  ;;  %v585_v14 = vshrl.u32 %v20934_v8, 16  ;;  %v21745_v15 = vrot.slane %v574_v9, 1  ;;  %v589_v16 = vshll.u32 %v20936_v12, 16  ;;  %v20930_v18 = vld [vmem:[#allocation4 + $0x28] sm:$0xff]   ;;  %v20939_v20 = vld [vmem:[%s25170_s1 + $0x18] sm:$0xff]   ;;  %v593_v24 = vshrl.u32 %v20936_v12, 16 }
  0x56   : > { %17983 = vmatpush3.bf16.msra.mxu0 %v20926_v2  ;;  %v21740_v11 = vld [vmem:[%s21731_s10] sm:$0xff]   ;;  %v21749_v17 = vld [vmem:[%s21731_s10 + $0x8] sm:$0xff]   ;;  %v583_v19 = vrot.slane %v581_v13, 1  ;;  %v597_v26 = vshll.u32 %v20939_v20, 16  ;;  %v21758_v27 = vld [vmem:[%s21731_s10 + $0x10] sm:$0xff]   ;;  %v601_v35 = vshrl.u32 %v20939_v20, 16 }
  0x57   : > { %17984 = vmatprep.subr.bf16.mxu0 %v20927_v3  ;;  %420 = vst [vmem:[#allocation2 + $0x10] sm:$0xff] %v21740_v11  ;;  %v579_v21 = vor.u32 %v577_v10, %v21745_v15  ;;  %v591_v23 = vrot.slane %v589_v16, 1  ;;  %421 = vst [vmem:[#allocation2 + $0x18] sm:$0xff] %v21749_v17  ;;  %v20941_v31 = vld [vmem:[%s25170_s1 + $0x20] sm:$0xff]   ;;  %v20931_v36 = vld [vmem:[#allocation4 + $0x30] sm:$0xff]   ;;  %s273_s15 = sand.u32 1, %s21546_s22  }
  0x58   : > { %v443_v7 = vld [vmem:[#allocation2] sm:$0x80]  ;;  %v587_v25 = vor.u32 %v585_v14, %v583_v19  ;;  %v599_v34 = vrot.slane %v597_v26, 1  ;;  %422 = vst [vmem:[#allocation2 + $0x20] sm:$0xff] %v21758_v27  ;;  %v605_v39 = vshll.u32 %v20941_v31, 16  ;;  %v21774_v40 = vld [vmem:[%s21731_s10 + $0x18] sm:$0xff]  }
  0x59   : > { %v717_v22 = vmul.bf16 %v21745_v15, %v443_v7  ;;  %v21761_v28 = vsel %vm572_vm0, %v579_v21, %v583_v19  ;;  %v595_v30 = vor.u32 %v593_v24, %v591_v23  ;;  %423 = vst [vmem:[#allocation2 + $0x28] sm:$0xff] %v21774_v40  ;;  %v20944_v49 = vld [vmem:[%s25170_s1 + $0x28] sm:$0xff]   ;;  %v20932_v50 = vld [vmem:[#allocation4 + $0x38] sm:$0xff]   ;;  %v609_v52 = vshrl.u32 %v20941_v31, 16  ;;  %v21789_v57 = vld [vmem:[%s21731_s10 + $0x20] sm:$0xff]   ;;  %s16541_s14 = sshll.u32 %s273_s15, 8 }
  0x5a   : > { %17985 = vmatpush3.bf16.msra.mxu0 %v20927_v3  ;;  %v718_v32 = vmul.bf16 0, %v21761_v28  ;;  %v21768_v33 = vsel %vm572_vm0, %v587_v25, %v591_v23  ;;  %v603_v44 = vor.u32 %v601_v35, %v599_v34  ;;  %v607_v48 = vrot.slane %v605_v39, 1  ;;  %v20946_v62 = vld [vmem:[%s25170_s1 + $0x30] sm:$0xff]   ;;  %424 = vst [vmem:[#allocation2 + $0x30] sm:$0xff] %v21789_v57  ;;  %v21800_v3 = vld [vmem:[%s21731_s10 + $0x28] sm:$0xff]   ;;  %v20949_v8 = vld [vmem:[%s25170_s1 + $0x38] sm:$0xff]  }
  0x5b   : > { %17986 = vmatprep.subr.bf16.mxu0 %v20928_v4  ;;  %v752_v29 = vshrl.u32 %v717_v22, 16  ;;  %v719_v38 = vmul.bf16 %v21740_v11, %v21768_v33  ;;  %v21777_v43 = vsel %vm572_vm0, %v595_v30, %v599_v34  ;;  %v613_v61 = vshll.u32 %v20944_v49, 16  ;;  %425 = vst [vmem:[#allocation2 + $0x38] sm:$0xff] %v21800_v3  ;;  %v20937_v12 = vld [vmem:[#allocation4 + $0x40] sm:$0xff]   ;;  %v21814_v21 = vld [vmem:[%s21731_s10 + $0x30] sm:$0xff]   ;;  %v20942_v24 = vld [vmem:[#allocation4 + $0x48] sm:$0xff]  }
  0x5c   : > { %v756_v41 = vshrl.u32 %v718_v32, 16  ;;  %v759_v42 = vshll.u32 %v718_v32, 16  ;;  %v720_v47 = vmul.bf16 %v21749_v17, %v21777_v43  ;;  %v21786_v56 = vsel %vm572_vm0, %v603_v44, %v607_v48  ;;  %v20951_v26 = vld [vmem:[%s25170_s1 + $0x40] sm:$0xff]   ;;  %426 = vst [vmem:[#allocation2 + $0x40] sm:$0xff] %v21814_v21  ;;  %v21828_v39 = vld [vmem:[%s21731_s10 + $0x38] sm:$0xff]   ;;  %v20954_v44 = vld [vmem:[%s25170_s1 + $0x48] sm:$0xff]  }
  0x5d   : > { %v754_v37 = vrot.slane %v752_v29, 7  ;;  %v764_v45 = vshrl.u32 %v719_v38, 16  ;;  %v767_v46 = vshll.u32 %v719_v38, 16  ;;  %v721_v59 = vmul.bf16 %v21758_v27, %v21786_v56  ;;  %427 = vst [vmem:[#allocation2 + $0x48] sm:$0xff] %v21828_v39  ;;  %s25055_s29 = scalar_lea.vmem [#allocation9], %s16541_s14  ;;  %s17115_s16 = sshll.u32 %s21620_s25, 12 }
  0x5e   : > { %17987 = vmatpush3.bf16.msra.mxu0 %v20928_v4  ;;  %v758_v51 = vrot.slane %v756_v41, 7  ;;  %v772_v54 = vshrl.u32 %v720_v47, 16  ;;  %v775_v55 = vshll.u32 %v720_v47, 16  ;;  %v611_v60 = vor.u32 %v609_v52, %v607_v48  ;;  %v21842_v48 = vld [vmem:[%s21731_s10 + $0x40] sm:$0xff]   ;;  %s16449_s17 = sshll.u32 %s25055_s29, 4  ;;  %s25128_s25 = scalar_lea.sflag [#allocation6], %s273_s15  ;;  %s25121_s17 = int_to_ptr.vmem [resolvable:$true] %s16449_s17 }
  0x5f   : > { %17988 = vmatprep.subr.bf16.mxu0 %v20929_v6  ;;  %v766_v53 = vrot.slane %v764_v45, 7  ;;  %v617_v2 = vshrl.u32 %v20944_v49, 16  ;;  %v780_v5 = vshrl.u32 %v721_v59, 16  ;;  %v615_v7 = vrot.slane %v613_v61, 1  ;;  %428 = vst [vmem:[#allocation2 + $0x50] sm:$0xff] %v21842_v48  ;;  %s21484_s20 = scalar_lea.vmem %s25121_s17, 4096 }
  0x60   : > { %v761_v58 = vor.u32 %v759_v42, %v758_v51  ;;  %v21796_v1 = vrot.slane %v772_v54, 7  ;;  %v621_v9 = vshll.u32 %v20946_v62, 16  ;;  %v625_v10 = vshrl.u32 %v20946_v62, 16  ;;  %p21485_p10 = scmp.ne.s32.totalorder %s25121_s17, %s21484_s20  ;;  %p25436_p1 = scmp.ne.s32.totalorder %s25275_s7, 0 }
  0x61   : > { %v769_v63 = vor.u32 %v767_v46, %v766_v53  ;;  %v21809_v14 = vsel %vm572_vm0, %v611_v60, %v615_v7  ;;  %v619_v16 = vor.u32 %v617_v2, %v615_v7  ;;  %v782_v23 = vrot.slane %v780_v5, 7  ;;  %v21857_v5 = vld [vmem:[%s21731_s10 + $0x48] sm:$0xff]   ;;  %s21561_s26 = smov [#allocation9]  }
  0x62   : > { %17989 = vmatpush3.bf16.msra.mxu0 %v20929_v6  ;;  %v762_v4 = vsel %vm750_vm1, %v754_v37, %v761_v58  ;;  %v783_v6 = vshll.u32 %v721_v59, 16  ;;  %v777_v13 = vor.u32 %v775_v55, %v21796_v1  ;;  %v722_v19 = vmul.bf16 %v21774_v40, %v21809_v14  ;;  %v20956_v58 = vld [vmem:[%s25170_s1 + $0x50] sm:$0xff]   ;;  %429 = vst [vmem:[#allocation2 + $0x58] sm:$0xff] %v21857_v5  ;;  %p21486_p2 = pnand %p21485_p10, %p25436_p1  ;;  %s21488_s28 = sshll.u32 %s21561_s26, 4  ;;  %s21489_s28 = int_to_ptr.vmem [resolvable:$false] %s21488_s28 }
  0x63   : > { %17990 = vmatprep.subr.bf16.mxu0 %v20930_v18  ;;  %17996 = vmatprep.mubr.bf16.mxu0 %v762_v4  ;;  %v623_v20 = vrot.slane %v621_v9, 1  ;;  %v770_v22 = vsel %vm750_vm1, %v758_v51, %v769_v63  ;;  %v633_v29 = vshrl.u32 %v20949_v8, 16  ;;  %v637_v38 = vshll.u32 %v20951_v26, 16  ;;  %s21490_s11 = scalar_lea.vmem %s21489_s28, 8192  ;;  %p21491_p4 = scmp.lt.s32.totalorder %s25121_s17, %s21489_s28 }
  0x64   : > { %v788_v30 = vshrl.u32 %v722_v19, 16  ;;  %v791_v31 = vshll.u32 %v722_v19, 16  ;;  %v778_v35 = vsel %vm750_vm1, %v766_v53, %v777_v13  ;;  %v785_v49 = vor.u32 %v783_v6, %v782_v23  ;;  %v20947_v53 = vld [vmem:[#allocation4 + $0x50] sm:$0xff]   ;;  %p21487_p3 = pneg %p21486_p2  ;;  %p21492_p7 = scmp.lt.s32.totalorder %s21490_s11, %s21484_s20 }
  0x65   : > { %v21821_v32 = vsel %vm572_vm0, %v619_v16, %v623_v20  ;;  %v627_v34 = vor.u32 %v625_v10, %v623_v20  ;;  %v639_v47 = vrot.slane %v637_v38, 1  ;;  %v645_v51 = vshll.u32 %v20954_v44, 16  ;;  %v21874_v20 = vld [vmem:[%s21731_s10 + $0x50] sm:$0xff]  }
  0x66   : > { %17991 = vmatpush3.bf16.msra.mxu0 %v20930_v18  ;;  %v629_v18 = vshll.u32 %v20949_v8, 16  ;;  %v21830_v41 = vrot.slane %v788_v30, 7  ;;  %v649_v2 = vshrl.u32 %v20954_v44, 16  ;;  %v653_v4 = vshll.u32 %v20956_v58, 16  ;;  %v20952_v8 = vld [vmem:[#allocation4 + $0x58] sm:$0xff]   ;;  %430 = vst [vmem:[#allocation2 + $0x60] sm:$0xff] %v21874_v20  ;;  %p21493_p8 = por %p21492_p7, %p21491_p4 }
  0x67   : > { %17992 = vmatprep.subr.bf16.mxu0 %v20931_v36  ;;  %v647_v61 = vrot.slane %v645_v51, 1  ;;  %v786_v6 = vsel %vm750_vm1, %v21796_v1, %v785_v49  ;;  %v20959_v1 = vld [vmem:[%s25170_s1 + $0x58] sm:$0xff]   ;;  %v657_v19 = vshrl.u32 %v20956_v58, 16  ;;  %v20964_v51 = vld [vmem:[%s25170_s1 + $0x68] sm:$0xff]  }
  0x68   : > { %v631_v25 = vrot.slane %v629_v18, 1  ;;  %v793_v52 = vor.u32 %v791_v31, %v21830_v41  ;;  %v655_v18 = vrot.slane %v653_v4, 1  ;;  %v21887_v44 = vld [vmem:[%s21731_s10 + $0x58] sm:$0xff]   ;;  %p21494_p11 = pnand %p21493_p8, %p21487_p3 }
  0x69   : > { %v651_v16 = vor.u32 %v649_v2, %v647_v61  ;;  %431 = vst [vmem:[#allocation2 + $0x68] sm:$0xff] %v21887_v44  ;;  %v677_v2 = vshll.u32 %v20964_v51, 16 }
  0x6a   : > { %17993 = vmatpush3.bf16.msra.mxu0 %v20931_v36  ;;  %v723_v36 = vmul.bf16 %v21789_v57, %v21821_v32  ;;  %v635_v37 = vor.u32 %v633_v29, %v631_v25  ;;  %v21833_v42 = vsel %vm572_vm0, %v627_v34, %v631_v25  ;;  %v794_v10 = vsel %vm750_vm1, %v782_v23, %v793_v52  ;;  %v21899_v52 = vld [vmem:[%s21731_s10 + $0x60] sm:$0xff]  }
  0x6b   : > { %17994 = vmatprep.subr.bf16.mxu0 %v20932_v50  ;;  %v724_v46 = vmul.bf16 %v21800_v3, %v21833_v42  ;;  %v661_v25 = vshll.u32 %v20959_v1, 16  ;;  %v21882_v31 = vsel %vm572_vm0, %v651_v16, %v655_v18  ;;  %v659_v34 = vor.u32 %v657_v19, %v655_v18  ;;  %432 = vst [vmem:[#allocation2 + $0x70] sm:$0xff] %v21899_v52  ;;  %v20969_v16 = vld [vmem:[%s25170_s1 + $0x78] sm:$0xff]  }
  0x6c   : > { %v796_v45 = vshrl.u32 %v723_v36, 16  ;;  %v21846_v55 = vsel %vm572_vm0, %v635_v37, %v639_v47  ;;  %v799_v59 = vshll.u32 %v723_v36, 16  ;;  %v665_v37 = vshrl.u32 %v20959_v1, 16 }
  0x6d   : > { %v804_v54 = vshrl.u32 %v724_v46, 16  ;;  %v21854_v63 = vmul.bf16 %v21814_v21, %v21846_v55  ;;  %v807_v7 = vshll.u32 %v724_v46, 16  ;;  %v663_v36 = vrot.slane %v661_v25, 1 }
  0x6e   : > { %17995 = vmatpush3.bf16.msra.mxu0 %v20932_v50  ;;  %v641_v50 = vshrl.u32 %v20951_v26, 16  ;;  %v798_v62 = vrot.slane %v796_v45, 7  ;;  %v20961_v26 = vld [vmem:[%s25170_s1 + $0x60] sm:$0xff]   ;;  %v681_v19 = vshrl.u32 %v20964_v51, 16 }
  0x6f   : > { %18028 = vmatprep.subr.bf16.mxu0 %v20937_v12  ;;  %v812_v23 = vshrl.u32 %v21854_v63, 16  ;;  %v815_v29 = vshll.u32 %v21854_v63, 16  ;;  %v669_v38 = vshll.u32 %v20961_v26, 16  ;;  %v21892_v49 = vsel %vm572_vm0, %v659_v34, %v663_v36 }
  0x70   : > { %v643_v60 = vor.u32 %v641_v50, %v639_v47  ;;  %v727_v47 = vmul.bf16 %v21842_v48, %v21882_v31  ;;  %v20962_v50 = vld [vmem:[#allocation4 + $0x68] sm:$0xff]   ;;  %v667_v63 = vor.u32 %v665_v37, %v663_v36 }
  0x71   : > { %17997 = vmatmul.mubr.bf16.vlgmr.msra.gmra.mrb[0].mxu0 %v770_v22  ;;  %v801_v22 = vor.u32 %v799_v59, %v798_v62  ;;  %v814_v45 = vrot.slane %v812_v23, 7  ;;  %v671_v58 = vrot.slane %v669_v38, 1  ;;  %v673_v59 = vshrl.u32 %v20961_v26, 16 }
  0x72   : > { %18029 = vmatpush3.bf16.msra.mxu0 %v20937_v12  ;;  %18000 = vmatprep.mubr.bf16.mxu0 %v778_v35  ;;  %v21862_v9 = vsel %vm572_vm0, %v643_v60, %v647_v61  ;;  %v21865_v12 = vrot.slane %v804_v54, 7  ;;  %v728_v54 = vmul.bf16 %v21857_v5, %v21892_v49  ;;  %v831_v26 = vshll.u32 %v727_v47, 16 }
  0x73   : > { %18030 = vmatprep.subr.bf16.mxu0 %v20942_v24  ;;  %v726_v13 = vmul.bf16 %v21828_v39, %v21862_v9  ;;  %v675_v4 = vor.u32 %v673_v59, %v671_v58  ;;  %v21917_v18 = vsel %vm572_vm0, %v667_v63, %v671_v58 }
  0x74   : > { %v809_v35 = vor.u32 %v807_v7, %v21865_v12  ;;  %v679_v7 = vrot.slane %v677_v2, 1  ;;  %v729_v36 = vmul.bf16 %v21874_v20, %v21917_v18 }
  0x75   : > { %v820_v30 = vshrl.u32 %v726_v13, 16  ;;  %v823_v46 = vshll.u32 %v726_v13, 16  ;;  %v21911_v13 = vld [vmem:[%s21731_s10 + $0x68] sm:$0xff]  }
  0x76   : > { %18031 = vmatpush3.bf16.msra.mxu0 %v20942_v24  ;;  %v20957_v24 = vld [vmem:[#allocation4 + $0x60] sm:$0xff]   ;;  %v810_v60 = vsel %vm750_vm1, %v798_v62, %v809_v35  ;;  %v836_v62 = vshrl.u32 %v728_v54, 16  ;;  %v21920_v23 = vsel %vm572_vm0, %v675_v4, %v679_v7  ;;  %433 = vst [vmem:[#allocation2 + $0x78] sm:$0xff] %v21911_v13  ;;  %v839_v35 = vshll.u32 %v728_v54, 16 }
  0x77   : > { %18032 = vmatprep.subr.bf16.mxu0 %v20947_v53  ;;  %v822_v61 = vrot.slane %v820_v30, 7  ;;  %v693_v30 = vshll.u32 %v20969_v16, 16  ;;  %v730_v51 = vmul.bf16 %v21887_v44, %v21920_v23  ;;  %v844_v54 = vshrl.u32 %v729_v36, 16 }
  0x79   : > { %18001 = vmatmul.mubr.bf16.gmra.mrb[4].mxu0 %v786_v6  ;;  %v828_v6 = vshrl.u32 %v727_v47, 16  ;;  %v825_v1 = vor.u32 %v823_v46, %v822_v61  ;;  %v838_v46 = vrot.slane %v836_v62, 7  ;;  %v683_v47 = vor.u32 %v681_v19, %v679_v7 }
  0x7a   : > { %18004 = vmatprep.mubr.bf16.mxu0 %v794_v10  ;;  %18033 = vmatpush3.bf16.msra.mxu0 %v20947_v53  ;;  %v802_v53 = vsel %vm750_vm1, %v21830_v41, %v801_v22  ;;  %v20966_v41 = vld [vmem:[%s25170_s1 + $0x70] sm:$0xff]   ;;  %v695_v59 = vrot.slane %v693_v30, 1 }
  0x7b   : > { %18034 = vmatprep.subr.bf16.mxu0 %v20952_v8  ;;  %v685_v10 = vshll.u32 %v20966_v41, 16  ;;  %v20967_v22 = vld [vmem:[#allocation4 + $0x70] sm:$0xff]   ;;  %v830_v25 = vrot.slane %v828_v6, 7  ;;  %v826_v38 = vsel %vm750_vm1, %v814_v45, %v825_v1  ;;  %v847_v6 = vshll.u32 %v729_v36, 16 }
  0x7c   : > { %v855_v1 = vshll.u32 %v730_v51, 16 }
  0x7d   : > { %v687_v37 = vrot.slane %v685_v10, 1 }
  0x7e   : > { %18035 = vmatpush3.bf16.msra.mxu0 %v20952_v8  ;;  %v817_v8 = vor.u32 %v815_v29, %v814_v45  ;;  %v689_v29 = vshrl.u32 %v20966_v41, 16  ;;  %v20972_v45 = vld [vmem:[#allocation4 + $0x80] sm:$0xff]   ;;  %v846_v41 = vrot.slane %v844_v54, 7 }
  0x7f   : > { %18036 = vmatprep.subr.bf16.mxu0 %v20957_v24  ;;  %v21935_v63 = vsel %vm572_vm0, %v683_v47, %v687_v37 }
  0x80   : > { %v818_v34 = vsel %vm750_vm1, %v21865_v12, %v817_v8  ;;  %v691_v58 = vor.u32 %v689_v29, %v687_v37  ;;  %v833_v12 = vor.u32 %v831_v26, %v830_v25  ;;  %25284 = vst [vmem:[#allocation13_spill] sm:$0xff] %v21935_v63  ;;  %v731_v7 = vmul.bf16 %v21899_v52, %v21935_v63 }
  0x81   : > { %18005 = vmatmul.mubr.bf16.gmra.mrb[8].mxu0 %v802_v53  ;;  %v20971_v53 = vld [vmem:[#allocation4 + $0x78] sm:$0xff]   ;;  %v697_v8 = vshrl.u32 %v20969_v16, 16 }
  0x82   : > { %18008 = vmatprep.mubr.bf16.mxu0 %v810_v60  ;;  %18037 = vmatpush3.bf16.msra.mxu0 %v20957_v24  ;;  %v21924_v24 = vld [vmem:[%s21731_s10 + $0x70] sm:$0xff]   ;;  %v852_v60 = vshrl.u32 %v730_v51, 16  ;;  %v21938_v2 = vsel %vm572_vm0, %v691_v58, %v695_v59  ;;  %v834_v4 = vsel %vm750_vm1, %v822_v61, %v833_v12  ;;  %v860_v26 = vshrl.u32 %v731_v7, 16 }
  0x83   : > { %18038 = vmatprep.subr.bf16.mxu0 %v20962_v50  ;;  %434 = vst [vmem:[#allocation2 + $0x80] sm:$0xff] %v21924_v24  ;;  %25285 = vst [vmem:[#allocation14_spill] sm:$0xff] %v21938_v2  ;;  %v732_v19 = vmul.bf16 %v21911_v13, %v21938_v2  ;;  %v21946_v61 = vor.u32 %v697_v8, %v695_v59  ;;  %v20973_v8 = vld [vmem:[#allocation4 + $0x88] sm:$0xff]  }
  0x84   : > { %v854_v10 = vrot.slane %v852_v60, 7  ;;  %v862_v16 = vrot.slane %v860_v26, 7  ;;  %v20980_v60 = vld [vmem:[%s25170_s1 + $0x80] sm:$0xff]  }
  0x85   : > { %25286 = vst [vmem:[#allocation15_spill] sm:$0xff] %v21946_v61  ;;  %v868_v30 = vshrl.u32 %v732_v19, 16 }
  0x86   : > { %18039 = vmatpush3.bf16.msra.mxu0 %v20962_v50  ;;  %v841_v50 = vor.u32 %v839_v35, %v838_v46  ;;  %v857_v29 = vor.u32 %v855_v1, %v854_v10  ;;  %v863_v35 = vshll.u32 %v731_v7, 16  ;;  %v20984_v7 = vld [vmem:[%s25170_s1 + $0x98] sm:$0xff]  }
  0x87   : > { %18040 = vmatprep.subr.bf16.mxu0 %v20967_v22  ;;  %v870_v37 = vrot.slane %v868_v30, 7  ;;  %v1551_v26 = vshrl.u32 %v20984_v7, 16  ;;  %v20988_v30 = vld [vmem:[%s25170_s1 + $0xb0] sm:$0xff]  }
  0x88   : > { %v842_v62 = vsel %vm750_vm1, %v830_v25, %v841_v50  ;;  %v733_v25 = vmul.bf16 %v21924_v24, %v21946_v61  ;;  %v858_v36 = vsel %vm750_vm1, %v846_v41, %v857_v29  ;;  %v865_v51 = vor.u32 %v863_v35, %v862_v16  ;;  %v20987_v29 = vld [vmem:[%s25170_s1 + $0xa8] sm:$0xff]  }
  0x89   : > { %18009 = vmatmul.mubr.bf16.gmra.mrb[12].mxu0 %v818_v34 }
  0x8a   : > { %18012 = vmatprep.mubr.bf16.mxu0 %v826_v38  ;;  %18041 = vmatpush3.bf16.msra.mxu0 %v20967_v22  ;;  %v849_v22 = vor.u32 %v847_v6, %v846_v41  ;;  %v871_v38 = vshll.u32 %v732_v19, 16  ;;  %v876_v47 = vshrl.u32 %v733_v25, 16  ;;  %v866_v58 = vsel %vm750_vm1, %v854_v10, %v865_v51  ;;  %v20982_v6 = vld [vmem:[%s25170_s1 + $0x90] sm:$0xff]   ;;  %v21003_v10 = vld [vmem:[%s21731_s10 + $0x78] sm:$0xff]   ;;  %s25119_s10 = scalar_lea.hbm %s25175_s6, %s17115_s16 }
  0x8b   : > { %18042 = vmatprep.subr.bf16.mxu0 %v20971_v53  ;;  %v879_v12 = vshll.u32 %v733_v25, 16  ;;  %v1528_v41 = vshrl.u32 %v20980_v60, 16  ;;  %435 = vst [vmem:[#allocation2 + $0x88] sm:$0xff] %v21003_v10  ;;  %v1554_v51 = vshll.u32 %v20984_v7, 16  ;;  %v20976_v7 = vld [vmem:[#allocation4 + $0xa0] sm:$0xff]  }
  0x8c   : > { %v850_v34 = vsel %vm750_vm1, %v838_v46, %v849_v22  ;;  %v878_v59 = vrot.slane %v876_v47, 7  ;;  %v1543_v22 = vshrl.u32 %v20982_v6, 16 }
  0x8d   : > { %v1530_v19 = vrot.slane %v1528_v41, 7 }
  0x8e   : > { %18043 = vmatpush3.bf16.msra.mxu0 %v20971_v53  ;;  %v873_v53 = vor.u32 %v871_v38, %v870_v37  ;;  %v881_v54 = vor.u32 %v879_v12, %v878_v59  ;;  %v1545_v38 = vrot.slane %v1543_v22, 7  ;;  %v1575_v59 = vshrl.u32 %v20988_v30, 16 }
  0x8f   : > { %18076 = vmatprep.subr.bf16.mxu0 %v20972_v45 }
  0x90   : > { %v874_v46 = vsel %vm750_vm1, %v862_v16, %v873_v53  ;;  %v882_v50 = vsel %vm750_vm1, %v870_v37, %v881_v54  ;;  %v1553_v53 = vrot.slane %v1551_v26, 7  ;;  %v20975_v54 = vld [vmem:[#allocation4 + $0x98] sm:$0xff]  }
  0x91   : > { %18013 = vmatmul.mubr.bf16.gmra.mrb[16].mxu0 %v834_v4  ;;  %v20981_v4 = vld [vmem:[%s25170_s1 + $0x88] sm:$0xff]  }
  0x92   : > { %18016 = vmatprep.mubr.bf16.mxu0 %v842_v62  ;;  %v20985_v62 = vld [vmem:[%s25170_s1 + $0xa0] sm:$0xff]   ;;  %v1535_v1 = vshrl.u32 %v20981_v4, 16  ;;  %v1538_v16 = vshll.u32 %v20981_v4, 16 }
  0x93   : > { %v1559_v35 = vshrl.u32 %v20985_v62, 16  ;;  %v1562_v47 = vshll.u32 %v20985_v62, 16  ;;  %v1556_v62 = vor.u32 %v1554_v51, %v1553_v53  ;;  %v20994_v51 = vld [vmem:[%s25170_s1 + $0xd0] sm:$0xff]  }
  0x94   : > { %v1537_v25 = vrot.slane %v1535_v1, 7  ;;  %v20993_v1 = vld [vmem:[%s25170_s1 + $0xc8] sm:$0xff]  }
  0x95   : > { %v1561_v12 = vrot.slane %v1559_v35, 7 }
  0x97   : > { %v1564_v22 = vor.u32 %v1562_v47, %v1561_v12 }
  0x99   : > { %18017 = vmatmul.mubr.bf16.gmra.mrb[20].mxu0 %v850_v34  ;;  %v20974_v34 = vld [vmem:[#allocation4 + $0x90] sm:$0xff]   ;;  %v22010_v47 = vsel %vm750_vm1, %v1553_v53, %v1564_v22 }
  0x9a   : > { %18020 = vmatprep.mubr.bf16.mxu0 %v858_v36  ;;  %v1546_v36 = vshll.u32 %v20982_v6, 16  ;;  %v1570_v6 = vshll.u32 %v20987_v29, 16  ;;  %25291 = vst [vmem:[#allocation20_spill] sm:$0xff] %v22010_v47  ;;  %v20978_v53 = vld [vmem:[#allocation4 + $0xb0] sm:$0xff]  }
  0x9c   : > { %v1548_v41 = vor.u32 %v1546_v36, %v1545_v38 }
  0x9e   : > { %v22001_v36 = vsel %vm750_vm1, %v1537_v25, %v1548_v41  ;;  %v1599_v41 = vshrl.u32 %v20993_v1, 16 }
  0x9f   : > { %25289 = vst [vmem:[#allocation18_spill] sm:$0xff] %v22001_v36 }
  0xa1   : > { %18021 = vmatmul.mubr.bf16.gmra.mrb[24].mxu0 %v866_v58  ;;  %v1567_v58 = vshrl.u32 %v20987_v29, 16 }
  0xa2   : > { %18024 = vmatprep.mubr.bf16.mxu0 %v874_v46  ;;  %v20991_v46 = vld [vmem:[%s25170_s1 + $0xc0] sm:$0xff]  }
  0xa3   : > { %v1569_v10 = vrot.slane %v1567_v58, 7 }
  0xa5   : > { %v1572_v58 = vor.u32 %v1570_v6, %v1569_v10  ;;  %v1607_v6 = vshrl.u32 %v20994_v51, 16 }
  0xa9   : > { %18025 = vmatmul.mubr.bf16.gmra.mrb[28].mxu0 %v882_v50  ;;  %v1540_v50 = vor.u32 %v1538_v16, %v1537_v25  ;;  %v1591_v16 = vshrl.u32 %v20991_v46, 16  ;;  %v1594_v25 = vshll.u32 %v20991_v46, 16 }
  0xaa   : > { %18044 = vmatprep.mubr.bf16.mxu0 %v21560_v0  ;;  %v1531_v0 = vshll.u32 %v20980_v60, 16  ;;  %v21357_v60 = vld [vmem:[#allocation2] sm:$0xff] }
  0xab   : > { %v21997_v29 = vsel %vm750_vm1, %v1530_v19, %v1540_v50 }
  0xac   : > { %v21980_v37 = vor.u32 %v1531_v0, %v1530_v19  ;;  %v1578_v0 = vshll.u32 %v20988_v30, 16  ;;  %25288 = vst [vmem:[#allocation17_spill] sm:$0xff] %v21997_v29  ;;  %v22004_v30 = vsel %vm750_vm1, %v1545_v38, %v1556_v62  ;;  %v22014_v38 = vmul.bf16 %v21740_v11, %v21997_v29 }
  0xad   : > { %25290 = vst [vmem:[#allocation19_spill] sm:$0xff] %v22004_v30  ;;  %v22018_v62 = vmul.bf16 %v21749_v17, %v22001_v36 }
  0xae   : > { %25287 = vst [vmem:[#allocation16_spill] sm:$0xff] %v21980_v37  ;;  %v21989_v4 = vmul.bf16 %v21357_v60, %v21980_v37  ;;  %v1593_v60 = vrot.slane %v1591_v16, 7  ;;  %v1602_v16 = vshll.u32 %v20993_v1, 16 }
  0xb0   : > { %v1707_v35 = vshll.u32 %v21989_v4, 16 }
  0xb1   : > { %18045 = vmatmul.mubr.bf16.vlgmr.msra.gmra.mrb[0].mxu0 %v21740_v11  ;;  %v22031_v11 = vmul.bf16 %v21774_v40, %v22010_v47 }
  0xb2   : > { %18077 = vmatpush3.bf16.msra.mxu0 %v20972_v45  ;;  %18048 = vmatprep.mubr.bf16.mxu0 %v21749_v17  ;;  %v20990_v45 = vld [vmem:[%s25170_s1 + $0xb8] sm:$0xff]   ;;  %v22027_v46 = vrot.slane %v1707_v35, 1  ;;  %v22034_v17 = vsel %vm750_vm1, %v1561_v12, %v1572_v58  ;;  %v1712_v35 = vshll.u32 %v22014_v38, 16  ;;  %v22045_v12 = vrot.slane %v1607_v6, 7 }
  0xb3   : > { %18078 = vmatprep.subr.bf16.mxu0 %v20973_v8  ;;  %v1583_v26 = vshrl.u32 %v20990_v45, 16  ;;  %25292 = vst [vmem:[#allocation21_spill] sm:$0xff] %v22034_v17  ;;  %v1610_v58 = vshll.u32 %v20994_v51, 16  ;;  %v22054_v1 = vmul.bf16 %v21789_v57, %v22034_v17 }
  0xb4   : > { %v22066_v47 = vrot.slane %v1712_v35, 1 }
  0xb5   : > { %v1585_v50 = vrot.slane %v1583_v26, 7  ;;  %v1596_v26 = vor.u32 %v1594_v25, %v1593_v60  ;;  %v1744_v35 = vshll.u32 %v22054_v1, 16 }
  0xb6   : > { %18079 = vmatpush3.bf16.msra.mxu0 %v20973_v8  ;;  %v1577_v8 = vrot.slane %v1575_v59, 7  ;;  %v1586_v59 = vshll.u32 %v20990_v45, 16  ;;  %v22024_v45 = vmul.bf16 %v21758_v27, %v22004_v30 }
  0xb7   : > { %18080 = vmatprep.subr.bf16.mxu0 %v20974_v34  ;;  %v22064_v6 = vsel %vm750_vm1, %v1585_v50, %v1596_v26  ;;  %v22078_v26 = vld [vmem:[#allocation4 + $0xc0] sm:$0xff]  }
  0xb8   : > { %v1580_v19 = vor.u32 %v1578_v0, %v1577_v8  ;;  %v1588_v22 = vor.u32 %v1586_v59, %v1585_v50  ;;  %v1736_v59 = vshll.u32 %v22031_v11, 16  ;;  %25295 = vst [vmem:[#allocation24_spill] sm:$0xff] %v22064_v6 }
  0xb9   : > { %18049 = vmatmul.mubr.bf16.gmra.mrb[4].mxu0 %v21758_v27  ;;  %v20996_v27 = vld [vmem:[%s25170_s1 + $0xd8] sm:$0xff]  }
  0xba   : > { %18052 = vmatprep.mubr.bf16.mxu0 %v21774_v40  ;;  %18081 = vmatpush3.bf16.msra.mxu0 %v20974_v34  ;;  %v20977_v34 = vld [vmem:[#allocation4 + $0xa8] sm:$0xff]   ;;  %v22037_v0 = vsel %vm750_vm1, %v1569_v10, %v1580_v19  ;;  %v1720_v40 = vshll.u32 %v22018_v62, 16  ;;  %v20997_v10 = vld [vmem:[%s25170_s1 + $0xe0] sm:$0xff]   ;;  %v22061_v51 = vsel %vm750_vm1, %v1577_v8, %v1588_v22  ;;  %v1615_v19 = vshrl.u32 %v20996_v27, 16 }
  0xbb   : > { %18082 = vmatprep.subr.bf16.mxu0 %v20975_v54  ;;  %25293 = vst [vmem:[#allocation22_spill] sm:$0xff] %v22037_v0  ;;  %v22058_v25 = vmul.bf16 %v21800_v3, %v22037_v0  ;;  %25294 = vst [vmem:[#allocation23_spill] sm:$0xff] %v22061_v51  ;;  %v1612_v22 = vor.u32 %v1610_v58, %v22045_v12  ;;  %v1623_v50 = vshrl.u32 %v20997_v10, 16  ;;  %v1618_v17 = vshll.u32 %v20996_v27, 16 }
  0xbc   : > { %v22068_v30 = vrot.slane %v1720_v40, 1  ;;  %v22085_v40 = vmul.bf16 %v21814_v21, %v22061_v51  ;;  %v1626_v51 = vshll.u32 %v20997_v10, 16  ;;  %v22108_v27 = vrot.slane %v1744_v35, 1 }
  0xbd   : > { %v1752_v58 = vshll.u32 %v22058_v25, 16 }
  0xbe   : > { %18083 = vmatpush3.bf16.msra.mxu0 %v20975_v54  ;;  %v1728_v54 = vshll.u32 %v22024_v45, 16 }
  0xbf   : > { %18084 = vmatprep.subr.bf16.mxu0 %v20976_v7 }
  0xc1   : > { %18053 = vmatmul.mubr.bf16.gmra.mrb[8].mxu0 %v21789_v57 }
  0xc2   : > { %18056 = vmatprep.mubr.bf16.mxu0 %v21800_v3  ;;  %18085 = vmatpush3.bf16.msra.mxu0 %v20976_v7  ;;  %v1601_v7 = vrot.slane %v1599_v41, 7  ;;  %v20979_v41 = vld [vmem:[#allocation4 + $0xb8] sm:$0xff]   ;;  %v22073_v3 = vrot.slane %v1728_v54, 1  ;;  %v22089_v54 = vmul.bf16 %v21828_v39, %v22064_v6 }
  0xc3   : > { %18086 = vmatprep.subr.bf16.mxu0 %v20977_v34 }
  0xc4   : > { %v22099_v57 = vsel %vm750_vm1, %v1601_v7, %v1612_v22  ;;  %v1768_v6 = vshll.u32 %v22089_v54, 16  ;;  %v22117_v22 = vrot.slane %v1752_v58, 1 }
  0xc5   : > { %25297 = vst [vmem:[#allocation26_spill] sm:$0xff] %v22099_v57  ;;  %v22114_v10 = vmul.bf16 %v21857_v5, %v22099_v57 }
  0xc6   : > { %18087 = vmatpush3.bf16.msra.mxu0 %v20977_v34  ;;  %v1604_v34 = vor.u32 %v1602_v16, %v1601_v7  ;;  %v22080_v16 = vrot.slane %v1736_v59, 1  ;;  %v20999_v59 = vld [vmem:[%s25170_s1 + $0xe8] sm:$0xff]  }
  0xc7   : > { %18088 = vmatprep.subr.bf16.mxu0 %v20978_v53  ;;  %v1634_v0 = vshll.u32 %v20999_v59, 16  ;;  %v1784_v58 = vshll.u32 %v22114_v10, 16 }
  0xc8   : > { %v22093_v8 = vsel %vm750_vm1, %v1593_v60, %v1604_v34  ;;  %v1631_v34 = vshrl.u32 %v20999_v59, 16 }
  0xc9   : > { %18057 = vmatmul.mubr.bf16.gmra.mrb[12].mxu0 %v21814_v21  ;;  %25296 = vst [vmem:[#allocation25_spill] sm:$0xff] %v22093_v8  ;;  %v1625_v21 = vrot.slane %v1623_v50, 7  ;;  %v22105_v60 = vmul.bf16 %v21842_v48, %v22093_v8 }
  0xca   : > { %18060 = vmatprep.mubr.bf16.mxu0 %v21828_v39  ;;  %18089 = vmatpush3.bf16.msra.mxu0 %v20978_v53  ;;  %v1617_v53 = vrot.slane %v1615_v19, 7  ;;  %v1760_v39 = vshll.u32 %v22085_v40, 16  ;;  %v22123_v19 = vrot.slane %v1768_v6, 1 }
  0xcb   : > { %18090 = vmatprep.subr.bf16.mxu0 %v20979_v41  ;;  %v1628_v8 = vor.u32 %v1626_v51, %v1625_v21  ;;  %v1776_v57 = vshll.u32 %v22105_v60, 16  ;;  %v1633_v51 = vrot.slane %v1631_v34, 7  ;;  %v22157_v34 = vrot.slane %v1784_v58, 1 }
  0xcc   : > { %v22121_v35 = vrot.slane %v1760_v39, 1  ;;  %v22142_v39 = vld [vmem:[%s25170_s1 + $0xf8] sm:$0xff]  }
  0xcd   : > { %v22137_v6 = vsel %vm750_vm1, %v1617_v53, %v1628_v8 }
  0xce   : > { %18091 = vmatpush3.bf16.msra.mxu0 %v20979_v41  ;;  %v1620_v41 = vor.u32 %v1618_v17, %v1617_v53  ;;  %25299 = vst [vmem:[#allocation28_spill] sm:$0xff] %v22137_v6  ;;  %v22150_v17 = vmul.bf16 %v21887_v44, %v22137_v6  ;;  %v1636_v53 = vor.u32 %v1634_v0, %v1633_v51 }
  0xcf   : > { %18124 = vmatprep.subr.bf16.mxu0 %v22078_v26 }
  0xd0   : > { %v1800_v36 = vshll.u32 %v22150_v17, 16  ;;  %v1804_v58 = vshrl.u32 %v22150_v17, 16 }
  0xd1   : > { %18061 = vmatmul.mubr.bf16.gmra.mrb[16].mxu0 %v21842_v48  ;;  %v21000_v48 = vld [vmem:[%s25170_s1 + $0xf0] sm:$0xff]  }
  0xd2   : > { %18064 = vmatprep.mubr.bf16.mxu0 %v21857_v5  ;;  %v22134_v5 = vsel %vm750_vm1, %v22045_v12, %v1620_v41  ;;  %v22153_v12 = vrot.slane %v1776_v57, 1  ;;  %v1639_v41 = vshrl.u32 %v21000_v48, 16  ;;  %v1642_v7 = vshll.u32 %v21000_v48, 16  ;;  %v1413_v48 = vld [vmem:[#allocation2 + $0x88] sm:$0x1] }
  0xd3   : > { %25298 = vst [vmem:[#allocation27_spill] sm:$0xff] %v22134_v5  ;;  %v22146_v59 = vmul.bf16 %v21874_v20, %v22134_v5  ;;  %v1647_v5 = vshrl.u32 %v22142_v39, 16  ;;  %v22182_v8 = vrot.slane %v1800_v36, 1  ;;  %v25302_v36 = vshrl.u32 %v22014_v38, 16 }
  0xd4   : > { %v22173_v57 = vrot.slane %v1639_v41, 7 }
  0xd5   : > { %v1792_v50 = vshll.u32 %v22146_v59, 16  ;;  %v22177_v6 = vrot.slane %v1647_v5, 7 }
  0xd6   : > { %v1644_v29 = vor.u32 %v1642_v7, %v22173_v57  ;;  %v25303_v7 = vshrl.u32 %v22018_v62, 16 }
  0xd7   : > { %v1687_v41 = vmul.bf16 %v22177_v6, %v1413_v48 }
  0xd8   : > { %v1726_v48 = vor.u32 %v25303_v7, %v22068_v30  ;;  %v20995_v7 = vld [vmem:[#allocation4 + $0xe0] sm:$0xff]  }
  0xd9   : > { %18065 = vmatmul.mubr.bf16.gmra.mrb[20].mxu0 %v21874_v20  ;;  %v22164_v20 = vsel %vm750_vm1, %v1625_v21, %v1636_v53  ;;  %v25301_v21 = vshrl.u32 %v21989_v4, 16 }
  0xda   : > { %18068 = vmatprep.mubr.bf16.mxu0 %v21887_v44  ;;  %25300 = vst [vmem:[#allocation29_spill] sm:$0xff] %v22164_v20  ;;  %v22168_v0 = vmul.bf16 %v21899_v52, %v22164_v20  ;;  %v22171_v44 = vrot.slane %v1792_v50, 1  ;;  %v1650_v20 = vshll.u32 %v22142_v39, 16  ;;  %v1718_v39 = vor.u32 %v25302_v36, %v22066_v47  ;;  %v20986_v50 = vld [vmem:[#allocation4 + $0xc8] sm:$0xff]  }
  0xdb   : > { %v1710_v53 = vor.u32 %v22027_v46, %v25301_v21  ;;  %v22194_v46 = vshll.u32 %v1687_v41, 16  ;;  %v22200_v21 = vsel %vm750_vm1, %v1633_v51, %v1644_v29  ;;  %v1731_v38 = vsel %vm572_vm0, %v1726_v48, %v22073_v3 }
  0xdd   : > { %v1715_v5 = vsel %vm572_vm0, %v1710_v53, %v22066_v47  ;;  %v1723_v53 = vsel %vm572_vm0, %v1718_v39, %v22068_v30  ;;  %v2093_v47 = vld [vmem:[#allocation2 + $0x8] sm:$0x80]  ;;  %v25305_v30 = vshrl.u32 %v22031_v11, 16  ;;  %v25306_v11 = vshrl.u32 %v22054_v1, 16 }
  0xde   : > { %v2095_v36 = vmul.bf16 %v2093_v47, %v21745_v15 }
  0xdf   : > { %v1742_v41 = vor.u32 %v25305_v30, %v22080_v16  ;;  %v1750_v48 = vor.u32 %v25306_v11, %v22108_v27  ;;  %v25308_v30 = vshrl.u32 %v22085_v40, 16  ;;  %v25310_v11 = vshrl.u32 %v22105_v60, 16 }
  0xe1   : > { %18069 = vmatmul.mubr.bf16.gmra.mrb[24].mxu0 %v21899_v52  ;;  %v1808_v52 = vshll.u32 %v22168_v0, 16 }
  0xe2   : > { %18072 = vmatprep.mubr.bf16.mxu0 %v21911_v13 }
  0xe3   : > { %v22192_v4 = vrot.slane %v1808_v52, 1  ;;  %v20989_v52 = vld [vmem:[#allocation4 + $0xd0] sm:$0xff]  }
  0xe9   : > { %18073 = vmatmul.mubr.bf16.gmra.mrb[28].mxu0 %v21924_v24  ;;  %v22207_v24 = vmul.bf16 %v21911_v13, %v22200_v21  ;;  %v25304_v13 = vshrl.u32 %v22024_v45, 16  ;;  %v1834_v45 = vrot.slane %v22194_v46, 1 }
  0xea   : > { %18092 = vmatprep.mubr.bf16.mxu0 %v1715_v5  ;;  %v20992_v5 = vld [vmem:[#allocation4 + $0xd8] sm:$0xff]  }
  0xeb   : > { %v1816_v29 = vshll.u32 %v22207_v24, 16  ;;  %v1820_v51 = vshrl.u32 %v22207_v24, 16  ;;  %v1734_v62 = vor.u32 %v25304_v13, %v22073_v3  ;;  %v22228_v3 = vshrl.u32 %v2095_v36, 16  ;;  %v22255_v36 = vld [vmem:[#allocation2 + $0x80] sm:$0xff] }
  0xec   : > { %v1755_v13 = vsel %vm572_vm0, %v1750_v48, %v22117_v22  ;;  %v1782_v48 = vor.u32 %v25310_v11, %v22153_v12 }
  0xed   : > { %v1739_v39 = vsel %vm572_vm0, %v1734_v62, %v22080_v16  ;;  %v25307_v16 = vshrl.u32 %v22058_v25, 16  ;;  %v1652_v62 = vor.u32 %v1650_v20, %v22177_v6  ;;  %v21001_v25 = vld [vmem:[#allocation4 + $0xf0] sm:$0xff]   ;;  %v25309_v20 = vshrl.u32 %v22089_v54, 16  ;;  %v22263_v54 = vld [vmem:[#allocation4 + $0x100] sm:$0xff]  }
  0xee   : > { %v2131_v60 = vrot.slane %v22228_v3, 7  ;;  %v25313_v3 = vshrl.u32 %v22168_v0, 16 }
  0xf1   : > { %18093 = vmatmul.mubr.bf16.vlgmr.msra.gmra.mrb[0].mxu0 %v1723_v53  ;;  %v20998_v53 = vld [vmem:[#allocation4 + $0xe8] sm:$0xff]  }
  0xf2   : > { %18125 = vmatpush3.bf16.msra.mxu0 %v22078_v26  ;;  %18096 = vmatprep.mubr.bf16.mxu0 %v1731_v38  ;;  %v1747_v26 = vsel %vm572_vm0, %v1742_v41, %v22108_v27  ;;  %v22236_v38 = vld [vmem:[#allocation2 + $0x10] sm:$0xff]  ;;  %v1766_v41 = vor.u32 %v25308_v30, %v22121_v35 }
  0xf3   : > { %18126 = vmatprep.subr.bf16.mxu0 %v20986_v50  ;;  %v2096_v47 = vmul.bf16 %v22236_v38, %v21761_v28 }
  0xf4   : > { %v1771_v40 = vsel %vm572_vm0, %v1766_v41, %v22123_v19 }
  0xf5   : > { %v2133_v27 = vshrl.u32 %v2096_v47, 16 }
  0xf6   : > { %18127 = vmatpush3.bf16.msra.mxu0 %v20986_v50  ;;  %v1758_v50 = vor.u32 %v25307_v16, %v22117_v22  ;;  %v22250_v22 = vsel %vm750_vm1, %v22173_v57, %v1652_v62  ;;  %v1818_v57 = vrot.slane %v1816_v29, 1  ;;  %v25311_v16 = vshrl.u32 %v22114_v10, 16 }
  0xf7   : > { %18128 = vmatprep.subr.bf16.mxu0 %v20989_v52 }
  0xf8   : > { %v1763_v1 = vsel %vm572_vm0, %v1758_v50, %v22121_v35  ;;  %v1787_v50 = vsel %vm572_vm0, %v1782_v48, %v22157_v34 }
  0xf9   : > { %18097 = vmatmul.mubr.bf16.gmra.mrb[4].mxu0 %v1739_v39  ;;  %v1686_v39 = vmul.bf16 %v22255_v36, %v22250_v22 }
  0xfa   : > { %18100 = vmatprep.mubr.bf16.mxu0 %v1747_v26  ;;  %18129 = vmatpush3.bf16.msra.mxu0 %v20989_v52  ;;  %v2136_v52 = vshll.u32 %v2096_v47, 16  ;;  %v21004_v26 = vld [vmem:[#allocation4 + $0xf8] sm:$0xff]   ;;  %v1806_v47 = vor.u32 %v1804_v58, %v22182_v8 }
  0xfb   : > { %18130 = vmatprep.subr.bf16.mxu0 %v20992_v5 }
  0xfe   : > { %18131 = vmatpush3.bf16.msra.mxu0 %v20992_v5  ;;  %v1774_v5 = vor.u32 %v25309_v20, %v22123_v19  ;;  %v1790_v19 = vor.u32 %v25311_v16, %v22157_v34 }
  0xff   : > { %18132 = vmatprep.subr.bf16.mxu0 %v20995_v7 }
 0x100   : > { %v1779_v35 = vsel %vm572_vm0, %v1774_v5, %v22153_v12  ;;  %v1795_v29 = vsel %vm572_vm0, %v1790_v19, %v22171_v44  ;;  %v25312_v12 = vshrl.u32 %v22146_v59, 16  ;;  %v1822_v59 = vor.u32 %v1820_v51, %v1818_v57 }
 0x101   : > { %18101 = vmatmul.mubr.bf16.gmra.mrb[8].mxu0 %v1755_v13  ;;  %v1811_v13 = vsel %vm572_vm0, %v1806_v47, %v22192_v4 }
 0x102   : > { %18104 = vmatprep.mubr.bf16.mxu0 %v1763_v1  ;;  %18133 = vmatpush3.bf16.msra.mxu0 %v20995_v7  ;;  %v1824_v7 = vshll.u32 %v1686_v39, 16  ;;  %v1798_v10 = vor.u32 %v25312_v12, %v22171_v44  ;;  %v2135_v1 = vrot.slane %v2133_v27, 7  ;;  %v22292_v44 = vld [vmem:[#allocation2 + $0x18] sm:$0xff]  ;;  %v22319_v12 = vld [vmem:[#allocation2 + $0x40] sm:$0xff] }
 0x103   : > { %18134 = vmatprep.subr.bf16.mxu0 %v20998_v53  ;;  %v2097_v17 = vmul.bf16 %v22292_v44, %v21768_v33 }
 0x104   : > { %v1803_v34 = vsel %vm572_vm0, %v1798_v10, %v22182_v8  ;;  %v1826_v62 = vrot.slane %v1824_v7, 1  ;;  %v22296_v8 = vld [vmem:[#allocation2 + $0x20] sm:$0xff]  ;;  %v2138_v51 = vor.u32 %v2136_v52, %v2135_v1  ;;  %v22310_v7 = vld [vmem:[#allocation2 + $0x30] sm:$0xff]  ;;  %v2102_v10 = vmul.bf16 %v22319_v12, %v21833_v42 }
 0x105   : > { %v2098_v58 = vmul.bf16 %v22296_v8, %v21777_v43  ;;  %v2141_v0 = vshrl.u32 %v2097_v17, 16  ;;  %v2144_v5 = vshll.u32 %v2097_v17, 16  ;;  %v2100_v52 = vmul.bf16 %v22310_v7, %v21809_v14 }
 0x106   : > { %18135 = vmatpush3.bf16.msra.mxu0 %v20998_v53  ;;  %v1828_v53 = vshrl.u32 %v1686_v39, 16  ;;  %v1827_v30 = vsel %vm572_vm0, %v1822_v59, %v1826_v62  ;;  %v22305_v39 = vld [vmem:[#allocation2 + $0x28] sm:$0xff] }
 0x107   : > { %18136 = vmatprep.subr.bf16.mxu0 %v21001_v25  ;;  %v2143_v20 = vrot.slane %v2141_v0, 7  ;;  %v2165_v48 = vshrl.u32 %v2100_v52, 16 }
 0x108   : > { %v1830_v24 = vor.u32 %v1828_v53, %v1826_v62  ;;  %v22315_v53 = vld [vmem:[#allocation2 + $0x38] sm:$0xff] }
 0x109   : > { %18105 = vmatmul.mubr.bf16.gmra.mrb[12].mxu0 %v1771_v40  ;;  %v2139_v40 = vsel %vm750_vm1, %v2131_v60, %v2138_v51  ;;  %v2146_v46 = vor.u32 %v2144_v5, %v2143_v20  ;;  %v2101_v60 = vmul.bf16 %v22315_v53, %v21821_v32 }
 0x10a   : > { %18108 = vmatprep.mubr.bf16.mxu0 %v1779_v35  ;;  %18137 = vmatpush3.bf16.msra.mxu0 %v21001_v25  ;;  %v1814_v25 = vor.u32 %v25313_v3, %v22192_v4  ;;  %v2149_v4 = vshrl.u32 %v2098_v58, 16  ;;  %v1835_v41 = vsel %vm572_vm0, %v1830_v24, %v1834_v45  ;;  %v21007_v3 = vld [vmem:[#allocation4 + $0x110] sm:$0xff]  }
 0x10b   : > { %18138 = vmatprep.subr.bf16.mxu0 %v21004_v26  ;;  %v2147_v19 = vsel %vm750_vm1, %v2135_v1, %v2146_v46  ;;  %v2173_v1 = vshrl.u32 %v2101_v60, 16  ;;  %v2176_v17 = vshll.u32 %v2101_v60, 16  ;;  %v22330_v24 = vld [vmem:[#allocation2 + $0x50] sm:$0xff]  ;;  %v22335_v46 = vld [vmem:[#allocation2 + $0x58] sm:$0xff] }
 0x10c   : > { %v1819_v27 = vsel %vm572_vm0, %v1814_v25, %v1818_v57  ;;  %v2151_v35 = vrot.slane %v2149_v4, 7  ;;  %v2152_v57 = vshll.u32 %v2098_v58, 16  ;;  %v2181_v25 = vshrl.u32 %v2102_v10, 16  ;;  %v22325_v58 = vld [vmem:[#allocation2 + $0x48] sm:$0xff]  ;;  %v21008_v4 = vld [vmem:[#allocation4 + $0x118] sm:$0xff]  }
 0x10d   : > { %v2175_v0 = vrot.slane %v2173_v1, 7 }
 0x10e   : > { %18139 = vmatpush3.bf16.msra.mxu0 %v21004_v26  ;;  %v2099_v26 = vmul.bf16 %v22305_v39, %v21786_v56  ;;  %v2154_v11 = vor.u32 %v2152_v57, %v2151_v35 }
 0x10f   : > { %18172 = vmatprep.subr.bf16.mxu0 %v22263_v54 }
 0x110   : > { %v2157_v45 = vshrl.u32 %v2099_v26, 16  ;;  %v2160_v16 = vshll.u32 %v2099_v26, 16  ;;  %v2155_v47 = vsel %vm750_vm1, %v2143_v20, %v2154_v11  ;;  %v2184_v20 = vshll.u32 %v2102_v10, 16  ;;  %v21010_v10 = vld [vmem:[#allocation4 + $0x128] sm:$0xff]  }
 0x111   : > { %18109 = vmatmul.mubr.bf16.gmra.mrb[16].mxu0 %v1787_v50  ;;  %v2178_v26 = vor.u32 %v2176_v17, %v2175_v0 }
 0x112   : > { %18112 = vmatprep.mubr.bf16.mxu0 %v1795_v29  ;;  %v2159_v50 = vrot.slane %v2157_v45, 7  ;;  %v21006_v29 = vld [vmem:[#allocation4 + $0x108] sm:$0xff]   ;;  %v2105_v45 = vmul.bf16 %v22335_v46, %v21882_v31 }
 0x114   : > { %v2162_v62 = vor.u32 %v2160_v16, %v2159_v50 }
 0x119   : > { %18113 = vmatmul.mubr.bf16.gmra.mrb[20].mxu0 %v1803_v34  ;;  %v2167_v34 = vrot.slane %v2165_v48, 7 }
 0x11a   : > { %18116 = vmatprep.mubr.bf16.mxu0 %v1811_v13  ;;  %v2168_v13 = vshll.u32 %v2100_v52, 16 }
 0x11b   : > { %v2179_v11 = vsel %vm750_vm1, %v2167_v34, %v2178_v26 }
 0x11c   : > { %v2170_v59 = vor.u32 %v2168_v13, %v2167_v34  ;;  %v21011_v34 = vld [vmem:[#allocation4 + $0x130] sm:$0xff]  }
 0x11e   : > { %v2171_v51 = vsel %vm750_vm1, %v2159_v50, %v2170_v59 }
 0x121   : > { %18117 = vmatmul.mubr.bf16.gmra.mrb[24].mxu0 %v1819_v27  ;;  %v2103_v27 = vmul.bf16 %v22325_v58, %v21846_v55 }
 0x122   : > { %18120 = vmatprep.mubr.bf16.mxu0 %v1827_v30  ;;  %v2163_v30 = vsel %vm750_vm1, %v2151_v35, %v2162_v62  ;;  %v21009_v35 = vld [vmem:[#allocation4 + $0x120] sm:$0xff]  }
 0x123   : > { %v2189_v5 = vshrl.u32 %v2103_v27, 16  ;;  %v2192_v52 = vshll.u32 %v2103_v27, 16 }
 0x125   : > { %v2191_v48 = vrot.slane %v2189_v5, 7 }
 0x127   : > { %v2194_v13 = vor.u32 %v2192_v52, %v2191_v48 }
 0x129   : > { %18121 = vmatmul.mubr.bf16.gmra.mrb[28].mxu0 %v1835_v41  ;;  %v2183_v41 = vrot.slane %v2181_v25, 7  ;;  %v22345_v25 = vld [vmem:[#allocation2 + $0x68] sm:$0xff] }
 0x12a   : > { %18140 = vmatprep.mubr.bf16.mxu0 %v2139_v40  ;;  %v2107_v59 = vmul.bf16 %v22345_v25, %v21917_v18 }
 0x12b   : > { %v2186_v57 = vor.u32 %v2184_v20, %v2183_v41  ;;  %v2195_v17 = vsel %vm750_vm1, %v2183_v41, %v2194_v13  ;;  %v21012_v20 = vld [vmem:[#allocation4 + $0x138] sm:$0xff]   ;;  %v21013_v41 = vld [vmem:[#allocation4 + $0x140] sm:$0xff]  }
 0x12c   : > { %v2221_v5 = vshrl.u32 %v2107_v59, 16 }
 0x131   : > { %18141 = vmatmul.mubr.bf16.vlgmr.msra.gmra.mrb[0].mxu0 %v2147_v19  ;;  %v22340_v19 = vld [vmem:[#allocation2 + $0x60] sm:$0xff] }
 0x132   : > { %18173 = vmatpush3.bf16.msra.mxu0 %v22263_v54  ;;  %18144 = vmatprep.mubr.bf16.mxu0 %v2155_v47  ;;  %v2104_v54 = vmul.bf16 %v22330_v24, %v21862_v9  ;;  %v2106_v50 = vmul.bf16 %v22340_v19, %v21892_v49  ;;  %v2205_v47 = vshrl.u32 %v2105_v45, 16 }
 0x133   : > { %18174 = vmatprep.subr.bf16.mxu0 %v21006_v29 }
 0x134   : > { %v2197_v40 = vshrl.u32 %v2104_v54, 16  ;;  %v2200_v16 = vshll.u32 %v2104_v54, 16  ;;  %v2213_v62 = vshrl.u32 %v2106_v50, 16  ;;  %v2207_v27 = vrot.slane %v2205_v47, 7 }
 0x136   : > { %18175 = vmatpush3.bf16.msra.mxu0 %v21006_v29  ;;  %v2187_v29 = vsel %vm750_vm1, %v2175_v0, %v2186_v57  ;;  %v2199_v60 = vrot.slane %v2197_v40, 7  ;;  %v22350_v0 = vld [vmem:[#allocation2 + $0x70] sm:$0xff]  ;;  %v2224_v57 = vshll.u32 %v2107_v59, 16  ;;  %v22364_v59 = vld [vmem:[#allocation2 + $0x88] sm:$0xff] }
 0x137   : > { %18176 = vmatprep.subr.bf16.mxu0 %v21007_v3 }
 0x138   : > { %v2202_v1 = vor.u32 %v2200_v16, %v2199_v60  ;;  %v2110_v16 = vmul.bf16 %v22255_v36, %v21938_v2  ;;  %v2111_v36 = vmul.bf16 %v22364_v59, %v21946_v61 }
 0x139   : > { %18145 = vmatmul.mubr.bf16.gmra.mrb[4].mxu0 %v2163_v30  ;;  %v2216_v30 = vshll.u32 %v2106_v50, 16 }
 0x13a   : > { %18148 = vmatprep.mubr.bf16.mxu0 %v2171_v51  ;;  %18177 = vmatpush3.bf16.msra.mxu0 %v21007_v3  ;;  %v2208_v3 = vshll.u32 %v2105_v45, 16  ;;  %v2203_v54 = vsel %vm750_vm1, %v2191_v48, %v2202_v1  ;;  %v2215_v51 = vrot.slane %v2213_v62, 7  ;;  %v2223_v45 = vrot.slane %v2221_v5, 7 }
 0x13b   : > { %18178 = vmatprep.subr.bf16.mxu0 %v21008_v4 }
 0x13c   : > { %v2210_v26 = vor.u32 %v2208_v3, %v2207_v27  ;;  %v2226_v47 = vor.u32 %v2224_v57, %v2223_v45 }
 0x13e   : > { %18179 = vmatpush3.bf16.msra.mxu0 %v21008_v4  ;;  %v2108_v4 = vmul.bf16 %v22350_v0, %v21920_v23  ;;  %v2211_v52 = vsel %vm750_vm1, %v2199_v60, %v2210_v26  ;;  %v2245_v60 = vshrl.u32 %v2110_v16, 16 }
 0x13f   : > { %18180 = vmatprep.subr.bf16.mxu0 %v21009_v35 }
 0x140   : > { %v2229_v40 = vshrl.u32 %v2108_v4, 16 }
 0x141   : > { %18149 = vmatmul.mubr.bf16.gmra.mrb[8].mxu0 %v2179_v11  ;;  %v22356_v11 = vld [vmem:[#allocation2 + $0x78] sm:$0xff] }
 0x142   : > { %18152 = vmatprep.mubr.bf16.mxu0 %v2187_v29  ;;  %18181 = vmatpush3.bf16.msra.mxu0 %v21009_v35  ;;  %v2218_v35 = vor.u32 %v2216_v30, %v2215_v51  ;;  %v2109_v48 = vmul.bf16 %v22356_v11, %v21935_v63  ;;  %v2231_v29 = vrot.slane %v2229_v40, 7  ;;  %v2248_v30 = vshll.u32 %v2110_v16, 16  ;;  %v21017_v16 = vld [vmem:[#allocation4 + $0x160] sm:$0xff]  }
 0x143   : > { %18182 = vmatprep.subr.bf16.mxu0 %v21010_v10 }
 0x144   : > { %v2219_v50 = vsel %vm750_vm1, %v2207_v27, %v2218_v35  ;;  %v2237_v13 = vshrl.u32 %v2109_v48, 16  ;;  %v2240_v3 = vshll.u32 %v2109_v48, 16  ;;  %v2247_v27 = vrot.slane %v2245_v60, 7  ;;  %v21016_v48 = vld [vmem:[#allocation4 + $0x158] sm:$0xff]   ;;  %v25315_v60 = vld [vmem:[#allocation18_spill] sm:$0xff] }
 0x146   : > { %18183 = vmatpush3.bf16.msra.mxu0 %v21010_v10  ;;  %v2232_v10 = vshll.u32 %v2108_v4, 16  ;;  %v2239_v1 = vrot.slane %v2237_v13, 7  ;;  %v21020_v13 = vld [vmem:[#allocation4 + $0x178] sm:$0xff]  }
 0x147   : > { %18184 = vmatprep.subr.bf16.mxu0 %v21011_v34 }
 0x148   : > { %v2234_v62 = vor.u32 %v2232_v10, %v2231_v29  ;;  %v2242_v4 = vor.u32 %v2240_v3, %v2239_v1 }
 0x149   : > { %18153 = vmatmul.mubr.bf16.gmra.mrb[12].mxu0 %v2195_v17 }
 0x14a   : > { %18156 = vmatprep.mubr.bf16.mxu0 %v2203_v54  ;;  %18185 = vmatpush3.bf16.msra.mxu0 %v21011_v34  ;;  %v2227_v34 = vsel %vm750_vm1, %v2215_v51, %v2226_v47  ;;  %v2235_v17 = vsel %vm750_vm1, %v2223_v45, %v2234_v62  ;;  %v2253_v54 = vshrl.u32 %v2111_v36, 16  ;;  %v2243_v5 = vsel %vm750_vm1, %v2231_v29, %v2242_v4  ;;  %v21015_v45 = vld [vmem:[#allocation4 + $0x150] sm:$0xff]   ;;  %v21018_v29 = vld [vmem:[#allocation4 + $0x168] sm:$0xff]   ;;  %v22390_v47 = vld [vmem:[#allocation2 + $0x20] sm:$0xff] }
 0x14b   : > { %18186 = vmatprep.subr.bf16.mxu0 %v21012_v20  ;;  %v2256_v51 = vshll.u32 %v2111_v36, 16  ;;  %v22394_v62 = vmul.bf16 %v22390_v47, %v25315_v60  ;;  %v22402_v36 = vld [vmem:[#allocation4 + $0x180] sm:$0xff]  }
 0x14c   : > { %v2255_v26 = vrot.slane %v2253_v54, 7 }
 0x14e   : > { %18187 = vmatpush3.bf16.msra.mxu0 %v21012_v20  ;;  %v2250_v20 = vor.u32 %v2248_v30, %v2247_v27  ;;  %v2258_v35 = vor.u32 %v2256_v51, %v2255_v26  ;;  %v22420_v26 = vld [vmem:[#allocation2 + $0x40] sm:$0xff] }
 0x14f   : > { %18220 = vmatprep.subr.bf16.mxu0 %v21013_v41 }
 0x150   : > { %v2251_v40 = vsel %vm750_vm1, %v2239_v1, %v2250_v20  ;;  %v2259_v57 = vsel %vm750_vm1, %v2247_v27, %v2258_v35  ;;  %v22400_v1 = vld [vmem:[#allocation2 + $0x28] sm:$0xff]  ;;  %v22405_v27 = vld [vmem:[#allocation2 + $0x30] sm:$0xff]  ;;  %v2844_v20 = vshrl.u32 %v22394_v62, 16 }
 0x151   : > { %18157 = vmatmul.mubr.bf16.gmra.mrb[16].mxu0 %v2211_v52  ;;  %v21014_v52 = vld [vmem:[#allocation4 + $0x148] sm:$0xff]   ;;  %v22426_v35 = vld [vmem:[#allocation2 + $0x50] sm:$0xff] }
 0x152   : > { %18160 = vmatprep.mubr.bf16.mxu0 %v2219_v50  ;;  %v2774_v50 = vld [vmem:[#allocation2 + $0x10] sm:$0xff] }
 0x159   : > { %18161 = vmatmul.mubr.bf16.gmra.mrb[20].mxu0 %v2227_v34 }
 0x15a   : > { %18164 = vmatprep.mubr.bf16.mxu0 %v2235_v17  ;;  %v2840_v17 = vshll.u32 %v22394_v62, 16  ;;  %v25323_v62 = vld [vmem:[#allocation26_spill] sm:$0xff] }
 0x15c   : > { %v2842_v54 = vrot.slane %v2840_v17, 1 }
 0x161   : > { %18165 = vmatmul.mubr.bf16.gmra.mrb[24].mxu0 %v2243_v5  ;;  %v22418_v5 = vld [vmem:[#allocation2 + $0x38] sm:$0xff] }
 0x162   : > { %18168 = vmatprep.mubr.bf16.mxu0 %v2251_v40  ;;  %v22424_v40 = vld [vmem:[#allocation2 + $0x48] sm:$0xff] }
 0x169   : > { %18169 = vmatmul.mubr.bf16.gmra.mrb[28].mxu0 %v2259_v57 }
 0x16a   : > { %18188 = vmatprep.mubr.bf16.mxu0 %v22236_v38  ;;  %v22377_v38 = vld [vmem:[#allocation2 + $0x18] sm:$0xff] }
 0x171   : > { %18189 = vmatmul.mubr.bf16.vlgmr.msra.gmra.mrb[0].mxu0 %v22292_v44  ;;  %v22380_v44 = vmul.bf16 %v2774_v50, %v21980_v37  ;;  %v25319_v50 = vld [vmem:[#allocation22_spill] sm:$0xff] }
 0x172   : > { %18221 = vmatpush3.bf16.msra.mxu0 %v21013_v41  ;;  %18192 = vmatprep.mubr.bf16.mxu0 %v22296_v8  ;;  %v25314_v8 = vld [vmem:[#allocation17_spill] sm:$0xff] }
 0x173   : > { %18222 = vmatprep.subr.bf16.mxu0 %v21014_v52  ;;  %v22384_v41 = vmul.bf16 %v22377_v38, %v25314_v8 }
 0x175   : > { %v2832_v10 = vshll.u32 %v22384_v41, 16 }
 0x176   : > { %18223 = vmatpush3.bf16.msra.mxu0 %v21014_v52  ;;  %v22429_v52 = vld [vmem:[#allocation2 + $0x58] sm:$0xff] }
 0x177   : > { %18224 = vmatprep.subr.bf16.mxu0 %v21015_v45  ;;  %v2834_v3 = vrot.slane %v2832_v10, 1  ;;  %v25322_v10 = vld [vmem:[#allocation25_spill] sm:$0xff] }
 0x179   : > { %18193 = vmatmul.mubr.bf16.gmra.mrb[4].mxu0 %v22305_v39  ;;  %v21019_v39 = vld [vmem:[#allocation4 + $0x170] sm:$0xff]  }
 0x17a   : > { %18196 = vmatprep.mubr.bf16.mxu0 %v22310_v7  ;;  %18225 = vmatpush3.bf16.msra.mxu0 %v21015_v45  ;;  %v2827_v7 = vshll.u32 %v22380_v44, 16  ;;  %v22432_v45 = vld [vmem:[#allocation2 + $0x60] sm:$0xff] }
 0x17b   : > { %18226 = vmatprep.subr.bf16.mxu0 %v21016_v48  ;;  %v22456_v17 = vmul.bf16 %v22432_v45, %v25323_v62 }
 0x17c   : > { %v2829_v34 = vrot.slane %v2827_v7, 1 }
 0x17e   : > { %18227 = vmatpush3.bf16.msra.mxu0 %v21016_v48  ;;  %v25318_v48 = vld [vmem:[#allocation21_spill] sm:$0xff] }
 0x17f   : > { %18228 = vmatprep.subr.bf16.mxu0 %v21017_v16 }
 0x181   : > { %18197 = vmatmul.mubr.bf16.gmra.mrb[8].mxu0 %v22315_v53  ;;  %v2825_v53 = vshrl.u32 %v22380_v44, 16 }
 0x182   : > { %18200 = vmatprep.mubr.bf16.mxu0 %v22319_v12  ;;  %18229 = vmatpush3.bf16.msra.mxu0 %v21017_v16  ;;  %v22436_v16 = vmul.bf16 %v22418_v5, %v25318_v48 }
 0x183   : > { %18230 = vmatprep.subr.bf16.mxu0 %v21018_v29  ;;  %v2830_v8 = vor.u32 %v2829_v34, %v2825_v53  ;;  %v2846_v53 = vor.u32 %v2844_v20, %v2842_v54  ;;  %v21022_v34 = vld [vmem:[#allocation4 + $0x188] sm:$0xff]  }
 0x186   : > { %18231 = vmatpush3.bf16.msra.mxu0 %v21018_v29  ;;  %v25320_v29 = vld [vmem:[#allocation23_spill] sm:$0xff] }
 0x187   : > { %18232 = vmatprep.subr.bf16.mxu0 %v21019_v39  ;;  %v22444_v44 = vmul.bf16 %v22424_v40, %v25320_v29  ;;  %v2864_v29 = vshll.u32 %v22436_v16, 16 }
 0x189   : > { %18201 = vmatmul.mubr.bf16.gmra.mrb[12].mxu0 %v22325_v58  ;;  %v25316_v58 = vld [vmem:[#allocation19_spill] sm:$0xff] }
 0x18a   : > { %18204 = vmatprep.mubr.bf16.mxu0 %v22330_v24  ;;  %18233 = vmatpush3.bf16.msra.mxu0 %v21019_v39  ;;  %v22409_v30 = vmul.bf16 %v22400_v1, %v25316_v58  ;;  %v25317_v24 = vld [vmem:[#allocation20_spill] sm:$0xff]  ;;  %v21374_v58 = vld [vmem:[#allocation2 + $0x80] sm:$0xff] }
 0x18b   : > { %18234 = vmatprep.subr.bf16.mxu0 %v21020_v13  ;;  %v22414_v4 = vmul.bf16 %v22405_v27, %v25317_v24  ;;  %v25321_v39 = vld [vmem:[#allocation24_spill] sm:$0xff] }
 0x18c   : > { %v2848_v51 = vshll.u32 %v22409_v30, 16  ;;  %v2852_v57 = vshrl.u32 %v22409_v30, 16  ;;  %v22448_v7 = vmul.bf16 %v22426_v35, %v25321_v39  ;;  %v2868_v39 = vshrl.u32 %v22436_v16, 16 }
 0x18e   : > { %18235 = vmatpush3.bf16.msra.mxu0 %v21020_v13  ;;  %v22452_v13 = vmul.bf16 %v22429_v52, %v25322_v10  ;;  %v2850_v30 = vrot.slane %v2848_v51, 1  ;;  %v2880_v10 = vshll.u32 %v22444_v44, 16  ;;  %v2888_v24 = vshll.u32 %v22448_v7, 16 }
 0x18f   : > { %18268 = vmatprep.subr.bf16.mxu0 %v22402_v36  ;;  %v2866_v51 = vrot.slane %v2864_v29, 1  ;;  %v2892_v37 = vshrl.u32 %v22448_v7, 16 }
 0x190   : > { %v2896_v62 = vshll.u32 %v22452_v13, 16  ;;  %v2882_v16 = vrot.slane %v2880_v10, 1  ;;  %v2890_v60 = vrot.slane %v2888_v24, 1  ;;  %v2900_v61 = vshrl.u32 %v22452_v13, 16  ;;  %v25325_v24 = vld [vmem:[#allocation27_spill] sm:$0xff] }
 0x191   : > { %18205 = vmatmul.mubr.bf16.gmra.mrb[16].mxu0 %v22335_v46  ;;  %v2856_v46 = vshll.u32 %v22414_v4, 16  ;;  %v22488_v10 = vld [vmem:[#allocation2 + $0x70] sm:$0xff] }
 0x192   : > { %18208 = vmatprep.mubr.bf16.mxu0 %v22340_v19  ;;  %v22440_v19 = vmul.bf16 %v22420_v26, %v25319_v50  ;;  %v2860_v50 = vshrl.u32 %v22414_v4, 16  ;;  %v2898_v2 = vrot.slane %v2896_v62, 1  ;;  %v21023_v62 = vld [vmem:[#allocation4 + $0x190] sm:$0xff]  }
 0x193   : > { %v2858_v12 = vrot.slane %v2856_v46, 1 }
 0x194   : > { %v2872_v48 = vshll.u32 %v22440_v19, 16  ;;  %v2876_v46 = vshrl.u32 %v22440_v19, 16  ;;  %v2908_v19 = vshrl.u32 %v22456_v17, 16 }
 0x195   : > { %v2862_v20 = vor.u32 %v2860_v50, %v2858_v12  ;;  %v21026_v50 = vld [vmem:[#allocation4 + $0x1a8] sm:$0xff]  }
 0x196   : > { %v2874_v4 = vrot.slane %v2872_v48, 1  ;;  %v22477_v48 = vld [vmem:[#allocation2 + $0x68] sm:$0xff] }
 0x199   : > { %18209 = vmatmul.mubr.bf16.gmra.mrb[20].mxu0 %v22345_v25  ;;  %v2904_v25 = vshll.u32 %v22456_v17, 16 }
 0x19a   : > { %18212 = vmatprep.mubr.bf16.mxu0 %v22350_v0  ;;  %v2884_v0 = vshrl.u32 %v22444_v44, 16  ;;  %v22484_v44 = vmul.bf16 %v22477_v48, %v25325_v24 }
 0x19b   : > { %v22473_v63 = vrot.slane %v2904_v25, 1  ;;  %v21024_v25 = vld [vmem:[#allocation4 + $0x198] sm:$0xff]  }
 0x19c   : > { %v2912_v17 = vshll.u32 %v22484_v44, 16 }
 0x1a1   : > { %18213 = vmatmul.mubr.bf16.gmra.mrb[24].mxu0 %v22356_v11  ;;  %v2835_v11 = vsel %vm572_vm0, %v2830_v8, %v2834_v3  ;;  %v2851_v8 = vsel %vm572_vm0, %v2846_v53, %v2850_v30  ;;  %v21025_v53 = vld [vmem:[#allocation4 + $0x1a0] sm:$0xff]  }
 0x1a2   : > { %18216 = vmatprep.mubr.bf16.mxu0 %v21374_v58  ;;  %v25324_v58 = vshrl.u32 %v22384_v41, 16  ;;  %v2916_v41 = vshrl.u32 %v22484_v44, 16 }
 0x1a4   : > { %v2838_v29 = vor.u32 %v25324_v58, %v2834_v3  ;;  %v2854_v3 = vor.u32 %v2852_v57, %v2850_v30  ;;  %v2878_v57 = vor.u32 %v2876_v46, %v2874_v4  ;;  %v21028_v46 = vld [vmem:[#allocation4 + $0x1b8] sm:$0xff]  }
 0x1a6   : > { %v2843_v7 = vsel %vm572_vm0, %v2838_v29, %v2842_v54  ;;  %v2859_v58 = vsel %vm572_vm0, %v2854_v3, %v2858_v12  ;;  %v2867_v29 = vsel %vm572_vm0, %v2862_v20, %v2866_v51  ;;  %v22499_v12 = vld [vmem:[#allocation2 + $0x78] sm:$0xff]  ;;  %v21027_v3 = vld [vmem:[#allocation4 + $0x1b0] sm:$0xff]   ;;  %v2894_v20 = vor.u32 %v2892_v37, %v2890_v60 }
 0x1a7   : > { %v2910_v37 = vor.u32 %v2908_v19, %v22473_v63 }
 0x1a9   : > { %18217 = vmatmul.mubr.bf16.gmra.mrb[28].mxu0 %v22364_v59 }
 0x1aa   : > { %18236 = vmatprep.mubr.bf16.mxu0 %v2835_v11  ;;  %v25326_v11 = vld [vmem:[#allocation28_spill] sm:$0xff] }
 0x1ab   : > { %v2803_v54 = vmul.bf16 %v22488_v10, %v25326_v11 }
 0x1ad   : > { %v2920_v44 = vshll.u32 %v2803_v54, 16 }
 0x1af   : > { %v2922_v13 = vrot.slane %v2920_v44, 1 }
 0x1b1   : > { %18237 = vmatmul.mubr.bf16.vlgmr.msra.gmra.mrb[0].mxu0 %v2843_v7  ;;  %v2914_v7 = vrot.slane %v2912_v17, 1  ;;  %v2886_v17 = vor.u32 %v2884_v0, %v2882_v16  ;;  %v2902_v0 = vor.u32 %v2900_v61, %v2898_v2  ;;  %v2806_v61 = vmul.bf16 %v22364_v59, %v22250_v22 }
 0x1b2   : > { %18269 = vmatpush3.bf16.msra.mxu0 %v22402_v36  ;;  %18240 = vmatprep.mubr.bf16.mxu0 %v2851_v8  ;;  %v2870_v36 = vor.u32 %v2868_v39, %v2866_v51  ;;  %v2883_v8 = vsel %vm572_vm0, %v2878_v57, %v2882_v16  ;;  %v25327_v39 = vld [vmem:[#allocation29_spill] sm:$0xff] }
 0x1b3   : > { %18270 = vmatprep.subr.bf16.mxu0 %v21022_v34  ;;  %v2804_v51 = vmul.bf16 %v22499_v12, %v25327_v39  ;;  %v22510_v16 = vld [vmem:[#allocation2 + $0x80] sm:$0xff] }
 0x1b4   : > { %v2875_v30 = vsel %vm572_vm0, %v2870_v36, %v2874_v4  ;;  %v2891_v4 = vsel %vm572_vm0, %v2886_v17, %v2890_v60  ;;  %v2907_v60 = vsel %vm572_vm0, %v2902_v0, %v22473_v63  ;;  %v3216_v17 = vmul.bf16 %v22377_v38, %v21761_v28 }
 0x1b5   : > { %v2932_v57 = vshrl.u32 %v2804_v51, 16  ;;  %v3217_v28 = vmul.bf16 %v22390_v47, %v21768_v33  ;;  %v3219_v33 = vmul.bf16 %v22405_v27, %v21786_v56  ;;  %v3221_v56 = vmul.bf16 %v22420_v26, %v21821_v32 }
 0x1b6   : > { %18271 = vmatpush3.bf16.msra.mxu0 %v21022_v34  ;;  %v2924_v34 = vshrl.u32 %v2803_v54, 16  ;;  %v2915_v54 = vsel %vm572_vm0, %v2910_v37, %v2914_v7 }
 0x1b7   : > { %18272 = vmatprep.subr.bf16.mxu0 %v21023_v62 }
 0x1b8   : > { %v2926_v19 = vor.u32 %v2924_v34, %v2922_v13 }
 0x1b9   : > { %18241 = vmatmul.mubr.bf16.gmra.mrb[4].mxu0 %v2859_v58  ;;  %v22505_v58 = vld [vmem:[#allocation4 + $0x1c0] sm:$0xff]  }
 0x1ba   : > { %18244 = vmatprep.mubr.bf16.mxu0 %v2867_v29  ;;  %18273 = vmatpush3.bf16.msra.mxu0 %v21023_v62  ;;  %v2899_v62 = vsel %vm572_vm0, %v2894_v20, %v2898_v2  ;;  %v2805_v29 = vmul.bf16 %v22510_v16, %v22200_v21  ;;  %v2918_v2 = vor.u32 %v2916_v41, %v2914_v7  ;;  %v3213_v20 = vld [vmem:[#allocation2 + $0x10] sm:$0x80] }
 0x1bb   : > { %18274 = vmatprep.subr.bf16.mxu0 %v21024_v25 }
 0x1bc   : > { %v2936_v36 = vshll.u32 %v2805_v29, 16  ;;  %v2923_v63 = vsel %vm572_vm0, %v2918_v2, %v2922_v13  ;;  %v3261_v13 = vshrl.u32 %v3217_v28, 16 }
 0x1be   : > { %18275 = vmatpush3.bf16.msra.mxu0 %v21024_v25  ;;  %v2928_v25 = vshll.u32 %v2804_v51, 16  ;;  %v2938_v44 = vrot.slane %v2936_v36, 1  ;;  %v3215_v51 = vmul.bf16 %v3213_v20, %v21745_v15  ;;  %v3263_v36 = vrot.slane %v3261_v13, 7 }
 0x1bf   : > { %18276 = vmatprep.subr.bf16.mxu0 %v21025_v53 }
 0x1c0   : > { %v3249_v38 = vshrl.u32 %v3215_v51, 16 }
 0x1c1   : > { %18245 = vmatmul.mubr.bf16.gmra.mrb[8].mxu0 %v2875_v30  ;;  %v2944_v30 = vshll.u32 %v2806_v61, 16 }
 0x1c2   : > { %18248 = vmatprep.mubr.bf16.mxu0 %v2883_v8  ;;  %18277 = vmatpush3.bf16.msra.mxu0 %v21025_v53  ;;  %v2930_v53 = vrot.slane %v2928_v25, 1  ;;  %v2948_v25 = vshrl.u32 %v2806_v61, 16  ;;  %v3251_v2 = vrot.slane %v3249_v38, 7  ;;  %v3296_v38 = vshll.u32 %v3221_v56, 16 }
 0x1c3   : > { %18278 = vmatprep.subr.bf16.mxu0 %v21026_v50  ;;  %v2946_v7 = vrot.slane %v2944_v30, 1 }
 0x1c4   : > { %v2931_v8 = vsel %vm572_vm0, %v2926_v19, %v2930_v53  ;;  %v2934_v41 = vor.u32 %v2932_v57, %v2930_v53  ;;  %v3264_v57 = vshll.u32 %v3217_v28, 16 }
 0x1c6   : > { %18279 = vmatpush3.bf16.msra.mxu0 %v21026_v50  ;;  %v2940_v50 = vshrl.u32 %v2805_v29, 16  ;;  %v2950_v29 = vor.u32 %v2948_v25, %v2946_v7  ;;  %v3266_v30 = vor.u32 %v3264_v57, %v3263_v36  ;;  %v21031_v25 = vld [vmem:[#allocation4 + $0x1d0] sm:$0xff]   ;;  %v3225_v57 = vmul.bf16 %v22432_v45, %v21882_v31 }
 0x1c7   : > { %18280 = vmatprep.subr.bf16.mxu0 %v21027_v3 }
 0x1c8   : > { %v2942_v59 = vor.u32 %v2940_v50, %v2938_v44 }
 0x1c9   : > { %18249 = vmatmul.mubr.bf16.gmra.mrb[12].mxu0 %v2891_v4  ;;  %v2939_v4 = vsel %vm572_vm0, %v2934_v41, %v2938_v44  ;;  %v3280_v41 = vshll.u32 %v3219_v33, 16 }
 0x1ca   : > { %18252 = vmatprep.mubr.bf16.mxu0 %v2899_v62  ;;  %18281 = vmatpush3.bf16.msra.mxu0 %v21027_v3  ;;  %v2790_v3 = vld [vmem:[#allocation2 + $0x90] sm:$0x1]  ;;  %v2947_v62 = vsel %vm572_vm0, %v2942_v59, %v2946_v7  ;;  %v21030_v7 = vld [vmem:[#allocation4 + $0x1c8] sm:$0xff]  }
 0x1cb   : > { %18282 = vmatprep.subr.bf16.mxu0 %v21028_v46  ;;  %v2807_v34 = vmul.bf16 %v2790_v3, %v22177_v6 }
 0x1cd   : > { %v2952_v0 = vshll.u32 %v2807_v34, 16 }
 0x1ce   : > { %18283 = vmatpush3.bf16.msra.mxu0 %v21028_v46  ;;  %v3253_v46 = vshrl.u32 %v3216_v17, 16 }
 0x1cf   : > { %18316 = vmatprep.subr.bf16.mxu0 %v22505_v58  ;;  %v2954_v15 = vrot.slane %v2952_v0, 1 }
 0x1d0   : > { %v3255_v37 = vrot.slane %v3253_v46, 7 }
 0x1d1   : > { %18253 = vmatmul.mubr.bf16.gmra.mrb[16].mxu0 %v2907_v60  ;;  %v3256_v60 = vshll.u32 %v3216_v17, 16  ;;  %v2955_v61 = vsel %vm572_vm0, %v2950_v29, %v2954_v15  ;;  %v3224_v29 = vmul.bf16 %v22429_v52, %v21862_v9 }
 0x1d2   : > { %18256 = vmatprep.mubr.bf16.mxu0 %v2915_v54  ;;  %v3218_v54 = vmul.bf16 %v22400_v1, %v21777_v43  ;;  %v3220_v43 = vmul.bf16 %v22418_v5, %v21809_v14  ;;  %v3267_v44 = vsel %vm750_vm1, %v3255_v37, %v3266_v30  ;;  %v3222_v14 = vmul.bf16 %v22424_v40, %v21833_v42 }
 0x1d3   : > { %v3258_v19 = vor.u32 %v3256_v60, %v3255_v37  ;;  %v3223_v37 = vmul.bf16 %v22426_v35, %v21846_v55  ;;  %v3325_v30 = vshrl.u32 %v3225_v57, 16 }
 0x1d4   : > { %v3269_v53 = vshrl.u32 %v3218_v54, 16  ;;  %v3272_v50 = vshll.u32 %v3218_v54, 16  ;;  %v3285_v17 = vshrl.u32 %v3220_v43, 16  ;;  %v3288_v51 = vshll.u32 %v3220_v43, 16  ;;  %v21032_v54 = vld [vmem:[#allocation4 + $0x1d8] sm:$0xff]  }
 0x1d5   : > { %v3259_v47 = vsel %vm750_vm1, %v3251_v2, %v3258_v19  ;;  %v3301_v0 = vshrl.u32 %v3222_v14, 16  ;;  %v3309_v13 = vshrl.u32 %v3223_v37, 16  ;;  %v3317_v19 = vshrl.u32 %v3224_v29, 16 }
 0x1d6   : > { %v3287_v34 = vrot.slane %v3285_v17, 7  ;;  %v21035_v17 = vld [vmem:[#allocation4 + $0x1f0] sm:$0xff]  }
 0x1d7   : > { %v3303_v60 = vrot.slane %v3301_v0, 7  ;;  %v3319_v9 = vrot.slane %v3317_v19, 7 }
 0x1d9   : > { %18257 = vmatmul.mubr.bf16.gmra.mrb[20].mxu0 %v2923_v63  ;;  %v3271_v63 = vrot.slane %v3269_v53, 7  ;;  %v21033_v53 = vld [vmem:[#allocation4 + $0x1e0] sm:$0xff]  }
 0x1da   : > { %18260 = vmatprep.mubr.bf16.mxu0 %v2931_v8  ;;  %v3277_v8 = vshrl.u32 %v3219_v33, 16 }
 0x1db   : > { %v3274_v3 = vor.u32 %v3272_v50, %v3271_v63  ;;  %v21034_v50 = vld [vmem:[#allocation4 + $0x1e8] sm:$0xff]  }
 0x1dc   : > { %v3279_v20 = vrot.slane %v3277_v8, 7 }
 0x1dd   : > { %v3275_v59 = vsel %vm750_vm1, %v3263_v36, %v3274_v3  ;;  %v3312_v36 = vshll.u32 %v3223_v37, 16 }
 0x1de   : > { %v3282_v46 = vor.u32 %v3280_v41, %v3279_v20  ;;  %v3227_v41 = vmul.bf16 %v22488_v10, %v21917_v18 }
 0x1e0   : > { %v3283_v32 = vsel %vm750_vm1, %v3271_v63, %v3282_v46  ;;  %v3226_v63 = vmul.bf16 %v22477_v48, %v21892_v49  ;;  %v3344_v0 = vshll.u32 %v3227_v41, 16 }
 0x1e1   : > { %18261 = vmatmul.mubr.bf16.gmra.mrb[24].mxu0 %v2939_v4  ;;  %v3293_v4 = vshrl.u32 %v3221_v56, 16 }
 0x1e2   : > { %18264 = vmatprep.mubr.bf16.mxu0 %v2947_v62  ;;  %v3290_v62 = vor.u32 %v3288_v51, %v3287_v34  ;;  %v3333_v3 = vshrl.u32 %v3226_v63, 16 }
 0x1e3   : > { %v3295_v28 = vrot.slane %v3293_v4, 7 }
 0x1e4   : > { %v3291_v42 = vsel %vm750_vm1, %v3279_v20, %v3290_v62  ;;  %v3328_v20 = vshll.u32 %v3225_v57, 16  ;;  %v3335_v56 = vrot.slane %v3333_v3, 7  ;;  %v21037_v62 = vld [vmem:[#allocation4 + $0x200] sm:$0xff]  }
 0x1e5   : > { %v3298_v15 = vor.u32 %v3296_v38, %v3295_v28 }
 0x1e7   : > { %v3299_v55 = vsel %vm750_vm1, %v3287_v34, %v3298_v15  ;;  %v21036_v34 = vld [vmem:[#allocation4 + $0x1f8] sm:$0xff]  }
 0x1e9   : > { %18265 = vmatmul.mubr.bf16.gmra.mrb[28].mxu0 %v2955_v61  ;;  %v3311_v61 = vrot.slane %v3309_v13, 7 }
 0x1ea   : > { %18284 = vmatprep.mubr.bf16.mxu0 %v3259_v47  ;;  %v3320_v47 = vshll.u32 %v3224_v29, 16 }
 0x1eb   : > { %v3314_v43 = vor.u32 %v3312_v36, %v3311_v61 }
 0x1ec   : > { %v3322_v8 = vor.u32 %v3320_v47, %v3319_v9 }
 0x1ed   : > { %v3315_v31 = vsel %vm750_vm1, %v3303_v60, %v3314_v43 }
 0x1ee   : > { %v3323_v49 = vsel %vm750_vm1, %v3311_v61, %v3322_v8  ;;  %v25330_v61 = vld [vmem:[#allocation15_spill] sm:$0xff] }
 0x1f1   : > { %18285 = vmatmul.mubr.bf16.vlgmr.msra.gmra.mrb[0].mxu0 %v3267_v44  ;;  %v3327_v44 = vrot.slane %v3325_v30, 7 }
 0x1f2   : > { %18317 = vmatpush3.bf16.msra.mxu0 %v22505_v58  ;;  %18288 = vmatprep.mubr.bf16.mxu0 %v3275_v59  ;;  %v3304_v58 = vshll.u32 %v3222_v14, 16  ;;  %v3336_v59 = vshll.u32 %v3226_v63, 16  ;;  %v3341_v14 = vshrl.u32 %v3227_v41, 16  ;;  %v21377_v41 = vld [vmem:[#allocation2 + $0x18] sm:$0xff] }
 0x1f3   : > { %18318 = vmatprep.subr.bf16.mxu0 %v21030_v7  ;;  %v3330_v51 = vor.u32 %v3328_v20, %v3327_v44  ;;  %v21046_v20 = vld [vmem:[#allocation7 + $0x8] sm:$0xff]  }
 0x1f4   : > { %v3306_v2 = vor.u32 %v3304_v58, %v3303_v60  ;;  %v3338_v46 = vor.u32 %v3336_v59, %v3335_v56  ;;  %v25329_v60 = vld [vmem:[#allocation14_spill] sm:$0xff]  ;;  %v21039_v59 = vld [vmem:[#allocation4 + $0x210] sm:$0xff]  }
 0x1f5   : > { %v3331_v18 = vsel %vm750_vm1, %v3319_v9, %v3330_v51  ;;  %v21042_v51 = vld [vmem:[#allocation4 + $0x228] sm:$0xff]  }
 0x1f6   : > { %18319 = vmatpush3.bf16.msra.mxu0 %v21030_v7  ;;  %v3307_v33 = vsel %vm750_vm1, %v3295_v28, %v3306_v2  ;;  %v3228_v7 = vmul.bf16 %v22499_v12, %v21920_v23  ;;  %v3339_v23 = vsel %vm750_vm1, %v3327_v44, %v3338_v46  ;;  %v21045_v44 = vld [vmem:[#allocation7] sm:$0xff]  }
 0x1f7   : > { %18320 = vmatprep.subr.bf16.mxu0 %v21031_v25  ;;  %18412 = vmatprep.subr.bf16.mxu1 %v21045_v44 }
 0x1f8   : > { %v3349_v4 = vshrl.u32 %v3228_v7, 16  ;;  %v3352_v37 = vshll.u32 %v3228_v7, 16  ;;  %18413 = vmatpush3.bf16.msra.mxu1 %v21045_v44  ;;  %v21040_v7 = vld [vmem:[#allocation4 + $0x218] sm:$0xff]  }
 0x1f9   : > { %18289 = vmatmul.mubr.bf16.gmra.mrb[4].mxu0 %v3283_v32  ;;  %v25328_v32 = vld [vmem:[#allocation13_spill] sm:$0xff]  ;;  %18414 = vmatprep.subr.bf16.mxu1 %v21046_v20 }
 0x1fa   : > { %18292 = vmatprep.mubr.bf16.mxu0 %v3291_v42  ;;  %18321 = vmatpush3.bf16.msra.mxu0 %v21031_v25  ;;  %v3343_v25 = vrot.slane %v3341_v14, 7  ;;  %v3229_v28 = vmul.bf16 %v22510_v16, %v25328_v32  ;;  %v3351_v38 = vrot.slane %v3349_v4, 7  ;;  %v22567_v42 = vld [vmem:[#allocation2 + $0x88] sm:$0xff]  ;;  %v21044_v14 = vld [vmem:[#allocation4 + $0x238] sm:$0xff]   ;;  %v21380_v32 = vld [vmem:[#allocation2 + $0x30] sm:$0xff] }
 0x1fb   : > { %18322 = vmatprep.subr.bf16.mxu0 %v21032_v54  ;;  %v3230_v58 = vmul.bf16 %v22567_v42, %v25329_v60 }
 0x1fc   : > { %v3357_v29 = vshrl.u32 %v3229_v28, 16  ;;  %v3354_v15 = vor.u32 %v3352_v37, %v3351_v38  ;;  %18415 = vmatpush3.bf16.msra.mxu1 %v21046_v20 }
 0x1fd   : > { %v3365_v13 = vshrl.u32 %v3230_v58, 16  ;;  %v3368_v9 = vshll.u32 %v3230_v58, 16 }
 0x1fe   : > { %18323 = vmatpush3.bf16.msra.mxu0 %v21032_v54  ;;  %v3346_v54 = vor.u32 %v3344_v0, %v3343_v25  ;;  %v3359_v19 = vrot.slane %v3357_v29, 7  ;;  %v3355_v57 = vsel %vm750_vm1, %v3343_v25, %v3354_v15  ;;  %v21381_v15 = vld [vmem:[#allocation2 + $0x38] sm:$0xff] }
 0x1ff   : > { %18324 = vmatprep.subr.bf16.mxu0 %v21033_v53 }
 0x200   : > { %v3347_v2 = vsel %vm750_vm1, %v3335_v56, %v3346_v54  ;;  %v21378_v56 = vld [vmem:[#allocation2 + $0x20] sm:$0xff] }
 0x201   : > { %18293 = vmatmul.mubr.bf16.gmra.mrb[8].mxu0 %v3299_v55  ;;  %v22572_v55 = vld [vmem:[#allocation2] sm:$0xff] }
 0x202   : > { %18296 = vmatprep.mubr.bf16.mxu0 %v3307_v33  ;;  %18325 = vmatpush3.bf16.msra.mxu0 %v21033_v53  ;;  %v3360_v53 = vshll.u32 %v3229_v28, 16  ;;  %v3231_v36 = vmul.bf16 %v22572_v55, %v25330_v61  ;;  %v3367_v33 = vrot.slane %v3365_v13, 7  ;;  %v25334_v28 = vld [vmem:[#allocation19_spill] sm:$0xff]  ;;  %v25335_v13 = vld [vmem:[#allocation20_spill] sm:$0xff]  ;;  %v21382_v61 = vld [vmem:[#allocation2 + $0x40] sm:$0xff] }
 0x203   : > { %18326 = vmatprep.subr.bf16.mxu0 %v21034_v50 }
 0x204   : > { %v3362_v47 = vor.u32 %v3360_v53, %v3359_v19  ;;  %v3373_v63 = vshrl.u32 %v3231_v36, 16  ;;  %v3376_v8 = vshll.u32 %v3231_v36, 16  ;;  %v25336_v36 = vld [vmem:[#allocation21_spill] sm:$0xff] }
 0x206   : > { %18327 = vmatpush3.bf16.msra.mxu0 %v21034_v50  ;;  %v3370_v50 = vor.u32 %v3368_v9, %v3367_v33  ;;  %v3363_v43 = vsel %vm750_vm1, %v3351_v38, %v3362_v47  ;;  %v3375_v30 = vrot.slane %v3373_v63, 7 }
 0x207   : > { %18328 = vmatprep.subr.bf16.mxu0 %v21035_v17 }
 0x208   : > { %v3371_v3 = vsel %vm750_vm1, %v3359_v19, %v3370_v50 }
 0x209   : > { %18297 = vmatmul.mubr.bf16.gmra.mrb[12].mxu0 %v3315_v31 }
 0x20a   : > { %18300 = vmatprep.mubr.bf16.mxu0 %v3323_v49  ;;  %18329 = vmatpush3.bf16.msra.mxu0 %v21035_v17  ;;  %v3378_v17 = vor.u32 %v3376_v8, %v3375_v30  ;;  %v21038_v49 = vld [vmem:[#allocation4 + $0x208] sm:$0xff]  }
 0x20b   : > { %18330 = vmatprep.subr.bf16.mxu0 %v21036_v34  ;;  %v21383_v8 = vld [vmem:[#allocation2 + $0x48] sm:$0xff] }
 0x20c   : > { %v3379_v31 = vsel %vm750_vm1, %v3367_v33, %v3378_v17 }
 0x20e   : > { %18331 = vmatpush3.bf16.msra.mxu0 %v21036_v34  ;;  %v21041_v34 = vld [vmem:[#allocation4 + $0x220] sm:$0xff]  }
 0x20f   : > { %18364 = vmatprep.subr.bf16.mxu0 %v21037_v62 }
 0x211   : > { %18301 = vmatmul.mubr.bf16.gmra.mrb[16].mxu0 %v3331_v18  ;;  %v25333_v18 = vld [vmem:[#allocation18_spill] sm:$0xff] }
 0x212   : > { %18304 = vmatprep.mubr.bf16.mxu0 %v3339_v23  ;;  %v3914_v23 = vmul.bf16 %v21380_v32, %v25334_v28 }
 0x214   : > { %v3968_v54 = vshll.u32 %v3914_v23, 16  ;;  %v3972_v47 = vshrl.u32 %v3914_v23, 16 }
 0x216   : > { %v3970_v53 = vrot.slane %v3968_v54, 1 }
 0x219   : > { %18305 = vmatmul.mubr.bf16.gmra.mrb[20].mxu0 %v3347_v2  ;;  %v3915_v2 = vmul.bf16 %v21381_v15, %v25335_v13  ;;  %v3922_v15 = vmul.bf16 %v22488_v10, %v25325_v24  ;;  %v3924_v24 = vmul.bf16 %v22510_v16, %v25327_v39  ;;  %v3926_v39 = vmul.bf16 %v22572_v55, %v22250_v22 }
 0x21a   : > { %18308 = vmatprep.mubr.bf16.mxu0 %v3355_v57  ;;  %v3916_v57 = vmul.bf16 %v21382_v61, %v25336_v36 }
 0x21b   : > { %v3976_v33 = vshll.u32 %v3915_v2, 16  ;;  %v3980_v50 = vshrl.u32 %v3915_v2, 16  ;;  %v4032_v61 = vshll.u32 %v3922_v15, 16  ;;  %v4068_v22 = vshrl.u32 %v3926_v39, 16 }
 0x21d   : > { %v3978_v30 = vrot.slane %v3976_v33, 1 }
 0x21f   : > { %v3982_v44 = vor.u32 %v3980_v50, %v3978_v30  ;;  %v3908_v50 = vld [vmem:[#allocation2 + $0x88] sm:$0xff] }
 0x221   : > { %18309 = vmatmul.mubr.bf16.gmra.mrb[24].mxu0 %v3363_v43  ;;  %v3984_v43 = vshll.u32 %v3916_v57, 16 }
 0x222   : > { %18312 = vmatprep.mubr.bf16.mxu0 %v3371_v3  ;;  %v25337_v3 = vld [vmem:[#allocation22_spill] sm:$0xff] }
 0x223   : > { %v3917_v17 = vmul.bf16 %v21383_v8, %v25337_v3  ;;  %v3986_v20 = vrot.slane %v3984_v43, 1  ;;  %v4048_v8 = vshll.u32 %v3924_v24, 16 }
 0x229   : > { %18313 = vmatmul.mubr.bf16.gmra.mrb[28].mxu0 %v3379_v31  ;;  %v3974_v31 = vor.u32 %v3972_v47, %v3970_v53 }
 0x22a   : > { %18332 = vmatprep.mubr.bf16.mxu0 %v21377_v41 }
 0x231   : > { %18333 = vmatmul.mubr.bf16.vlgmr.msra.gmra.mrb[0].mxu0 %v21378_v56 }
 0x232   : > { %18365 = vmatpush3.bf16.msra.mxu0 %v21037_v62  ;;  %18336 = vmatprep.mubr.bf16.mxu0 %v22400_v1  ;;  %v21043_v1 = vld [vmem:[#allocation4 + $0x230] sm:$0xff]  }
 0x233   : > { %18366 = vmatprep.subr.bf16.mxu0 %v21038_v49 }
 0x236   : > { %18367 = vmatpush3.bf16.msra.mxu0 %v21038_v49  ;;  %v25338_v49 = vld [vmem:[#allocation23_spill] sm:$0xff] }
 0x237   : > { %18368 = vmatprep.subr.bf16.mxu0 %v21039_v59 }
 0x239   : > { %18337 = vmatmul.mubr.bf16.gmra.mrb[4].mxu0 %v22405_v27  ;;  %v25331_v27 = vld [vmem:[#allocation16_spill] sm:$0xff] }
 0x23a   : > { %18340 = vmatprep.mubr.bf16.mxu0 %v22418_v5  ;;  %18369 = vmatpush3.bf16.msra.mxu0 %v21039_v59  ;;  %v3911_v5 = vmul.bf16 %v21377_v41, %v25331_v27  ;;  %v21384_v41 = vld [vmem:[#allocation2 + $0x50] sm:$0xff]  ;;  %v3992_v59 = vshll.u32 %v3917_v17, 16 }
 0x23b   : > { %18370 = vmatprep.subr.bf16.mxu0 %v21040_v7 }
 0x23c   : > { %v3947_v46 = vshll.u32 %v3911_v5, 16  ;;  %v3945_v4 = vshrl.u32 %v3911_v5, 16  ;;  %v3994_v27 = vrot.slane %v3992_v59, 1  ;;  %v21385_v5 = vld [vmem:[#allocation2 + $0x58] sm:$0xff] }
 0x23d   : > { %v3910_v59 = vld [vmem:[#allocation2 + $0x98] sm:$0x1] }
 0x23e   : > { %18371 = vmatpush3.bf16.msra.mxu0 %v21040_v7  ;;  %v3979_v7 = vsel %vm572_vm0, %v3974_v31, %v3978_v30  ;;  %v4050_v31 = vrot.slane %v4048_v8, 1 }
 0x23f   : > { %18372 = vmatprep.subr.bf16.mxu0 %v21041_v34 }
 0x241   : > { %18341 = vmatmul.mubr.bf16.gmra.mrb[8].mxu0 %v22420_v26  ;;  %v25332_v26 = vld [vmem:[#allocation17_spill] sm:$0xff] }
 0x242   : > { %18344 = vmatprep.mubr.bf16.mxu0 %v22424_v40  ;;  %18373 = vmatpush3.bf16.msra.mxu0 %v21041_v34  ;;  %v3912_v40 = vmul.bf16 %v21378_v56, %v25332_v26  ;;  %v3918_v56 = vmul.bf16 %v21384_v41, %v25338_v49  ;;  %v3988_v34 = vshrl.u32 %v3916_v57, 16  ;;  %v25339_v26 = vld [vmem:[#allocation24_spill] sm:$0xff] }
 0x243   : > { %18374 = vmatprep.subr.bf16.mxu0 %v21042_v51 }
 0x244   : > { %v3952_v62 = vshll.u32 %v3912_v40, 16  ;;  %v3956_v37 = vshrl.u32 %v3912_v40, 16  ;;  %v3919_v40 = vmul.bf16 %v21385_v5, %v25339_v26 }
 0x246   : > { %18375 = vmatpush3.bf16.msra.mxu0 %v21042_v51  ;;  %v3954_v0 = vrot.slane %v3952_v62, 1  ;;  %v3987_v51 = vsel %vm572_vm0, %v3982_v44, %v3986_v20  ;;  %v21386_v62 = vld [vmem:[#allocation2 + $0x60] sm:$0xff]  ;;  %v4012_v28 = vshrl.u32 %v3919_v40, 16 }
 0x247   : > { %18376 = vmatprep.subr.bf16.mxu0 %v21043_v1 }
 0x248   : > { %v3958_v19 = vor.u32 %v3956_v37, %v3954_v0  ;;  %v25341_v37 = vld [vmem:[#allocation26_spill] sm:$0xff] }
 0x249   : > { %18345 = vmatmul.mubr.bf16.gmra.mrb[12].mxu0 %v22426_v35  ;;  %v3949_v35 = vrot.slane %v3947_v46, 1  ;;  %v3990_v46 = vor.u32 %v3988_v34, %v3986_v20  ;;  %v4052_v20 = vshrl.u32 %v3924_v24, 16  ;;  %v3927_v34 = vmul.bf16 %v3910_v59, %v22177_v6  ;;  %v21053_v6 = vld [vmem:[%s25170_s1] sm:$0xff]  }
 0x24a   : > { %18348 = vmatprep.mubr.bf16.mxu0 %v22429_v52  ;;  %18377 = vmatpush3.bf16.msra.mxu0 %v21043_v1  ;;  %v21379_v52 = vld [vmem:[#allocation2 + $0x28] sm:$0xff]  ;;  %v3996_v1 = vshrl.u32 %v3917_v17, 16  ;;  %v21058_v24 = vld [vmem:[%s25170_s1 + $0x20] sm:$0xff]  }
 0x24b   : > { %18378 = vmatprep.subr.bf16.mxu0 %v21044_v14  ;;  %v3913_v25 = vmul.bf16 %v21379_v52, %v25333_v18  ;;  %v25340_v52 = vld [vmem:[#allocation25_spill] sm:$0xff] }
 0x24c   : > { %v3920_v18 = vmul.bf16 %v21386_v62, %v25340_v52  ;;  %v21049_v62 = vld [vmem:[#allocation7 + $0x20] sm:$0xff]   ;;  %v21054_v52 = vld [vmem:[%s25170_s1 + $0x8] sm:$0xff]  }
 0x24d   : > { %v3960_v38 = vshll.u32 %v3913_v25, 16  ;;  %v3964_v58 = vshrl.u32 %v3913_v25, 16  ;;  %v4008_v25 = vshll.u32 %v3919_v40, 16 }
 0x24e   : > { %18379 = vmatpush3.bf16.msra.mxu0 %v21044_v14  ;;  %v4000_v14 = vshll.u32 %v3918_v56, 16  ;;  %v4016_v23 = vshll.u32 %v3920_v18, 16 }
 0x24f   : > { %v3962_v29 = vrot.slane %v3960_v38, 1  ;;  %v4010_v38 = vrot.slane %v4008_v25, 1  ;;  %v4541_v25 = vshll.u32 %v21054_v52, 16 }
 0x251   : > { %18349 = vmatmul.mubr.bf16.gmra.mrb[16].mxu0 %v22432_v45  ;;  %v3950_v45 = vor.u32 %v3949_v35, %v3945_v4  ;;  %v3963_v9 = vsel %vm572_vm0, %v3958_v19, %v3962_v29  ;;  %v3998_v4 = vor.u32 %v3996_v1, %v3994_v27  ;;  %v4002_v35 = vrot.slane %v4000_v14, 1 }
 0x252   : > { %18352 = vmatprep.mubr.bf16.mxu0 %v22477_v48  ;;  %v4014_v54 = vor.u32 %v4012_v28, %v4010_v38  ;;  %v4020_v19 = vshrl.u32 %v3920_v18, 16  ;;  %v4534_v18 = vshll.u32 %v21053_v6, 16  ;;  %v4543_v28 = vrot.slane %v4541_v25, 1 }
 0x253   : > { %v3955_v60 = vsel %vm572_vm0, %v3950_v45, %v3954_v0  ;;  %v3995_v45 = vsel %vm572_vm0, %v3990_v46, %v3994_v27  ;;  %v4004_v0 = vshrl.u32 %v3918_v56, 16  ;;  %v4003_v32 = vsel %vm572_vm0, %v3998_v4, %v4002_v35  ;;  %v21047_v4 = vld [vmem:[#allocation7 + $0x10] sm:$0xff]  }
 0x254   : > { %v4064_v56 = vshll.u32 %v3926_v39, 16  ;;  %v4072_v27 = vshll.u32 %v3927_v34, 16  ;;  %18416 = vmatprep.subr.bf16.mxu1 %v21047_v4 }
 0x255   : > { %18417 = vmatpush3.bf16.msra.mxu1 %v21047_v4  ;;  %v22697_v4 = vld [vmem:[%s25170_s1 + $0x40] sm:$0xff]  }
 0x256   : > { %v4066_v1 = vrot.slane %v4064_v56, 1  ;;  %v4074_v40 = vrot.slane %v4072_v27, 1 }
 0x258   : > { %v4070_v26 = vor.u32 %v4068_v22, %v4066_v1 }
 0x259   : > { %18353 = vmatmul.mubr.bf16.gmra.mrb[20].mxu0 %v22488_v10 }
 0x25a   : > { %18356 = vmatprep.mubr.bf16.mxu0 %v22499_v12  ;;  %v4075_v46 = vsel %vm572_vm0, %v4070_v26, %v4074_v40 }
 0x261   : > { %18357 = vmatmul.mubr.bf16.gmra.mrb[24].mxu0 %v22510_v16 }
 0x262   : > { %18360 = vmatprep.mubr.bf16.mxu0 %v22567_v42  ;;  %v3966_v42 = vor.u32 %v3964_v58, %v3962_v29  ;;  %v4006_v58 = vor.u32 %v4004_v0, %v4002_v35  ;;  %v4018_v29 = vrot.slane %v4016_v23, 1  ;;  %v21048_v35 = vld [vmem:[#allocation7 + $0x18] sm:$0xff]   ;;  %v4537_v0 = vshrl.u32 %v21053_v6, 16 }
 0x263   : > { %18418 = vmatprep.subr.bf16.mxu1 %v21048_v35  ;;  %v4545_v23 = vshrl.u32 %v21054_v52, 16 }
 0x264   : > { %v3971_v63 = vsel %vm572_vm0, %v3966_v42, %v3970_v53  ;;  %v4011_v2 = vsel %vm572_vm0, %v4006_v58, %v4010_v38  ;;  %v4019_v42 = vsel %vm572_vm0, %v4014_v54, %v4018_v29  ;;  %v4022_v57 = vor.u32 %v4020_v19, %v4018_v29  ;;  %18419 = vmatpush3.bf16.msra.mxu1 %v21048_v35  ;;  %v21051_v58 = vld [vmem:[#allocation7 + $0x30] sm:$0xff]   ;;  %v4404_v29 = vld [vmem:[#allocation3] sm:$0x80] }
 0x265   : > { %18420 = vmatprep.subr.bf16.mxu1 %v21049_v62 }
 0x268   : > { %18421 = vmatpush3.bf16.msra.mxu1 %v21049_v62 }
 0x269   : > { %18361 = vmatmul.mubr.bf16.gmra.mrb[28].mxu0 %v22572_v55 }
 0x26a   : > { %18380 = vmatprep.mubr.bf16.mxu0 %v3955_v60  ;;  %v3921_v60 = vmul.bf16 %v22477_v48, %v25341_v37  ;;  %v3923_v48 = vmul.bf16 %v22499_v12, %v25326_v11  ;;  %v3925_v11 = vmul.bf16 %v3908_v50, %v22200_v21  ;;  %v4054_v21 = vor.u32 %v4052_v20, %v4050_v31  ;;  %v22666_v50 = vld [vmem:[%s25172_s3] ss:$0 sm:$0xff] }
 0x26b   : > { %v4547_v37 = vor.u32 %v4545_v23, %v4543_v28  ;;  %v4569_v20 = vshrl.u32 %v21058_v24, 16 }
 0x26c   : > { %v4024_v13 = vshll.u32 %v3921_v60, 16  ;;  %v4028_v53 = vshrl.u32 %v3921_v60, 16  ;;  %v4040_v10 = vshll.u32 %v3923_v48, 16  ;;  %v4044_v30 = vshrl.u32 %v3923_v48, 16 }
 0x26d   : > { %v4056_v16 = vshll.u32 %v3925_v11, 16  ;;  %v4060_v49 = vshrl.u32 %v3925_v11, 16 }
 0x26e   : > { %v4026_v36 = vrot.slane %v4024_v13, 1  ;;  %v4042_v3 = vrot.slane %v4040_v10, 1 }
 0x270   : > { %v4030_v33 = vor.u32 %v4028_v53, %v4026_v36  ;;  %v4027_v47 = vsel %vm572_vm0, %v4022_v57, %v4026_v36  ;;  %v4046_v17 = vor.u32 %v4044_v30, %v4042_v3  ;;  %v21055_v57 = vld [vmem:[%s25170_s1 + $0x10] sm:$0xff]   ;;  %v22671_v30 = vld [vmem:[%s25170_s1 + $0x28] sm:$0xff]  }
 0x271   : > { %18381 = vmatmul.mubr.bf16.vlgmr.msra.gmra.mrb[0].mxu0 %v3963_v9  ;;  %v4034_v9 = vrot.slane %v4032_v61, 1 }
 0x272   : > { %18384 = vmatprep.mubr.bf16.mxu0 %v3971_v63  ;;  %v4036_v63 = vshrl.u32 %v3922_v15, 16  ;;  %v4051_v41 = vsel %vm572_vm0, %v4046_v17, %v4050_v31 }
 0x273   : > { %v4035_v43 = vsel %vm572_vm0, %v4030_v33, %v4034_v9  ;;  %v4549_v33 = vshll.u32 %v21055_v57, 16 }
 0x274   : > { %v4038_v12 = vor.u32 %v4036_v63, %v4034_v9  ;;  %v21057_v9 = vld [vmem:[%s25170_s1 + $0x18] sm:$0xff]  }
 0x275   : > { %v4551_v10 = vrot.slane %v4549_v33, 1  ;;  %v4557_v63 = vshll.u32 %v21057_v9, 16 }
 0x276   : > { %v4043_v44 = vsel %vm572_vm0, %v4038_v12, %v4042_v3  ;;  %v21061_v3 = vld [vmem:[%s25170_s1 + $0x30] sm:$0xff]  }
 0x277   : > { %v4559_v31 = vrot.slane %v4557_v63, 1  ;;  %v4585_v52 = vshrl.u32 %v21061_v3, 16 }
 0x279   : > { %18385 = vmatmul.mubr.bf16.gmra.mrb[4].mxu0 %v3979_v7  ;;  %v4058_v7 = vrot.slane %v4056_v16, 1 }
 0x27a   : > { %18388 = vmatprep.mubr.bf16.mxu0 %v3987_v51 }
 0x27b   : > { %v4062_v51 = vor.u32 %v4060_v49, %v4058_v7  ;;  %v4059_v14 = vsel %vm572_vm0, %v4054_v21, %v4058_v7  ;;  %v4581_v7 = vshll.u32 %v21061_v3, 16  ;;  %v22684_v21 = vld [vmem:[%s25170_s1 + $0x38] sm:$0xff]  }
 0x27d   : > { %v4067_v5 = vsel %vm572_vm0, %v4062_v51, %v4066_v1  ;;  %v22701_v62 = vrot.slane %v4581_v7, 1 }
 0x281   : > { %18389 = vmatmul.mubr.bf16.gmra.mrb[8].mxu0 %v3995_v45  ;;  %v22638_v45 = vrot.slane %v4534_v18, 1  ;;  %v4589_v18 = vshll.u32 %v22684_v21, 16 }
 0x282   : > { %18392 = vmatprep.mubr.bf16.mxu0 %v4003_v32  ;;  %v21050_v32 = vld [vmem:[#allocation7 + $0x28] sm:$0xff]  }
 0x283   : > { %v4539_v38 = vor.u32 %v4537_v0, %v22638_v45  ;;  %18422 = vmatprep.subr.bf16.mxu1 %v21050_v32  ;;  %v4677_v15 = vmul.bf16 %v22638_v45, %v4404_v29 }
 0x284   : > { %18423 = vmatpush3.bf16.msra.mxu1 %v21050_v32 }
 0x285   : > { %v22642_v60 = vsel %vm572_vm0, %v4539_v38, %v4543_v28  ;;  %18424 = vmatprep.subr.bf16.mxu1 %v21051_v58  ;;  %v4711_v19 = vshrl.u32 %v4677_v15, 16 }
 0x286   : > { %v4678_v54 = vmul.bf16 %v22572_v55, %v22642_v60  ;;  %v22651_v55 = vld [vmem:[#allocation7 + $0x40] sm:$0xff]  }
 0x287   : > { %v4713_v61 = vrot.slane %v4711_v19, 7 }
 0x288   : > { %v4715_v13 = vshrl.u32 %v4678_v54, 16  ;;  %18425 = vmatpush3.bf16.msra.mxu1 %v21051_v58  ;;  %v4718_v53 = vshll.u32 %v4678_v54, 16 }
 0x289   : > { %18393 = vmatmul.mubr.bf16.gmra.mrb[12].mxu0 %v4011_v2  ;;  %v21052_v2 = vld [vmem:[#allocation7 + $0x38] sm:$0xff]  }
 0x28a   : > { %18396 = vmatprep.mubr.bf16.mxu0 %v4019_v42  ;;  %v22647_v42 = vrot.slane %v4715_v13, 7  ;;  %18426 = vmatprep.subr.bf16.mxu1 %v21052_v2  ;;  %v4577_v13 = vshrl.u32 %v22671_v30, 16 }
 0x28c   : > { %v4720_v36 = vor.u32 %v4718_v53, %v22647_v42  ;;  %18427 = vmatpush3.bf16.msra.mxu1 %v21052_v2  ;;  %v4597_v2 = vshll.u32 %v22697_v4, 16 }
 0x28d   : > { %18460 = vmatprep.subr.bf16.mxu1 %v22651_v55 }
 0x28e   : > { %v4721_v48 = vsel %vm750_vm1, %v4713_v61, %v4720_v36  ;;  %v4587_v61 = vor.u32 %v4585_v52, %v22701_v62  ;;  %v22720_v36 = vrot.slane %v4589_v18, 1 }
 0x28f   : > { %18428 = vmatprep.mubr.bf16.mxu1 %v4721_v48  ;;  %v22725_v48 = vld [vmem:[%s25170_s1 + $0x48] sm:$0xff]  }
 0x290   : > { %v22752_v7 = vsel %vm572_vm0, %v4587_v61, %v22720_v36  ;;  %v22788_v61 = vld [vmem:[%s25170_s1 + $0x60] sm:$0xff]  }
 0x291   : > { %18397 = vmatmul.mubr.bf16.gmra.mrb[16].mxu0 %v4027_v47  ;;  %v4553_v47 = vshrl.u32 %v21055_v57, 16 }
 0x292   : > { %18400 = vmatprep.mubr.bf16.mxu0 %v4035_v43  ;;  %v4565_v43 = vshll.u32 %v21058_v24, 16 }
 0x293   : > { %v4555_v17 = vor.u32 %v4553_v47, %v4551_v10 }
 0x295   : > { %v22687_v1 = vsel %vm572_vm0, %v4555_v17, %v4559_v31 }
 0x299   : > { %18401 = vmatmul.mubr.bf16.gmra.mrb[20].mxu0 %v4043_v44  ;;  %v4567_v44 = vrot.slane %v4565_v43, 1 }
 0x29a   : > { %18404 = vmatprep.mubr.bf16.mxu0 %v4051_v41  ;;  %v4573_v41 = vshll.u32 %v22671_v30, 16 }
 0x29c   : > { %v4575_v26 = vrot.slane %v4573_v41, 1 }
 0x2a1   : > { %18405 = vmatmul.mubr.bf16.gmra.mrb[24].mxu0 %v4059_v14  ;;  %v4561_v14 = vshrl.u32 %v21057_v9, 16 }
 0x2a2   : > { %18408 = vmatprep.mubr.bf16.mxu0 %v4067_v5  ;;  %v4571_v5 = vor.u32 %v4569_v20, %v4567_v44  ;;  %v4605_v20 = vshll.u32 %v22725_v48, 16 }
 0x2a4   : > { %v22713_v58 = vsel %vm572_vm0, %v4571_v5, %v4575_v26 }
 0x2a9   : > { %18409 = vmatmul.mubr.bf16.gmra.mrb[28].mxu0 %v4075_v46  ;;  %v22692_v46 = vsel %vm572_vm0, %v4547_v37, %v4551_v10  ;;  %v4563_v37 = vor.u32 %v4561_v14, %v4559_v31 }
 0x2ab   : > { %v22733_v3 = vsel %vm572_vm0, %v4563_v37, %v4567_v44  ;;  %v21062_v37 = vld [vmem:[#allocation7 + $0x50] sm:$0xff]  }
 0x344   : > { %v18382_v8 = vpop.f32.mrb[0].mxu0 }
 0x345   : > { %v19708_v11 = vadd.f32 %v18382_v8, %v22666_v50  ;;  %v4174_v12 = vpop.f32.mrb[1].mxu0 }
 0x346   : > { %v19709_v39 = vadd.f32 %v22666_v50, %v4174_v12  ;;  %v18383_v16 = vpop.f32.mrb[2].mxu0  ;;  %v22740_v12 = vld [vmem:[%s25170_s1 + $0x50] sm:$0xff]  }
 0x347   : > { %v19710_v49 = vadd.f32 %v18383_v16, %v22666_v50  ;;  %v4177_v56 = vpop.f32.mrb[3].mxu0  ;;  %v4335_v34 = vmax.f32 %v19708_v11, 0.0  ;;  %v22735_v11 = vrot.slane %v4597_v2, 1  ;;  %v4601_v16 = vshrl.u32 %v22697_v4, 16 }
 0x348   : > { %v19711_v59 = vadd.f32 %v22666_v50, %v4177_v56  ;;  %v4333_v22 = vmax.f32 %v19709_v39, 0.0  ;;  %v4613_v52 = vshll.u32 %v22740_v12, 16 }
 0x349   : > { %v4336_v51 = vmax.f32 %v19710_v49, 0.0  ;;  %v21059_v49 = vld [vmem:[#allocation7 + $0x48] sm:$0xff]  }
 0x34a   : > { %v4334_v27 = vmax.f32 %v19711_v59, 0.0  ;;  %v4579_v59 = vor.u32 %v4577_v13, %v4575_v26 }
 0x34b   : > { %v22689_v40 = vpack.c.bf16 %v4336_v51, %v4335_v34 }
 0x34c   : > { %v22699_v35 = vpack.c.bf16 %v4334_v27, %v4333_v22  ;;  %v18386_v6 = vpop.f32.mrb[4].mxu0  ;;  %v4593_v27 = vshrl.u32 %v22684_v21, 16  ;;  %v22772_v21 = vld [vmem:[%s25170_s1 + $0x58] sm:$0xff]  }
 0x34d   : > { %4382 = vst [vmem:[#allocation3 + $0x18] sm:$0xff] %v22689_v40  ;;  %v19712_v25 = vadd.f32 %v18386_v6, %v22666_v50  ;;  %v4190_v0 = vpop.f32.mrb[5].mxu0  ;;  %v4680_v32 = vmul.bf16 %v22687_v1, %v22689_v40 }
 0x34e   : > { %4381 = vst [vmem:[#allocation3 + $0x10] sm:$0xff] %v22699_v35  ;;  %v19713_v28 = vadd.f32 %v22666_v50, %v4190_v0  ;;  %v18387_v23 = vpop.f32.mrb[6].mxu0  ;;  %v4679_v38 = vmul.bf16 %v22692_v46, %v22699_v35  ;;  %v22767_v0 = vrot.slane %v4605_v20, 1 }
 0x34f   : > { %v19714_v54 = vadd.f32 %v18387_v23, %v22666_v50  ;;  %v4193_v29 = vpop.f32.mrb[7].mxu0  ;;  %v4731_v15 = vshrl.u32 %v4680_v32, 16  ;;  %v4339_v57 = vmax.f32 %v19712_v25, 0.0  ;;  %v4734_v24 = vshll.u32 %v4680_v32, 16 }
 0x350   : > { %v19715_v19 = vadd.f32 %v22666_v50, %v4193_v29  ;;  %v4723_v53 = vshrl.u32 %v4679_v38, 16  ;;  %v4337_v10 = vmax.f32 %v19713_v28, 0.0  ;;  %v4726_v43 = vshll.u32 %v4679_v38, 16 }
 0x351   : > { %v4340_v33 = vmax.f32 %v19714_v54, 0.0  ;;  %v22727_v9 = vrot.slane %v4731_v15, 7  ;;  %v4603_v25 = vor.u32 %v4601_v16, %v22735_v11 }
 0x352   : > { %v4338_v47 = vmax.f32 %v19715_v19, 0.0  ;;  %v4725_v63 = vrot.slane %v4723_v53, 7  ;;  %v22781_v19 = vsel %vm572_vm0, %v4579_v59, %v22701_v62  ;;  %v22783_v53 = vrot.slane %v4613_v52, 1 }
 0x353   : > { %v22729_v30 = vpack.c.bf16 %v4340_v33, %v4339_v57  ;;  %v4736_v8 = vor.u32 %v4734_v24, %v22727_v9 }
 0x354   : > { %v22742_v17 = vpack.c.bf16 %v4338_v47, %v4337_v10  ;;  %v18390_v31 = vpop.f32.mrb[8].mxu0  ;;  %v4728_v39 = vor.u32 %v4726_v43, %v4725_v63  ;;  %v4617_v10 = vshrl.u32 %v22740_v12, 16  ;;  %v4621_v47 = vshll.u32 %v22772_v21, 16 }
 0x355   : > { %4384 = vst [vmem:[#allocation3 + $0x28] sm:$0xff] %v22729_v30  ;;  %v19716_v44 = vadd.f32 %v18390_v31, %v22666_v50  ;;  %v4206_v41 = vpop.f32.mrb[9].mxu0  ;;  %v4682_v56 = vmul.bf16 %v22713_v58, %v22729_v30  ;;  %v4737_v4 = vsel %vm750_vm1, %v4725_v63, %v4736_v8  ;;  %v4595_v8 = vor.u32 %v4593_v27, %v22720_v36  ;;  %v21065_v31 = vld [vmem:[#allocation7 + $0x58] sm:$0xff]  }
 0x356   : > { %4383 = vst [vmem:[#allocation3 + $0x20] sm:$0xff] %v22742_v17  ;;  %v19717_v34 = vadd.f32 %v22666_v50, %v4206_v41  ;;  %v18391_v51 = vpop.f32.mrb[10].mxu0  ;;  %v4729_v14 = vsel %vm750_vm1, %v22647_v42, %v4728_v39  ;;  %v4681_v22 = vmul.bf16 %v22733_v3, %v22742_v17  ;;  %v22801_v39 = vsel %vm572_vm0, %v4603_v25, %v22767_v0 }
 0x357   : > { %v19718_v5 = vadd.f32 %v18391_v51, %v22666_v50  ;;  %v4209_v26 = vpop.f32.mrb[11].mxu0  ;;  %18429 = vmatmul.mubr.bf16.vlgmr.msra.gmra.mrb[0].mxu1 %v4729_v14  ;;  %v4747_v6 = vshrl.u32 %v4682_v56, 16  ;;  %v4343_v32 = vmax.f32 %v19716_v44, 0.0  ;;  %v4750_v38 = vshll.u32 %v4682_v56, 16 }
 0x358   : > { %v19719_v18 = vadd.f32 %v22666_v50, %v4209_v26  ;;  %18432 = vmatprep.mubr.bf16.mxu1 %v4737_v4  ;;  %18461 = vmatpush3.bf16.msra.mxu1 %v22651_v55  ;;  %v4739_v42 = vshrl.u32 %v4681_v22, 16  ;;  %v4341_v54 = vmax.f32 %v19717_v34, 0.0  ;;  %v4742_v15 = vshll.u32 %v4681_v22, 16 }
 0x359   : > { %v4344_v28 = vmax.f32 %v19718_v5, 0.0  ;;  %18462 = vmatprep.subr.bf16.mxu1 %v21059_v49  ;;  %v22774_v23 = vrot.slane %v4747_v6, 7  ;;  %v4609_v41 = vshrl.u32 %v22725_v48, 16  ;;  %v4629_v34 = vshll.u32 %v22788_v61, 16  ;;  %v22820_v48 = vld [vmem:[%s25170_s1 + $0x68] sm:$0xff]   ;;  %v21068_v6 = vld [vmem:[#allocation7 + $0x60] sm:$0xff]  }
 0x35a   : > { %v4342_v29 = vmax.f32 %v19719_v18, 0.0  ;;  %v4741_v55 = vrot.slane %v4739_v42, 7  ;;  %v22815_v22 = vrot.slane %v4621_v47, 1  ;;  %v21071_v47 = vld [vmem:[#allocation7 + $0x68] sm:$0xff]  }
 0x35b   : > { %v22776_v13 = vpack.c.bf16 %v4344_v28, %v4343_v32  ;;  %v4752_v2 = vor.u32 %v4750_v38, %v22774_v23  ;;  %v22829_v38 = vsel %vm572_vm0, %v4595_v8, %v22735_v11 }
 0x35c   : > { %v22790_v57 = vpack.c.bf16 %v4342_v29, %v4341_v54  ;;  %v18394_v33 = vpop.f32.mrb[12].mxu0  ;;  %v4744_v24 = vor.u32 %v4742_v15, %v4741_v55  ;;  %18463 = vmatpush3.bf16.msra.mxu1 %v21059_v49  ;;  %v4633_v15 = vshrl.u32 %v22788_v61, 16 }
 0x35d   : > { %4386 = vst [vmem:[#allocation3 + $0x38] sm:$0xff] %v22776_v13  ;;  %v19720_v62 = vadd.f32 %v18394_v33, %v22666_v50  ;;  %v4222_v63 = vpop.f32.mrb[13].mxu0  ;;  %18464 = vmatprep.subr.bf16.mxu1 %v21062_v37  ;;  %v4684_v43 = vmul.bf16 %v22752_v7, %v22776_v13  ;;  %v4753_v56 = vsel %vm750_vm1, %v4741_v55, %v4752_v2  ;;  %v4637_v2 = vshll.u32 %v22820_v48, 16 }
 0x35e   : > { %4385 = vst [vmem:[#allocation3 + $0x30] sm:$0xff] %v22790_v57  ;;  %v19721_v12 = vadd.f32 %v22666_v50, %v4222_v63  ;;  %v18395_v16 = vpop.f32.mrb[14].mxu0  ;;  %v4745_v20 = vsel %vm750_vm1, %v22727_v9, %v4744_v24  ;;  %v4683_v44 = vmul.bf16 %v22781_v19, %v22790_v57  ;;  %v4619_v9 = vor.u32 %v4617_v10, %v22783_v53 }
 0x35f   : > { %v19722_v36 = vadd.f32 %v18395_v16, %v22666_v50  ;;  %v4225_v49 = vpop.f32.mrb[15].mxu0  ;;  %18433 = vmatmul.mubr.bf16.gmra.mrb[4].mxu1 %v4745_v20  ;;  %v4763_v59 = vshrl.u32 %v4684_v43, 16  ;;  %v4347_v27 = vmax.f32 %v19720_v62, 0.0  ;;  %v4766_v4 = vshll.u32 %v4684_v43, 16 }
 0x360   : > { %v19723_v51 = vadd.f32 %v22666_v50, %v4225_v49  ;;  %18436 = vmatprep.mubr.bf16.mxu1 %v4753_v56  ;;  %v4755_v14 = vshrl.u32 %v4683_v44, 16  ;;  %18465 = vmatpush3.bf16.msra.mxu1 %v21062_v37  ;;  %v4345_v52 = vmax.f32 %v19721_v12, 0.0  ;;  %v4758_v25 = vshll.u32 %v4683_v44, 16 }
 0x361   : > { %v4348_v5 = vmax.f32 %v19722_v36, 0.0  ;;  %v22822_v26 = vrot.slane %v4763_v59, 7  ;;  %18466 = vmatprep.subr.bf16.mxu1 %v21065_v31  ;;  %v22831_v37 = vrot.slane %v4629_v34, 1  ;;  %v4611_v10 = vor.u32 %v4609_v41, %v22767_v0 }
 0x362   : > { %v4346_v18 = vmax.f32 %v19723_v51, 0.0  ;;  %v4757_v42 = vrot.slane %v4755_v14, 7  ;;  %v22850_v8 = vsel %vm572_vm0, %v4619_v9, %v22815_v22  ;;  %v4625_v20 = vshrl.u32 %v22772_v21, 16  ;;  %v21074_v21 = vld [vmem:[#allocation7 + $0x70] sm:$0xff]  }
 0x363   : > { %v22824_v32 = vpack.c.bf16 %v4348_v5, %v4347_v27  ;;  %v4768_v28 = vor.u32 %v4766_v4, %v22822_v26  ;;  %v4635_v36 = vor.u32 %v4633_v15, %v22831_v37  ;;  %v22862_v49 = vrot.slane %v4637_v2, 1 }
 0x364   : > { %v22833_v54 = vpack.c.bf16 %v4346_v18, %v4345_v52  ;;  %v18398_v29 = vpop.f32.mrb[16].mxu0  ;;  %v4760_v55 = vor.u32 %v4758_v25, %v4757_v42  ;;  %18467 = vmatpush3.bf16.msra.mxu1 %v21065_v31  ;;  %v4627_v2 = vor.u32 %v4625_v20, %v22815_v22 }
 0x365   : > { %4388 = vst [vmem:[#allocation3 + $0x48] sm:$0xff] %v22824_v32  ;;  %v19724_v33 = vadd.f32 %v18398_v29, %v22666_v50  ;;  %v4238_v24 = vpop.f32.mrb[17].mxu0  ;;  %v4686_v11 = vmul.bf16 %v22801_v39, %v22824_v32  ;;  %18468 = vmatprep.subr.bf16.mxu1 %v21068_v6  ;;  %v4769_v12 = vsel %vm750_vm1, %v4757_v42, %v4768_v28  ;;  %v22879_v29 = vld [vmem:[%s25170_s1 + $0x78] sm:$0xff]  }
 0x366   : > { %4387 = vst [vmem:[#allocation3 + $0x40] sm:$0xff] %v22833_v54  ;;  %v19725_v62 = vadd.f32 %v22666_v50, %v4238_v24  ;;  %v18399_v63 = vpop.f32.mrb[18].mxu0  ;;  %v4761_v61 = vsel %vm750_vm1, %v22774_v23, %v4760_v55  ;;  %v4685_v43 = vmul.bf16 %v22829_v38, %v22833_v54  ;;  %v22858_v23 = vld [vmem:[%s25170_s1 + $0x70] sm:$0xff]  }
 0x367   : > { %v19726_v31 = vadd.f32 %v18399_v63, %v22666_v50  ;;  %v4241_v0 = vpop.f32.mrb[19].mxu0  ;;  %18437 = vmatmul.mubr.bf16.gmra.mrb[8].mxu1 %v4761_v61  ;;  %v4779_v16 = vshrl.u32 %v4686_v11, 16  ;;  %v4351_v56 = vmax.f32 %v19724_v33, 0.0  ;;  %v4782_v51 = vshll.u32 %v4686_v11, 16  ;;  %v21076_v33 = vld [vmem:[#allocation7 + $0x78] sm:$0xff]  }
 0x368   : > { %v19727_v44 = vadd.f32 %v22666_v50, %v4241_v0  ;;  %18440 = vmatprep.mubr.bf16.mxu1 %v4769_v12  ;;  %v4771_v41 = vshrl.u32 %v4685_v43, 16  ;;  %18469 = vmatpush3.bf16.msra.mxu1 %v21068_v6  ;;  %v4349_v14 = vmax.f32 %v19725_v62, 0.0  ;;  %v4774_v5 = vshll.u32 %v4685_v43, 16 }
 0x369   : > { %v4352_v59 = vmax.f32 %v19726_v31, 0.0  ;;  %v22864_v34 = vrot.slane %v4779_v16, 7  ;;  %18470 = vmatprep.subr.bf16.mxu1 %v21071_v47  ;;  %v22871_v6 = vsel %vm572_vm0, %v4611_v10, %v22783_v53  ;;  %v4645_v18 = vshll.u32 %v22858_v23, 16 }
 0x36a   : > { %v4350_v9 = vmax.f32 %v19727_v44, 0.0  ;;  %v4773_v27 = vrot.slane %v4771_v41, 7  ;;  %v22894_v62 = vsel %vm572_vm0, %v4635_v36, %v22862_v49  ;;  %v4653_v16 = vshll.u32 %v22879_v29, 16 }
 0x36b   : > { %v22866_v4 = vpack.c.bf16 %v4352_v59, %v4351_v56  ;;  %v4784_v52 = vor.u32 %v4782_v51, %v22864_v34  ;;  %v4647_v31 = vrot.slane %v4645_v18, 1  ;;  %v22901_v56 = vld [vmem:[#allocation7 + $0x80] sm:$0xff]  }
 0x36c   : > { %v22874_v42 = vpack.c.bf16 %v4350_v9, %v4349_v14  ;;  %v18402_v25 = vpop.f32.mrb[20].mxu0  ;;  %v4776_v28 = vor.u32 %v4774_v5, %v4773_v27  ;;  %18471 = vmatpush3.bf16.msra.mxu1 %v21071_v47 }
 0x36d   : > { %4390 = vst [vmem:[#allocation3 + $0x58] sm:$0xff] %v22866_v4  ;;  %v19728_v55 = vadd.f32 %v18402_v25, %v22666_v50  ;;  %v4254_v15 = vpop.f32.mrb[21].mxu0  ;;  %v4688_v53 = vmul.bf16 %v22850_v8, %v22866_v4  ;;  %18472 = vmatprep.subr.bf16.mxu1 %v21074_v21  ;;  %v4785_v61 = vsel %vm750_vm1, %v4773_v27, %v4784_v52 }
 0x36e   : > { %4389 = vst [vmem:[#allocation3 + $0x50] sm:$0xff] %v22874_v42  ;;  %v19729_v24 = vadd.f32 %v22666_v50, %v4254_v15  ;;  %v18403_v11 = vpop.f32.mrb[22].mxu0  ;;  %v4777_v10 = vsel %vm750_vm1, %v22822_v26, %v4776_v28  ;;  %v4687_v47 = vmul.bf16 %v22871_v6, %v22874_v42  ;;  %v4649_v26 = vshrl.u32 %v22858_v23, 16 }
 0x36f   : > { %v19730_v63 = vadd.f32 %v18403_v11, %v22666_v50  ;;  %v4257_v22 = vpop.f32.mrb[23].mxu0  ;;  %18441 = vmatmul.mubr.bf16.gmra.mrb[12].mxu1 %v4777_v10  ;;  %v4795_v43 = vshrl.u32 %v4688_v53, 16  ;;  %v4355_v20 = vmax.f32 %v19728_v55, 0.0  ;;  %v4798_v36 = vshll.u32 %v4688_v53, 16 }
 0x370   : > { %v19731_v0 = vadd.f32 %v22666_v50, %v4257_v22  ;;  %18444 = vmatprep.mubr.bf16.mxu1 %v4785_v61  ;;  %v4787_v12 = vshrl.u32 %v4687_v47, 16  ;;  %18473 = vmatpush3.bf16.msra.mxu1 %v21074_v21  ;;  %v4353_v59 = vmax.f32 %v19729_v24, 0.0  ;;  %v4790_v9 = vshll.u32 %v4687_v47, 16 }
 0x371   : > { %v4356_v44 = vmax.f32 %v19730_v63, 0.0  ;;  %v4797_v41 = vrot.slane %v4795_v43, 7  ;;  %18474 = vmatprep.subr.bf16.mxu1 %v21076_v33  ;;  %v22907_v23 = vsel %vm572_vm0, %v4627_v2, %v22831_v37  ;;  %v4641_v21 = vshrl.u32 %v22820_v48, 16 }
 0x372   : > { %v4354_v51 = vmax.f32 %v19731_v0, 0.0  ;;  %v4789_v14 = vrot.slane %v4787_v12, 7  ;;  %v4651_v28 = vor.u32 %v4649_v26, %v4647_v31  ;;  %v4655_v55 = vrot.slane %v4653_v16, 1 }
 0x373   : > { %v22903_v27 = vpack.c.bf16 %v4356_v44, %v4355_v20  ;;  %v4800_v5 = vor.u32 %v4798_v36, %v4797_v41  ;;  %v4643_v22 = vor.u32 %v4641_v21, %v22862_v49 }
 0x374   : > { %v22910_v52 = vpack.c.bf16 %v4354_v51, %v4353_v59  ;;  %v18406_v18 = vpop.f32.mrb[24].mxu0  ;;  %v4792_v25 = vor.u32 %v4790_v9, %v4789_v14  ;;  %18475 = vmatpush3.bf16.msra.mxu1 %v21076_v33  ;;  %v22928_v0 = vsel %vm572_vm0, %v4651_v28, %v4655_v55 }
 0x375   : > { %4392 = vst [vmem:[#allocation3 + $0x68] sm:$0xff] %v22903_v27  ;;  %v19732_v15 = vadd.f32 %v18406_v18, %v22666_v50  ;;  %v4270_v53 = vpop.f32.mrb[25].mxu0  ;;  %v4690_v24 = vmul.bf16 %v22894_v62, %v22903_v27  ;;  %18508 = vmatprep.subr.bf16.mxu1 %v22901_v56  ;;  %v4801_v47 = vsel %vm750_vm1, %v4789_v14, %v4800_v5  ;;  %v4657_v18 = vshrl.u32 %v22879_v29, 16 }
 0x376   : > { %4391 = vst [vmem:[#allocation3 + $0x60] sm:$0xff] %v22910_v52  ;;  %v19733_v48 = vadd.f32 %v22666_v50, %v4270_v53  ;;  %v18407_v37 = vpop.f32.mrb[26].mxu0  ;;  %v4793_v2 = vsel %vm750_vm1, %v22864_v34, %v4792_v25  ;;  %v4689_v33 = vmul.bf16 %v22907_v23, %v22910_v52  ;;  %v22933_v49 = vsel %vm572_vm0, %v4643_v22, %v4647_v31 }
 0x377   : > { %v19734_v11 = vadd.f32 %v18407_v37, %v22666_v50  ;;  %v4273_v10 = vpop.f32.mrb[27].mxu0  ;;  %18445 = vmatmul.mubr.bf16.gmra.mrb[16].mxu1 %v4793_v2  ;;  %v4811_v63 = vshrl.u32 %v4690_v24, 16  ;;  %v4359_v34 = vmax.f32 %v19732_v15, 0.0  ;;  %v4814_v16 = vshll.u32 %v4690_v24, 16 }
 0x378   : > { %v19735_v61 = vadd.f32 %v22666_v50, %v4273_v10  ;;  %18448 = vmatprep.mubr.bf16.mxu1 %v4801_v47  ;;  %v4803_v43 = vshrl.u32 %v4689_v33, 16  ;;  %v4357_v20 = vmax.f32 %v19733_v48, 0.0  ;;  %v4806_v59 = vshll.u32 %v4689_v33, 16 }
 0x379   : > { %v4360_v12 = vmax.f32 %v19734_v11, 0.0  ;;  %v4813_v26 = vrot.slane %v4811_v63, 7  ;;  %v22950_v47 = vor.u32 %v4657_v18, %v4655_v55 }
 0x37a   : > { %v4358_v44 = vmax.f32 %v19735_v61, 0.0  ;;  %v4805_v36 = vrot.slane %v4803_v43, 7 }
 0x37b   : > { %v22930_v51 = vpack.c.bf16 %v4360_v12, %v4359_v34  ;;  %v4816_v14 = vor.u32 %v4814_v16, %v4813_v26 }
 0x37c   : > { %v22935_v9 = vpack.c.bf16 %v4358_v44, %v4357_v20  ;;  %v18410_v5 = vpop.f32.mrb[28].mxu0  ;;  %v4808_v21 = vor.u32 %v4806_v59, %v4805_v36 }
 0x37d   : > { %4394 = vst [vmem:[#allocation3 + $0x78] sm:$0xff] %v22930_v51  ;;  %v19736_v25 = vadd.f32 %v18410_v5, %v22666_v50  ;;  %v4286_v28 = vpop.f32.mrb[29].mxu0  ;;  %v4692_v15 = vmul.bf16 %v22928_v0, %v22930_v51  ;;  %v4817_v2 = vsel %vm750_vm1, %v4805_v36, %v4816_v14 }
 0x37e   : > { %4393 = vst [vmem:[#allocation3 + $0x70] sm:$0xff] %v22935_v9  ;;  %v19737_v53 = vadd.f32 %v22666_v50, %v4286_v28  ;;  %v18411_v31 = vpop.f32.mrb[30].mxu0  ;;  %v4809_v24 = vsel %vm750_vm1, %v4797_v41, %v4808_v21  ;;  %v4691_v48 = vmul.bf16 %v22933_v49, %v22935_v9 }
 0x37f   : > { %v19738_v29 = vadd.f32 %v18411_v31, %v22666_v50  ;;  %v4289_v37 = vpop.f32.mrb[31].mxu0  ;;  %18449 = vmatmul.mubr.bf16.gmra.mrb[20].mxu1 %v4809_v24  ;;  %v4827_v33 = vshrl.u32 %v4692_v15, 16  ;;  %v4363_v63 = vmax.f32 %v19736_v25, 0.0  ;;  %v4830_v41 = vshll.u32 %v4692_v15, 16  ;;  %v21387_v15 = vld [vmem:[#allocation2] sm:$0xff]  ;;  %v21080_v31 = vld [vmem:[#allocation7 + $0x98] sm:$0xff]  }
 0x380   : > { %v19739_v11 = vadd.f32 %v22666_v50, %v4289_v37  ;;  %18452 = vmatprep.mubr.bf16.mxu1 %v4817_v2  ;;  %v4819_v10 = vshrl.u32 %v4691_v48, 16  ;;  %v4361_v43 = vmax.f32 %v19737_v53, 0.0  ;;  %v4822_v16 = vshll.u32 %v4691_v48, 16  ;;  %v21078_v53 = vld [vmem:[#allocation7 + $0x88] sm:$0xff]   ;;  %v21081_v24 = vld [vmem:[#allocation7 + $0xa0] sm:$0xff]  }
 0x381   : > { %v4364_v22 = vmax.f32 %v19738_v29, 0.0  ;;  %v4829_v61 = vrot.slane %v4827_v33, 7  ;;  %v21082_v48 = vld [vmem:[#allocation7 + $0xa8] sm:$0xff]  }
 0x382   : > { %v4362_v34 = vmax.f32 %v19739_v11, 0.0  ;;  %v4821_v12 = vrot.slane %v4819_v10, 7  ;;  %v21089_v11 = vld [vmem:[%s25170_s1 + $0x98] sm:$0xff]  }
 0x383   : > { %v4380_v20 = vpack.c.bf16 %v4364_v22, %v4363_v63  ;;  %v4832_v44 = vor.u32 %v4830_v41, %v4829_v61 }
 0x384   : > { %v22952_v59 = vpack.c.bf16 %v4362_v34, %v4361_v43  ;;  %v4824_v36 = vor.u32 %v4822_v16, %v4821_v12  ;;  %v21090_v34 = vld [vmem:[%s25170_s1 + $0xa0] sm:$0xff]  }
 0x385   : > { %4396 = vst [vmem:[#allocation3 + $0x88] sm:$0xff] %v4380_v20  ;;  %v4833_v14 = vsel %vm750_vm1, %v4821_v12, %v4832_v44  ;;  %v5512_v20 = vshll.u32 %v21089_v11, 16  ;;  %v21092_v44 = vld [vmem:[%s25170_s1 + $0xa8] sm:$0xff]  }
 0x386   : > { %4395 = vst [vmem:[#allocation3 + $0x80] sm:$0xff] %v22952_v59  ;;  %v4825_v50 = vsel %vm750_vm1, %v4813_v26, %v4824_v36  ;;  %v4693_v55 = vmul.bf16 %v22950_v47, %v22952_v59  ;;  %v21079_v26 = vld [vmem:[#allocation7 + $0x90] sm:$0xff]  }
 0x387   : > { %18453 = vmatmul.mubr.bf16.gmra.mrb[24].mxu1 %v4825_v50  ;;  %v5517_v50 = vshrl.u32 %v21090_v34, 16 }
 0x388   : > { %18456 = vmatprep.mubr.bf16.mxu1 %v4833_v14  ;;  %v4835_v5 = vshrl.u32 %v4693_v55, 16  ;;  %v4838_v18 = vshll.u32 %v4693_v55, 16 }
 0x38a   : > { %v4837_v21 = vrot.slane %v4835_v5, 7 }
 0x38c   : > { %v4840_v25 = vor.u32 %v4838_v18, %v4837_v21  ;;  %v5525_v21 = vshrl.u32 %v21092_v44, 16  ;;  %v23002_v18 = vld [vmem:[#allocation3 + $0x18] sm:$0xff] }
 0x38e   : > { %v4841_v28 = vsel %vm750_vm1, %v4829_v61, %v4840_v25  ;;  %v5509_v61 = vshrl.u32 %v21089_v11, 16  ;;  %v21096_v11 = vld [vmem:[%s25170_s1 + $0xc0] sm:$0xff]  }
 0x38f   : > { %18457 = vmatmul.mubr.bf16.gmra.mrb[28].mxu1 %v4841_v28  ;;  %v5519_v28 = vrot.slane %v5517_v50, 7 }
 0x390   : > { %18476 = vmatprep.mubr.bf16.mxu1 %v21387_v15  ;;  %v5511_v16 = vrot.slane %v5509_v61, 7 }
 0x392   : > { %v5514_v5 = vor.u32 %v5512_v20, %v5511_v16  ;;  %v21098_v20 = vld [vmem:[%s25170_s1 + $0xc8] sm:$0xff]  }
 0x397   : > { %18477 = vmatmul.mubr.bf16.vlgmr.msra.gmra.mrb[0].mxu1 %v22699_v35 }
 0x398   : > { %18480 = vmatprep.mubr.bf16.mxu1 %v22689_v40  ;;  %18509 = vmatpush3.bf16.msra.mxu1 %v22901_v56  ;;  %v21083_v40 = vld [vmem:[#allocation7 + $0xb0] sm:$0xff]   ;;  %v21084_v56 = vld [vmem:[#allocation7 + $0xb8] sm:$0xff]  }
 0x399   : > { %18510 = vmatprep.subr.bf16.mxu1 %v21078_v53 }
 0x39c   : > { %18511 = vmatpush3.bf16.msra.mxu1 %v21078_v53  ;;  %v21093_v53 = vld [vmem:[%s25170_s1 + $0xb0] sm:$0xff]  }
 0x39d   : > { %18512 = vmatprep.subr.bf16.mxu1 %v21079_v26 }
 0x39f   : > { %18481 = vmatmul.mubr.bf16.gmra.mrb[4].mxu1 %v22742_v17  ;;  %v21086_v17 = vld [vmem:[%s25170_s1 + $0x88] sm:$0xff]  }
 0x3a0   : > { %18484 = vmatprep.mubr.bf16.mxu1 %v22729_v30  ;;  %18513 = vmatpush3.bf16.msra.mxu1 %v21079_v26  ;;  %v21085_v30 = vld [vmem:[%s25170_s1 + $0x80] sm:$0xff]   ;;  %v5493_v29 = vshrl.u32 %v21086_v17, 16  ;;  %v5496_v33 = vshll.u32 %v21086_v17, 16 }
 0x3a1   : > { %18514 = vmatprep.subr.bf16.mxu1 %v21080_v31  ;;  %v5489_v37 = vshll.u32 %v21085_v30, 16 }
 0x3a2   : > { %v5495_v2 = vrot.slane %v5493_v29, 7  ;;  %v5533_v29 = vshrl.u32 %v21093_v53, 16 }
 0x3a4   : > { %18515 = vmatpush3.bf16.msra.mxu1 %v21080_v31  ;;  %v5498_v22 = vor.u32 %v5496_v33, %v5495_v2 }
 0x3a5   : > { %18516 = vmatprep.subr.bf16.mxu1 %v21081_v24 }
 0x3a7   : > { %18485 = vmatmul.mubr.bf16.gmra.mrb[8].mxu1 %v22790_v57  ;;  %v5486_v57 = vshrl.u32 %v21085_v30, 16  ;;  %v21095_v30 = vld [vmem:[%s25170_s1 + $0xb8] sm:$0xff]  }
 0x3a8   : > { %18488 = vmatprep.mubr.bf16.mxu1 %v22776_v13  ;;  %18517 = vmatpush3.bf16.msra.mxu1 %v21081_v24  ;;  %v22975_v13 = vld [vmem:[#allocation7 + $0xc0] sm:$0xff]   ;;  %v5541_v33 = vshrl.u32 %v21095_v30, 16 }
 0x3a9   : > { %18518 = vmatprep.subr.bf16.mxu1 %v21082_v48 }
 0x3aa   : > { %v5543_v50 = vrot.slane %v5541_v33, 7 }
 0x3ac   : > { %18519 = vmatpush3.bf16.msra.mxu1 %v21082_v48 }
 0x3ad   : > { %18520 = vmatprep.subr.bf16.mxu1 %v21083_v40 }
 0x3af   : > { %18489 = vmatmul.mubr.bf16.gmra.mrb[12].mxu1 %v22833_v54  ;;  %v21087_v54 = vld [vmem:[%s25170_s1 + $0x90] sm:$0xff]  }
 0x3b0   : > { %18492 = vmatprep.mubr.bf16.mxu1 %v22824_v32  ;;  %18521 = vmatpush3.bf16.msra.mxu1 %v21083_v40  ;;  %v5488_v32 = vrot.slane %v5486_v57, 7  ;;  %v5501_v10 = vshrl.u32 %v21087_v54, 16  ;;  %v5504_v43 = vshll.u32 %v21087_v54, 16  ;;  %v5527_v40 = vrot.slane %v5525_v21, 7 }
 0x3b1   : > { %18522 = vmatprep.subr.bf16.mxu1 %v21084_v56 }
 0x3b2   : > { %v22986_v63 = vor.u32 %v5489_v37, %v5488_v32  ;;  %v5503_v41 = vrot.slane %v5501_v10, 7  ;;  %v22995_v12 = vsel %vm750_vm1, %v5488_v32, %v5498_v22  ;;  %v23027_v22 = vld [vmem:[#allocation3 + $0x28] sm:$0xff] }
 0x3b3   : > { %v5630_v55 = vmul.bf16 %v22995_v12, %v22699_v35  ;;  %v23012_v35 = vld [vmem:[#allocation3 + $0x20] sm:$0xff] }
 0x3b4   : > { %18523 = vmatpush3.bf16.msra.mxu1 %v21084_v56  ;;  %v5506_v36 = vor.u32 %v5504_v43, %v5503_v41  ;;  %v23015_v48 = vsel %vm750_vm1, %v5503_v41, %v5514_v5  ;;  %v5528_v56 = vshll.u32 %v21092_v44, 16  ;;  %v5535_v41 = vrot.slane %v5533_v29, 7  ;;  %v23037_v44 = vld [vmem:[#allocation3 + $0x30] sm:$0xff] }
 0x3b5   : > { %18556 = vmatprep.subr.bf16.mxu1 %v22975_v13  ;;  %v5670_v24 = vshll.u32 %v5630_v55, 16  ;;  %25342 = vst [vmem:[#allocation27_spill] sm:$0xff] %v23015_v48  ;;  %v5632_v37 = vmul.bf16 %v23015_v48, %v23012_v35  ;;  %v5536_v43 = vshll.u32 %v21093_v53, 16 }
 0x3b6   : > { %v23005_v25 = vsel %vm750_vm1, %v5495_v2, %v5506_v36  ;;  %v5530_v2 = vor.u32 %v5528_v56, %v5527_v40  ;;  %v5557_v56 = vshrl.u32 %v21098_v20, 16 }
 0x3b7   : > { %18493 = vmatmul.mubr.bf16.gmra.mrb[16].mxu1 %v22874_v42  ;;  %v5631_v17 = vmul.bf16 %v23005_v25, %v23002_v18  ;;  %v5672_v32 = vrot.slane %v5670_v24, 1  ;;  %v5538_v53 = vor.u32 %v5536_v43, %v5535_v41 }
 0x3b8   : > { %18496 = vmatprep.mubr.bf16.mxu1 %v22866_v4  ;;  %v5629_v4 = vmul.bf16 %v21387_v15, %v22986_v63  ;;  %v5520_v15 = vshll.u32 %v21090_v34, 16  ;;  %v23040_v36 = vsel %vm750_vm1, %v5519_v28, %v5530_v2 }
 0x3b9   : > { %v5678_v10 = vshll.u32 %v5631_v17, 16  ;;  %25344 = vst [vmem:[#allocation29_spill] sm:$0xff] %v23040_v36  ;;  %v23046_v24 = vmul.bf16 %v23040_v36, %v23037_v44  ;;  %v23055_v43 = vsel %vm750_vm1, %v5527_v40, %v5538_v53  ;;  %v21101_v40 = vld [vmem:[%s25170_s1 + $0xd8] sm:$0xff]  }
 0x3ba   : > { %v5665_v14 = vshll.u32 %v5629_v4, 16  ;;  %v5663_v26 = vshrl.u32 %v5629_v4, 16  ;;  %v5522_v57 = vor.u32 %v5520_v15, %v5519_v28  ;;  %v5686_v4 = vshll.u32 %v5632_v37, 16  ;;  %25345 = vst [vmem:[#allocation13_spill] sm:$0xff] %v23055_v43 }
 0x3bb   : > { %v5680_v5 = vrot.slane %v5678_v10, 1  ;;  %v5674_v15 = vshrl.u32 %v5630_v55, 16  ;;  %v21091_v10 = vld [vmem:[#allocation7 + $0xc8] sm:$0xff]  }
 0x3bc   : > { %v5667_v31 = vrot.slane %v5665_v14, 1  ;;  %v23030_v61 = vsel %vm750_vm1, %v5511_v16, %v5522_v57  ;;  %v5544_v16 = vshll.u32 %v21095_v30, 16  ;;  %v5549_v14 = vshrl.u32 %v21096_v11, 16  ;;  %v21099_v30 = vld [vmem:[%s25170_s1 + $0xd0] sm:$0xff]  }
 0x3bd   : > { %25343 = vst [vmem:[#allocation28_spill] sm:$0xff] %v23030_v61  ;;  %v5633_v21 = vmul.bf16 %v23030_v61, %v23027_v22  ;;  %v5676_v57 = vor.u32 %v5674_v15, %v5672_v32 }
 0x3be   : > { %v5668_v54 = vor.u32 %v5667_v31, %v5663_v26  ;;  %v5682_v26 = vshrl.u32 %v5631_v17, 16  ;;  %v5688_v31 = vrot.slane %v5686_v4, 1  ;;  %v5546_v29 = vor.u32 %v5544_v16, %v5543_v50  ;;  %v23052_v17 = vld [vmem:[#allocation3 + $0x38] sm:$0xff] }
 0x3bf   : > { %18497 = vmatmul.mubr.bf16.gmra.mrb[20].mxu1 %v22910_v52  ;;  %v5551_v28 = vrot.slane %v5549_v14, 7  ;;  %v5694_v33 = vshll.u32 %v5633_v21, 16  ;;  %v5681_v55 = vsel %vm572_vm0, %v5676_v57, %v5680_v5  ;;  %v5560_v4 = vshll.u32 %v21098_v20, 16  ;;  %v23060_v14 = vld [vmem:[#allocation3 + $0x40] sm:$0xff] }
 0x3c0   : > { %18500 = vmatprep.mubr.bf16.mxu1 %v22903_v27  ;;  %v5673_v34 = vsel %vm572_vm0, %v5668_v54, %v5672_v32  ;;  %v5552_v54 = vshll.u32 %v21096_v11, 16  ;;  %v5684_v2 = vor.u32 %v5682_v26, %v5680_v5  ;;  %v5559_v11 = vrot.slane %v5557_v56, 7  ;;  %v21094_v56 = vld [vmem:[#allocation7 + $0xd0] sm:$0xff]  }
 0x3c1   : > { %v5690_v16 = vshrl.u32 %v5632_v37, 16  ;;  %v23063_v5 = vsel %vm750_vm1, %v5535_v41, %v5546_v29  ;;  %v5565_v26 = vshrl.u32 %v21099_v30, 16  ;;  %v5696_v53 = vrot.slane %v5694_v33, 1  ;;  %v23074_v29 = vld [vmem:[#allocation3 + $0x48] sm:$0xff] }
 0x3c2   : > { %v5689_v32 = vsel %vm572_vm0, %v5684_v2, %v5688_v31  ;;  %25346 = vst [vmem:[#allocation14_spill] sm:$0xff] %v23063_v5  ;;  %v5554_v15 = vor.u32 %v5552_v54, %v5551_v28  ;;  %v5635_v20 = vmul.bf16 %v23055_v43, %v23052_v17  ;;  %v23072_v2 = vmul.bf16 %v23063_v5, %v23060_v14 }
 0x3c3   : > { %v5692_v57 = vor.u32 %v5690_v16, %v5688_v31  ;;  %v5562_v41 = vor.u32 %v5560_v4, %v5559_v11  ;;  %v5567_v33 = vrot.slane %v5565_v26, 7  ;;  %v21097_v31 = vld [vmem:[#allocation7 + $0xd8] sm:$0xff]   ;;  %v5706_v16 = vshrl.u32 %v23046_v24, 16 }
 0x3c4   : > { %v23077_v54 = vsel %vm750_vm1, %v5543_v50, %v5554_v15  ;;  %v5710_v43 = vshll.u32 %v5635_v20, 16  ;;  %v5718_v4 = vshll.u32 %v23072_v2, 16 }
 0x3c5   : > { %25347 = vst [vmem:[#allocation15_spill] sm:$0xff] %v23077_v54  ;;  %v5637_v50 = vmul.bf16 %v23077_v54, %v23074_v29  ;;  %v5714_v54 = vshrl.u32 %v5635_v20, 16 }
 0x3c6   : > { %v5720_v61 = vrot.slane %v5718_v4, 1  ;;  %v21105_v4 = vld [vmem:[%s25170_s1 + $0xf0] sm:$0xff]  }
 0x3c7   : > { %18501 = vmatmul.mubr.bf16.gmra.mrb[24].mxu1 %v22935_v9 }
 0x3c8   : > { %18504 = vmatprep.mubr.bf16.mxu1 %v22930_v51 }
 0x3cf   : > { %18505 = vmatmul.mubr.bf16.gmra.mrb[28].mxu1 %v22952_v59 }
 0x3d0   : > { %18524 = vmatprep.mubr.bf16.mxu1 %v5673_v34  ;;  %v5702_v34 = vshll.u32 %v23046_v24, 16  ;;  %v23098_v24 = vld [vmem:[#allocation3 + $0x58] sm:$0xff] }
 0x3d2   : > { %v5704_v37 = vrot.slane %v5702_v34, 1  ;;  %v21102_v34 = vld [vmem:[%s25170_s1 + $0xe0] sm:$0xff]  }
 0x3d3   : > { %v5581_v5 = vshrl.u32 %v21102_v34, 16 }
 0x3d5   : > { %v5583_v20 = vrot.slane %v5581_v5, 7 }
 0x3d7   : > { %18525 = vmatmul.mubr.bf16.vlgmr.msra.gmra.mrb[0].mxu1 %v5681_v55  ;;  %v5568_v55 = vshll.u32 %v21099_v30, 16  ;;  %v23088_v30 = vsel %vm750_vm1, %v5551_v28, %v5562_v41  ;;  %v5726_v28 = vshll.u32 %v5637_v50, 16 }
 0x3d8   : > { %18528 = vmatprep.mubr.bf16.mxu1 %v5689_v32  ;;  %18557 = vmatpush3.bf16.msra.mxu1 %v22975_v13  ;;  %v5698_v13 = vshrl.u32 %v5633_v21, 16  ;;  %v5573_v32 = vshrl.u32 %v21101_v40, 16  ;;  %v5697_v21 = vsel %vm572_vm0, %v5692_v57, %v5696_v53  ;;  %25348 = vst [vmem:[#allocation16_spill] sm:$0xff] %v23088_v30  ;;  %v21104_v57 = vld [vmem:[%s25170_s1 + $0xe8] sm:$0xff]   ;;  %v23096_v41 = vmul.bf16 %v23088_v30, %v22874_v42 }
 0x3d9   : > { %18558 = vmatprep.subr.bf16.mxu1 %v21091_v10  ;;  %v5570_v15 = vor.u32 %v5568_v55, %v5567_v33  ;;  %v5589_v55 = vshrl.u32 %v21104_v57, 16  ;;  %v5597_v30 = vshrl.u32 %v21105_v4, 16 }
 0x3da   : > { %v5700_v36 = vor.u32 %v5698_v13, %v5696_v53  ;;  %v5575_v26 = vrot.slane %v5573_v32, 7  ;;  %v5576_v53 = vshll.u32 %v21101_v40, 16  ;;  %v21100_v13 = vld [vmem:[#allocation7 + $0xe0] sm:$0xff]   ;;  %v21103_v32 = vld [vmem:[#allocation7 + $0xe8] sm:$0xff]  }
 0x3db   : > { %v23101_v40 = vsel %vm750_vm1, %v5559_v11, %v5570_v15  ;;  %v5734_v11 = vshll.u32 %v23096_v41, 16  ;;  %v5591_v5 = vrot.slane %v5589_v55, 7  ;;  %v5599_v55 = vrot.slane %v5597_v30, 7  ;;  %v23132_v30 = vld [vmem:[#allocation7 + $0x100] sm:$0xff]  }
 0x3dc   : > { %18559 = vmatpush3.bf16.msra.mxu1 %v21091_v10  ;;  %v5705_v10 = vsel %vm572_vm0, %v5700_v36, %v5704_v37  ;;  %v5712_v36 = vrot.slane %v5710_v43, 1  ;;  %25349 = vst [vmem:[#allocation17_spill] sm:$0xff] %v23101_v40  ;;  %v5639_v15 = vmul.bf16 %v23101_v40, %v23098_v24 }
 0x3dd   : > { %18560 = vmatprep.subr.bf16.mxu1 %v21094_v56 }
 0x3de   : > { %v5716_v43 = vor.u32 %v5714_v54, %v5712_v36  ;;  %v5722_v54 = vshrl.u32 %v23072_v2, 16  ;;  %v5742_v48 = vshll.u32 %v5639_v15, 16 }
 0x3df   : > { %18529 = vmatmul.mubr.bf16.gmra.mrb[4].mxu1 %v5697_v21  ;;  %v5708_v21 = vor.u32 %v5706_v16, %v5704_v37  ;;  %v5728_v16 = vrot.slane %v5726_v28, 1  ;;  %v21106_v28 = vld [vmem:[#allocation7 + $0xf0] sm:$0xff]  }
 0x3e0   : > { %18532 = vmatprep.mubr.bf16.mxu1 %v5705_v10  ;;  %18561 = vmatpush3.bf16.msra.mxu1 %v21094_v56  ;;  %v5578_v56 = vor.u32 %v5576_v53, %v5575_v26  ;;  %v5584_v10 = vshll.u32 %v21102_v34, 16  ;;  %v5592_v34 = vshll.u32 %v21104_v57, 16  ;;  %v21108_v57 = vld [vmem:[#allocation7 + $0xf8] sm:$0xff]  }
 0x3e1   : > { %18562 = vmatprep.subr.bf16.mxu1 %v21097_v31  ;;  %v5713_v37 = vsel %vm572_vm0, %v5708_v21, %v5712_v36  ;;  %v21107_v36 = vld [vmem:[%s25170_s1 + $0xf8] sm:$0xff]   ;;  %v5730_v21 = vshrl.u32 %v5637_v50, 16 }
 0x3e2   : > { %v23113_v53 = vsel %vm750_vm1, %v5567_v33, %v5578_v56  ;;  %v5594_v33 = vor.u32 %v5592_v34, %v5591_v5  ;;  %v5608_v34 = vshll.u32 %v21107_v36, 16 }
 0x3e3   : > { %25350 = vst [vmem:[#allocation18_spill] sm:$0xff] %v23113_v53  ;;  %v5732_v40 = vor.u32 %v5730_v21, %v5728_v16  ;;  %v5640_v2 = vmul.bf16 %v23113_v53, %v22910_v52  ;;  %v5746_v53 = vshrl.u32 %v5639_v15, 16 }
 0x3e4   : > { %18563 = vmatpush3.bf16.msra.mxu1 %v21097_v31  ;;  %v5721_v31 = vsel %vm572_vm0, %v5716_v43, %v5720_v61  ;;  %v5724_v43 = vor.u32 %v5722_v54, %v5720_v61  ;;  %v5600_v61 = vshll.u32 %v21105_v4, 16  ;;  %v23126_v21 = vsel %vm750_vm1, %v5583_v20, %v5594_v33 }
 0x3e5   : > { %18564 = vmatprep.subr.bf16.mxu1 %v21100_v13  ;;  %v5750_v54 = vshll.u32 %v5640_v2, 16  ;;  %25352 = vst [vmem:[#allocation20_spill] sm:$0xff] %v23126_v21  ;;  %v5738_v4 = vshrl.u32 %v23096_v41, 16  ;;  %v5754_v33 = vshrl.u32 %v5640_v2, 16 }
 0x3e6   : > { %v5729_v56 = vsel %vm572_vm0, %v5724_v43, %v5728_v16 }
 0x3e7   : > { %18533 = vmatmul.mubr.bf16.gmra.mrb[8].mxu1 %v5713_v37  ;;  %v5586_v37 = vor.u32 %v5584_v10, %v5583_v20  ;;  %v5752_v16 = vrot.slane %v5750_v54, 1  ;;  %v5642_v20 = vmul.bf16 %v23126_v21, %v22935_v9 }
 0x3e8   : > { %18536 = vmatprep.mubr.bf16.mxu1 %v5721_v31  ;;  %18565 = vmatpush3.bf16.msra.mxu1 %v21100_v13  ;;  %v5736_v31 = vrot.slane %v5734_v11, 1  ;;  %v5605_v13 = vshrl.u32 %v21107_v36, 16  ;;  %v5744_v11 = vrot.slane %v5742_v48, 1 }
 0x3e9   : > { %18566 = vmatprep.subr.bf16.mxu1 %v21103_v32  ;;  %v23122_v50 = vsel %vm750_vm1, %v5575_v26, %v5586_v37 }
 0x3ea   : > { %25351 = vst [vmem:[#allocation19_spill] sm:$0xff] %v23122_v50  ;;  %v5737_v10 = vsel %vm572_vm0, %v5732_v40, %v5736_v31  ;;  %v5641_v26 = vmul.bf16 %v23122_v50, %v22903_v27  ;;  %v5602_v40 = vor.u32 %v5600_v61, %v5599_v55  ;;  %v5748_v48 = vor.u32 %v5746_v53, %v5744_v11 }
 0x3eb   : > { %v5740_v43 = vor.u32 %v5738_v4, %v5736_v31  ;;  %v5766_v53 = vshll.u32 %v5642_v20, 16 }
 0x3ec   : > { %18567 = vmatpush3.bf16.msra.mxu1 %v21103_v32  ;;  %v23128_v32 = vrot.slane %v5605_v13, 7  ;;  %v5758_v36 = vshll.u32 %v5641_v26, 16  ;;  %v5753_v41 = vsel %vm572_vm0, %v5748_v48, %v5752_v16  ;;  %v5762_v61 = vshrl.u32 %v5641_v26, 16 }
 0x3ed   : > { %18568 = vmatprep.subr.bf16.mxu1 %v21106_v28  ;;  %v5745_v15 = vsel %vm572_vm0, %v5740_v43, %v5744_v11  ;;  %v5770_v26 = vshrl.u32 %v5642_v20, 16 }
 0x3ee   : > { %v5610_v37 = vor.u32 %v5608_v34, %v23128_v32  ;;  %v5760_v31 = vrot.slane %v5758_v36, 1 }
 0x3ef   : > { %18537 = vmatmul.mubr.bf16.gmra.mrb[12].mxu1 %v5729_v56  ;;  %v5756_v56 = vor.u32 %v5754_v33, %v5752_v16  ;;  %v6051_v16 = vld [vmem:[#allocation3 + $0x8] sm:$0x80] }
 0x3f0   : > { %18540 = vmatprep.mubr.bf16.mxu1 %v5737_v10  ;;  %18569 = vmatpush3.bf16.msra.mxu1 %v21106_v28  ;;  %v23141_v28 = vsel %vm750_vm1, %v5591_v5, %v5602_v40  ;;  %v23145_v13 = vsel %vm750_vm1, %v5599_v55, %v5610_v37  ;;  %v5768_v10 = vrot.slane %v5766_v53, 1  ;;  %v5764_v11 = vor.u32 %v5762_v61, %v5760_v31  ;;  %v5372_v55 = vld [vmem:[#allocation3 + $0x88] sm:$0x1]  ;;  %v23153_v40 = vld [vmem:[#allocation3 + $0x10] sm:$0xff] }
 0x3f1   : > { %18570 = vmatprep.subr.bf16.mxu1 %v21108_v57  ;;  %25353 = vst [vmem:[#allocation21_spill] sm:$0xff] %v23141_v28  ;;  %25354 = vst [vmem:[#allocation22_spill] sm:$0xff] %v23145_v13  ;;  %v5644_v5 = vmul.bf16 %v23145_v13, %v22952_v59  ;;  %v5761_v34 = vsel %vm572_vm0, %v5756_v56, %v5760_v31  ;;  %v6054_v48 = vmul.bf16 %v23153_v40, %v22642_v60 }
 0x3f2   : > { %v5769_v2 = vsel %vm572_vm0, %v5764_v11, %v5768_v10  ;;  %v5772_v37 = vor.u32 %v5770_v26, %v5768_v10  ;;  %v5645_v36 = vmul.bf16 %v23128_v32, %v5372_v55  ;;  %v6053_v53 = vmul.bf16 %v6051_v16, %v22638_v45 }
 0x3f3   : > { %v5782_v4 = vshll.u32 %v5644_v5, 16  ;;  %v6091_v33 = vshrl.u32 %v6054_v48, 16  ;;  %v6055_v11 = vmul.bf16 %v23002_v18, %v22692_v46  ;;  %v6056_v10 = vmul.bf16 %v23012_v35, %v22687_v1 }
 0x3f4   : > { %18571 = vmatpush3.bf16.msra.mxu1 %v21108_v57  ;;  %v5643_v57 = vmul.bf16 %v23141_v28, %v22930_v51  ;;  %v5790_v61 = vshll.u32 %v5645_v36, 16 }
 0x3f5   : > { %18604 = vmatprep.subr.bf16.mxu1 %v23132_v30  ;;  %v6099_v55 = vshrl.u32 %v6055_v11, 16 }
 0x3f6   : > { %v5774_v54 = vshll.u32 %v5643_v57, 16 }
 0x3f7   : > { %18541 = vmatmul.mubr.bf16.gmra.mrb[16].mxu1 %v5745_v15  ;;  %v5778_v15 = vshrl.u32 %v5643_v57, 16  ;;  %v6094_v57 = vshll.u32 %v6054_v48, 16  ;;  %v6058_v48 = vmul.bf16 %v23037_v44, %v22713_v58 }
 0x3f8   : > { %18544 = vmatprep.mubr.bf16.mxu1 %v5753_v41  ;;  %v5776_v43 = vrot.slane %v5774_v54, 1  ;;  %v5784_v41 = vrot.slane %v5782_v4, 1  ;;  %v6093_v54 = vrot.slane %v6091_v33, 7  ;;  %v5792_v4 = vrot.slane %v5790_v61, 1 }
 0x3fa   : > { %v5780_v31 = vor.u32 %v5778_v15, %v5776_v43  ;;  %v5777_v56 = vsel %vm572_vm0, %v5772_v37, %v5776_v43  ;;  %v6096_v16 = vor.u32 %v6094_v57, %v6093_v54  ;;  %v6107_v43 = vshrl.u32 %v6056_v10, 16  ;;  %v21110_v57 = vld [vmem:[#allocation7 + $0x108] sm:$0xff]  }
 0x3fb   : > { %v6101_v15 = vrot.slane %v6099_v55, 7  ;;  %v6059_v55 = vmul.bf16 %v23052_v17, %v22781_v19 }
 0x3fc   : > { %v5785_v20 = vsel %vm572_vm0, %v5780_v31, %v5784_v41  ;;  %v6057_v31 = vmul.bf16 %v23027_v22, %v22733_v3  ;;  %v6109_v33 = vrot.slane %v6107_v43, 7  ;;  %v6060_v43 = vmul.bf16 %v23060_v14, %v22752_v7 }
 0x3ff   : > { %18545 = vmatmul.mubr.bf16.gmra.mrb[20].mxu1 %v5761_v34  ;;  %v6087_v34 = vshrl.u32 %v6053_v53, 16 }
 0x400   : > { %18548 = vmatprep.mubr.bf16.mxu1 %v5769_v2  ;;  %v5786_v2 = vshrl.u32 %v5644_v5, 16  ;;  %v6102_v5 = vshll.u32 %v6055_v11, 16  ;;  %v6118_v11 = vshll.u32 %v6057_v31, 16 }
 0x401   : > { %v6089_v26 = vrot.slane %v6087_v34, 7 }
 0x402   : > { %v5788_v37 = vor.u32 %v5786_v2, %v5784_v41  ;;  %v6104_v61 = vor.u32 %v6102_v5, %v6101_v15  ;;  %v6123_v41 = vshrl.u32 %v6058_v48, 16  ;;  %v6139_v5 = vshrl.u32 %v6060_v43, 16 }
 0x403   : > { %v6097_v53 = vsel %vm750_vm1, %v6089_v26, %v6096_v16 }
 0x404   : > { %v5793_v36 = vsel %vm572_vm0, %v5788_v37, %v5792_v4  ;;  %v6105_v2 = vsel %vm750_vm1, %v6093_v54, %v6104_v61  ;;  %v6125_v16 = vrot.slane %v6123_v41, 7  ;;  %v21111_v37 = vld [vmem:[#allocation7 + $0x110] sm:$0xff]   ;;  %v6131_v54 = vshrl.u32 %v6059_v55, 16 }
 0x405   : > { %v6142_v41 = vshll.u32 %v6060_v43, 16  ;;  %v6064_v43 = vmul.bf16 %v22850_v8, %v22910_v52 }
 0x406   : > { %v6133_v61 = vrot.slane %v6131_v54, 7  ;;  %v6063_v54 = vmul.bf16 %v23098_v24, %v22871_v6 }
 0x407   : > { %18549 = vmatmul.mubr.bf16.gmra.mrb[24].mxu1 %v5777_v56  ;;  %v6110_v56 = vshll.u32 %v6056_v10, 16  ;;  %v6126_v10 = vshll.u32 %v6058_v48, 16  ;;  %v6062_v48 = vmul.bf16 %v22801_v39, %v22874_v42 }
 0x408   : > { %18552 = vmatprep.mubr.bf16.mxu1 %v5785_v20  ;;  %v6115_v20 = vshrl.u32 %v6057_v31, 16  ;;  %v6141_v31 = vrot.slane %v6139_v5, 7  ;;  %v21115_v5 = vld [vmem:[#allocation7 + $0x130] sm:$0xff]  }
 0x409   : > { %v6112_v34 = vor.u32 %v6110_v56, %v6109_v33  ;;  %v21112_v56 = vld [vmem:[#allocation7 + $0x118] sm:$0xff]  }
 0x40a   : > { %v6117_v4 = vrot.slane %v6115_v20, 7  ;;  %v6061_v20 = vmul.bf16 %v23074_v29, %v22829_v38 }
 0x40b   : > { %v6113_v26 = vsel %vm750_vm1, %v6101_v15, %v6112_v34  ;;  %v6134_v34 = vshll.u32 %v6059_v55, 16 }
 0x40f   : > { %18553 = vmatmul.mubr.bf16.gmra.mrb[28].mxu1 %v5793_v36  ;;  %v6120_v36 = vor.u32 %v6118_v11, %v6117_v4  ;;  %v6155_v11 = vshrl.u32 %v6062_v48, 16 }
 0x410   : > { %18572 = vmatprep.mubr.bf16.mxu1 %v6097_v53  ;;  %v6128_v53 = vor.u32 %v6126_v10, %v6125_v16  ;;  %v21114_v10 = vld [vmem:[#allocation7 + $0x128] sm:$0xff]  }
 0x411   : > { %v6121_v15 = vsel %vm750_vm1, %v6109_v33, %v6120_v36  ;;  %v6144_v33 = vor.u32 %v6142_v41, %v6141_v31  ;;  %v6157_v55 = vrot.slane %v6155_v11, 7 }
 0x413   : > { %v6145_v42 = vsel %vm750_vm1, %v6133_v61, %v6144_v33  ;;  %v21117_v33 = vld [vmem:[#allocation7 + $0x140] sm:$0xff]  }
 0x417   : > { %18573 = vmatmul.mubr.bf16.vlgmr.msra.gmra.mrb[0].mxu1 %v6105_v2  ;;  %v6136_v2 = vor.u32 %v6134_v34, %v6133_v61  ;;  %v21116_v34 = vld [vmem:[#allocation7 + $0x138] sm:$0xff]  }
 0x418   : > { %18576 = vmatprep.mubr.bf16.mxu1 %v6113_v26  ;;  %18605 = vmatpush3.bf16.msra.mxu1 %v23132_v30  ;;  %v6129_v30 = vsel %vm750_vm1, %v6117_v4, %v6128_v53  ;;  %v6147_v26 = vshrl.u32 %v6061_v20, 16  ;;  %v6158_v53 = vshll.u32 %v6062_v48, 16  ;;  %v6066_v48 = vmul.bf16 %v22894_v62, %v22935_v9 }
 0x419   : > { %18606 = vmatprep.subr.bf16.mxu1 %v21110_v57  ;;  %v6137_v36 = vsel %vm750_vm1, %v6125_v16, %v6136_v2  ;;  %v6065_v2 = vmul.bf16 %v22907_v23, %v22903_v27 }
 0x41a   : > { %v6149_v4 = vrot.slane %v6147_v26, 7  ;;  %v6160_v16 = vor.u32 %v6158_v53, %v6157_v55  ;;  %v6174_v26 = vshll.u32 %v6064_v43, 16 }
 0x41b   : > { %v6182_v53 = vshll.u32 %v6065_v2, 16 }
 0x41c   : > { %18607 = vmatpush3.bf16.msra.mxu1 %v21110_v57  ;;  %v21113_v57 = vld [vmem:[#allocation7 + $0x120] sm:$0xff]   ;;  %v6161_v52 = vsel %vm750_vm1, %v6149_v4, %v6160_v16 }
 0x41d   : > { %18608 = vmatprep.subr.bf16.mxu1 %v21111_v37 }
 0x41f   : > { %18577 = vmatmul.mubr.bf16.gmra.mrb[4].mxu1 %v6121_v15  ;;  %v6163_v15 = vshrl.u32 %v6063_v54, 16 }
 0x420   : > { %18580 = vmatprep.mubr.bf16.mxu1 %v6129_v30  ;;  %18609 = vmatpush3.bf16.msra.mxu1 %v21111_v37  ;;  %v6150_v37 = vshll.u32 %v6061_v20, 16  ;;  %v6171_v30 = vshrl.u32 %v6064_v43, 16  ;;  %v6068_v43 = vmul.bf16 %v22928_v0, %v22952_v59 }
 0x421   : > { %18610 = vmatprep.subr.bf16.mxu1 %v21112_v56  ;;  %v6165_v61 = vrot.slane %v6163_v15, 7 }
 0x422   : > { %v6173_v20 = vrot.slane %v6171_v30, 7  ;;  %v6203_v30 = vshrl.u32 %v6068_v43, 16 }
 0x424   : > { %18611 = vmatpush3.bf16.msra.mxu1 %v21112_v56  ;;  %v6152_v56 = vor.u32 %v6150_v37, %v6149_v4  ;;  %v6067_v4 = vmul.bf16 %v22933_v49, %v22930_v51 }
 0x425   : > { %18612 = vmatprep.subr.bf16.mxu1 %v21113_v57 }
 0x426   : > { %v6153_v41 = vsel %vm750_vm1, %v6141_v31, %v6152_v56  ;;  %v6176_v31 = vor.u32 %v6174_v26, %v6173_v20  ;;  %v6195_v15 = vshrl.u32 %v6067_v4, 16  ;;  %v6198_v26 = vshll.u32 %v6067_v4, 16  ;;  %v21119_v4 = vld [vmem:[#allocation7 + $0x150] sm:$0xff]  }
 0x427   : > { %18581 = vmatmul.mubr.bf16.gmra.mrb[8].mxu1 %v6137_v36  ;;  %v6187_v36 = vshrl.u32 %v6066_v48, 16 }
 0x428   : > { %18584 = vmatprep.mubr.bf16.mxu1 %v6145_v42  ;;  %18613 = vmatpush3.bf16.msra.mxu1 %v21113_v57  ;;  %v6166_v57 = vshll.u32 %v6063_v54, 16  ;;  %v6177_v37 = vsel %vm750_vm1, %v6165_v61, %v6176_v31 }
 0x429   : > { %18614 = vmatprep.subr.bf16.mxu1 %v21114_v10  ;;  %v6189_v54 = vrot.slane %v6187_v36, 7 }
 0x42a   : > { %v6168_v11 = vor.u32 %v6166_v57, %v6165_v61  ;;  %v6205_v57 = vrot.slane %v6203_v30, 7  ;;  %v6732_v30 = vld [vmem:[#allocation3 + $0x10] sm:$0xff] }
 0x42c   : > { %18615 = vmatpush3.bf16.msra.mxu1 %v21114_v10  ;;  %v6179_v10 = vshrl.u32 %v6065_v2, 16  ;;  %v6169_v27 = vsel %vm750_vm1, %v6157_v55, %v6168_v11  ;;  %v6206_v2 = vshll.u32 %v6068_v43, 16  ;;  %v21121_v43 = vld [vmem:[#allocation7 + $0x160] sm:$0xff]  }
 0x42d   : > { %18616 = vmatprep.subr.bf16.mxu1 %v21115_v5 }
 0x42e   : > { %v6181_v42 = vrot.slane %v6179_v10, 7  ;;  %v6208_v10 = vor.u32 %v6206_v2, %v6205_v57 }
 0x42f   : > { %18585 = vmatmul.mubr.bf16.gmra.mrb[12].mxu1 %v6153_v41  ;;  %v6197_v41 = vrot.slane %v6195_v15, 7  ;;  %v21125_v15 = vld [vmem:[#allocation7 + $0x180] sm:$0xff]  }
 0x430   : > { %18588 = vmatprep.mubr.bf16.mxu1 %v6161_v52  ;;  %18617 = vmatpush3.bf16.msra.mxu1 %v21115_v5  ;;  %v6190_v5 = vshll.u32 %v6066_v48, 16  ;;  %v6184_v56 = vor.u32 %v6182_v53, %v6181_v42 }
 0x431   : > { %18618 = vmatprep.subr.bf16.mxu1 %v21116_v34  ;;  %v6200_v48 = vor.u32 %v6198_v26, %v6197_v41  ;;  %v6751_v26 = vmul.bf16 %v23005_v25, %v23012_v35 }
 0x432   : > { %v6192_v16 = vor.u32 %v6190_v5, %v6189_v54  ;;  %v6185_v55 = vsel %vm750_vm1, %v6173_v20, %v6184_v56  ;;  %v6209_v20 = vsel %vm750_vm1, %v6197_v41, %v6208_v10  ;;  %v21124_v5 = vld [vmem:[#allocation7 + $0x178] sm:$0xff]   ;;  %v21389_v56 = vld [vmem:[#allocation3 + $0x50] sm:$0xff]  ;;  %v6749_v41 = vmul.bf16 %v6732_v30, %v22986_v63 }
 0x433   : > { %v6201_v31 = vsel %vm750_vm1, %v6189_v54, %v6200_v48  ;;  %v21120_v54 = vld [vmem:[#allocation7 + $0x158] sm:$0xff]   ;;  %v6798_v10 = vshll.u32 %v6751_v26, 16 }
 0x434   : > { %18619 = vmatpush3.bf16.msra.mxu1 %v21116_v34  ;;  %v23202_v34 = vld [vmem:[#allocation3 + $0x88] sm:$0xff]  ;;  %v6193_v61 = vsel %vm750_vm1, %v6181_v42, %v6192_v16  ;;  %v21390_v16 = vld [vmem:[#allocation3 + $0x60] sm:$0xff]  ;;  %v6783_v2 = vshrl.u32 %v6749_v41, 16 }
 0x435   : > { %18652 = vmatprep.subr.bf16.mxu1 %v21117_v33  ;;  %v6069_v52 = vmul.bf16 %v23202_v34, %v22950_v47  ;;  %v21118_v42 = vld [vmem:[#allocation7 + $0x148] sm:$0xff]  }
 0x437   : > { %18589 = vmatmul.mubr.bf16.gmra.mrb[16].mxu1 %v6169_v27  ;;  %v6211_v11 = vshrl.u32 %v6069_v52, 16  ;;  %v6214_v27 = vshll.u32 %v6069_v52, 16  ;;  %v6785_v52 = vshll.u32 %v6749_v41, 16  ;;  %v21127_v41 = vld [vmem:[#allocation7 + $0x190] sm:$0xff]  }
 0x438   : > { %18592 = vmatprep.mubr.bf16.mxu1 %v6177_v37 }
 0x439   : > { %v6213_v36 = vrot.slane %v6211_v11, 7 }
 0x43b   : > { %v6216_v37 = vor.u32 %v6214_v27, %v6213_v36  ;;  %v25355_v36 = vld [vmem:[#allocation27_spill] sm:$0xff] }
 0x43d   : > { %v6217_v53 = vsel %vm750_vm1, %v6205_v57, %v6216_v37  ;;  %v6787_v57 = vrot.slane %v6785_v52, 1 }
 0x43f   : > { %18593 = vmatmul.mubr.bf16.gmra.mrb[20].mxu1 %v6185_v55  ;;  %v21391_v55 = vld [vmem:[#allocation3 + $0x68] sm:$0xff]  ;;  %v6788_v11 = vor.u32 %v6787_v57, %v6783_v2  ;;  %v23240_v2 = vld [vmem:[#allocation3 + $0x50] sm:$0xff] }
 0x440   : > { %18596 = vmatprep.mubr.bf16.mxu1 %v6193_v61  ;;  %v6750_v61 = vmul.bf16 %v22995_v12, %v23002_v18 }
 0x442   : > { %v6790_v48 = vshll.u32 %v6750_v61, 16 }
 0x447   : > { %18597 = vmatmul.mubr.bf16.gmra.mrb[24].mxu1 %v6201_v31  ;;  %v6792_v31 = vrot.slane %v6790_v48, 1 }
 0x448   : > { %18600 = vmatprep.mubr.bf16.mxu1 %v6209_v20  ;;  %v6800_v20 = vrot.slane %v6798_v10, 1 }
 0x44f   : > { %18601 = vmatmul.mubr.bf16.gmra.mrb[28].mxu1 %v6217_v53 }
 0x450   : > { %18620 = vmatprep.mubr.bf16.mxu1 %v23153_v40  ;;  %v21122_v40 = vld [vmem:[#allocation7 + $0x168] sm:$0xff]  }
 0x457   : > { %18621 = vmatmul.mubr.bf16.vlgmr.msra.gmra.mrb[0].mxu1 %v23002_v18  ;;  %v6793_v18 = vsel %vm572_vm0, %v6788_v11, %v6792_v31  ;;  %v25359_v11 = vld [vmem:[#allocation14_spill] sm:$0xff] }
 0x458   : > { %18624 = vmatprep.mubr.bf16.mxu1 %v23012_v35  ;;  %18653 = vmatpush3.bf16.msra.mxu1 %v21117_v33  ;;  %v21123_v33 = vld [vmem:[#allocation7 + $0x170] sm:$0xff]   ;;  %v6802_v35 = vshrl.u32 %v6751_v26, 16  ;;  %v6756_v10 = vmul.bf16 %v25359_v11, %v23074_v29 }
 0x459   : > { %18654 = vmatprep.subr.bf16.mxu1 %v21118_v42 }
 0x45a   : > { %v6804_v53 = vor.u32 %v6802_v35, %v6800_v20 }
 0x45c   : > { %18655 = vmatpush3.bf16.msra.mxu1 %v21118_v42 }
 0x45d   : > { %18656 = vmatprep.subr.bf16.mxu1 %v21119_v4 }
 0x45f   : > { %18625 = vmatmul.mubr.bf16.gmra.mrb[4].mxu1 %v23027_v22 }
 0x460   : > { %18628 = vmatprep.mubr.bf16.mxu1 %v23037_v44  ;;  %18657 = vmatpush3.bf16.msra.mxu1 %v21119_v4 }
 0x461   : > { %18658 = vmatprep.subr.bf16.mxu1 %v21120_v54 }
 0x464   : > { %18659 = vmatpush3.bf16.msra.mxu1 %v21120_v54 }
 0x465   : > { %18660 = vmatprep.subr.bf16.mxu1 %v21121_v43 }
 0x467   : > { %18629 = vmatmul.mubr.bf16.gmra.mrb[8].mxu1 %v23052_v17 }
 0x468   : > { %18632 = vmatprep.mubr.bf16.mxu1 %v23060_v14  ;;  %18661 = vmatpush3.bf16.msra.mxu1 %v21121_v43  ;;  %v21126_v43 = vld [vmem:[#allocation7 + $0x188] sm:$0xff]  }
 0x469   : > { %18662 = vmatprep.subr.bf16.mxu1 %v21122_v40 }
 0x46c   : > { %18663 = vmatpush3.bf16.msra.mxu1 %v21122_v40  ;;  %v25357_v40 = vld [vmem:[#allocation29_spill] sm:$0xff] }
 0x46d   : > { %18664 = vmatprep.subr.bf16.mxu1 %v21123_v33 }
 0x46f   : > { %18633 = vmatmul.mubr.bf16.gmra.mrb[12].mxu1 %v23074_v29 }
 0x470   : > { %18636 = vmatprep.mubr.bf16.mxu1 %v21389_v56  ;;  %18665 = vmatpush3.bf16.msra.mxu1 %v21123_v33 }
 0x471   : > { %18666 = vmatprep.subr.bf16.mxu1 %v21124_v5 }
 0x474   : > { %18667 = vmatpush3.bf16.msra.mxu1 %v21124_v5 }
 0x475   : > { %18700 = vmatprep.subr.bf16.mxu1 %v21125_v15 }
 0x477   : > { %18637 = vmatmul.mubr.bf16.gmra.mrb[16].mxu1 %v23098_v24 }
 0x478   : > { %18640 = vmatprep.mubr.bf16.mxu1 %v21390_v16 }
 0x47f   : > { %18641 = vmatmul.mubr.bf16.gmra.mrb[20].mxu1 %v21391_v55 }
 0x480   : > { %18644 = vmatprep.mubr.bf16.mxu1 %v22935_v9  ;;  %v6752_v9 = vmul.bf16 %v25355_v36, %v23027_v22  ;;  %v6754_v22 = vmul.bf16 %v25357_v40, %v23052_v17 }
 0x482   : > { %v6806_v37 = vshll.u32 %v6752_v9, 16  ;;  %v6822_v55 = vshll.u32 %v6754_v22, 16  ;;  %v6810_v52 = vshrl.u32 %v6752_v9, 16 }
 0x484   : > { %v6808_v54 = vrot.slane %v6806_v37, 1  ;;  %v6824_v48 = vrot.slane %v6822_v55, 1  ;;  %v6838_v37 = vshll.u32 %v6756_v10, 16 }
 0x486   : > { %v6809_v5 = vsel %vm572_vm0, %v6804_v53, %v6808_v54  ;;  %v6812_v26 = vor.u32 %v6810_v52, %v6808_v54  ;;  %v6826_v53 = vshrl.u32 %v6754_v22, 16  ;;  %v25362_v52 = vld [vmem:[#allocation17_spill] sm:$0xff] }
 0x487   : > { %18645 = vmatmul.mubr.bf16.gmra.mrb[24].mxu1 %v22930_v51  ;;  %v25356_v51 = vld [vmem:[#allocation28_spill] sm:$0xff] }
 0x488   : > { %18648 = vmatprep.mubr.bf16.mxu1 %v22952_v59  ;;  %v6753_v27 = vmul.bf16 %v25356_v51, %v23037_v44  ;;  %v6794_v59 = vshrl.u32 %v6750_v61, 16  ;;  %v25358_v44 = vld [vmem:[#allocation13_spill] sm:$0xff]  ;;  %v6828_v54 = vor.u32 %v6826_v53, %v6824_v48  ;;  %v25363_v53 = vld [vmem:[#allocation18_spill] sm:$0xff] }
 0x489   : > { %v6755_v16 = vmul.bf16 %v25358_v44, %v23060_v14 }
 0x48a   : > { %v6814_v42 = vshll.u32 %v6753_v27, 16  ;;  %v6796_v4 = vor.u32 %v6794_v59, %v6792_v31  ;;  %v6818_v30 = vshrl.u32 %v6753_v27, 16  ;;  %v21128_v31 = vld [vmem:[#allocation7 + $0x198] sm:$0xff]   ;;  %v25360_v27 = vld [vmem:[#allocation15_spill] sm:$0xff]  ;;  %v21129_v59 = vld [vmem:[#allocation7 + $0x1a0] sm:$0xff]  }
 0x48b   : > { %v6830_v57 = vshll.u32 %v6755_v16, 16  ;;  %v6757_v9 = vmul.bf16 %v23240_v2, %v25360_v27  ;;  %v6834_v35 = vshrl.u32 %v6755_v16, 16 }
 0x48c   : > { %v6801_v33 = vsel %vm572_vm0, %v6796_v4, %v6800_v20  ;;  %v6816_v56 = vrot.slane %v6814_v42, 1 }
 0x48d   : > { %v6832_v20 = vrot.slane %v6830_v57, 1  ;;  %v6846_v4 = vshll.u32 %v6757_v9, 16 }
 0x48e   : > { %v6820_v61 = vor.u32 %v6818_v30, %v6816_v56  ;;  %v21130_v30 = vld [vmem:[#allocation7 + $0x1a8] sm:$0xff]  }
 0x48f   : > { %18649 = vmatmul.mubr.bf16.gmra.mrb[28].mxu1 %v23202_v34  ;;  %v6836_v42 = vor.u32 %v6834_v35, %v6832_v20  ;;  %v6833_v55 = vsel %vm572_vm0, %v6828_v54, %v6832_v20  ;;  %v23258_v20 = vld [vmem:[#allocation3 + $0x70] sm:$0xff] }
 0x490   : > { %18668 = vmatprep.mubr.bf16.mxu1 %v6793_v18  ;;  %v6817_v18 = vsel %vm572_vm0, %v6812_v26, %v6816_v56  ;;  %v21131_v26 = vld [vmem:[#allocation7 + $0x1b0] sm:$0xff]   ;;  %v6761_v54 = vmul.bf16 %v23258_v20, %v23122_v50 }
 0x497   : > { %18669 = vmatmul.mubr.bf16.vlgmr.msra.gmra.mrb[0].mxu1 %v6801_v33  ;;  %v6840_v33 = vrot.slane %v6838_v37, 1 }
 0x498   : > { %18672 = vmatprep.mubr.bf16.mxu1 %v6809_v5  ;;  %18701 = vmatpush3.bf16.msra.mxu1 %v21125_v15  ;;  %v6825_v15 = vsel %vm572_vm0, %v6820_v61, %v6824_v48  ;;  %v25361_v5 = vld [vmem:[#allocation16_spill] sm:$0xff]  ;;  %v6850_v61 = vshrl.u32 %v6757_v9, 16  ;;  %v6842_v48 = vshrl.u32 %v6756_v10, 16 }
 0x499   : > { %18702 = vmatprep.subr.bf16.mxu1 %v21126_v43  ;;  %v6758_v56 = vmul.bf16 %v25361_v5, %v23098_v24  ;;  %v6841_v16 = vsel %vm572_vm0, %v6836_v42, %v6840_v33 }
 0x49a   : > { %v6844_v35 = vor.u32 %v6842_v48, %v6840_v33  ;;  %v6878_v48 = vshll.u32 %v6761_v54, 16 }
 0x49b   : > { %v6854_v57 = vshll.u32 %v6758_v56, 16 }
 0x49c   : > { %18703 = vmatpush3.bf16.msra.mxu1 %v21126_v43  ;;  %v23248_v43 = vld [vmem:[#allocation3 + $0x60] sm:$0xff] }
 0x49d   : > { %18704 = vmatprep.subr.bf16.mxu1 %v21127_v41  ;;  %v6759_v22 = vmul.bf16 %v23248_v43, %v25362_v52  ;;  %v6856_v37 = vrot.slane %v6854_v57, 1 }
 0x49f   : > { %18673 = vmatmul.mubr.bf16.gmra.mrb[4].mxu1 %v6817_v18  ;;  %v6866_v33 = vshrl.u32 %v6759_v22, 16 }
 0x4a0   : > { %18676 = vmatprep.mubr.bf16.mxu1 %v6825_v15  ;;  %18705 = vmatpush3.bf16.msra.mxu1 %v21127_v41  ;;  %v6848_v41 = vrot.slane %v6846_v4, 1  ;;  %v6862_v15 = vshll.u32 %v6759_v22, 16  ;;  %v21132_v4 = vld [vmem:[#allocation7 + $0x1b8] sm:$0xff]  }
 0x4a1   : > { %18706 = vmatprep.subr.bf16.mxu1 %v21128_v31 }
 0x4a2   : > { %v6852_v18 = vor.u32 %v6850_v61, %v6848_v41  ;;  %v6849_v9 = vsel %vm572_vm0, %v6844_v35, %v6848_v41  ;;  %v6864_v10 = vrot.slane %v6862_v15, 1  ;;  %v23268_v61 = vld [vmem:[#allocation3 + $0x78] sm:$0xff]  ;;  %v23270_v35 = vld [vmem:[#allocation3 + $0x80] sm:$0xff] }
 0x4a3   : > { %v6762_v15 = vmul.bf16 %v23268_v61, %v23126_v21  ;;  %v6764_v21 = vmul.bf16 %v23202_v34, %v23145_v13 }
 0x4a4   : > { %18707 = vmatpush3.bf16.msra.mxu1 %v21128_v31  ;;  %v23256_v31 = vld [vmem:[#allocation3 + $0x68] sm:$0xff]  ;;  %v6868_v57 = vor.u32 %v6866_v33, %v6864_v10 }
 0x4a5   : > { %18708 = vmatprep.subr.bf16.mxu1 %v21129_v59  ;;  %v6760_v42 = vmul.bf16 %v23256_v31, %v25363_v53 }
 0x4a7   : > { %18677 = vmatmul.mubr.bf16.gmra.mrb[8].mxu1 %v6833_v55  ;;  %v6870_v55 = vshll.u32 %v6760_v42, 16  ;;  %v6874_v33 = vshrl.u32 %v6760_v42, 16  ;;  %v7171_v42 = vld [vmem:[#allocation3 + $0x10] sm:$0x80] }
 0x4a8   : > { %18680 = vmatprep.mubr.bf16.mxu1 %v6841_v16  ;;  %18709 = vmatpush3.bf16.msra.mxu1 %v21129_v59  ;;  %v6857_v59 = vsel %vm572_vm0, %v6852_v18, %v6856_v37  ;;  %v6858_v16 = vshrl.u32 %v6758_v56, 16  ;;  %v6880_v56 = vrot.slane %v6878_v48, 1 }
 0x4a9   : > { %18710 = vmatprep.subr.bf16.mxu1 %v21130_v30  ;;  %v6872_v18 = vrot.slane %v6870_v55, 1 }
 0x4aa   : > { %v6860_v41 = vor.u32 %v6858_v16, %v6856_v37  ;;  %v6882_v37 = vshrl.u32 %v6761_v54, 16 }
 0x4ab   : > { %v6876_v16 = vor.u32 %v6874_v33, %v6872_v18 }
 0x4ac   : > { %18711 = vmatpush3.bf16.msra.mxu1 %v21130_v30  ;;  %v23266_v30 = vld [vmem:[#allocation7 + $0x1c0] sm:$0xff]   ;;  %v6865_v22 = vsel %vm572_vm0, %v6860_v41, %v6864_v10  ;;  %v6748_v41 = vld [vmem:[#allocation3 + $0x90] sm:$0x1] }
 0x4ad   : > { %18712 = vmatprep.subr.bf16.mxu1 %v21131_v26  ;;  %v6881_v10 = vsel %vm572_vm0, %v6876_v16, %v6880_v56 }
 0x4af   : > { %18681 = vmatmul.mubr.bf16.gmra.mrb[12].mxu1 %v6849_v9  ;;  %v6763_v9 = vmul.bf16 %v23270_v35, %v23141_v28  ;;  %v23290_v28 = vld [vmem:[#allocation3 + $0x20] sm:$0xff] }
 0x4b0   : > { %18684 = vmatprep.mubr.bf16.mxu1 %v6857_v59  ;;  %18713 = vmatpush3.bf16.msra.mxu1 %v21131_v26  ;;  %v6873_v26 = vsel %vm572_vm0, %v6868_v57, %v6872_v18  ;;  %v6886_v59 = vshll.u32 %v6762_v15, 16  ;;  %v6902_v18 = vshll.u32 %v6764_v21, 16 }
 0x4b1   : > { %18714 = vmatprep.subr.bf16.mxu1 %v21132_v4  ;;  %v6894_v55 = vshll.u32 %v6763_v9, 16 }
 0x4b2   : > { %v6888_v50 = vrot.slane %v6886_v59, 1  ;;  %v6765_v59 = vmul.bf16 %v6748_v41, %v23128_v32  ;;  %v23295_v41 = vld [vmem:[#allocation3 + $0x28] sm:$0xff] }
 0x4b3   : > { %v6896_v48 = vrot.slane %v6894_v55, 1 }
 0x4b4   : > { %18715 = vmatpush3.bf16.msra.mxu1 %v21132_v4  ;;  %v6884_v4 = vor.u32 %v6882_v37, %v6880_v56  ;;  %v6890_v37 = vshrl.u32 %v6762_v15, 16  ;;  %v7173_v56 = vmul.bf16 %v7171_v42, %v22638_v45  ;;  %v6910_v13 = vshll.u32 %v6765_v59, 16 }
 0x4b5   : > { %18748 = vmatprep.subr.bf16.mxu1 %v23266_v30  ;;  %v7176_v45 = vmul.bf16 %v23295_v41, %v22687_v1 }
 0x4b6   : > { %v6889_v57 = vsel %vm572_vm0, %v6884_v4, %v6888_v50  ;;  %v6904_v4 = vrot.slane %v6902_v18, 1  ;;  %v7207_v15 = vshrl.u32 %v7173_v56, 16 }
 0x4b7   : > { %18685 = vmatmul.mubr.bf16.gmra.mrb[16].mxu1 %v6865_v22  ;;  %v23283_v22 = vld [vmem:[#allocation3 + $0x18] sm:$0xff] }
 0x4b8   : > { %18688 = vmatprep.mubr.bf16.mxu1 %v6873_v26  ;;  %v7174_v54 = vmul.bf16 %v23283_v22, %v22642_v60  ;;  %v6898_v26 = vshrl.u32 %v6763_v9, 16  ;;  %v7175_v60 = vmul.bf16 %v23290_v28, %v22692_v46 }
 0x4ba   : > { %v6900_v33 = vor.u32 %v6898_v26, %v6896_v48  ;;  %v7211_v16 = vshrl.u32 %v7174_v54, 16  ;;  %v7214_v42 = vshll.u32 %v7174_v54, 16  ;;  %v6912_v26 = vrot.slane %v6910_v13, 1 }
 0x4bb   : > { %v7219_v18 = vshrl.u32 %v7175_v60, 16  ;;  %v7222_v13 = vshll.u32 %v7175_v60, 16  ;;  %v7230_v54 = vshll.u32 %v7176_v45, 16 }
 0x4bc   : > { %v6905_v9 = vsel %vm572_vm0, %v6900_v33, %v6904_v4  ;;  %v23300_v33 = vld [vmem:[#allocation3 + $0x30] sm:$0xff] }
 0x4bd   : > { %v7177_v56 = vmul.bf16 %v23300_v33, %v22733_v3  ;;  %v7179_v3 = vmul.bf16 %v23060_v14, %v22781_v19  ;;  %v21136_v19 = vld [vmem:[#allocation7 + $0x1d8] sm:$0xff]  }
 0x4bf   : > { %18689 = vmatmul.mubr.bf16.gmra.mrb[20].mxu1 %v6881_v10  ;;  %v6892_v10 = vor.u32 %v6890_v37, %v6888_v50  ;;  %v6906_v50 = vshrl.u32 %v6764_v21, 16  ;;  %v7209_v37 = vrot.slane %v7207_v15, 7  ;;  %v7178_v21 = vmul.bf16 %v23052_v17, %v22713_v58 }
 0x4c0   : > { %18692 = vmatprep.mubr.bf16.mxu1 %v6889_v57  ;;  %v7213_v57 = vrot.slane %v7211_v16, 7  ;;  %v7180_v58 = vmul.bf16 %v23074_v29, %v22752_v7  ;;  %v7238_v17 = vshll.u32 %v7177_v56, 16  ;;  %v7181_v7 = vmul.bf16 %v23240_v2, %v22829_v38  ;;  %v21138_v38 = vld [vmem:[#allocation7 + $0x1e8] sm:$0xff]  }
 0x4c1   : > { %v6897_v55 = vsel %vm572_vm0, %v6892_v10, %v6896_v48  ;;  %v6908_v48 = vor.u32 %v6906_v50, %v6904_v4  ;;  %v7227_v10 = vshrl.u32 %v7176_v45, 16  ;;  %v7243_v50 = vshrl.u32 %v7178_v21, 16  ;;  %v21135_v45 = vld [vmem:[#allocation7 + $0x1d0] sm:$0xff]  }
 0x4c2   : > { %v7216_v59 = vor.u32 %v7214_v42, %v7213_v57  ;;  %v21134_v42 = vld [vmem:[#allocation7 + $0x1c8] sm:$0xff]   ;;  %v7246_v60 = vshll.u32 %v7178_v21, 16  ;;  %v7262_v21 = vshll.u32 %v7180_v58, 16 }
 0x4c3   : > { %v6913_v46 = vsel %vm572_vm0, %v6908_v48, %v6912_v26  ;;  %v7229_v16 = vrot.slane %v7227_v10, 7 }
 0x4c4   : > { %v7217_v1 = vsel %vm750_vm1, %v7209_v37, %v7216_v59  ;;  %v7245_v37 = vrot.slane %v7243_v50, 7 }
 0x4c5   : > { %v7232_v15 = vor.u32 %v7230_v54, %v7229_v16 }
 0x4c6   : > { %v7248_v10 = vor.u32 %v7246_v60, %v7245_v37 }
 0x4c7   : > { %18693 = vmatmul.mubr.bf16.gmra.mrb[24].mxu1 %v6897_v55  ;;  %v7221_v55 = vrot.slane %v7219_v18, 7 }
 0x4c8   : > { %18696 = vmatprep.mubr.bf16.mxu1 %v6905_v9  ;;  %v7235_v9 = vshrl.u32 %v7177_v56, 16  ;;  %v7182_v56 = vmul.bf16 %v23098_v24, %v22801_v39 }
 0x4c9   : > { %v7224_v4 = vor.u32 %v7222_v13, %v7221_v55  ;;  %v7233_v18 = vsel %vm750_vm1, %v7221_v55, %v7232_v15  ;;  %v21137_v13 = vld [vmem:[#allocation7 + $0x1e0] sm:$0xff]  }
 0x4ca   : > { %v7237_v26 = vrot.slane %v7235_v9, 7  ;;  %v7275_v9 = vshrl.u32 %v7182_v56, 16 }
 0x4cb   : > { %v7225_v48 = vsel %vm750_vm1, %v7213_v57, %v7224_v4  ;;  %v7251_v57 = vshrl.u32 %v7179_v3, 16  ;;  %v7267_v4 = vshrl.u32 %v7181_v7, 16 }
 0x4cc   : > { %v7240_v59 = vor.u32 %v7238_v17, %v7237_v26  ;;  %v7249_v29 = vsel %vm750_vm1, %v7237_v26, %v7248_v10  ;;  %v7277_v24 = vrot.slane %v7275_v9, 7  ;;  %v7270_v26 = vshll.u32 %v7181_v7, 16 }
 0x4cd   : > { %v7253_v55 = vrot.slane %v7251_v57, 7  ;;  %v7269_v50 = vrot.slane %v7267_v4, 7  ;;  %v7185_v57 = vmul.bf16 %v23258_v20, %v22907_v23 }
 0x4ce   : > { %v7241_v14 = vsel %vm750_vm1, %v7229_v16, %v7240_v59 }
 0x4cf   : > { %18697 = vmatmul.mubr.bf16.gmra.mrb[28].mxu1 %v6913_v46  ;;  %v7259_v46 = vshrl.u32 %v7180_v58, 16  ;;  %v7272_v58 = vor.u32 %v7270_v26, %v7269_v50  ;;  %v7302_v4 = vshll.u32 %v7185_v57, 16 }
 0x4d0   : > { %18716 = vmatprep.mubr.bf16.mxu1 %v7217_v1  ;;  %v7254_v1 = vshll.u32 %v7179_v3, 16  ;;  %v7278_v3 = vshll.u32 %v7182_v56, 16 }
 0x4d2   : > { %v7256_v54 = vor.u32 %v7254_v1, %v7253_v55 }
 0x4d4   : > { %v7257_v15 = vsel %vm750_vm1, %v7245_v37, %v7256_v54  ;;  %v7280_v37 = vor.u32 %v7278_v3, %v7277_v24  ;;  %v7188_v54 = vmul.bf16 %v23202_v34, %v22928_v0 }
 0x4d6   : > { %v7326_v3 = vshll.u32 %v7188_v54, 16 }
 0x4d7   : > { %18717 = vmatmul.mubr.bf16.vlgmr.msra.gmra.mrb[0].mxu1 %v7225_v48  ;;  %v7184_v48 = vmul.bf16 %v23256_v31, %v22850_v8  ;;  %v7281_v8 = vsel %vm750_vm1, %v7269_v50, %v7280_v37  ;;  %v7323_v50 = vshrl.u32 %v7188_v54, 16 }
 0x4d8   : > { %18720 = vmatprep.mubr.bf16.mxu1 %v7233_v18  ;;  %18749 = vmatpush3.bf16.msra.mxu1 %v23266_v30  ;;  %v7261_v30 = vrot.slane %v7259_v46, 7  ;;  %v21139_v18 = vld [vmem:[#allocation7 + $0x1f0] sm:$0xff]   ;;  %v7186_v46 = vmul.bf16 %v23268_v61, %v22894_v62 }
 0x4d9   : > { %18750 = vmatprep.subr.bf16.mxu1 %v21134_v42  ;;  %v7291_v60 = vshrl.u32 %v7184_v48, 16  ;;  %v7325_v26 = vrot.slane %v7323_v50, 7 }
 0x4da   : > { %v7264_v16 = vor.u32 %v7262_v21, %v7261_v30  ;;  %v7307_v56 = vshrl.u32 %v7186_v46, 16  ;;  %v7187_v21 = vmul.bf16 %v23270_v35, %v22933_v49 }
 0x4db   : > { %v7293_v10 = vrot.slane %v7291_v60, 7 }
 0x4dc   : > { %18751 = vmatpush3.bf16.msra.mxu1 %v21134_v42  ;;  %v7183_v42 = vmul.bf16 %v23248_v43, %v22871_v6  ;;  %v7265_v39 = vsel %vm750_vm1, %v7253_v55, %v7264_v16  ;;  %v21140_v6 = vld [vmem:[#allocation7 + $0x1f8] sm:$0xff]   ;;  %v21141_v55 = vld [vmem:[#allocation7 + $0x200] sm:$0xff]   ;;  %v7310_v16 = vshll.u32 %v7186_v46, 16  ;;  %v7318_v0 = vshll.u32 %v7187_v21, 16  ;;  %v21142_v46 = vld [vmem:[#allocation7 + $0x208] sm:$0xff]  }
 0x4dd   : > { %18752 = vmatprep.subr.bf16.mxu1 %v21135_v45 }
 0x4de   : > { %v7283_v17 = vshrl.u32 %v7183_v42, 16 }
 0x4df   : > { %18721 = vmatmul.mubr.bf16.gmra.mrb[4].mxu1 %v7241_v14  ;;  %v7294_v14 = vshll.u32 %v7184_v48, 16 }
 0x4e0   : > { %18724 = vmatprep.mubr.bf16.mxu1 %v7249_v29  ;;  %18753 = vmatpush3.bf16.msra.mxu1 %v21135_v45  ;;  %v7273_v45 = vsel %vm750_vm1, %v7261_v30, %v7272_v58  ;;  %v7285_v59 = vrot.slane %v7283_v17, 7  ;;  %v7299_v29 = vshrl.u32 %v7185_v57, 16  ;;  %v7328_v17 = vor.u32 %v7326_v3, %v7325_v26  ;;  %v21149_v57 = vld [vmem:[#allocation4 + $0x240] sm:$0xff]  }
 0x4e1   : > { %18754 = vmatprep.subr.bf16.mxu1 %v21136_v19  ;;  %v7296_v30 = vor.u32 %v7294_v14, %v7293_v10  ;;  %18844 = vmatprep.subr.bf16.mxu0 %v21149_v57  ;;  %v21143_v14 = vld [vmem:[#allocation7 + $0x210] sm:$0xff]   ;;  %v7857_v3 = vld [vmem:[#allocation3 + $0x40] sm:$0xff] }
 0x4e2   : > { %v7301_v1 = vrot.slane %v7299_v29, 7  ;;  %18845 = vmatpush3.bf16.msra.mxu0 %v21149_v57  ;;  %v21397_v29 = vld [vmem:[#allocation3 + $0x38] sm:$0xff] }
 0x4e3   : > { %v7297_v62 = vsel %vm750_vm1, %v7285_v59, %v7296_v30  ;;  %v21399_v30 = vld [vmem:[#allocation3 + $0x48] sm:$0xff] }
 0x4e4   : > { %18755 = vmatpush3.bf16.msra.mxu1 %v21136_v19  ;;  %v7286_v19 = vshll.u32 %v7183_v42, 16  ;;  %v7304_v9 = vor.u32 %v7302_v4, %v7301_v1  ;;  %v7854_v4 = vld [vmem:[#allocation3 + $0x28] sm:$0xff] }
 0x4e5   : > { %18756 = vmatprep.subr.bf16.mxu1 %v21137_v13 }
 0x4e6   : > { %v7288_v7 = vor.u32 %v7286_v19, %v7285_v59  ;;  %v7305_v42 = vsel %vm750_vm1, %v7293_v10, %v7304_v9  ;;  %v21151_v10 = vld [vmem:[#allocation4 + $0x250] sm:$0xff]   ;;  %v21152_v19 = vld [vmem:[#allocation4 + $0x258] sm:$0xff]  }
 0x4e7   : > { %18725 = vmatmul.mubr.bf16.gmra.mrb[8].mxu1 %v7257_v15  ;;  %v7855_v9 = vld [vmem:[#allocation3 + $0x30] sm:$0xff] }
 0x4e8   : > { %18728 = vmatprep.mubr.bf16.mxu1 %v7265_v39  ;;  %18757 = vmatpush3.bf16.msra.mxu1 %v21137_v13  ;;  %v7289_v23 = vsel %vm750_vm1, %v7277_v24, %v7288_v7  ;;  %v7309_v13 = vrot.slane %v7307_v56, 7  ;;  %v23339_v24 = vld [vmem:[#allocation2] sm:$0xff]  ;;  %v21147_v56 = vld [vmem:[#allocation7 + $0x230] sm:$0xff]  }
 0x4e9   : > { %18758 = vmatprep.subr.bf16.mxu1 %v21138_v38  ;;  %v7189_v49 = vmul.bf16 %v23339_v24, %v22950_v47  ;;  %v21153_v7 = vld [vmem:[#allocation4 + $0x260] sm:$0xff]  }
 0x4ea   : > { %v7312_v15 = vor.u32 %v7310_v16, %v7309_v13 }
 0x4eb   : > { %v7331_v58 = vshrl.u32 %v7189_v49, 16 }
 0x4ec   : > { %18759 = vmatpush3.bf16.msra.mxu1 %v21138_v38  ;;  %v7315_v38 = vshrl.u32 %v7187_v21, 16  ;;  %v7313_v48 = vsel %vm750_vm1, %v7301_v1, %v7312_v15  ;;  %v7852_v1 = vld [vmem:[#allocation3 + $0x18] sm:$0xff]  ;;  %v7853_v21 = vld [vmem:[#allocation3 + $0x20] sm:$0xff]  ;;  %v7871_v15 = vmul.bf16 %v7854_v4, %v23005_v25 }
 0x4ed   : > { %18760 = vmatprep.subr.bf16.mxu1 %v21139_v18  ;;  %v7333_v60 = vrot.slane %v7331_v58, 7 }
 0x4ee   : > { %v7317_v39 = vrot.slane %v7315_v38, 7  ;;  %v7922_v25 = vshrl.u32 %v7871_v15, 16 }
 0x4ef   : > { %18729 = vmatmul.mubr.bf16.gmra.mrb[12].mxu1 %v7273_v45 }
 0x4f0   : > { %18732 = vmatprep.mubr.bf16.mxu1 %v7281_v8  ;;  %18761 = vmatpush3.bf16.msra.mxu1 %v21139_v18  ;;  %v7320_v18 = vor.u32 %v7318_v0, %v7317_v39  ;;  %v7329_v45 = vsel %vm750_vm1, %v7317_v39, %v7328_v17  ;;  %v21150_v8 = vld [vmem:[#allocation4 + $0x248] sm:$0xff]   ;;  %v7872_v39 = vmul.bf16 %v7855_v9, %v25355_v36 }
 0x4f1   : > { %18762 = vmatprep.subr.bf16.mxu1 %v21140_v6  ;;  %18846 = vmatprep.subr.bf16.mxu0 %v21150_v8 }
 0x4f2   : > { %v7321_v37 = vsel %vm750_vm1, %v7309_v13, %v7320_v18  ;;  %18847 = vmatpush3.bf16.msra.mxu0 %v21150_v8  ;;  %v7870_v13 = vmul.bf16 %v7853_v21, %v22995_v12  ;;  %v7930_v57 = vshrl.u32 %v7872_v39, 16 }
 0x4f3   : > { %18848 = vmatprep.subr.bf16.mxu0 %v21151_v10 }
 0x4f4   : > { %18763 = vmatpush3.bf16.msra.mxu1 %v21140_v6  ;;  %v7334_v6 = vshll.u32 %v7189_v49, 16  ;;  %v7910_v16 = vshll.u32 %v7870_v13, 16  ;;  %v7914_v0 = vshrl.u32 %v7870_v13, 16 }
 0x4f5   : > { %18796 = vmatprep.subr.bf16.mxu1 %v21141_v55 }
 0x4f6   : > { %v7336_v59 = vor.u32 %v7334_v6, %v7333_v60  ;;  %18849 = vmatpush3.bf16.msra.mxu0 %v21151_v10 }
 0x4f7   : > { %18733 = vmatmul.mubr.bf16.gmra.mrb[16].mxu1 %v7289_v23  ;;  %18850 = vmatprep.subr.bf16.mxu0 %v21152_v19  ;;  %v21400_v23 = vld [vmem:[#allocation3 + $0x58] sm:$0xff] }
 0x4f8   : > { %18736 = vmatprep.mubr.bf16.mxu1 %v7297_v62  ;;  %v7337_v47 = vsel %vm750_vm1, %v7325_v26, %v7336_v59  ;;  %v7869_v62 = vmul.bf16 %v7852_v1, %v22986_v63  ;;  %v7856_v63 = vld [vmem:[#allocation3 + $0x38] sm:$0xff]  ;;  %v7926_v26 = vshll.u32 %v7872_v39, 16 }
 0x4f9   : > { %v7873_v18 = vmul.bf16 %v7856_v63, %v25356_v51  ;;  %v25364_v63 = vld [vmem:[#allocation19_spill] sm:$0xff] }
 0x4fa   : > { %18851 = vmatpush3.bf16.msra.mxu0 %v21152_v19  ;;  %v7905_v54 = vshll.u32 %v7869_v62, 16  ;;  %v7903_v50 = vshrl.u32 %v7869_v62, 16  ;;  %v7928_v17 = vrot.slane %v7926_v26, 1 }
 0x4fb   : > { %18852 = vmatprep.subr.bf16.mxu0 %v21153_v7  ;;  %v7934_v60 = vshll.u32 %v7873_v18, 16 }
 0x4fc   : > { %v7907_v38 = vrot.slane %v7905_v54, 1  ;;  %v7932_v51 = vor.u32 %v7930_v57, %v7928_v17 }
 0x4fd   : > { %v7936_v8 = vrot.slane %v7934_v60, 1 }
 0x4fe   : > { %18853 = vmatpush3.bf16.msra.mxu0 %v21153_v7  ;;  %v7908_v49 = vor.u32 %v7907_v38, %v7903_v50 }
 0x4ff   : > { %18737 = vmatmul.mubr.bf16.gmra.mrb[20].mxu1 %v7305_v42  ;;  %v7912_v42 = vrot.slane %v7910_v16, 1 }
 0x500   : > { %18740 = vmatprep.mubr.bf16.mxu1 %v7313_v48  ;;  %v7918_v48 = vshll.u32 %v7871_v15, 16 }
 0x501   : > { %v7913_v12 = vsel %vm572_vm0, %v7908_v49, %v7912_v42  ;;  %v7916_v58 = vor.u32 %v7914_v0, %v7912_v42  ;;  %v25365_v0 = vld [vmem:[#allocation20_spill] sm:$0xff] }
 0x507   : > { %18741 = vmatmul.mubr.bf16.gmra.mrb[24].mxu1 %v7321_v37  ;;  %v7874_v37 = vmul.bf16 %v7857_v3, %v25357_v40  ;;  %v7876_v40 = vmul.bf16 %v23240_v2, %v25359_v11 }
 0x508   : > { %18744 = vmatprep.mubr.bf16.mxu1 %v7329_v45  ;;  %v7858_v45 = vld [vmem:[#allocation3 + $0x48] sm:$0xff] }
 0x509   : > { %v7875_v10 = vmul.bf16 %v7858_v45, %v25358_v44  ;;  %v7962_v54 = vshrl.u32 %v7876_v40, 16 }
 0x50b   : > { %v7950_v7 = vshll.u32 %v7875_v10, 16 }
 0x50f   : > { %18745 = vmatmul.mubr.bf16.gmra.mrb[28].mxu1 %v7337_v47  ;;  %v7942_v47 = vshll.u32 %v7874_v37, 16 }
 0x510   : > { %18764 = vmatprep.mubr.bf16.mxu1 %v23283_v22  ;;  %v21144_v22 = vld [vmem:[#allocation7 + $0x218] sm:$0xff]  }
 0x511   : > { %v7944_v19 = vrot.slane %v7942_v47, 1  ;;  %v25367_v47 = vld [vmem:[#allocation22_spill] sm:$0xff] }
 0x517   : > { %18765 = vmatmul.mubr.bf16.vlgmr.msra.gmra.mrb[0].mxu1 %v23290_v28  ;;  %v21145_v28 = vld [vmem:[#allocation7 + $0x220] sm:$0xff]  }
 0x518   : > { %18768 = vmatprep.mubr.bf16.mxu1 %v23295_v41  ;;  %18797 = vmatpush3.bf16.msra.mxu1 %v21141_v55  ;;  %v21146_v41 = vld [vmem:[#allocation7 + $0x228] sm:$0xff]   ;;  %v21398_v55 = vld [vmem:[#allocation3 + $0x40] sm:$0xff] }
 0x519   : > { %18798 = vmatprep.subr.bf16.mxu1 %v21142_v46 }
 0x51c   : > { %18799 = vmatpush3.bf16.msra.mxu1 %v21142_v46  ;;  %v7938_v46 = vshrl.u32 %v7873_v18, 16 }
 0x51d   : > { %18800 = vmatprep.subr.bf16.mxu1 %v21143_v14 }
 0x51f   : > { %18769 = vmatmul.mubr.bf16.gmra.mrb[4].mxu1 %v23300_v33  ;;  %v21148_v33 = vld [vmem:[#allocation7 + $0x238] sm:$0xff]  }
 0x520   : > { %18772 = vmatprep.mubr.bf16.mxu1 %v21397_v29  ;;  %18801 = vmatpush3.bf16.msra.mxu1 %v21143_v14  ;;  %v7940_v14 = vor.u32 %v7938_v46, %v7936_v8  ;;  %v7860_v29 = vld [vmem:[#allocation3 + $0x58] sm:$0xff] }
 0x521   : > { %18802 = vmatprep.subr.bf16.mxu1 %v21144_v22  ;;  %v7877_v44 = vmul.bf16 %v7860_v29, %v25360_v27  ;;  %v7879_v27 = vmul.bf16 %v23256_v31, %v25362_v52  ;;  %v7881_v52 = vmul.bf16 %v23268_v61, %v25364_v63 }
 0x523   : > { %v7966_v1 = vshll.u32 %v7877_v44, 16  ;;  %v7970_v9 = vshrl.u32 %v7877_v44, 16  ;;  %v7982_v15 = vshll.u32 %v7879_v27, 16 }
 0x524   : > { %18803 = vmatpush3.bf16.msra.mxu1 %v21144_v22  ;;  %v7937_v22 = vsel %vm572_vm0, %v7932_v51, %v7936_v8  ;;  %v7868_v8 = vld [vmem:[#allocation3 + $0x98] sm:$0x1] }
 0x525   : > { %18804 = vmatprep.subr.bf16.mxu1 %v21145_v28  ;;  %v7968_v4 = vrot.slane %v7966_v1, 1  ;;  %v21157_v1 = vld [vmem:[%s25170_s1] sm:$0xff]  }
 0x527   : > { %18773 = vmatmul.mubr.bf16.gmra.mrb[8].mxu1 %v21398_v55  ;;  %v7946_v55 = vshrl.u32 %v7874_v37, 16 }
 0x528   : > { %18776 = vmatprep.mubr.bf16.mxu1 %v21399_v30  ;;  %18805 = vmatpush3.bf16.msra.mxu1 %v21145_v28  ;;  %v7945_v28 = vsel %vm572_vm0, %v7940_v14, %v7944_v19  ;;  %v7952_v30 = vrot.slane %v7950_v7, 1  ;;  %v7885_v14 = vmul.bf16 %v7868_v8, %v23128_v32  ;;  %v21155_v32 = vld [vmem:[#allocation4 + $0x270] sm:$0xff]  }
 0x529   : > { %18806 = vmatprep.subr.bf16.mxu1 %v21146_v41 }
 0x52c   : > { %18807 = vmatpush3.bf16.msra.mxu1 %v21146_v41  ;;  %v7958_v41 = vshll.u32 %v7876_v40, 16 }
 0x52d   : > { %18808 = vmatprep.subr.bf16.mxu1 %v21147_v56 }
 0x52f   : > { %18777 = vmatmul.mubr.bf16.gmra.mrb[12].mxu1 %v23240_v2  ;;  %v7878_v2 = vmul.bf16 %v23248_v43, %v25361_v5  ;;  %v7972_v5 = vor.u32 %v7970_v9, %v7968_v4 }
 0x530   : > { %18780 = vmatprep.mubr.bf16.mxu1 %v21400_v23  ;;  %18809 = vmatpush3.bf16.msra.mxu1 %v21147_v56  ;;  %v7948_v56 = vor.u32 %v7946_v55, %v7944_v19  ;;  %v7960_v23 = vrot.slane %v7958_v41, 1  ;;  %v8030_v55 = vshll.u32 %v7885_v14, 16 }
 0x531   : > { %18810 = vmatprep.subr.bf16.mxu1 %v21148_v33  ;;  %v7974_v13 = vshll.u32 %v7878_v2, 16  ;;  %v7978_v49 = vshrl.u32 %v7878_v2, 16  ;;  %v21154_v2 = vld [vmem:[#allocation4 + $0x268] sm:$0xff]  }
 0x532   : > { %v7953_v21 = vsel %vm572_vm0, %v7948_v56, %v7952_v30  ;;  %v7964_v16 = vor.u32 %v7962_v54, %v7960_v23  ;;  %18854 = vmatprep.subr.bf16.mxu0 %v21154_v2  ;;  %v8576_v54 = vshrl.u32 %v21157_v1, 16 }
 0x533   : > { %v7976_v38 = vrot.slane %v7974_v13, 1  ;;  %18855 = vmatpush3.bf16.msra.mxu0 %v21154_v2  ;;  %v8573_v13 = vshll.u32 %v21157_v1, 16  ;;  %v23476_v1 = vld [vmem:[#allocation2 + $0x68] sm:$0xff] }
 0x534   : > { %18811 = vmatpush3.bf16.msra.mxu1 %v21148_v33  ;;  %v7954_v33 = vshrl.u32 %v7875_v10, 16  ;;  %v7969_v50 = vsel %vm572_vm0, %v7964_v16, %v7968_v4  ;;  %18856 = vmatprep.subr.bf16.mxu0 %v21155_v32  ;;  %v8443_v16 = vld [vmem:[#allocation2] sm:$0x80] }
 0x535   : > { %v7977_v42 = vsel %vm572_vm0, %v7972_v5, %v7976_v38  ;;  %v23408_v9 = vrot.slane %v8573_v13, 1 }
 0x536   : > { %v7956_v11 = vor.u32 %v7954_v33, %v7952_v30  ;;  %v8032_v33 = vrot.slane %v8030_v55, 1  ;;  %v21165_v55 = vld [vmem:[%s25170_s1 + $0x30] sm:$0xff]  }
 0x537   : > { %18781 = vmatmul.mubr.bf16.gmra.mrb[16].mxu1 %v23248_v43  ;;  %v7880_v43 = vmul.bf16 %v23258_v20, %v25363_v53  ;;  %v7866_v53 = vld [vmem:[#allocation3 + $0x88] sm:$0xff]  ;;  %18857 = vmatpush3.bf16.msra.mxu0 %v21155_v32 }
 0x538   : > { %18784 = vmatprep.mubr.bf16.mxu1 %v23256_v31  ;;  %v7961_v62 = vsel %vm572_vm0, %v7956_v11, %v7960_v23  ;;  %v7980_v31 = vor.u32 %v7978_v49, %v7976_v38  ;;  %v21156_v11 = vld [vmem:[#allocation4 + $0x278] sm:$0xff]  }
 0x539   : > { %v7990_v39 = vshll.u32 %v7880_v43, 16  ;;  %18858 = vmatprep.subr.bf16.mxu0 %v21156_v11 }
 0x53b   : > { %v7992_v26 = vrot.slane %v7990_v39, 1  ;;  %18859 = vmatpush3.bf16.msra.mxu0 %v21156_v11 }
 0x53f   : > { %18785 = vmatmul.mubr.bf16.gmra.mrb[20].mxu1 %v23258_v20  ;;  %v7882_v20 = vmul.bf16 %v23270_v35, %v25365_v0 }
 0x540   : > { %18788 = vmatprep.mubr.bf16.mxu1 %v23268_v61 }
 0x541   : > { %v8010_v40 = vshrl.u32 %v7882_v20, 16 }
 0x547   : > { %18789 = vmatmul.mubr.bf16.gmra.mrb[24].mxu1 %v23270_v35  ;;  %v7884_v35 = vmul.bf16 %v23339_v24, %v25367_v47 }
 0x548   : > { %18792 = vmatprep.mubr.bf16.mxu1 %v23202_v34  ;;  %v7920_v34 = vrot.slane %v7918_v48, 1  ;;  %v7984_v48 = vrot.slane %v7982_v15, 1  ;;  %v8716_v15 = vmul.bf16 %v23408_v9, %v8443_v16  ;;  %v23487_v16 = vld [vmem:[#allocation2 + $0x60] sm:$0xff] }
 0x549   : > { %v8022_v19 = vshll.u32 %v7884_v35, 16  ;;  %v8026_v41 = vshrl.u32 %v7884_v35, 16 }
 0x54a   : > { %v7924_v36 = vor.u32 %v7922_v25, %v7920_v34  ;;  %v7921_v6 = vsel %vm572_vm0, %v7916_v58, %v7920_v34  ;;  %v7998_v34 = vshll.u32 %v7881_v52, 16  ;;  %v7985_v18 = vsel %vm572_vm0, %v7980_v31, %v7984_v48 }
 0x54b   : > { %v8006_v25 = vshll.u32 %v7882_v20, 16  ;;  %v8751_v39 = vshrl.u32 %v8716_v15, 16  ;;  %v21162_v20 = vld [vmem:[%s25170_s1 + $0x20] sm:$0xff]  }
 0x54c   : > { %v7929_v59 = vsel %vm572_vm0, %v7924_v36, %v7928_v17  ;;  %v25366_v17 = vld [vmem:[#allocation21_spill] sm:$0xff]  ;;  %v7994_v36 = vshrl.u32 %v7880_v43, 16  ;;  %v8000_v61 = vrot.slane %v7998_v34, 1  ;;  %v8578_v43 = vor.u32 %v8576_v54, %v23408_v9  ;;  %v23436_v34 = vld [vmem:[#allocation2 + $0x28] sm:$0xff] }
 0x54d   : > { %v7883_v37 = vmul.bf16 %v7866_v53, %v25366_v17  ;;  %v8008_v45 = vrot.slane %v8006_v25, 1  ;;  %v8753_v63 = vrot.slane %v8751_v39, 7  ;;  %v23432_v53 = vld [vmem:[#allocation2 + $0x18] sm:$0xff]  ;;  %v8313_v35 = vunpack.c.l.bf16 %v23436_v34 }
 0x54e   : > { %v7996_v60 = vor.u32 %v7994_v36, %v7992_v26  ;;  %v8309_v36 = vunpack.c.l.bf16 %v23432_v53  ;;  %v8620_v39 = vshll.u32 %v21165_v55, 16 }
 0x54f   : > { %18793 = vmatmul.mubr.bf16.gmra.mrb[28].mxu1 %v23339_v24  ;;  %v8018_v7 = vshrl.u32 %v7883_v37, 16 }
 0x550   : > { %18812 = vmatprep.mubr.bf16.mxu1 %v7913_v12  ;;  %v7986_v12 = vshrl.u32 %v7879_v27, 16  ;;  %v8001_v10 = vsel %vm572_vm0, %v7996_v60, %v8000_v61  ;;  %v23444_v60 = vld [vmem:[#allocation2 + $0x30] sm:$0xff] }
 0x551   : > { %v8315_v14 = vunpack.c.l.bf16 %v23444_v60 }
 0x552   : > { %v7988_v3 = vor.u32 %v7986_v12, %v7984_v48 }
 0x554   : > { %v7993_v58 = vsel %vm572_vm0, %v7988_v3, %v7992_v26  ;;  %v21159_v26 = vld [vmem:[%s25170_s1 + $0x10] sm:$0xff]  }
 0x555   : > { %v8588_v0 = vshll.u32 %v21159_v26, 16  ;;  %v23434_v3 = vld [vmem:[#allocation2 + $0x10] sm:$0xff]  ;;  %v8592_v17 = vshrl.u32 %v21159_v26, 16 }
 0x556   : > { %v8308_v47 = vunpack.c.h.bf16 %v23434_v3 }
 0x557   : > { %18813 = vmatmul.mubr.bf16.vlgmr.msra.gmra.mrb[0].mxu1 %v7921_v6  ;;  %v8002_v6 = vshrl.u32 %v7881_v52, 16  ;;  %v8590_v25 = vrot.slane %v8588_v0, 1 }
 0x558   : > { %18816 = vmatprep.mubr.bf16.mxu1 %v7929_v59  ;;  %v8014_v59 = vshll.u32 %v7883_v37, 16 }
 0x559   : > { %v8004_v57 = vor.u32 %v8002_v6, %v8000_v61  ;;  %v8307_v61 = vunpack.c.l.bf16 %v23434_v3  ;;  %v8604_v6 = vshll.u32 %v21162_v20, 16 }
 0x55a   : > { %v8016_v46 = vrot.slane %v8014_v59, 1  ;;  %v8310_v59 = vunpack.c.h.bf16 %v23432_v53 }
 0x55b   : > { %v8009_v51 = vsel %vm572_vm0, %v8004_v57, %v8008_v45 }
 0x55c   : > { %v8020_v29 = vor.u32 %v8018_v7, %v8016_v46 }
 0x55f   : > { %18817 = vmatmul.mubr.bf16.gmra.mrb[4].mxu1 %v7937_v22  ;;  %v8012_v22 = vor.u32 %v8010_v40, %v8008_v45  ;;  %v23449_v45 = vld [vmem:[%s25170_s1 + $0x28] sm:$0xff]   ;;  %v23460_v40 = vld [vmem:[#allocation2 + $0x40] sm:$0xff] }
 0x560   : > { %18820 = vmatprep.mubr.bf16.mxu1 %v7945_v28  ;;  %v8024_v28 = vrot.slane %v8022_v19, 1  ;;  %v23458_v19 = vld [vmem:[#allocation2 + $0x48] sm:$0xff]  ;;  %v8319_v2 = vunpack.c.l.bf16 %v23460_v40  ;;  %v8320_v13 = vunpack.c.h.bf16 %v23460_v40  ;;  %v8616_v26 = vshrl.u32 %v23449_v45, 16 }
 0x561   : > { %v8017_v30 = vsel %vm572_vm0, %v8012_v22, %v8016_v46  ;;  %v8594_v22 = vor.u32 %v8592_v17, %v8590_v25  ;;  %v8322_v32 = vunpack.c.h.bf16 %v23458_v19 }
 0x562   : > { %v8025_v44 = vsel %vm572_vm0, %v8020_v29, %v8024_v28  ;;  %v8028_v56 = vor.u32 %v8026_v41, %v8024_v28  ;;  %v23464_v28 = vld [vmem:[#allocation2 + $0x58] sm:$0xff]  ;;  %v23466_v41 = vld [vmem:[#allocation2 + $0x50] sm:$0xff] }
 0x563   : > { %v8325_v54 = vunpack.c.l.bf16 %v23464_v28 }
 0x564   : > { %v8033_v23 = vsel %vm572_vm0, %v8028_v56, %v8032_v33  ;;  %v8608_v56 = vshrl.u32 %v21162_v20, 16  ;;  %v8612_v33 = vshll.u32 %v23449_v45, 16 }
 0x567   : > { %18821 = vmatmul.mubr.bf16.gmra.mrb[8].mxu1 %v7953_v21  ;;  %v21158_v21 = vld [vmem:[%s25170_s1 + $0x8] sm:$0xff]  }
 0x568   : > { %18824 = vmatprep.mubr.bf16.mxu1 %v7961_v62  ;;  %v23405_v62 = vld [vmem:[#allocation4 + $0x280] sm:$0xff]   ;;  %v8580_v4 = vshll.u32 %v21158_v21, 16  ;;  %v8584_v27 = vshrl.u32 %v21158_v21, 16 }
 0x569   : > { %18892 = vmatprep.subr.bf16.mxu0 %v23405_v62  ;;  %v23481_v21 = vld [vmem:[%s25174_s5] ss:$0 sm:$0xff] }
 0x56a   : > { %v8582_v38 = vrot.slane %v8580_v4, 1 }
 0x56c   : > { %v23411_v5 = vor.u32 %v8584_v27, %v8582_v38 }
 0x56f   : > { %18825 = vmatmul.mubr.bf16.gmra.mrb[12].mxu1 %v7969_v50  ;;  %v23415_v50 = vsel %vm572_vm0, %v8578_v43, %v8582_v38  ;;  %v21168_v38 = vld [vmem:[%s25170_s1 + $0x40] sm:$0xff]   ;;  %v23494_v43 = vsel %vm572_vm0, %v23411_v5, %v8590_v25 }
 0x570   : > { %18828 = vmatprep.mubr.bf16.mxu1 %v7977_v42  ;;  %v8717_v42 = vmul.bf16 %v23339_v24, %v23415_v50  ;;  %v21161_v24 = vld [vmem:[%s25170_s1 + $0x18] sm:$0xff]   ;;  %v8636_v45 = vshll.u32 %v21168_v38, 16  ;;  %v8640_v27 = vshrl.u32 %v21168_v38, 16 }
 0x571   : > { %v8596_v37 = vshll.u32 %v21161_v24, 16  ;;  %v8600_v57 = vshrl.u32 %v21161_v24, 16 }
 0x572   : > { %v8755_v49 = vshrl.u32 %v8717_v42, 16  ;;  %v8758_v48 = vshll.u32 %v8717_v42, 16 }
 0x573   : > { %v8598_v29 = vrot.slane %v8596_v37, 1 }
 0x574   : > { %v23419_v52 = vrot.slane %v8755_v49, 7  ;;  %v21167_v49 = vld [vmem:[%s25170_s1 + $0x38] sm:$0xff]  }
 0x575   : > { %v8602_v11 = vor.u32 %v8600_v57, %v8598_v29  ;;  %v23497_v15 = vsel %vm572_vm0, %v8594_v22, %v8598_v29  ;;  %v8624_v57 = vshrl.u32 %v21165_v55, 16  ;;  %v23513_v22 = vld [vmem:[#allocation2 + $0x78] sm:$0xff]  ;;  %v23515_v29 = vld [vmem:[#allocation2 + $0x70] sm:$0xff] }
 0x576   : > { %v8760_v31 = vor.u32 %v8758_v48, %v23419_v52 }
 0x577   : > { %18829 = vmatmul.mubr.bf16.gmra.mrb[16].mxu1 %v7985_v18  ;;  %v23438_v18 = vld [vmem:[#allocation2 + $0x20] sm:$0xff] }
 0x578   : > { %18832 = vmatprep.mubr.bf16.mxu1 %v7993_v58  ;;  %v8761_v12 = vsel %vm750_vm1, %v8753_v63, %v8760_v31  ;;  %v23440_v58 = vld [vmem:[#allocation2 + $0x38] sm:$0xff]  ;;  %v8311_v8 = vunpack.c.l.bf16 %v23438_v18  ;;  %v8614_v31 = vrot.slane %v8612_v33, 1 }
 0x579   : > { %18860 = vmatprep.mubr.bf16.mxu0 %v8761_v12  ;;  %v8317_v46 = vunpack.c.l.bf16 %v23440_v58  ;;  %v8318_v7 = vunpack.c.h.bf16 %v23440_v58  ;;  %v23633_v58 = vld [vmem:[%s25170_s1 + $0x68] sm:$0xff]  }
 0x57a   : > { %v8618_v20 = vor.u32 %v8616_v26, %v8614_v31 }
 0x57f   : > { %18833 = vmatmul.mubr.bf16.gmra.mrb[20].mxu1 %v8001_v10  ;;  %v8314_v10 = vunpack.c.h.bf16 %v23436_v34  ;;  %v23582_v34 = vld [vmem:[%s25170_s1 + $0x50] sm:$0xff]  }
 0x580   : > { %18836 = vmatprep.mubr.bf16.mxu1 %v8009_v51  ;;  %v8312_v51 = vunpack.c.h.bf16 %v23438_v18 }
 0x587   : > { %18837 = vmatmul.mubr.bf16.gmra.mrb[24].mxu1 %v8017_v30  ;;  %v8316_v30 = vunpack.c.h.bf16 %v23444_v60 }
 0x588   : > { %18840 = vmatprep.mubr.bf16.mxu1 %v8025_v44  ;;  %v8606_v44 = vrot.slane %v8604_v6, 1 }
 0x58a   : > { %v8610_v63 = vor.u32 %v8608_v56, %v8606_v44  ;;  %v23507_v24 = vsel %vm572_vm0, %v8602_v11, %v8606_v44  ;;  %v23520_v44 = vld [vmem:[%s25170_s1 + $0x48] sm:$0xff]  }
 0x58c   : > { %v23527_v25 = vsel %vm572_vm0, %v8610_v63, %v8614_v31 }
 0x58f   : > { %18841 = vmatmul.mubr.bf16.gmra.mrb[28].mxu1 %v8033_v23  ;;  %v8321_v23 = vunpack.c.l.bf16 %v23458_v19 }
 0x62a   : > { %v18814_v48 = vpop.f32.mrb[0].mxu1 }
 0x62b   : > { %v19740_v5 = vadd.f32 %v18814_v48, %v23481_v21  ;;  %v8132_v0 = vpop.f32.mrb[1].mxu1  ;;  %v8622_v48 = vrot.slane %v8620_v39, 1 }
 0x62c   : > { %v19741_v17 = vadd.f32 %v23481_v21, %v8132_v0  ;;  %v18815_v37 = vpop.f32.mrb[2].mxu1  ;;  %v8628_v0 = vshll.u32 %v21167_v49, 16 }
 0x62d   : > { %v8341_v56 = vadd.f32 %v19740_v5, %v8309_v36  ;;  %v19742_v33 = vadd.f32 %v18815_v37, %v23481_v21  ;;  %v8135_v11 = vpop.f32.mrb[3].mxu1  ;;  %v8632_v5 = vshrl.u32 %v21167_v49, 16  ;;  %v8638_v37 = vrot.slane %v8636_v45, 1 }
 0x62e   : > { %v8339_v6 = vadd.f32 %v19741_v17, %v8307_v61  ;;  %v19743_v55 = vadd.f32 %v23481_v21, %v8135_v11  ;;  %v8644_v61 = vshll.u32 %v23520_v44, 16  ;;  %v8626_v63 = vor.u32 %v8624_v57, %v8622_v48 }
 0x62f   : > { %v8342_v12 = vadd.f32 %v19742_v33, %v8310_v59  ;;  %v8373_v17 = vmax.f32 %v8341_v56, 0.0  ;;  %v8630_v4 = vrot.slane %v8628_v0, 1  ;;  %v23537_v59 = vsel %vm572_vm0, %v8618_v20, %v8622_v48  ;;  %v23544_v56 = vld [vmem:[#allocation2 + $0x88] sm:$0xff]  ;;  %v23549_v48 = vld [vmem:[#allocation2 + $0x80] sm:$0xff] }
 0x630   : > { %v8340_v39 = vadd.f32 %v19743_v55, %v8308_v47  ;;  %v8371_v31 = vmax.f32 %v8339_v6, 0.0  ;;  %v8642_v0 = vor.u32 %v8640_v27, %v8638_v37  ;;  %v8646_v20 = vrot.slane %v8644_v61, 1 }
 0x631   : > { %v8374_v11 = vmax.f32 %v8342_v12, 0.0  ;;  %v8634_v45 = vor.u32 %v8632_v5, %v8630_v4 }
 0x632   : > { %v8372_v26 = vmax.f32 %v8340_v39, 0.0  ;;  %v18818_v53 = vpop.f32.mrb[4].mxu1 }
 0x633   : > { %v23540_v49 = vpack.c.bf16 %v8374_v11, %v8373_v17  ;;  %v19744_v3 = vadd.f32 %v18818_v53, %v23481_v21  ;;  %v8148_v47 = vpop.f32.mrb[5].mxu1  ;;  %v23558_v11 = vsel %vm572_vm0, %v8626_v63, %v8630_v4  ;;  %v8648_v4 = vshrl.u32 %v23520_v44, 16 }
 0x634   : > { %v23546_v12 = vpack.c.bf16 %v8372_v26, %v8371_v31  ;;  %v19745_v6 = vadd.f32 %v23481_v21, %v8148_v47  ;;  %v18819_v57 = vpop.f32.mrb[6].mxu1 }
 0x635   : > { %8420 = vst [vmem:[#allocation2 + $0x18] sm:$0xff] %v23540_v49  ;;  %v8345_v55 = vadd.f32 %v19744_v3, %v8313_v35  ;;  %v19746_v39 = vadd.f32 %v18819_v57, %v23481_v21  ;;  %v8151_v17 = vpop.f32.mrb[7].mxu1  ;;  %v8719_v5 = vmul.bf16 %v23497_v15, %v23540_v49  ;;  %v23590_v38 = vor.u32 %v8648_v4, %v8646_v20 }
 0x636   : > { %8419 = vst [vmem:[#allocation2 + $0x10] sm:$0xff] %v23546_v12  ;;  %v8343_v27 = vadd.f32 %v19745_v6, %v8311_v8  ;;  %v19747_v61 = vadd.f32 %v23481_v21, %v8151_v17  ;;  %v8718_v31 = vmul.bf16 %v23494_v43, %v23546_v12  ;;  %v23574_v8 = vsel %vm572_vm0, %v8634_v45, %v8638_v37 }
 0x637   : > { %v8346_v26 = vadd.f32 %v19746_v39, %v8314_v10  ;;  %v8771_v53 = vshrl.u32 %v8719_v5, 16  ;;  %v23577_v6 = vsel %vm572_vm0, %v8642_v0, %v8646_v20  ;;  %v8377_v10 = vmax.f32 %v8345_v55, 0.0  ;;  %v23595_v55 = vld [vmem:[%s25170_s1 + $0x58] sm:$0xff]  }
 0x638   : > { %v8344_v63 = vadd.f32 %v19747_v61, %v8312_v51  ;;  %v8763_v47 = vshrl.u32 %v8718_v31, 16  ;;  %v8774_v44 = vshll.u32 %v8719_v5, 16  ;;  %v8375_v17 = vmax.f32 %v8343_v27, 0.0 }
 0x639   : > { %v8378_v57 = vmax.f32 %v8346_v26, 0.0  ;;  %v23584_v39 = vrot.slane %v8771_v53, 7  ;;  %v8766_v3 = vshll.u32 %v8718_v31, 16  ;;  %v8652_v53 = vshll.u32 %v23582_v34, 16 }
 0x63a   : > { %v8376_v18 = vmax.f32 %v8344_v63, 0.0  ;;  %v18822_v51 = vpop.f32.mrb[8].mxu1  ;;  %v8765_v61 = vrot.slane %v8763_v47, 7  ;;  %v23604_v63 = vld [vmem:[%s25170_s1 + $0x60] sm:$0xff]  }
 0x63b   : > { %v23586_v37 = vpack.c.bf16 %v8378_v57, %v8377_v10  ;;  %v19748_v45 = vadd.f32 %v18822_v51, %v23481_v21  ;;  %v8164_v0 = vpop.f32.mrb[9].mxu1  ;;  %v8776_v35 = vor.u32 %v8774_v44, %v23584_v39  ;;  %v21163_v10 = vld [vmem:[#allocation4 + $0x288] sm:$0xff]  }
 0x63c   : > { %v23597_v5 = vpack.c.bf16 %v8376_v18, %v8375_v17  ;;  %v19749_v27 = vadd.f32 %v23481_v21, %v8164_v0  ;;  %v18823_v26 = vpop.f32.mrb[10].mxu1  ;;  %v8768_v31 = vor.u32 %v8766_v3, %v8765_v61  ;;  %v8656_v3 = vshrl.u32 %v23582_v34, 16 }
 0x63d   : > { %8422 = vst [vmem:[#allocation2 + $0x28] sm:$0xff] %v23586_v37  ;;  %v8349_v20 = vadd.f32 %v19748_v45, %v8317_v46  ;;  %v19750_v4 = vadd.f32 %v18823_v26, %v23481_v21  ;;  %v8167_v47 = vpop.f32.mrb[11].mxu1  ;;  %v8721_v57 = vmul.bf16 %v23527_v25, %v23586_v37  ;;  %v8777_v45 = vsel %vm750_vm1, %v8765_v61, %v8776_v35 }
 0x63e   : > { %8421 = vst [vmem:[#allocation2 + $0x20] sm:$0xff] %v23597_v5  ;;  %v8347_v44 = vadd.f32 %v19749_v27, %v8315_v14  ;;  %v19751_v17 = vadd.f32 %v23481_v21, %v8167_v47  ;;  %v8769_v18 = vsel %vm750_vm1, %v23419_v52, %v8768_v31  ;;  %v8720_v46 = vmul.bf16 %v23507_v24, %v23597_v5 }
 0x63f   : > { %v8350_v51 = vadd.f32 %v19750_v4, %v8318_v7  ;;  %18861 = vmatmul.mubr.bf16.vlgmr.msra.gmra.mrb[32].mxu0 %v8769_v18  ;;  %v8787_v0 = vshrl.u32 %v8721_v57, 16  ;;  %v8660_v26 = vshll.u32 %v23595_v55, 16  ;;  %v8668_v31 = vshll.u32 %v23604_v63, 16 }
 0x640   : > { %v8348_v14 = vadd.f32 %v19751_v17, %v8316_v30  ;;  %18864 = vmatprep.mubr.bf16.mxu0 %v8777_v45  ;;  %18893 = vmatpush3.bf16.msra.mxu0 %v23405_v62  ;;  %v8779_v27 = vshrl.u32 %v8720_v46, 16  ;;  %v8381_v7 = vmax.f32 %v8349_v20, 0.0  ;;  %v8790_v60 = vshll.u32 %v8721_v57, 16  ;;  %v21166_v30 = vld [vmem:[#allocation4 + $0x290] sm:$0xff]  }
 0x641   : > { %v8382_v35 = vmax.f32 %v8350_v51, 0.0  ;;  %18894 = vmatprep.subr.bf16.mxu0 %v21163_v10  ;;  %v23635_v61 = vrot.slane %v8787_v0, 7  ;;  %v8379_v4 = vmax.f32 %v8347_v44, 0.0  ;;  %v8782_v18 = vshll.u32 %v8720_v46, 16  ;;  %v23649_v46 = vld [vmem:[%s25170_s1 + $0x70] sm:$0xff]  }
 0x642   : > { %v8380_v47 = vmax.f32 %v8348_v14, 0.0  ;;  %v18826_v62 = vpop.f32.mrb[12].mxu1  ;;  %v8781_v17 = vrot.slane %v8779_v27, 7  ;;  %v8672_v20 = vshrl.u32 %v23604_v63, 16  ;;  %v8676_v44 = vshll.u32 %v23633_v58, 16 }
 0x643   : > { %v23637_v45 = vpack.c.bf16 %v8382_v35, %v8381_v7  ;;  %v19752_v33 = vadd.f32 %v18826_v62, %v23481_v21  ;;  %v8180_v36 = vpop.f32.mrb[13].mxu1  ;;  %v8792_v42 = vor.u32 %v8790_v60, %v23635_v61  ;;  %v23657_v35 = vrot.slane %v8652_v53, 1 }
 0x644   : > { %v23642_v51 = vpack.c.bf16 %v8380_v47, %v8379_v4  ;;  %v19753_v0 = vadd.f32 %v23481_v21, %v8180_v36  ;;  %v18827_v57 = vpop.f32.mrb[14].mxu1  ;;  %v8784_v52 = vor.u32 %v8782_v18, %v8781_v17  ;;  %18895 = vmatpush3.bf16.msra.mxu0 %v21163_v10  ;;  %v21169_v10 = vld [vmem:[#allocation4 + $0x298] sm:$0xff]   ;;  %v23670_v18 = vrot.slane %v8660_v26, 1 }
 0x645   : > { %8424 = vst [vmem:[#allocation2 + $0x38] sm:$0xff] %v23637_v45  ;;  %v8353_v14 = vadd.f32 %v19752_v33, %v8321_v23  ;;  %v19754_v27 = vadd.f32 %v18827_v57, %v23481_v21  ;;  %v8183_v7 = vpop.f32.mrb[15].mxu1  ;;  %18896 = vmatprep.subr.bf16.mxu0 %v21166_v30  ;;  %v8723_v36 = vmul.bf16 %v23558_v11, %v23637_v45  ;;  %v23703_v34 = vrot.slane %v8676_v44, 1 }
 0x646   : > { %8423 = vst [vmem:[#allocation2 + $0x30] sm:$0xff] %v23642_v51  ;;  %v8351_v60 = vadd.f32 %v19753_v0, %v8319_v2  ;;  %v19755_v4 = vadd.f32 %v23481_v21, %v8183_v7  ;;  %v8785_v23 = vsel %vm750_vm1, %v23584_v39, %v8784_v52  ;;  %v8722_v33 = vmul.bf16 %v23537_v59, %v23642_v51 }
 0x647   : > { %v8354_v47 = vadd.f32 %v19754_v27, %v8322_v32  ;;  %18865 = vmatmul.mubr.bf16.gmra.mrb[36].mxu0 %v8785_v23  ;;  %v8793_v53 = vsel %vm750_vm1, %v8781_v17, %v8792_v42  ;;  %v8803_v62 = vshrl.u32 %v8723_v36, 16  ;;  %v8684_v52 = vshll.u32 %v23649_v46, 16  ;;  %v21172_v42 = vld [vmem:[#allocation4 + $0x2a0] sm:$0xff]  }
 0x648   : > { %v8352_v2 = vadd.f32 %v19755_v4, %v8320_v13  ;;  %18868 = vmatprep.mubr.bf16.mxu0 %v8793_v53  ;;  %v8795_v0 = vshrl.u32 %v8722_v33, 16  ;;  %18897 = vmatpush3.bf16.msra.mxu0 %v21166_v30  ;;  %v8385_v57 = vmax.f32 %v8353_v14, 0.0  ;;  %v8806_v32 = vshll.u32 %v8723_v36, 16 }
 0x649   : > { %v8386_v7 = vmax.f32 %v8354_v47, 0.0  ;;  %v23676_v19 = vrot.slane %v8803_v62, 7  ;;  %18898 = vmatprep.subr.bf16.mxu0 %v21169_v10  ;;  %v8383_v17 = vmax.f32 %v8351_v60, 0.0  ;;  %v8798_v40 = vshll.u32 %v8722_v33, 16 }
 0x64a   : > { %v8384_v26 = vmax.f32 %v8352_v2, 0.0  ;;  %v18830_v27 = vpop.f32.mrb[16].mxu1  ;;  %v8797_v23 = vrot.slane %v8795_v0, 7  ;;  %v23684_v14 = vrot.slane %v8668_v31, 1  ;;  %v8658_v33 = vor.u32 %v8656_v3, %v23657_v35  ;;  %v23695_v2 = vld [vmem:[%s25170_s1 + $0x78] sm:$0xff]  }
 0x64b   : > { %v23678_v13 = vpack.c.bf16 %v8386_v7, %v8385_v57  ;;  %v19756_v30 = vadd.f32 %v18830_v27, %v23481_v21  ;;  %v8196_v4 = vpop.f32.mrb[17].mxu1  ;;  %v8808_v53 = vor.u32 %v8806_v32, %v23676_v19  ;;  %v21175_v7 = vld [vmem:[#allocation4 + $0x2a8] sm:$0xff]   ;;  %v25368_v3 = vunpack.c.l.bf16 %v23466_v41 }
 0x64c   : > { %v23686_v47 = vpack.c.bf16 %v8384_v26, %v8383_v17  ;;  %v19757_v36 = vadd.f32 %v23481_v21, %v8196_v4  ;;  %v18831_v60 = vpop.f32.mrb[18].mxu1  ;;  %v8800_v62 = vor.u32 %v8798_v40, %v8797_v23  ;;  %18899 = vmatpush3.bf16.msra.mxu0 %v21169_v10  ;;  %v25369_v27 = vunpack.c.h.bf16 %v23464_v28 }
 0x64d   : > { %8426 = vst [vmem:[#allocation2 + $0x48] sm:$0xff] %v23678_v13  ;;  %v8357_v31 = vadd.f32 %v19756_v30, %v8325_v54  ;;  %v19758_v0 = vadd.f32 %v18831_v60, %v23481_v21  ;;  %v8199_v57 = vpop.f32.mrb[19].mxu1  ;;  %v8725_v10 = vmul.bf16 %v23577_v6, %v23678_v13  ;;  %18900 = vmatprep.subr.bf16.mxu0 %v21172_v42  ;;  %v8688_v4 = vshrl.u32 %v23649_v46, 16 }
 0x64e   : > { %8425 = vst [vmem:[#allocation2 + $0x40] sm:$0xff] %v23686_v47  ;;  %v8355_v32 = vadd.f32 %v19757_v36, %v25368_v3  ;;  %v19759_v17 = vadd.f32 %v23481_v21, %v8199_v57  ;;  %v8801_v54 = vsel %vm750_vm1, %v23635_v61, %v8800_v62  ;;  %v8724_v26 = vmul.bf16 %v23574_v8, %v23686_v47 }
 0x64f   : > { %v8358_v40 = vadd.f32 %v19758_v0, %v25369_v27  ;;  %18869 = vmatmul.mubr.bf16.gmra.mrb[40].mxu0 %v8801_v54  ;;  %v8809_v44 = vsel %vm750_vm1, %v8797_v23, %v8808_v53  ;;  %v8819_v30 = vshrl.u32 %v8725_v10, 16  ;;  %v25370_v60 = vunpack.c.h.bf16 %v23466_v41  ;;  %v21178_v53 = vld [vmem:[#allocation4 + $0x2b0] sm:$0xff]  }
 0x650   : > { %18872 = vmatprep.mubr.bf16.mxu0 %v8809_v44  ;;  %v8811_v57 = vshrl.u32 %v8724_v26, 16  ;;  %v23721_v61 = vsel %vm572_vm0, %v8658_v33, %v23670_v18  ;;  %18901 = vmatpush3.bf16.msra.mxu0 %v21172_v42  ;;  %v8692_v62 = vshll.u32 %v23695_v2, 16  ;;  %v8389_v28 = vmax.f32 %v8357_v31, 0.0 }
 0x651   : > { %v8356_v36 = vadd.f32 %v19759_v17, %v25370_v60  ;;  %v8390_v0 = vmax.f32 %v8358_v40, 0.0  ;;  %v23724_v3 = vrot.slane %v8819_v30, 7  ;;  %v8822_v23 = vshll.u32 %v8725_v10, 16  ;;  %18902 = vmatprep.subr.bf16.mxu0 %v21175_v7 }
 0x652   : > { %v8387_v54 = vmax.f32 %v8355_v32, 0.0  ;;  %v18834_v41 = vpop.f32.mrb[20].mxu1  ;;  %v8813_v17 = vrot.slane %v8811_v57, 7  ;;  %v8814_v44 = vshll.u32 %v8724_v26, 16  ;;  %v23733_v31 = vsel %vm572_vm0, %v23590_v38, %v23657_v35 }
 0x653   : > { %v8388_v27 = vmax.f32 %v8356_v36, 0.0  ;;  %v23726_v60 = vpack.c.bf16 %v8390_v0, %v8389_v28  ;;  %v19760_v33 = vadd.f32 %v18834_v41, %v23481_v21  ;;  %v8212_v39 = vpop.f32.mrb[21].mxu1  ;;  %v8824_v42 = vor.u32 %v8822_v23, %v23724_v3  ;;  %v21180_v23 = vld [vmem:[#allocation4 + $0x2b8] sm:$0xff]  }
 0x654   : > { %v19761_v32 = vadd.f32 %v23481_v21, %v8212_v39  ;;  %v18835_v40 = vpop.f32.mrb[22].mxu1  ;;  %v8816_v30 = vor.u32 %v8814_v44, %v8813_v17  ;;  %v8674_v26 = vor.u32 %v8672_v20, %v23684_v14  ;;  %18903 = vmatpush3.bf16.msra.mxu0 %v21175_v7  ;;  %v25371_v36 = vunpack.c.l.bf16 %v23476_v1 }
 0x655   : > { %v23735_v10 = vpack.c.bf16 %v8388_v27, %v8387_v54  ;;  %8428 = vst [vmem:[#allocation2 + $0x58] sm:$0xff] %v23726_v60  ;;  %v19762_v28 = vadd.f32 %v18835_v40, %v23481_v21  ;;  %v8215_v38 = vpop.f32.mrb[23].mxu1  ;;  %v8727_v35 = vmul.bf16 %v23721_v61, %v23726_v60  ;;  %v25372_v39 = vshrl.u32 %v23595_v55, 16  ;;  %18904 = vmatprep.subr.bf16.mxu0 %v21178_v53 }
 0x656   : > { %v8361_v57 = vadd.f32 %v19760_v33, %v25371_v36  ;;  %v25373_v63 = vunpack.c.l.bf16 %v23487_v16  ;;  %v19763_v7 = vadd.f32 %v23481_v21, %v8215_v38  ;;  %v8817_v54 = vsel %vm750_vm1, %v23676_v19, %v8816_v30 }
 0x657   : > { %v8666_v0 = vor.u32 %v25372_v39, %v23670_v18  ;;  %8427 = vst [vmem:[#allocation2 + $0x50] sm:$0xff] %v23735_v10  ;;  %v8726_v27 = vmul.bf16 %v23733_v31, %v23735_v10  ;;  %v25374_v41 = vunpack.c.h.bf16 %v23476_v1  ;;  %18873 = vmatmul.mubr.bf16.gmra.mrb[44].mxu0 %v8817_v54  ;;  %v8825_v55 = vsel %vm750_vm1, %v8813_v17, %v8824_v42 }
 0x658   : > { %v8359_v20 = vadd.f32 %v19761_v32, %v25373_v63  ;;  %v8835_v18 = vshrl.u32 %v8727_v35, 16  ;;  %v23763_v33 = vrot.slane %v8684_v52, 1  ;;  %v25375_v32 = vunpack.c.h.bf16 %v23487_v16  ;;  %18876 = vmatprep.mubr.bf16.mxu0 %v8825_v55  ;;  %18905 = vmatpush3.bf16.msra.mxu0 %v21178_v53  ;;  %v23775_v52 = vld [vmem:[#allocation4 + $0x2c0] sm:$0xff]  }
 0x659   : > { %v8362_v44 = vadd.f32 %v19762_v28, %v25374_v41  ;;  %v8827_v36 = vshrl.u32 %v8726_v27, 16  ;;  %v23769_v19 = vsel %vm572_vm0, %v8674_v26, %v23703_v34  ;;  %v23771_v30 = vrot.slane %v8692_v62, 1  ;;  %18906 = vmatprep.subr.bf16.mxu0 %v21180_v23 }
 0x65a   : > { %v8360_v40 = vadd.f32 %v19763_v7, %v25375_v32  ;;  %v8393_v1 = vmax.f32 %v8361_v57, 0.0  ;;  %v23773_v17 = vrot.slane %v8835_v18, 7  ;;  %v8838_v42 = vshll.u32 %v8727_v35, 16  ;;  %v18838_v39 = vpop.f32.mrb[24].mxu1 }
 0x65b   : > { %v8394_v28 = vmax.f32 %v8362_v44, 0.0  ;;  %v8391_v38 = vmax.f32 %v8359_v20, 0.0  ;;  %v8829_v63 = vrot.slane %v8827_v36, 7  ;;  %v8830_v7 = vshll.u32 %v8726_v27, 16  ;;  %v8228_v62 = vpop.f32.mrb[25].mxu1 }
 0x65c   : > { %v8392_v16 = vmax.f32 %v8360_v40, 0.0  ;;  %v19764_v26 = vadd.f32 %v18838_v39, %v23481_v21  ;;  %v8840_v53 = vor.u32 %v8838_v42, %v23773_v17  ;;  %v23783_v57 = vsel %vm572_vm0, %v8666_v0, %v23684_v14  ;;  %v18839_v20 = vpop.f32.mrb[26].mxu1  ;;  %18907 = vmatpush3.bf16.msra.mxu0 %v21180_v23 }
 0x65d   : > { %v23777_v54 = vpack.c.bf16 %v8394_v28, %v8393_v1  ;;  %v19765_v41 = vadd.f32 %v23481_v21, %v8228_v62  ;;  %v8832_v44 = vor.u32 %v8830_v7, %v8829_v63  ;;  %v8690_v27 = vor.u32 %v8688_v4, %v23763_v33  ;;  %v8231_v14 = vpop.f32.mrb[27].mxu1  ;;  %18940 = vmatprep.subr.bf16.mxu0 %v23775_v52 }
 0x65e   : > { %v23785_v35 = vpack.c.bf16 %v8392_v16, %v8391_v38  ;;  %v25376_v55 = vunpack.c.l.bf16 %v23513_v22  ;;  %v19766_v32 = vadd.f32 %v18839_v20, %v23481_v21  ;;  %v8338_v0 = vunpack.c.h.bf16 %v23544_v56 }
 0x65f   : > { %8430 = vst [vmem:[#allocation2 + $0x68] sm:$0xff] %v23777_v54  ;;  %v8729_v40 = vmul.bf16 %v23769_v19, %v23777_v54  ;;  %v25377_v46 = vunpack.c.l.bf16 %v23515_v29  ;;  %v19767_v23 = vadd.f32 %v23481_v21, %v8231_v14  ;;  %v8833_v36 = vsel %vm750_vm1, %v23724_v3, %v8832_v44 }
 0x660   : > { %v8365_v18 = vadd.f32 %v19764_v26, %v25376_v55  ;;  %8429 = vst [vmem:[#allocation2 + $0x60] sm:$0xff] %v23785_v35  ;;  %v8728_v1 = vmul.bf16 %v23783_v57, %v23785_v35  ;;  %v25378_v28 = vunpack.c.h.bf16 %v23513_v22  ;;  %18877 = vmatmul.mubr.bf16.gmra.mrb[48].mxu0 %v8833_v36  ;;  %v8841_v38 = vsel %vm750_vm1, %v8829_v63, %v8840_v53 }
 0x661   : > { %v8363_v4 = vadd.f32 %v19765_v41, %v25377_v46  ;;  %v8851_v16 = vshrl.u32 %v8729_v40, 16  ;;  %v25379_v39 = vshrl.u32 %v23633_v58, 16  ;;  %v25380_v26 = vunpack.c.h.bf16 %v23515_v29  ;;  %18880 = vmatprep.mubr.bf16.mxu0 %v8841_v38 }
 0x662   : > { %v8366_v42 = vadd.f32 %v19766_v32, %v25378_v28  ;;  %v8336_v41 = vunpack.c.h.bf16 %v23549_v48  ;;  %v8843_v3 = vshrl.u32 %v8728_v1, 16  ;;  %v23818_v20 = vsel %vm572_vm0, %v8690_v27, %v23771_v30  ;;  %v18842_v14 = vpop.f32.mrb[28].mxu1 }
 0x663   : > { %v8682_v7 = vor.u32 %v25379_v39, %v23703_v34  ;;  %v8364_v62 = vadd.f32 %v19767_v23, %v25380_v26  ;;  %v8397_v22 = vmax.f32 %v8365_v18, 0.0  ;;  %v8853_v55 = vrot.slane %v8851_v16, 7  ;;  %v8244_v23 = vpop.f32.mrb[29].mxu1 }
 0x664   : > { %v8398_v44 = vmax.f32 %v8366_v42, 0.0  ;;  %v8854_v63 = vshll.u32 %v8729_v40, 16  ;;  %v8395_v53 = vmax.f32 %v8363_v4, 0.0  ;;  %v8845_v58 = vrot.slane %v8843_v3, 7  ;;  %v18843_v40 = vpop.f32.mrb[30].mxu1 }
 0x665   : > { %v8396_v32 = vmax.f32 %v8364_v62, 0.0  ;;  %v8846_v34 = vshll.u32 %v8728_v1, 16  ;;  %v19768_v29 = vadd.f32 %v18842_v14, %v23481_v21  ;;  %v23825_v28 = vsel %vm572_vm0, %v8682_v7, %v23763_v33  ;;  %v8247_v39 = vpop.f32.mrb[31].mxu1 }
 0x666   : > { %v23820_v46 = vpack.c.bf16 %v8398_v44, %v8397_v22  ;;  %v8856_v36 = vor.u32 %v8854_v63, %v8853_v55  ;;  %v19769_v18 = vadd.f32 %v23481_v21, %v8244_v23  ;;  %v8696_v42 = vshrl.u32 %v23695_v2, 16 }
 0x667   : > { %v23827_v27 = vpack.c.bf16 %v8396_v32, %v8395_v53  ;;  %v8848_v4 = vor.u32 %v8846_v34, %v8845_v58  ;;  %v25381_v1 = vunpack.c.l.bf16 %v23544_v56  ;;  %v19770_v16 = vadd.f32 %v18843_v40, %v23481_v21 }
 0x668   : > { %8432 = vst [vmem:[#allocation2 + $0x78] sm:$0xff] %v23820_v46  ;;  %v8731_v33 = vmul.bf16 %v23818_v20, %v23820_v46  ;;  %v25382_v7 = vunpack.c.l.bf16 %v23549_v48  ;;  %v19771_v62 = vadd.f32 %v23481_v21, %v8247_v39  ;;  %v8857_v22 = vsel %vm750_vm1, %v8845_v58, %v8856_v36 }
 0x669   : > { %v8369_v38 = vadd.f32 %v19768_v29, %v25381_v1  ;;  %8431 = vst [vmem:[#allocation2 + $0x70] sm:$0xff] %v23827_v27  ;;  %v8849_v2 = vsel %vm750_vm1, %v23773_v17, %v8848_v4  ;;  %v8730_v56 = vmul.bf16 %v23825_v28, %v23827_v27  ;;  %v8370_v3 = vadd.f32 %v19770_v16, %v8338_v0 }
 0x66a   : > { %v8367_v26 = vadd.f32 %v19769_v18, %v25382_v7  ;;  %18881 = vmatmul.mubr.bf16.gmra.mrb[52].mxu0 %v8849_v2  ;;  %v8867_v44 = vshrl.u32 %v8731_v33, 16  ;;  %v8368_v63 = vadd.f32 %v19771_v62, %v8336_v41  ;;  %v23847_v32 = vor.u32 %v8696_v42, %v23771_v30  ;;  %v21182_v7 = vld [vmem:[#allocation4 + $0x2c8] sm:$0xff]   ;;  %v21185_v62 = vld [vmem:[#allocation4 + $0x2e0] sm:$0xff]  }
 0x66b   : > { %18884 = vmatprep.mubr.bf16.mxu0 %v8857_v22  ;;  %v8859_v53 = vshrl.u32 %v8730_v56, 16  ;;  %v8401_v48 = vmax.f32 %v8369_v38, 0.0  ;;  %v8402_v14 = vmax.f32 %v8370_v3, 0.0  ;;  %v8870_v34 = vshll.u32 %v8731_v33, 16  ;;  %v21401_v33 = vld [vmem:[#allocation2] sm:$0xff]  ;;  %v21186_v2 = vld [vmem:[#allocation4 + $0x2e8] sm:$0xff]  }
 0x66c   : > { %v8869_v21 = vrot.slane %v8867_v44, 7  ;;  %v8399_v29 = vmax.f32 %v8367_v26, 0.0  ;;  %v8400_v17 = vmax.f32 %v8368_v63, 0.0  ;;  %v8862_v18 = vshll.u32 %v8730_v56, 16  ;;  %v21184_v26 = vld [vmem:[#allocation4 + $0x2d8] sm:$0xff]  }
 0x66d   : > { %v8861_v23 = vrot.slane %v8859_v53, 7  ;;  %v8418_v40 = vpack.c.bf16 %v8402_v14, %v8401_v48  ;;  %v21193_v44 = vld [vmem:[%s25170_s1 + $0x98] sm:$0xff]  }
 0x66e   : > { %v8872_v0 = vor.u32 %v8870_v34, %v8869_v21  ;;  %v23849_v4 = vpack.c.bf16 %v8400_v17, %v8399_v29  ;;  %v9549_v14 = vshrl.u32 %v21193_v44, 16  ;;  %v23891_v29 = vld [vmem:[#allocation2 + $0x10] sm:$0xff] }
 0x66f   : > { %v8864_v58 = vor.u32 %v8862_v18, %v8861_v23  ;;  %8434 = vst [vmem:[#allocation2 + $0x88] sm:$0xff] %v8418_v40  ;;  %v9552_v18 = vshll.u32 %v21193_v44, 16  ;;  %v21196_v40 = vld [vmem:[%s25170_s1 + $0xa8] sm:$0xff]  }
 0x670   : > { %8433 = vst [vmem:[#allocation2 + $0x80] sm:$0xff] %v23849_v4  ;;  %v8732_v30 = vmul.bf16 %v23847_v32, %v23849_v4  ;;  %v8873_v36 = vsel %vm750_vm1, %v8861_v23, %v8872_v0  ;;  %v9551_v23 = vrot.slane %v9549_v14, 7  ;;  %v23923_v44 = vld [vmem:[#allocation2 + $0x28] sm:$0xff] }
 0x671   : > { %v8865_v41 = vsel %vm750_vm1, %v8853_v55, %v8864_v58  ;;  %v21183_v55 = vld [vmem:[#allocation4 + $0x2d0] sm:$0xff]  }
 0x672   : > { %18885 = vmatmul.mubr.bf16.gmra.mrb[56].mxu0 %v8865_v41  ;;  %v8875_v42 = vshrl.u32 %v8732_v30, 16  ;;  %v8878_v38 = vshll.u32 %v8732_v30, 16 }
 0x673   : > { %18888 = vmatprep.mubr.bf16.mxu0 %v8873_v36  ;;  %v9554_v36 = vor.u32 %v9552_v18, %v9551_v23  ;;  %v23933_v18 = vld [vmem:[#allocation2 + $0x30] sm:$0xff] }
 0x674   : > { %v8877_v1 = vrot.slane %v8875_v42, 7  ;;  %v9565_v42 = vshrl.u32 %v21196_v40, 16 }
 0x676   : > { %v8880_v16 = vor.u32 %v8878_v38, %v8877_v1 }
 0x678   : > { %v8881_v39 = vsel %vm750_vm1, %v8869_v21, %v8880_v16 }
 0x67a   : > { %18889 = vmatmul.mubr.bf16.gmra.mrb[60].mxu0 %v8881_v39  ;;  %v21197_v39 = vld [vmem:[%s25170_s1 + $0xb0] sm:$0xff]  }
 0x67b   : > { %18908 = vmatprep.mubr.bf16.mxu0 %v21401_v33  ;;  %v9576_v14 = vshll.u32 %v21197_v39, 16 }
 0x682   : > { %18909 = vmatmul.mubr.bf16.vlgmr.msra.gmra.mrb[32].mxu0 %v23546_v12  ;;  %v21188_v12 = vld [vmem:[#allocation4 + $0x2f8] sm:$0xff]  }
 0x683   : > { %18912 = vmatprep.mubr.bf16.mxu0 %v23540_v49  ;;  %18941 = vmatpush3.bf16.msra.mxu0 %v23775_v52  ;;  %v21187_v49 = vld [vmem:[#allocation4 + $0x2f0] sm:$0xff]  }
 0x684   : > { %18942 = vmatprep.subr.bf16.mxu0 %v21182_v7 }
 0x687   : > { %18943 = vmatpush3.bf16.msra.mxu0 %v21182_v7 }
 0x688   : > { %18944 = vmatprep.subr.bf16.mxu0 %v21183_v55 }
 0x68a   : > { %18913 = vmatmul.mubr.bf16.gmra.mrb[36].mxu0 %v23597_v5  ;;  %v21190_v5 = vld [vmem:[%s25170_s1 + $0x88] sm:$0xff]  }
 0x68b   : > { %18916 = vmatprep.mubr.bf16.mxu0 %v23586_v37  ;;  %18945 = vmatpush3.bf16.msra.mxu0 %v21183_v55  ;;  %v21189_v37 = vld [vmem:[%s25170_s1 + $0x80] sm:$0xff]   ;;  %v9533_v52 = vshrl.u32 %v21190_v5, 16  ;;  %v9536_v22 = vshll.u32 %v21190_v5, 16 }
 0x68c   : > { %18946 = vmatprep.subr.bf16.mxu0 %v21184_v26  ;;  %v9529_v56 = vshll.u32 %v21189_v37, 16 }
 0x68d   : > { %v9535_v3 = vrot.slane %v9533_v52, 7 }
 0x68f   : > { %18947 = vmatpush3.bf16.msra.mxu0 %v21184_v26  ;;  %v9538_v48 = vor.u32 %v9536_v22, %v9535_v3  ;;  %v23911_v26 = vld [vmem:[#allocation2 + $0x20] sm:$0xff] }
 0x690   : > { %18948 = vmatprep.subr.bf16.mxu0 %v21185_v62 }
 0x692   : > { %18917 = vmatmul.mubr.bf16.gmra.mrb[40].mxu0 %v23642_v51  ;;  %v9526_v51 = vshrl.u32 %v21189_v37, 16 }
 0x693   : > { %18920 = vmatprep.mubr.bf16.mxu0 %v23637_v45  ;;  %18949 = vmatpush3.bf16.msra.mxu0 %v21185_v62  ;;  %v23872_v45 = vld [vmem:[#allocation4 + $0x300] sm:$0xff]  }
 0x694   : > { %18950 = vmatprep.subr.bf16.mxu0 %v21186_v2 }
 0x697   : > { %18951 = vmatpush3.bf16.msra.mxu0 %v21186_v2  ;;  %v9567_v2 = vrot.slane %v9565_v42, 7 }
 0x698   : > { %18952 = vmatprep.subr.bf16.mxu0 %v21187_v49 }
 0x69a   : > { %18921 = vmatmul.mubr.bf16.gmra.mrb[44].mxu0 %v23686_v47  ;;  %v21191_v47 = vld [vmem:[%s25170_s1 + $0x90] sm:$0xff]  }
 0x69b   : > { %18924 = vmatprep.mubr.bf16.mxu0 %v23678_v13  ;;  %18953 = vmatpush3.bf16.msra.mxu0 %v21187_v49  ;;  %v9528_v13 = vrot.slane %v9526_v51, 7  ;;  %v9541_v63 = vshrl.u32 %v21191_v47, 16  ;;  %v9544_v34 = vshll.u32 %v21191_v47, 16  ;;  %v9568_v49 = vshll.u32 %v21196_v40, 16 }
 0x69c   : > { %18954 = vmatprep.subr.bf16.mxu0 %v21188_v12  ;;  %v9573_v51 = vshrl.u32 %v21197_v39, 16 }
 0x69d   : > { %v23883_v53 = vor.u32 %v9529_v56, %v9528_v13  ;;  %v9543_v21 = vrot.slane %v9541_v63, 7  ;;  %v23894_v17 = vsel %vm750_vm1, %v9528_v13, %v9538_v48  ;;  %v9570_v56 = vor.u32 %v9568_v49, %v9567_v2  ;;  %v21203_v49 = vld [vmem:[%s25170_s1 + $0xd0] sm:$0xff]  }
 0x69e   : > { %v9670_v41 = vmul.bf16 %v23894_v17, %v23891_v29  ;;  %v9575_v48 = vrot.slane %v9573_v51, 7  ;;  %v21195_v51 = vld [vmem:[#allocation4 + $0x308] sm:$0xff]  }
 0x69f   : > { %18955 = vmatpush3.bf16.msra.mxu0 %v21188_v12  ;;  %v9546_v0 = vor.u32 %v9544_v34, %v9543_v21  ;;  %v23914_v62 = vsel %vm750_vm1, %v9543_v21, %v9554_v36  ;;  %v21199_v12 = vld [vmem:[%s25170_s1 + $0xb8] sm:$0xff]   ;;  %v21200_v21 = vld [vmem:[%s25170_s1 + $0xc0] sm:$0xff]  }
 0x6a0   : > { %18988 = vmatprep.subr.bf16.mxu0 %v23872_v45  ;;  %v9710_v55 = vshll.u32 %v9670_v41, 16  ;;  %25384 = vst [vmem:[#allocation24_spill] sm:$0xff] %v23914_v62  ;;  %v9672_v13 = vmul.bf16 %v23914_v62, %v23911_v26  ;;  %v9589_v39 = vshrl.u32 %v21200_v21, 16  ;;  %v21207_v62 = vld [vmem:[#allocation4 + $0x328] sm:$0xff]  }
 0x6a1   : > { %v23904_v1 = vsel %vm750_vm1, %v9535_v3, %v9546_v0  ;;  %v9581_v3 = vshrl.u32 %v21199_v12, 16  ;;  %v9584_v0 = vshll.u32 %v21199_v12, 16 }
 0x6a2   : > { %18925 = vmatmul.mubr.bf16.gmra.mrb[48].mxu0 %v23735_v10  ;;  %v21194_v10 = vld [vmem:[%s25170_s1 + $0xa0] sm:$0xff]   ;;  %25383 = vst [vmem:[#allocation23_spill] sm:$0xff] %v23904_v1  ;;  %v9712_v47 = vrot.slane %v9710_v55, 1 }
 0x6a3   : > { %18928 = vmatprep.mubr.bf16.mxu0 %v23726_v60  ;;  %v9669_v60 = vmul.bf16 %v21401_v33, %v23883_v53  ;;  %v9557_v58 = vshrl.u32 %v21194_v10, 16  ;;  %v9560_v16 = vshll.u32 %v21194_v10, 16  ;;  %v9726_v10 = vshll.u32 %v9672_v13, 16 }
 0x6a5   : > { %v9705_v30 = vshll.u32 %v9669_v60, 16  ;;  %v9559_v38 = vrot.slane %v9557_v58, 7  ;;  %v9703_v33 = vshrl.u32 %v9669_v60, 16  ;;  %v9714_v60 = vshrl.u32 %v9670_v41, 16  ;;  %v21202_v58 = vld [vmem:[%s25170_s1 + $0xc8] sm:$0xff]  }
 0x6a6   : > { %v9597_v55 = vshrl.u32 %v21202_v58, 16 }
 0x6a7   : > { %v9707_v7 = vrot.slane %v9705_v30, 1  ;;  %v9562_v5 = vor.u32 %v9560_v16, %v9559_v38  ;;  %v23936_v40 = vsel %vm750_vm1, %v9559_v38, %v9570_v56  ;;  %v9716_v42 = vor.u32 %v9714_v60, %v9712_v47  ;;  %v23962_v60 = vld [vmem:[#allocation2 + $0x40] sm:$0xff] }
 0x6a8   : > { %25386 = vst [vmem:[#allocation26_spill] sm:$0xff] %v23936_v40  ;;  %v9578_v16 = vor.u32 %v9576_v14, %v9575_v48  ;;  %v9591_v56 = vrot.slane %v9589_v39, 7  ;;  %v9730_v14 = vshrl.u32 %v9672_v13, 16 }
 0x6a9   : > { %v9708_v52 = vor.u32 %v9707_v7, %v9703_v33  ;;  %v23926_v63 = vsel %vm750_vm1, %v9551_v23, %v9562_v5  ;;  %v9583_v23 = vrot.slane %v9581_v3, 7  ;;  %v9728_v33 = vrot.slane %v9726_v10, 1  ;;  %v21205_v10 = vld [vmem:[%s25170_s1 + $0xd8] sm:$0xff]  }
 0x6aa   : > { %18929 = vmatmul.mubr.bf16.gmra.mrb[52].mxu0 %v23785_v35  ;;  %25385 = vst [vmem:[#allocation25_spill] sm:$0xff] %v23926_v63  ;;  %v9673_v36 = vmul.bf16 %v23926_v63, %v23923_v44  ;;  %v23945_v7 = vmul.bf16 %v23936_v40, %v23933_v18  ;;  %v9592_v3 = vshll.u32 %v21200_v21, 16  ;;  %v9600_v21 = vshll.u32 %v21202_v58, 16 }
 0x6ab   : > { %18932 = vmatprep.mubr.bf16.mxu0 %v23777_v54  ;;  %v23901_v54 = vld [vmem:[#allocation2 + $0x18] sm:$0xff]  ;;  %v9713_v34 = vsel %vm572_vm0, %v9708_v52, %v9712_v47  ;;  %v9586_v38 = vor.u32 %v9584_v0, %v9583_v23  ;;  %v9599_v0 = vrot.slane %v9597_v55, 7  ;;  %v9732_v39 = vor.u32 %v9730_v14, %v9728_v33  ;;  %v21206_v55 = vld [vmem:[%s25170_s1 + $0xe0] sm:$0xff]  }
 0x6ac   : > { %v9671_v37 = vmul.bf16 %v23904_v1, %v23901_v54  ;;  %v9734_v5 = vshll.u32 %v9673_v36, 16  ;;  %v23951_v47 = vld [vmem:[#allocation2 + $0x38] sm:$0xff]  ;;  %v9608_v58 = vshll.u32 %v21203_v49, 16 }
 0x6ae   : > { %v9718_v22 = vshll.u32 %v9671_v37, 16  ;;  %v9722_v41 = vshrl.u32 %v9671_v37, 16  ;;  %v23954_v37 = vsel %vm750_vm1, %v9567_v2, %v9578_v16  ;;  %v23965_v2 = vsel %vm750_vm1, %v9575_v48, %v9586_v38  ;;  %v21198_v16 = vld [vmem:[#allocation4 + $0x310] sm:$0xff]  }
 0x6af   : > { %25387 = vst [vmem:[#allocation27_spill] sm:$0xff] %v23954_v37  ;;  %25388 = vst [vmem:[#allocation28_spill] sm:$0xff] %v23965_v2  ;;  %v9675_v13 = vmul.bf16 %v23954_v37, %v23951_v47  ;;  %v9602_v48 = vor.u32 %v9600_v21, %v9599_v0  ;;  %v9616_v21 = vshll.u32 %v21205_v10, 16 }
 0x6b0   : > { %v9720_v30 = vrot.slane %v9718_v22, 1 }
 0x6b1   : > { %v9750_v37 = vshll.u32 %v9675_v13, 16 }
 0x6b2   : > { %18933 = vmatmul.mubr.bf16.gmra.mrb[56].mxu0 %v23827_v27  ;;  %v9724_v12 = vor.u32 %v9722_v41, %v9720_v30  ;;  %v9721_v52 = vsel %vm572_vm0, %v9716_v42, %v9720_v30  ;;  %v9605_v30 = vshrl.u32 %v21203_v49, 16  ;;  %v9736_v42 = vrot.slane %v9734_v5, 1 }
 0x6b3   : > { %18936 = vmatprep.mubr.bf16.mxu0 %v23820_v46  ;;  %v9594_v41 = vor.u32 %v9592_v3, %v9591_v56  ;;  %v23977_v3 = vld [vmem:[#allocation2 + $0x48] sm:$0xff] }
 0x6b4   : > { %v9729_v22 = vsel %vm572_vm0, %v9724_v12, %v9728_v33  ;;  %v9738_v12 = vshrl.u32 %v9673_v36, 16  ;;  %v9607_v38 = vrot.slane %v9605_v30, 7  ;;  %v21201_v33 = vld [vmem:[#allocation4 + $0x318] sm:$0xff]   ;;  %v9737_v36 = vsel %vm572_vm0, %v9732_v39, %v9736_v42 }
 0x6b5   : > { %v23980_v14 = vsel %vm750_vm1, %v9583_v23, %v9594_v41  ;;  %v9746_v30 = vshrl.u32 %v23945_v7, 16  ;;  %v21208_v23 = vld [vmem:[%s25170_s1 + $0xe8] sm:$0xff]   ;;  %v9752_v41 = vrot.slane %v9750_v37, 1  ;;  %v9624_v37 = vshll.u32 %v21206_v55, 16 }
 0x6b6   : > { %v9740_v5 = vor.u32 %v9738_v12, %v9736_v42  ;;  %25389 = vst [vmem:[#allocation29_spill] sm:$0xff] %v23980_v14  ;;  %v23985_v12 = vld [vmem:[#allocation2 + $0x50] sm:$0xff]  ;;  %v23988_v42 = vsel %vm750_vm1, %v9591_v56, %v9602_v48  ;;  %v9610_v39 = vor.u32 %v9608_v58, %v9607_v38  ;;  %v23997_v48 = vld [vmem:[#allocation2 + $0x58] sm:$0xff]  ;;  %v9629_v40 = vshrl.u32 %v21208_v23, 16 }
 0x6b7   : > { %25390 = vst [vmem:[#allocation13_spill] sm:$0xff] %v23988_v42 }
 0x6b8   : > { %v24000_v58 = vsel %vm750_vm1, %v9599_v0, %v9610_v39  ;;  %v9632_v39 = vshll.u32 %v21208_v23, 16 }
 0x6b9   : > { %25391 = vst [vmem:[#allocation14_spill] sm:$0xff] %v24000_v58 }
 0x6ba   : > { %18937 = vmatmul.mubr.bf16.gmra.mrb[60].mxu0 %v23849_v4 }
 0x6bb   : > { %18956 = vmatprep.mubr.bf16.mxu0 %v9713_v34  ;;  %v9742_v34 = vshll.u32 %v23945_v7, 16  ;;  %v9754_v7 = vshrl.u32 %v9675_v13, 16 }
 0x6bd   : > { %v9756_v63 = vor.u32 %v9754_v7, %v9752_v41 }
 0x6c2   : > { %18957 = vmatmul.mubr.bf16.vlgmr.msra.gmra.mrb[32].mxu0 %v9721_v52  ;;  %v9744_v52 = vrot.slane %v9742_v34, 1 }
 0x6c3   : > { %18960 = vmatprep.mubr.bf16.mxu0 %v9729_v22  ;;  %18989 = vmatpush3.bf16.msra.mxu0 %v23872_v45  ;;  %v23971_v45 = vmul.bf16 %v23965_v2, %v23962_v60  ;;  %v9613_v22 = vshrl.u32 %v21205_v10, 16  ;;  %v9621_v2 = vshrl.u32 %v21206_v55, 16  ;;  %v21204_v10 = vld [vmem:[#allocation4 + $0x320] sm:$0xff]  }
 0x6c4   : > { %18990 = vmatprep.subr.bf16.mxu0 %v21195_v51 }
 0x6c5   : > { %v9758_v49 = vshll.u32 %v23971_v45, 16  ;;  %v9615_v34 = vrot.slane %v9613_v22, 7  ;;  %v9677_v22 = vmul.bf16 %v23980_v14, %v23977_v3 }
 0x6c7   : > { %18991 = vmatpush3.bf16.msra.mxu0 %v21195_v51  ;;  %v9745_v51 = vsel %vm572_vm0, %v9740_v5, %v9744_v52  ;;  %v9748_v5 = vor.u32 %v9746_v30, %v9744_v52  ;;  %v9618_v56 = vor.u32 %v9616_v21, %v9615_v34  ;;  %v9766_v14 = vshll.u32 %v9677_v22, 16  ;;  %v21209_v52 = vld [vmem:[%s25170_s1 + $0xf0] sm:$0xff]  }
 0x6c8   : > { %18992 = vmatprep.subr.bf16.mxu0 %v21198_v16  ;;  %v9631_v30 = vrot.slane %v9629_v40, 7  ;;  %v9637_v7 = vshrl.u32 %v21209_v52, 16 }
 0x6c9   : > { %v9753_v13 = vsel %vm572_vm0, %v9748_v5, %v9752_v41  ;;  %v24011_v55 = vsel %vm750_vm1, %v9607_v38, %v9618_v56  ;;  %v21211_v41 = vld [vmem:[%s25170_s1 + $0xf8] sm:$0xff]   ;;  %v9768_v5 = vrot.slane %v9766_v14, 1  ;;  %v24018_v56 = vld [vmem:[#allocation2 + $0x68] sm:$0xff] }
 0x6ca   : > { %18961 = vmatmul.mubr.bf16.gmra.mrb[36].mxu0 %v9737_v36  ;;  %v9678_v36 = vmul.bf16 %v23988_v42, %v23985_v12  ;;  %25392 = vst [vmem:[#allocation15_spill] sm:$0xff] %v24011_v55  ;;  %v9680_v38 = vmul.bf16 %v24011_v55, %v23785_v35  ;;  %v9634_v23 = vor.u32 %v9632_v39, %v9631_v30  ;;  %v21212_v14 = vld [vmem:[#allocation4 + $0x338] sm:$0xff]   ;;  %v9648_v39 = vshll.u32 %v21211_v41, 16 }
 0x6cb   : > { %18964 = vmatprep.mubr.bf16.mxu0 %v9745_v51  ;;  %18993 = vmatpush3.bf16.msra.mxu0 %v21198_v16  ;;  %v9760_v16 = vrot.slane %v9758_v49, 1  ;;  %v9623_v51 = vrot.slane %v9621_v2, 7  ;;  %v9762_v49 = vshrl.u32 %v23971_v45, 16  ;;  %v9679_v2 = vmul.bf16 %v24000_v58, %v23997_v48 }
 0x6cc   : > { %18994 = vmatprep.subr.bf16.mxu0 %v21201_v33  ;;  %v9774_v0 = vshll.u32 %v9678_v36, 16  ;;  %v9790_v55 = vshll.u32 %v9680_v38, 16 }
 0x6cd   : > { %v9626_v21 = vor.u32 %v9624_v37, %v9623_v51  ;;  %v9764_v45 = vor.u32 %v9762_v49, %v9760_v16  ;;  %v9782_v58 = vshll.u32 %v9679_v2, 16 }
 0x6ce   : > { %v9776_v42 = vrot.slane %v9774_v0, 1 }
 0x6cf   : > { %18995 = vmatpush3.bf16.msra.mxu0 %v21201_v33  ;;  %v9761_v33 = vsel %vm572_vm0, %v9756_v63, %v9760_v16  ;;  %v21210_v63 = vld [vmem:[#allocation4 + $0x330] sm:$0xff]   ;;  %v24021_v40 = vsel %vm750_vm1, %v9615_v34, %v9626_v21  ;;  %v9769_v16 = vsel %vm572_vm0, %v9764_v45, %v9768_v5  ;;  %v9784_v0 = vrot.slane %v9782_v58, 1 }
 0x6d0   : > { %18996 = vmatprep.subr.bf16.mxu0 %v21204_v10  ;;  %25393 = vst [vmem:[#allocation16_spill] sm:$0xff] %v24021_v40  ;;  %v9681_v1 = vmul.bf16 %v24021_v40, %v24018_v56  ;;  %v9778_v34 = vshrl.u32 %v9678_v36, 16 }
 0x6d2   : > { %18965 = vmatmul.mubr.bf16.gmra.mrb[40].mxu0 %v9753_v13  ;;  %v9770_v13 = vshrl.u32 %v9677_v22, 16  ;;  %v9640_v22 = vshll.u32 %v21209_v52, 16  ;;  %v24032_v52 = vld [vmem:[#allocation4 + $0x340] sm:$0xff]   ;;  %v9780_v45 = vor.u32 %v9778_v34, %v9776_v42 }
 0x6d3   : > { %18968 = vmatprep.mubr.bf16.mxu0 %v9761_v33  ;;  %18997 = vmatpush3.bf16.msra.mxu0 %v21204_v10  ;;  %v9645_v10 = vshrl.u32 %v21211_v41, 16  ;;  %v9639_v33 = vrot.slane %v9637_v7, 7 }
 0x6d4   : > { %18998 = vmatprep.subr.bf16.mxu0 %v21207_v62  ;;  %v9772_v37 = vor.u32 %v9770_v13, %v9768_v5  ;;  %v9786_v5 = vshrl.u32 %v9679_v2, 16  ;;  %v9792_v13 = vrot.slane %v9790_v55, 1 }
 0x6d5   : > { %v24030_v21 = vrot.slane %v9645_v10, 7  ;;  %v9642_v7 = vor.u32 %v9640_v22, %v9639_v33 }
 0x6d6   : > { %v9777_v49 = vsel %vm572_vm0, %v9772_v37, %v9776_v42  ;;  %v9788_v58 = vor.u32 %v9786_v5, %v9784_v0  ;;  %v9798_v37 = vshll.u32 %v9681_v1, 16 }
 0x6d7   : > { %18999 = vmatpush3.bf16.msra.mxu0 %v21207_v62  ;;  %v24028_v62 = vsel %vm750_vm1, %v9623_v51, %v9634_v23  ;;  %v9650_v36 = vor.u32 %v9648_v39, %v24030_v21  ;;  %v9785_v51 = vsel %vm572_vm0, %v9780_v45, %v9784_v0  ;;  %v24040_v2 = vsel %vm750_vm1, %v9631_v30, %v9642_v7 }
 0x6d8   : > { %19000 = vmatprep.subr.bf16.mxu0 %v21210_v63  ;;  %25394 = vst [vmem:[#allocation17_spill] sm:$0xff] %v24028_v62  ;;  %25395 = vst [vmem:[#allocation18_spill] sm:$0xff] %v24040_v2  ;;  %v9793_v42 = vsel %vm572_vm0, %v9788_v58, %v9792_v13  ;;  %v9800_v41 = vrot.slane %v9798_v37, 1  ;;  %v9802_v23 = vshrl.u32 %v9681_v1, 16  ;;  %v9683_v10 = vmul.bf16 %v24040_v2, %v23820_v46 }
 0x6d9   : > { %v24044_v55 = vsel %vm750_vm1, %v9639_v33, %v9650_v36  ;;  %v9412_v33 = vld [vmem:[#allocation2 + $0x88] sm:$0x1]  ;;  %v10094_v1 = vmul.bf16 %v23891_v29, %v23415_v50 }
 0x6da   : > { %18969 = vmatmul.mubr.bf16.gmra.mrb[44].mxu0 %v9769_v16  ;;  %v9682_v16 = vmul.bf16 %v24028_v62, %v23827_v27  ;;  %25396 = vst [vmem:[#allocation19_spill] sm:$0xff] %v24044_v55  ;;  %v9804_v22 = vor.u32 %v9802_v23, %v9800_v41  ;;  %v9684_v30 = vmul.bf16 %v24044_v55, %v23849_v4  ;;  %v9814_v34 = vshll.u32 %v9683_v10, 16 }
 0x6db   : > { %18972 = vmatprep.mubr.bf16.mxu0 %v9777_v49  ;;  %19001 = vmatpush3.bf16.msra.mxu0 %v21210_v63  ;;  %v9685_v36 = vmul.bf16 %v24030_v21, %v9412_v33 }
 0x6dc   : > { %19002 = vmatprep.subr.bf16.mxu0 %v21212_v14  ;;  %v9806_v63 = vshll.u32 %v9682_v16, 16  ;;  %v9822_v45 = vshll.u32 %v9684_v30, 16  ;;  %v9810_v7 = vshrl.u32 %v9682_v16, 16  ;;  %v9816_v58 = vrot.slane %v9814_v34, 1 }
 0x6de   : > { %v9808_v49 = vrot.slane %v9806_v63, 1 }
 0x6df   : > { %19003 = vmatpush3.bf16.msra.mxu0 %v21212_v14  ;;  %v9794_v14 = vshrl.u32 %v9680_v38, 16  ;;  %v10091_v38 = vld [vmem:[#allocation2 + $0x8] sm:$0x80] }
 0x6e0   : > { %19036 = vmatprep.subr.bf16.mxu0 %v24032_v52  ;;  %v9809_v5 = vsel %vm572_vm0, %v9804_v22, %v9808_v49  ;;  %v9812_v37 = vor.u32 %v9810_v7, %v9808_v49  ;;  %v10095_v22 = vmul.bf16 %v23901_v54, %v23494_v43  ;;  %v10096_v49 = vmul.bf16 %v23911_v26, %v23497_v15 }
 0x6e1   : > { %v9796_v0 = vor.u32 %v9794_v14, %v9792_v13  ;;  %v9824_v13 = vrot.slane %v9822_v45, 1  ;;  %v9830_v14 = vshll.u32 %v9685_v36, 16 }
 0x6e2   : > { %18973 = vmatmul.mubr.bf16.gmra.mrb[48].mxu0 %v9785_v51  ;;  %v9818_v51 = vshrl.u32 %v9683_v10, 16  ;;  %v9817_v23 = vsel %vm572_vm0, %v9812_v37, %v9816_v58  ;;  %v10134_v10 = vshll.u32 %v10094_v1, 16  ;;  %v10139_v45 = vshrl.u32 %v10095_v22, 16 }
 0x6e3   : > { %18976 = vmatprep.mubr.bf16.mxu0 %v9793_v42  ;;  %v9801_v39 = vsel %vm572_vm0, %v9796_v0, %v9800_v41  ;;  %v10093_v42 = vmul.bf16 %v10091_v38, %v23408_v9  ;;  %v10131_v41 = vshrl.u32 %v10094_v1, 16  ;;  %v10147_v38 = vshrl.u32 %v10096_v49, 16 }
 0x6e4   : > { %v9820_v63 = vor.u32 %v9818_v51, %v9816_v58  ;;  %v10141_v36 = vrot.slane %v10139_v45, 7  ;;  %v10097_v51 = vmul.bf16 %v23923_v44, %v23507_v24  ;;  %v10098_v1 = vmul.bf16 %v23933_v18, %v23527_v25 }
 0x6e5   : > { %v10127_v0 = vshrl.u32 %v10093_v42, 16  ;;  %v10133_v34 = vrot.slane %v10131_v41, 7  ;;  %v10149_v41 = vrot.slane %v10147_v38, 7  ;;  %v21215_v38 = vld [vmem:[#allocation4 + $0x350] sm:$0xff]  }
 0x6e6   : > { %v9825_v16 = vsel %vm572_vm0, %v9820_v63, %v9824_v13  ;;  %v10150_v63 = vshll.u32 %v10096_v49, 16  ;;  %v10166_v49 = vshll.u32 %v10098_v1, 16 }
 0x6e7   : > { %v10129_v33 = vrot.slane %v10127_v0, 7  ;;  %v10136_v7 = vor.u32 %v10134_v10, %v10133_v34  ;;  %v21214_v0 = vld [vmem:[#allocation4 + $0x348] sm:$0xff]  }
 0x6e9   : > { %v10137_v42 = vsel %vm750_vm1, %v10129_v33, %v10136_v7  ;;  %v10100_v7 = vmul.bf16 %v23962_v60, %v23558_v11 }
 0x6ea   : > { %18977 = vmatmul.mubr.bf16.gmra.mrb[52].mxu0 %v9801_v39  ;;  %v9826_v39 = vshrl.u32 %v9684_v30, 16  ;;  %v10142_v30 = vshll.u32 %v10095_v22, 16  ;;  %v10158_v22 = vshll.u32 %v10097_v51, 16 }
 0x6eb   : > { %18980 = vmatprep.mubr.bf16.mxu0 %v9809_v5  ;;  %v9832_v5 = vrot.slane %v9830_v14, 1  ;;  %v10155_v14 = vshrl.u32 %v10097_v51, 16 }
 0x6ec   : > { %v9828_v58 = vor.u32 %v9826_v39, %v9824_v13  ;;  %v10163_v13 = vshrl.u32 %v10098_v1, 16  ;;  %v10102_v1 = vmul.bf16 %v23985_v12, %v23577_v6 }
 0x6ed   : > { %v10157_v39 = vrot.slane %v10155_v14, 7 }
 0x6ee   : > { %v9833_v37 = vsel %vm572_vm0, %v9828_v58, %v9832_v5  ;;  %v10099_v5 = vmul.bf16 %v23951_v47, %v23537_v59  ;;  %v10165_v33 = vrot.slane %v10163_v13, 7  ;;  %v21217_v13 = vld [vmem:[#allocation4 + $0x360] sm:$0xff]  }
 0x6ef   : > { %v10160_v58 = vor.u32 %v10158_v22, %v10157_v39  ;;  %v21218_v22 = vld [vmem:[#allocation4 + $0x368] sm:$0xff]  }
 0x6f0   : > { %v10174_v14 = vshll.u32 %v10099_v5, 16 }
 0x6f2   : > { %18981 = vmatmul.mubr.bf16.gmra.mrb[56].mxu0 %v9817_v23  ;;  %v10144_v23 = vor.u32 %v10142_v30, %v10141_v36  ;;  %v21216_v30 = vld [vmem:[#allocation4 + $0x358] sm:$0xff]  }
 0x6f3   : > { %18984 = vmatprep.mubr.bf16.mxu0 %v9825_v16  ;;  %v10152_v16 = vor.u32 %v10150_v63, %v10149_v41 }
 0x6f4   : > { %v10145_v10 = vsel %vm750_vm1, %v10133_v34, %v10144_v23  ;;  %v10171_v34 = vshrl.u32 %v10099_v5, 16  ;;  %v10101_v23 = vmul.bf16 %v23977_v3, %v23574_v8 }
 0x6f5   : > { %v10153_v45 = vsel %vm750_vm1, %v10141_v36, %v10152_v16  ;;  %v10161_v36 = vsel %vm750_vm1, %v10149_v41, %v10160_v58  ;;  %v10182_v16 = vshll.u32 %v10100_v7, 16  ;;  %v10103_v58 = vmul.bf16 %v23997_v48, %v23733_v31 }
 0x6f6   : > { %v10173_v63 = vrot.slane %v10171_v34, 7  ;;  %v10190_v34 = vshll.u32 %v10101_v23, 16 }
 0x6fa   : > { %18985 = vmatmul.mubr.bf16.gmra.mrb[60].mxu0 %v9833_v37  ;;  %v10168_v37 = vor.u32 %v10166_v49, %v10165_v33 }
 0x6fb   : > { %19004 = vmatprep.mubr.bf16.mxu0 %v10137_v42  ;;  %v10179_v42 = vshrl.u32 %v10100_v7, 16  ;;  %v10104_v7 = vmul.bf16 %v23721_v61, %v23785_v35 }
 0x6fd   : > { %v10181_v51 = vrot.slane %v10179_v42, 7  ;;  %v21219_v42 = vld [vmem:[#allocation4 + $0x370] sm:$0xff]  }
 0x6ff   : > { %v10184_v41 = vor.u32 %v10182_v16, %v10181_v51 }
 0x701   : > { %v10185_v5 = vsel %vm750_vm1, %v10173_v63, %v10184_v41  ;;  %v21221_v41 = vld [vmem:[#allocation4 + $0x380] sm:$0xff]  }
 0x702   : > { %19005 = vmatmul.mubr.bf16.vlgmr.msra.gmra.mrb[32].mxu0 %v10145_v10  ;;  %v10187_v10 = vshrl.u32 %v10101_v23, 16 }
 0x703   : > { %19008 = vmatprep.mubr.bf16.mxu0 %v10153_v45  ;;  %19037 = vmatpush3.bf16.msra.mxu0 %v24032_v52  ;;  %v10169_v52 = vsel %vm750_vm1, %v10157_v39, %v10168_v37  ;;  %v10195_v45 = vshrl.u32 %v10102_v1, 16  ;;  %v10198_v37 = vshll.u32 %v10102_v1, 16  ;;  %v10106_v1 = vmul.bf16 %v23769_v19, %v23827_v27 }
 0x704   : > { %19038 = vmatprep.subr.bf16.mxu0 %v21214_v0  ;;  %v10189_v39 = vrot.slane %v10187_v10, 7  ;;  %v10214_v10 = vshll.u32 %v10104_v7, 16 }
 0x707   : > { %19039 = vmatpush3.bf16.msra.mxu0 %v21214_v0  ;;  %v10176_v0 = vor.u32 %v10174_v14, %v10173_v63  ;;  %v21220_v14 = vld [vmem:[#allocation4 + $0x378] sm:$0xff]  }
 0x708   : > { %19040 = vmatprep.subr.bf16.mxu0 %v21215_v38 }
 0x709   : > { %v10177_v49 = vsel %vm750_vm1, %v10165_v33, %v10176_v0  ;;  %v10105_v0 = vmul.bf16 %v24018_v56, %v23783_v57 }
 0x70a   : > { %19009 = vmatmul.mubr.bf16.gmra.mrb[36].mxu0 %v10161_v36  ;;  %v10203_v36 = vshrl.u32 %v10103_v58, 16 }
 0x70b   : > { %19012 = vmatprep.mubr.bf16.mxu0 %v10169_v52  ;;  %19041 = vmatpush3.bf16.msra.mxu0 %v21215_v38  ;;  %v10197_v38 = vrot.slane %v10195_v45, 7  ;;  %v10211_v52 = vshrl.u32 %v10104_v7, 16  ;;  %v10108_v7 = vmul.bf16 %v23818_v20, %v23849_v4 }
 0x70c   : > { %19042 = vmatprep.subr.bf16.mxu0 %v21216_v30  ;;  %v10205_v63 = vrot.slane %v10203_v36, 7 }
 0x70d   : > { %v10200_v33 = vor.u32 %v10198_v37, %v10197_v38  ;;  %v10213_v23 = vrot.slane %v10211_v52, 7 }
 0x70f   : > { %19043 = vmatpush3.bf16.msra.mxu0 %v21216_v30  ;;  %v10192_v30 = vor.u32 %v10190_v34, %v10189_v39  ;;  %v10201_v35 = vsel %vm750_vm1, %v10189_v39, %v10200_v33  ;;  %v10107_v39 = vmul.bf16 %v23825_v28, %v23820_v46 }
 0x710   : > { %19044 = vmatprep.subr.bf16.mxu0 %v21217_v13 }
 0x711   : > { %v10193_v16 = vsel %vm750_vm1, %v10181_v51, %v10192_v30  ;;  %v10216_v51 = vor.u32 %v10214_v10, %v10213_v23  ;;  %v10230_v30 = vshll.u32 %v10106_v1, 16  ;;  %v10235_v33 = vshrl.u32 %v10107_v39, 16 }
 0x712   : > { %19013 = vmatmul.mubr.bf16.gmra.mrb[40].mxu0 %v10177_v49  ;;  %v10227_v49 = vshrl.u32 %v10106_v1, 16 }
 0x713   : > { %19016 = vmatprep.mubr.bf16.mxu0 %v10185_v5  ;;  %19045 = vmatpush3.bf16.msra.mxu0 %v21217_v13  ;;  %v10206_v13 = vshll.u32 %v10103_v58, 16  ;;  %v10217_v37 = vsel %vm750_vm1, %v10205_v63, %v10216_v51 }
 0x714   : > { %19046 = vmatprep.subr.bf16.mxu0 %v21218_v22  ;;  %v10229_v58 = vrot.slane %v10227_v49, 7 }
 0x715   : > { %v10208_v45 = vor.u32 %v10206_v13, %v10205_v63 }
 0x716   : > { %v10232_v52 = vor.u32 %v10230_v30, %v10229_v58 }
 0x717   : > { %19047 = vmatpush3.bf16.msra.mxu0 %v21218_v22  ;;  %v10219_v22 = vshrl.u32 %v10105_v0, 16  ;;  %v10209_v5 = vsel %vm750_vm1, %v10197_v38, %v10208_v45  ;;  %v10238_v45 = vshll.u32 %v10107_v39, 16  ;;  %v21223_v39 = vld [vmem:[#allocation4 + $0x390] sm:$0xff]  }
 0x718   : > { %19048 = vmatprep.subr.bf16.mxu0 %v21219_v42 }
 0x719   : > { %v10221_v34 = vrot.slane %v10219_v22, 7 }
 0x71a   : > { %19017 = vmatmul.mubr.bf16.gmra.mrb[44].mxu0 %v10193_v16  ;;  %v24099_v16 = vld [vmem:[#allocation2 + $0x88] sm:$0xff] }
 0x71b   : > { %19020 = vmatprep.mubr.bf16.mxu0 %v10201_v35  ;;  %19049 = vmatpush3.bf16.msra.mxu0 %v21219_v42  ;;  %v10222_v42 = vshll.u32 %v10105_v0, 16  ;;  %v10237_v35 = vrot.slane %v10235_v33, 7  ;;  %v10109_v13 = vmul.bf16 %v24099_v16, %v23847_v32  ;;  %v10233_v63 = vsel %vm750_vm1, %v10221_v34, %v10232_v52  ;;  %v21228_v33 = vld [vmem:[#allocation4 + $0x3b8] sm:$0xff]   ;;  %v21229_v52 = vld [vmem:[#allocation4 + $0x3c0] sm:$0xff]  }
 0x71c   : > { %19050 = vmatprep.subr.bf16.mxu0 %v21220_v14  ;;  %v10246_v0 = vshll.u32 %v10108_v7, 16 }
 0x71d   : > { %v10224_v36 = vor.u32 %v10222_v42, %v10221_v34  ;;  %v10240_v1 = vor.u32 %v10238_v45, %v10237_v35  ;;  %v10251_v22 = vshrl.u32 %v10109_v13, 16  ;;  %v21222_v34 = vld [vmem:[#allocation4 + $0x388] sm:$0xff]  }
 0x71f   : > { %19051 = vmatpush3.bf16.msra.mxu0 %v21220_v14  ;;  %v10243_v14 = vshrl.u32 %v10108_v7, 16  ;;  %v10225_v38 = vsel %vm750_vm1, %v10213_v23, %v10224_v36  ;;  %v10241_v49 = vsel %vm750_vm1, %v10229_v58, %v10240_v1  ;;  %v21224_v58 = vld [vmem:[#allocation4 + $0x398] sm:$0xff]   ;;  %v21225_v7 = vld [vmem:[#allocation4 + $0x3a0] sm:$0xff]   ;;  %v21226_v36 = vld [vmem:[#allocation4 + $0x3a8] sm:$0xff]  }
 0x720   : > { %19084 = vmatprep.subr.bf16.mxu0 %v21221_v41 }
 0x721   : > { %v10245_v10 = vrot.slane %v10243_v14, 7  ;;  %v21402_v14 = vld [vmem:[#allocation2 + $0x60] sm:$0xff] }
 0x722   : > { %19021 = vmatmul.mubr.bf16.gmra.mrb[48].mxu0 %v10209_v5  ;;  %v10253_v5 = vrot.slane %v10251_v22, 7 }
 0x723   : > { %19024 = vmatprep.mubr.bf16.mxu0 %v10217_v37  ;;  %v10248_v51 = vor.u32 %v10246_v0, %v10245_v10  ;;  %v10254_v37 = vshll.u32 %v10109_v13, 16  ;;  %v10790_v13 = vmul.bf16 %v23894_v17, %v23901_v54 }
 0x725   : > { %v10249_v23 = vsel %vm750_vm1, %v10237_v35, %v10248_v51  ;;  %v10256_v42 = vor.u32 %v10254_v37, %v10253_v5  ;;  %v10830_v1 = vshll.u32 %v10790_v13, 16 }
 0x727   : > { %v10257_v30 = vsel %vm750_vm1, %v10245_v10, %v10256_v42  ;;  %v25397_v10 = vld [vmem:[#allocation23_spill] sm:$0xff] }
 0x728   : > { %v10791_v45 = vmul.bf16 %v25397_v10, %v23911_v26 }
 0x72a   : > { %19025 = vmatmul.mubr.bf16.gmra.mrb[52].mxu0 %v10225_v38  ;;  %v10789_v38 = vmul.bf16 %v23883_v53, %v23891_v29  ;;  %v10838_v51 = vshll.u32 %v10791_v45, 16 }
 0x72b   : > { %19028 = vmatprep.mubr.bf16.mxu0 %v10233_v63 }
 0x72c   : > { %v10825_v35 = vshll.u32 %v10789_v38, 16  ;;  %v10823_v0 = vshrl.u32 %v10789_v38, 16  ;;  %v10840_v5 = vrot.slane %v10838_v51, 1  ;;  %v25402_v51 = vld [vmem:[#allocation28_spill] sm:$0xff] }
 0x72e   : > { %v10827_v63 = vrot.slane %v10825_v35, 1 }
 0x730   : > { %v10828_v22 = vor.u32 %v10827_v63, %v10823_v0 }
 0x732   : > { %19029 = vmatmul.mubr.bf16.gmra.mrb[56].mxu0 %v10241_v49  ;;  %v10832_v49 = vrot.slane %v10830_v1, 1 }
 0x733   : > { %19032 = vmatprep.mubr.bf16.mxu0 %v10249_v23 }
 0x73a   : > { %19033 = vmatmul.mubr.bf16.gmra.mrb[60].mxu0 %v10257_v30 }
 0x73b   : > { %19052 = vmatprep.mubr.bf16.mxu0 %v23891_v29  ;;  %v25398_v29 = vld [vmem:[#allocation24_spill] sm:$0xff] }
 0x742   : > { %19053 = vmatmul.mubr.bf16.vlgmr.msra.gmra.mrb[32].mxu0 %v23901_v54  ;;  %v10833_v54 = vsel %vm572_vm0, %v10828_v22, %v10832_v49 }
 0x743   : > { %19056 = vmatprep.mubr.bf16.mxu0 %v23911_v26  ;;  %19085 = vmatpush3.bf16.msra.mxu0 %v21221_v41  ;;  %v21227_v41 = vld [vmem:[#allocation4 + $0x3b0] sm:$0xff]   ;;  %v10842_v26 = vshrl.u32 %v10791_v45, 16 }
 0x744   : > { %19086 = vmatprep.subr.bf16.mxu0 %v21222_v34 }
 0x745   : > { %v10844_v42 = vor.u32 %v10842_v26, %v10840_v5 }
 0x747   : > { %19087 = vmatpush3.bf16.msra.mxu0 %v21222_v34 }
 0x748   : > { %19088 = vmatprep.subr.bf16.mxu0 %v21223_v39 }
 0x74a   : > { %19057 = vmatmul.mubr.bf16.gmra.mrb[36].mxu0 %v23923_v44 }
 0x74b   : > { %19060 = vmatprep.mubr.bf16.mxu0 %v23933_v18  ;;  %19089 = vmatpush3.bf16.msra.mxu0 %v21223_v39 }
 0x74c   : > { %19090 = vmatprep.subr.bf16.mxu0 %v21224_v58 }
 0x74f   : > { %19091 = vmatpush3.bf16.msra.mxu0 %v21224_v58  ;;  %v21230_v58 = vld [vmem:[#allocation4 + $0x3c8] sm:$0xff]  }
 0x750   : > { %19092 = vmatprep.subr.bf16.mxu0 %v21225_v7 }
 0x752   : > { %19061 = vmatmul.mubr.bf16.gmra.mrb[40].mxu0 %v23951_v47 }
 0x753   : > { %19064 = vmatprep.mubr.bf16.mxu0 %v23962_v60  ;;  %19093 = vmatpush3.bf16.msra.mxu0 %v21225_v7  ;;  %v25400_v7 = vld [vmem:[#allocation26_spill] sm:$0xff] }
 0x754   : > { %19094 = vmatprep.subr.bf16.mxu0 %v21226_v36 }
 0x757   : > { %19095 = vmatpush3.bf16.msra.mxu0 %v21226_v36 }
 0x758   : > { %19096 = vmatprep.subr.bf16.mxu0 %v21227_v41 }
 0x75a   : > { %19065 = vmatmul.mubr.bf16.gmra.mrb[44].mxu0 %v23977_v3 }
 0x75b   : > { %19068 = vmatprep.mubr.bf16.mxu0 %v23985_v12  ;;  %19097 = vmatpush3.bf16.msra.mxu0 %v21227_v41 }
 0x75c   : > { %19098 = vmatprep.subr.bf16.mxu0 %v21228_v33 }
 0x75f   : > { %19099 = vmatpush3.bf16.msra.mxu0 %v21228_v33 }
 0x760   : > { %19132 = vmatprep.subr.bf16.mxu0 %v21229_v52 }
 0x762   : > { %19069 = vmatmul.mubr.bf16.gmra.mrb[48].mxu0 %v23997_v48 }
 0x763   : > { %19072 = vmatprep.mubr.bf16.mxu0 %v21402_v14 }
 0x76a   : > { %19073 = vmatmul.mubr.bf16.gmra.mrb[52].mxu0 %v24018_v56 }
 0x76b   : > { %19076 = vmatprep.mubr.bf16.mxu0 %v23827_v27  ;;  %v10792_v27 = vmul.bf16 %v25398_v29, %v23923_v44  ;;  %v10794_v44 = vmul.bf16 %v25400_v7, %v23951_v47 }
 0x76d   : > { %v10846_v37 = vshll.u32 %v10792_v27, 16  ;;  %v10862_v35 = vshll.u32 %v10794_v44, 16  ;;  %v10850_v63 = vshrl.u32 %v10792_v27, 16 }
 0x76f   : > { %v10848_v39 = vrot.slane %v10846_v37, 1  ;;  %v10864_v22 = vrot.slane %v10862_v35, 1  ;;  %v21234_v35 = vld [vmem:[#allocation4 + $0x3e8] sm:$0xff]  }
 0x771   : > { %v10849_v41 = vsel %vm572_vm0, %v10844_v42, %v10848_v39  ;;  %v10852_v1 = vor.u32 %v10850_v63, %v10848_v39  ;;  %v21233_v42 = vld [vmem:[#allocation4 + $0x3e0] sm:$0xff]  }
 0x772   : > { %19077 = vmatmul.mubr.bf16.gmra.mrb[56].mxu0 %v23820_v46  ;;  %v25399_v46 = vld [vmem:[#allocation25_spill] sm:$0xff] }
 0x773   : > { %19080 = vmatprep.mubr.bf16.mxu0 %v23849_v4  ;;  %v10793_v23 = vmul.bf16 %v25399_v46, %v23933_v18  ;;  %v10834_v4 = vshrl.u32 %v10790_v13, 16  ;;  %v25401_v18 = vld [vmem:[#allocation27_spill] sm:$0xff] }
 0x774   : > { %v10795_v14 = vmul.bf16 %v25401_v18, %v23962_v60  ;;  %v21231_v13 = vld [vmem:[#allocation4 + $0x3d0] sm:$0xff]  }
 0x775   : > { %v10854_v30 = vshll.u32 %v10793_v23, 16  ;;  %v10836_v34 = vor.u32 %v10834_v4, %v10832_v49  ;;  %v10858_v38 = vshrl.u32 %v10793_v23, 16  ;;  %v10796_v49 = vmul.bf16 %v25402_v51, %v23977_v3  ;;  %v25403_v23 = vld [vmem:[#allocation29_spill] sm:$0xff] }
 0x776   : > { %v10870_v0 = vshll.u32 %v10795_v14, 16  ;;  %v10797_v37 = vmul.bf16 %v25403_v23, %v23985_v12  ;;  %v10874_v27 = vshrl.u32 %v10795_v14, 16 }
 0x777   : > { %v10841_v36 = vsel %vm572_vm0, %v10836_v34, %v10840_v5  ;;  %v10856_v33 = vrot.slane %v10854_v30, 1  ;;  %v10878_v4 = vshll.u32 %v10796_v49, 16  ;;  %v10866_v30 = vshrl.u32 %v10794_v44, 16 }
 0x778   : > { %v10872_v26 = vrot.slane %v10870_v0, 1  ;;  %v10886_v39 = vshll.u32 %v10797_v37, 16  ;;  %v10890_v0 = vshrl.u32 %v10797_v37, 16 }
 0x779   : > { %v10860_v45 = vor.u32 %v10858_v38, %v10856_v33  ;;  %v10857_v5 = vsel %vm572_vm0, %v10852_v1, %v10856_v33  ;;  %v25404_v33 = vld [vmem:[#allocation13_spill] sm:$0xff] }
 0x77a   : > { %19081 = vmatmul.mubr.bf16.gmra.mrb[60].mxu0 %v24099_v16  ;;  %v10876_v34 = vor.u32 %v10874_v27, %v10872_v26  ;;  %v10798_v38 = vmul.bf16 %v25404_v33, %v23997_v48 }
 0x77b   : > { %19100 = vmatprep.mubr.bf16.mxu0 %v10833_v54  ;;  %v21232_v54 = vld [vmem:[#allocation4 + $0x3d8] sm:$0xff]  }
 0x77c   : > { %v10894_v1 = vshll.u32 %v10798_v38, 16 }
 0x782   : > { %19101 = vmatmul.mubr.bf16.vlgmr.msra.gmra.mrb[32].mxu0 %v10841_v36  ;;  %v24146_v36 = vld [vmem:[#allocation2 + $0x60] sm:$0xff] }
 0x783   : > { %19104 = vmatprep.mubr.bf16.mxu0 %v10849_v41  ;;  %19133 = vmatpush3.bf16.msra.mxu0 %v21229_v52  ;;  %v10865_v52 = vsel %vm572_vm0, %v10860_v45, %v10864_v22  ;;  %v10880_v41 = vrot.slane %v10878_v4, 1  ;;  %v25405_v45 = vld [vmem:[#allocation14_spill] sm:$0xff]  ;;  %v24154_v4 = vld [vmem:[#allocation2 + $0x70] sm:$0xff] }
 0x784   : > { %19134 = vmatprep.subr.bf16.mxu0 %v21230_v58  ;;  %v10799_v44 = vmul.bf16 %v24146_v36, %v25405_v45 }
 0x785   : > { %v10881_v14 = vsel %vm572_vm0, %v10876_v34, %v10880_v41 }
 0x787   : > { %19135 = vmatpush3.bf16.msra.mxu0 %v21230_v58  ;;  %v10868_v58 = vor.u32 %v10866_v30, %v10864_v22  ;;  %v21235_v22 = vld [vmem:[#allocation4 + $0x3f0] sm:$0xff]  }
 0x788   : > { %19136 = vmatprep.subr.bf16.mxu0 %v21231_v13  ;;  %v25406_v30 = vld [vmem:[#allocation15_spill] sm:$0xff] }
 0x789   : > { %v10873_v63 = vsel %vm572_vm0, %v10868_v58, %v10872_v26  ;;  %v10896_v26 = vrot.slane %v10894_v1, 1  ;;  %v10800_v34 = vmul.bf16 %v25406_v30, %v24018_v56 }
 0x78a   : > { %19105 = vmatmul.mubr.bf16.gmra.mrb[36].mxu0 %v10857_v5 }
 0x78b   : > { %19108 = vmatprep.mubr.bf16.mxu0 %v10865_v52  ;;  %19137 = vmatpush3.bf16.msra.mxu0 %v21231_v13  ;;  %v10888_v13 = vrot.slane %v10886_v39, 1  ;;  %v10902_v52 = vshll.u32 %v10799_v44, 16  ;;  %v21236_v39 = vld [vmem:[#allocation4 + $0x3f8] sm:$0xff]  }
 0x78c   : > { %19138 = vmatprep.subr.bf16.mxu0 %v21232_v54 }
 0x78d   : > { %v10892_v5 = vor.u32 %v10890_v0, %v10888_v13  ;;  %v24164_v0 = vld [vmem:[#allocation2 + $0x78] sm:$0xff] }
 0x78f   : > { %19139 = vmatpush3.bf16.msra.mxu0 %v21232_v54  ;;  %v10882_v54 = vshrl.u32 %v10796_v49, 16  ;;  %v10897_v37 = vsel %vm572_vm0, %v10892_v5, %v10896_v26  ;;  %v10801_v49 = vmul.bf16 %v24154_v4, %v24021_v40 }
 0x790   : > { %19140 = vmatprep.subr.bf16.mxu0 %v21233_v42 }
 0x791   : > { %v10884_v27 = vor.u32 %v10882_v54, %v10880_v41  ;;  %v10906_v41 = vshrl.u32 %v10799_v44, 16  ;;  %v10918_v54 = vshll.u32 %v10801_v49, 16 }
 0x792   : > { %19109 = vmatmul.mubr.bf16.gmra.mrb[40].mxu0 %v10873_v63  ;;  %v10910_v63 = vshll.u32 %v10800_v34, 16 }
 0x793   : > { %19112 = vmatprep.mubr.bf16.mxu0 %v10881_v14  ;;  %19141 = vmatpush3.bf16.msra.mxu0 %v21233_v42  ;;  %v10889_v58 = vsel %vm572_vm0, %v10884_v27, %v10888_v13  ;;  %v10904_v42 = vrot.slane %v10902_v52, 1  ;;  %v10898_v14 = vshrl.u32 %v10798_v38, 16  ;;  %v24166_v27 = vld [vmem:[#allocation2 + $0x80] sm:$0xff]  ;;  %v10802_v52 = vmul.bf16 %v24164_v0, %v24028_v62 }
 0x794   : > { %19142 = vmatprep.subr.bf16.mxu0 %v21234_v35  ;;  %v10912_v5 = vrot.slane %v10910_v63, 1  ;;  %v10920_v38 = vrot.slane %v10918_v54, 1  ;;  %v10804_v62 = vmul.bf16 %v24099_v16, %v24044_v55 }
 0x795   : > { %v10908_v1 = vor.u32 %v10906_v41, %v10904_v42  ;;  %v10900_v13 = vor.u32 %v10898_v14, %v10896_v26  ;;  %v10922_v26 = vshrl.u32 %v10801_v49, 16  ;;  %v10914_v41 = vshrl.u32 %v10800_v34, 16  ;;  %v11211_v34 = vld [vmem:[#allocation2 + $0x10] sm:$0x80] }
 0x797   : > { %19143 = vmatpush3.bf16.msra.mxu0 %v21234_v35  ;;  %v24162_v35 = vld [vmem:[#allocation4 + $0x400] sm:$0xff]   ;;  %v10905_v44 = vsel %vm572_vm0, %v10900_v13, %v10904_v42  ;;  %v10916_v14 = vor.u32 %v10914_v41, %v10912_v5  ;;  %v10788_v13 = vld [vmem:[#allocation2 + $0x90] sm:$0x1] }
 0x798   : > { %19144 = vmatprep.subr.bf16.mxu0 %v21235_v22 }
 0x799   : > { %v10921_v42 = vsel %vm572_vm0, %v10916_v14, %v10920_v38 }
 0x79a   : > { %19113 = vmatmul.mubr.bf16.gmra.mrb[44].mxu0 %v10889_v58  ;;  %v10803_v58 = vmul.bf16 %v24166_v27, %v24040_v2  ;;  %v24186_v2 = vld [vmem:[#allocation2 + $0x20] sm:$0xff] }
 0x79b   : > { %19116 = vmatprep.mubr.bf16.mxu0 %v10897_v37  ;;  %19145 = vmatpush3.bf16.msra.mxu0 %v21235_v22  ;;  %v10913_v22 = vsel %vm572_vm0, %v10908_v1, %v10912_v5  ;;  %v10926_v37 = vshll.u32 %v10802_v52, 16  ;;  %v10942_v5 = vshll.u32 %v10804_v62, 16 }
 0x79c   : > { %19146 = vmatprep.subr.bf16.mxu0 %v21236_v39  ;;  %v10934_v63 = vshll.u32 %v10803_v58, 16 }
 0x79d   : > { %v10928_v40 = vrot.slane %v10926_v37, 1  ;;  %v10805_v37 = vmul.bf16 %v10788_v13, %v24030_v21  ;;  %v24191_v13 = vld [vmem:[#allocation2 + $0x28] sm:$0xff] }
 0x79e   : > { %v10936_v54 = vrot.slane %v10934_v63, 1 }
 0x79f   : > { %19147 = vmatpush3.bf16.msra.mxu0 %v21236_v39  ;;  %v10924_v39 = vor.u32 %v10922_v26, %v10920_v38  ;;  %v10930_v26 = vshrl.u32 %v10802_v52, 16  ;;  %v11213_v38 = vmul.bf16 %v11211_v34, %v23408_v9  ;;  %v10950_v55 = vshll.u32 %v10805_v37, 16 }
 0x7a0   : > { %19180 = vmatprep.subr.bf16.mxu0 %v24162_v35  ;;  %v11216_v9 = vmul.bf16 %v24191_v13, %v23497_v15 }
 0x7a1   : > { %v10929_v1 = vsel %vm572_vm0, %v10924_v39, %v10928_v40  ;;  %v10944_v39 = vrot.slane %v10942_v5, 1  ;;  %v11247_v52 = vshrl.u32 %v11213_v38, 16 }
 0x7a2   : > { %19117 = vmatmul.mubr.bf16.gmra.mrb[48].mxu0 %v10905_v44  ;;  %v24179_v44 = vld [vmem:[#allocation2 + $0x18] sm:$0xff] }
 0x7a3   : > { %19120 = vmatprep.mubr.bf16.mxu0 %v10913_v22  ;;  %v11214_v49 = vmul.bf16 %v24179_v44, %v23415_v50  ;;  %v10938_v22 = vshrl.u32 %v10803_v58, 16  ;;  %v11215_v50 = vmul.bf16 %v24186_v2, %v23494_v43 }
 0x7a5   : > { %v10940_v41 = vor.u32 %v10938_v22, %v10936_v54  ;;  %v11251_v14 = vshrl.u32 %v11214_v49, 16  ;;  %v11254_v34 = vshll.u32 %v11214_v49, 16  ;;  %v10952_v22 = vrot.slane %v10950_v55, 1 }
 0x7a6   : > { %v11259_v5 = vshrl.u32 %v11215_v50, 16  ;;  %v11262_v55 = vshll.u32 %v11215_v50, 16  ;;  %v11270_v49 = vshll.u32 %v11216_v9, 16 }
 0x7a7   : > { %v10945_v58 = vsel %vm572_vm0, %v10940_v41, %v10944_v39  ;;  %v24196_v41 = vld [vmem:[#allocation2 + $0x30] sm:$0xff] }
 0x7a8   : > { %v11217_v38 = vmul.bf16 %v24196_v41, %v23507_v24  ;;  %v11219_v24 = vmul.bf16 %v23962_v60, %v23537_v59  ;;  %v21240_v59 = vld [vmem:[#allocation4 + $0x418] sm:$0xff]  }
 0x7aa   : > { %19121 = vmatmul.mubr.bf16.gmra.mrb[52].mxu0 %v10921_v42  ;;  %v10932_v42 = vor.u32 %v10930_v26, %v10928_v40  ;;  %v10946_v40 = vshrl.u32 %v10804_v62, 16  ;;  %v11249_v26 = vrot.slane %v11247_v52, 7  ;;  %v11218_v62 = vmul.bf16 %v23951_v47, %v23527_v25 }
 0x7ab   : > { %19124 = vmatprep.mubr.bf16.mxu0 %v10929_v1  ;;  %v11253_v1 = vrot.slane %v11251_v14, 7  ;;  %v11220_v25 = vmul.bf16 %v23977_v3, %v23558_v11  ;;  %v11278_v47 = vshll.u32 %v11217_v38, 16  ;;  %v11221_v11 = vmul.bf16 %v23985_v12, %v23574_v8  ;;  %v21242_v8 = vld [vmem:[#allocation4 + $0x428] sm:$0xff]  }
 0x7ac   : > { %v10937_v63 = vsel %vm572_vm0, %v10932_v42, %v10936_v54  ;;  %v10948_v54 = vor.u32 %v10946_v40, %v10944_v39  ;;  %v11267_v42 = vshrl.u32 %v11216_v9, 16  ;;  %v11283_v40 = vshrl.u32 %v11218_v62, 16  ;;  %v21239_v9 = vld [vmem:[#allocation4 + $0x410] sm:$0xff]  }
 0x7ad   : > { %v11256_v37 = vor.u32 %v11254_v34, %v11253_v1  ;;  %v21238_v34 = vld [vmem:[#allocation4 + $0x408] sm:$0xff]   ;;  %v11286_v50 = vshll.u32 %v11218_v62, 16  ;;  %v11302_v62 = vshll.u32 %v11220_v25, 16 }
 0x7ae   : > { %v10953_v43 = vsel %vm572_vm0, %v10948_v54, %v10952_v22  ;;  %v11269_v14 = vrot.slane %v11267_v42, 7 }
 0x7af   : > { %v11257_v15 = vsel %vm750_vm1, %v11249_v26, %v11256_v37  ;;  %v11285_v26 = vrot.slane %v11283_v40, 7  ;;  %v11223_v40 = vmul.bf16 %v24146_v36, %v23733_v31  ;;  %v21244_v31 = vld [vmem:[#allocation4 + $0x438] sm:$0xff]  }
 0x7b0   : > { %v11272_v52 = vor.u32 %v11270_v49, %v11269_v14 }
 0x7b1   : > { %v11288_v42 = vor.u32 %v11286_v50, %v11285_v26 }
 0x7b2   : > { %19125 = vmatmul.mubr.bf16.gmra.mrb[56].mxu0 %v10937_v63  ;;  %v11261_v63 = vrot.slane %v11259_v5, 7 }
 0x7b3   : > { %19128 = vmatprep.mubr.bf16.mxu0 %v10945_v58  ;;  %v11275_v58 = vshrl.u32 %v11217_v38, 16  ;;  %v11222_v38 = vmul.bf16 %v23997_v48, %v23577_v6 }
 0x7b4   : > { %v11264_v39 = vor.u32 %v11262_v55, %v11261_v63  ;;  %v11273_v5 = vsel %vm750_vm1, %v11261_v63, %v11272_v52  ;;  %v21241_v55 = vld [vmem:[#allocation4 + $0x420] sm:$0xff]  }
 0x7b5   : > { %v11277_v22 = vrot.slane %v11275_v58, 7  ;;  %v11315_v58 = vshrl.u32 %v11222_v38, 16 }
 0x7b6   : > { %v11265_v54 = vsel %vm750_vm1, %v11253_v1, %v11264_v39  ;;  %v11291_v1 = vshrl.u32 %v11219_v24, 16  ;;  %v11307_v39 = vshrl.u32 %v11221_v11, 16 }
 0x7b7   : > { %v11280_v37 = vor.u32 %v11278_v47, %v11277_v22  ;;  %v11289_v3 = vsel %vm750_vm1, %v11277_v22, %v11288_v42  ;;  %v11317_v48 = vrot.slane %v11315_v58, 7  ;;  %v11318_v22 = vshll.u32 %v11222_v38, 16 }
 0x7b8   : > { %v11293_v63 = vrot.slane %v11291_v1, 7  ;;  %v11309_v52 = vrot.slane %v11307_v39, 7  ;;  %v11226_v1 = vmul.bf16 %v24164_v0, %v23769_v19  ;;  %v11326_v42 = vshll.u32 %v11223_v40, 16 }
 0x7b9   : > { %v11281_v60 = vsel %vm750_vm1, %v11269_v14, %v11280_v37  ;;  %v11225_v37 = vmul.bf16 %v24154_v4, %v23783_v57  ;;  %v11227_v38 = vmul.bf16 %v24166_v27, %v23825_v28 }
 0x7ba   : > { %19129 = vmatmul.mubr.bf16.gmra.mrb[60].mxu0 %v10953_v43  ;;  %v11299_v43 = vshrl.u32 %v11220_v25, 16  ;;  %v11323_v25 = vshrl.u32 %v11223_v40, 16  ;;  %v24235_v40 = vld [vmem:[#allocation2] sm:$0xff] }
 0x7bb   : > { %19148 = vmatprep.mubr.bf16.mxu0 %v11257_v15  ;;  %v11294_v15 = vshll.u32 %v11219_v24, 16  ;;  %v21243_v24 = vld [vmem:[#allocation4 + $0x430] sm:$0xff]   ;;  %v11229_v28 = vmul.bf16 %v24235_v40, %v23847_v32 }
 0x7bd   : > { %v11296_v49 = vor.u32 %v11294_v15, %v11293_v63 }
 0x7bf   : > { %v11297_v12 = vsel %vm750_vm1, %v11285_v26, %v11296_v49  ;;  %v11320_v26 = vor.u32 %v11318_v22, %v11317_v48  ;;  %v11350_v49 = vshll.u32 %v11226_v1, 16  ;;  %v11371_v22 = vshrl.u32 %v11229_v28, 16 }
 0x7c2   : > { %19149 = vmatmul.mubr.bf16.vlgmr.msra.gmra.mrb[32].mxu0 %v11265_v54  ;;  %v11310_v54 = vshll.u32 %v11221_v11, 16 }
 0x7c3   : > { %19152 = vmatprep.mubr.bf16.mxu0 %v11273_v5  ;;  %19181 = vmatpush3.bf16.msra.mxu0 %v24162_v35  ;;  %v11301_v35 = vrot.slane %v11299_v43, 7 }
 0x7c4   : > { %19182 = vmatprep.subr.bf16.mxu0 %v21238_v34  ;;  %v11312_v5 = vor.u32 %v11310_v54, %v11309_v52 }
 0x7c5   : > { %v11304_v14 = vor.u32 %v11302_v62, %v11301_v35  ;;  %v11228_v62 = vmul.bf16 %v24099_v16, %v23818_v20  ;;  %v11358_v20 = vshll.u32 %v11227_v38, 16 }
 0x7c6   : > { %v11313_v50 = vsel %vm750_vm1, %v11301_v35, %v11312_v5 }
 0x7c7   : > { %19183 = vmatpush3.bf16.msra.mxu0 %v21238_v34  ;;  %v11305_v6 = vsel %vm750_vm1, %v11293_v63, %v11304_v14  ;;  %v11224_v34 = vmul.bf16 %v24018_v56, %v23721_v61  ;;  %v11321_v61 = vsel %vm750_vm1, %v11309_v52, %v11320_v26  ;;  %v11339_v63 = vshrl.u32 %v11225_v37, 16 }
 0x7c8   : > { %19184 = vmatprep.subr.bf16.mxu0 %v21239_v9  ;;  %v11355_v14 = vshrl.u32 %v11227_v38, 16  ;;  %v11374_v26 = vshll.u32 %v11229_v28, 16  ;;  %v11893_v38 = vld [vmem:[#allocation2 + $0x20] sm:$0xff] }
 0x7c9   : > { %v11331_v47 = vshrl.u32 %v11224_v34, 16  ;;  %v11334_v43 = vshll.u32 %v11224_v34, 16  ;;  %v11341_v35 = vrot.slane %v11339_v63, 7  ;;  %v11366_v34 = vshll.u32 %v11228_v62, 16  ;;  %v21251_v63 = vld [vmem:[#allocation4 + $0x470] sm:$0xff]  }
 0x7ca   : > { %19153 = vmatmul.mubr.bf16.gmra.mrb[36].mxu0 %v11281_v60  ;;  %v11357_v52 = vrot.slane %v11355_v14, 7 }
 0x7cb   : > { %19156 = vmatprep.mubr.bf16.mxu0 %v11289_v3  ;;  %19185 = vmatpush3.bf16.msra.mxu0 %v21239_v9  ;;  %v11325_v9 = vrot.slane %v11323_v25, 7  ;;  %v11333_v56 = vrot.slane %v11331_v47, 7  ;;  %v11347_v3 = vshrl.u32 %v11226_v1, 16  ;;  %v11373_v25 = vrot.slane %v11371_v22, 7  ;;  %v21247_v1 = vld [vmem:[#allocation4 + $0x450] sm:$0xff]  }
 0x7cc   : > { %19186 = vmatprep.subr.bf16.mxu0 %v21240_v59  ;;  %v11360_v54 = vor.u32 %v11358_v20, %v11357_v52 }
 0x7cd   : > { %v11328_v60 = vor.u32 %v11326_v42, %v11325_v9  ;;  %v11336_v11 = vor.u32 %v11334_v43, %v11333_v56  ;;  %v11349_v15 = vrot.slane %v11347_v3, 7  ;;  %v21257_v42 = vld [vmem:[#allocation7 + $0x260] sm:$0xff]   ;;  %v21408_v43 = vld [vmem:[#allocation2 + $0x38] sm:$0xff] }
 0x7ce   : > { %v21412_v3 = vld [vmem:[#allocation2 + $0x58] sm:$0xff] }
 0x7cf   : > { %19187 = vmatpush3.bf16.msra.mxu0 %v21240_v59  ;;  %v21245_v59 = vld [vmem:[#allocation4 + $0x440] sm:$0xff]   ;;  %v11329_v57 = vsel %vm750_vm1, %v11317_v48, %v11328_v60  ;;  %v11337_v19 = vsel %vm750_vm1, %v11325_v9, %v11336_v11  ;;  %v11352_v58 = vor.u32 %v11350_v49, %v11349_v15  ;;  %v11361_v5 = vsel %vm750_vm1, %v11349_v15, %v11360_v54  ;;  %v21254_v9 = vld [vmem:[#allocation7 + $0x248] sm:$0xff]   ;;  %v21411_v11 = vld [vmem:[#allocation2 + $0x50] sm:$0xff] }
 0x7d0   : > { %19188 = vmatprep.subr.bf16.mxu0 %v21241_v55  ;;  %v21410_v60 = vld [vmem:[#allocation2 + $0x48] sm:$0xff]  ;;  %v11910_v15 = vmul.bf16 %v11893_v38, %v23894_v17 }
 0x7d2   : > { %19157 = vmatmul.mubr.bf16.gmra.mrb[40].mxu0 %v11297_v12  ;;  %v11950_v49 = vshll.u32 %v11910_v15, 16  ;;  %v11954_v20 = vshrl.u32 %v11910_v15, 16 }
 0x7d3   : > { %19160 = vmatprep.mubr.bf16.mxu0 %v11305_v6  ;;  %19189 = vmatpush3.bf16.msra.mxu0 %v21241_v55  ;;  %v11342_v55 = vshll.u32 %v11225_v37, 16  ;;  %v11353_v6 = vsel %vm750_vm1, %v11341_v35, %v11352_v58  ;;  %v21255_v37 = vld [vmem:[#allocation7 + $0x250] sm:$0xff]  }
 0x7d4   : > { %19190 = vmatprep.subr.bf16.mxu0 %v21242_v8 }
 0x7d5   : > { %v11344_v39 = vor.u32 %v11342_v55, %v11341_v35  ;;  %v11892_v35 = vld [vmem:[#allocation2 + $0x18] sm:$0xff]  ;;  %v11894_v55 = vld [vmem:[#allocation2 + $0x28] sm:$0xff] }
 0x7d6   : > { %v11911_v58 = vmul.bf16 %v11894_v55, %v25397_v10 }
 0x7d7   : > { %19191 = vmatpush3.bf16.msra.mxu0 %v21242_v8  ;;  %v11363_v8 = vshrl.u32 %v11228_v62, 16  ;;  %v11345_v12 = vsel %vm750_vm1, %v11333_v56, %v11344_v39  ;;  %v21256_v56 = vld [vmem:[#allocation7 + $0x258] sm:$0xff]   ;;  %v11895_v39 = vld [vmem:[#allocation2 + $0x30] sm:$0xff] }
 0x7d8   : > { %19192 = vmatprep.subr.bf16.mxu0 %v21243_v24  ;;  %v11962_v10 = vshrl.u32 %v11911_v58, 16 }
 0x7d9   : > { %v11365_v48 = vrot.slane %v11363_v8, 7 }
 0x7da   : > { %19161 = vmatmul.mubr.bf16.gmra.mrb[44].mxu0 %v11313_v50  ;;  %v21253_v50 = vld [vmem:[#allocation7 + $0x240] sm:$0xff]  }
 0x7db   : > { %19164 = vmatprep.mubr.bf16.mxu0 %v11321_v61  ;;  %19193 = vmatpush3.bf16.msra.mxu0 %v21243_v24  ;;  %v11368_v24 = vor.u32 %v11366_v34, %v11365_v48  ;;  %v21246_v61 = vld [vmem:[#allocation4 + $0x448] sm:$0xff]   ;;  %v11897_v34 = vld [vmem:[#allocation2 + $0x40] sm:$0xff] }
 0x7dc   : > { %19194 = vmatprep.subr.bf16.mxu0 %v21244_v31  ;;  %19276 = vmatprep.subr.bf16.mxu1 %v21253_v50 }
 0x7dd   : > { %v11369_v47 = vsel %vm750_vm1, %v11357_v52, %v11368_v24  ;;  %19277 = vmatpush3.bf16.msra.mxu1 %v21253_v50  ;;  %v11912_v52 = vmul.bf16 %v11895_v39, %v25398_v29 }
 0x7de   : > { %19278 = vmatprep.subr.bf16.mxu1 %v21254_v9 }
 0x7df   : > { %19195 = vmatpush3.bf16.msra.mxu0 %v21244_v31  ;;  %v11376_v31 = vor.u32 %v11374_v26, %v11373_v25  ;;  %v11970_v50 = vshrl.u32 %v11912_v52, 16 }
 0x7e0   : > { %19228 = vmatprep.subr.bf16.mxu0 %v21245_v59 }
 0x7e1   : > { %v11377_v32 = vsel %vm750_vm1, %v11365_v48, %v11376_v31  ;;  %19279 = vmatpush3.bf16.msra.mxu1 %v21254_v9  ;;  %v11966_v48 = vshll.u32 %v11912_v52, 16  ;;  %v11899_v9 = vld [vmem:[#allocation2 + $0x50] sm:$0xff] }
 0x7e2   : > { %19165 = vmatmul.mubr.bf16.gmra.mrb[48].mxu0 %v11329_v57  ;;  %19280 = vmatprep.subr.bf16.mxu1 %v21255_v37  ;;  %v21413_v57 = vld [vmem:[#allocation2 + $0x68] sm:$0xff] }
 0x7e3   : > { %19168 = vmatprep.mubr.bf16.mxu0 %v11337_v19  ;;  %v11909_v19 = vmul.bf16 %v11892_v35, %v23883_v53  ;;  %v11896_v53 = vld [vmem:[#allocation2 + $0x38] sm:$0xff]  ;;  %v11968_v24 = vrot.slane %v11966_v48, 1 }
 0x7e4   : > { %v11913_v54 = vmul.bf16 %v11896_v53, %v25399_v46 }
 0x7e5   : > { %19281 = vmatpush3.bf16.msra.mxu1 %v21255_v37  ;;  %v11945_v62 = vshll.u32 %v11909_v19, 16  ;;  %v11943_v8 = vshrl.u32 %v11909_v19, 16  ;;  %v11902_v19 = vld [vmem:[#allocation2 + $0x68] sm:$0xff] }
 0x7e6   : > { %19282 = vmatprep.subr.bf16.mxu1 %v21256_v56  ;;  %v11974_v25 = vshll.u32 %v11913_v54, 16 }
 0x7e7   : > { %v11947_v14 = vrot.slane %v11945_v62, 1 }
 0x7e8   : > { %v11976_v37 = vrot.slane %v11974_v25, 1 }
 0x7e9   : > { %19283 = vmatpush3.bf16.msra.mxu1 %v21256_v56  ;;  %v11948_v28 = vor.u32 %v11947_v14, %v11943_v8  ;;  %v11978_v56 = vshrl.u32 %v11913_v54, 16 }
 0x7ea   : > { %19169 = vmatmul.mubr.bf16.gmra.mrb[52].mxu0 %v11345_v12  ;;  %19284 = vmatprep.subr.bf16.mxu1 %v21257_v42  ;;  %v11952_v12 = vrot.slane %v11950_v49, 1 }
 0x7eb   : > { %19172 = vmatprep.mubr.bf16.mxu0 %v11353_v6  ;;  %v11958_v6 = vshll.u32 %v11911_v58, 16 }
 0x7ec   : > { %v11953_v17 = vsel %vm572_vm0, %v11948_v28, %v11952_v12  ;;  %v11956_v22 = vor.u32 %v11954_v20, %v11952_v12 }
 0x7ed   : > { %19285 = vmatpush3.bf16.msra.mxu1 %v21257_v42  ;;  %v11980_v42 = vor.u32 %v11978_v56, %v11976_v37 }
 0x7f2   : > { %19173 = vmatmul.mubr.bf16.gmra.mrb[56].mxu0 %v11361_v5  ;;  %v11914_v5 = vmul.bf16 %v11897_v34, %v25400_v7  ;;  %v11916_v7 = vmul.bf16 %v11899_v9, %v25402_v51  ;;  %v11918_v51 = vmul.bf16 %v24146_v36, %v25404_v33  ;;  %v25410_v9 = vld [vmem:[#allocation19_spill] sm:$0xff] }
 0x7f3   : > { %19176 = vmatprep.mubr.bf16.mxu0 %v11369_v47  ;;  %v11898_v47 = vld [vmem:[#allocation2 + $0x48] sm:$0xff] }
 0x7f4   : > { %v11915_v46 = vmul.bf16 %v11898_v47, %v25401_v18  ;;  %v12014_v62 = vshll.u32 %v11918_v51, 16  ;;  %v12002_v55 = vshrl.u32 %v11916_v7, 16 }
 0x7f6   : > { %v12016_v58 = vrot.slane %v12014_v62, 1 }
 0x7fa   : > { %19177 = vmatmul.mubr.bf16.gmra.mrb[60].mxu0 %v11377_v32  ;;  %v11982_v32 = vshll.u32 %v11914_v5, 16 }
 0x7fb   : > { %19196 = vmatprep.mubr.bf16.mxu0 %v24179_v44  ;;  %v21248_v44 = vld [vmem:[#allocation4 + $0x458] sm:$0xff]  }
 0x802   : > { %19197 = vmatmul.mubr.bf16.vlgmr.msra.gmra.mrb[32].mxu0 %v24186_v2  ;;  %v21249_v2 = vld [vmem:[#allocation4 + $0x460] sm:$0xff]  }
 0x803   : > { %19200 = vmatprep.mubr.bf16.mxu0 %v24191_v13  ;;  %19229 = vmatpush3.bf16.msra.mxu0 %v21245_v59  ;;  %v21250_v13 = vld [vmem:[#allocation4 + $0x468] sm:$0xff]   ;;  %v21409_v59 = vld [vmem:[#allocation2 + $0x40] sm:$0xff] }
 0x804   : > { %19230 = vmatprep.subr.bf16.mxu0 %v21246_v61 }
 0x807   : > { %19231 = vmatpush3.bf16.msra.mxu0 %v21246_v61  ;;  %v11972_v61 = vor.u32 %v11970_v50, %v11968_v24 }
 0x808   : > { %19232 = vmatprep.subr.bf16.mxu0 %v21247_v1 }
 0x80a   : > { %19201 = vmatmul.mubr.bf16.gmra.mrb[36].mxu0 %v24196_v41  ;;  %v21252_v41 = vld [vmem:[#allocation4 + $0x478] sm:$0xff]  }
 0x80b   : > { %19204 = vmatprep.mubr.bf16.mxu0 %v21408_v43  ;;  %19233 = vmatpush3.bf16.msra.mxu0 %v21247_v1  ;;  %v11984_v1 = vrot.slane %v11982_v32, 1  ;;  %v11977_v43 = vsel %vm572_vm0, %v11972_v61, %v11976_v37 }
 0x80c   : > { %19234 = vmatprep.subr.bf16.mxu0 %v21248_v44 }
 0x80f   : > { %19235 = vmatpush3.bf16.msra.mxu0 %v21248_v44  ;;  %v11990_v44 = vshll.u32 %v11915_v46, 16 }
 0x810   : > { %19236 = vmatprep.subr.bf16.mxu0 %v21249_v2 }
 0x812   : > { %19205 = vmatmul.mubr.bf16.gmra.mrb[40].mxu0 %v21409_v59  ;;  %v11998_v59 = vshll.u32 %v11916_v7, 16 }
 0x813   : > { %19208 = vmatprep.mubr.bf16.mxu0 %v21410_v60  ;;  %19237 = vmatpush3.bf16.msra.mxu0 %v21249_v2  ;;  %v11900_v2 = vld [vmem:[#allocation2 + $0x58] sm:$0xff]  ;;  %v11986_v60 = vshrl.u32 %v11914_v5, 16 }
 0x814   : > { %19238 = vmatprep.subr.bf16.mxu0 %v21250_v13 }
 0x815   : > { %v11988_v18 = vor.u32 %v11986_v60, %v11984_v1 }
 0x817   : > { %19239 = vmatpush3.bf16.msra.mxu0 %v21250_v13  ;;  %v11985_v13 = vsel %vm572_vm0, %v11980_v42, %v11984_v1 }
 0x818   : > { %19240 = vmatprep.subr.bf16.mxu0 %v21251_v63 }
 0x81a   : > { %19209 = vmatmul.mubr.bf16.gmra.mrb[44].mxu0 %v21411_v11  ;;  %v11994_v11 = vshrl.u32 %v11915_v46, 16  ;;  %v11908_v46 = vld [vmem:[#allocation2 + $0x98] sm:$0x1] }
 0x81b   : > { %19212 = vmatprep.mubr.bf16.mxu0 %v21412_v3  ;;  %19241 = vmatpush3.bf16.msra.mxu0 %v21251_v63  ;;  %v11992_v63 = vrot.slane %v11990_v44, 1  ;;  %v12000_v3 = vrot.slane %v11998_v59, 1  ;;  %v11925_v44 = vmul.bf16 %v11908_v46, %v24030_v21  ;;  %v21259_v21 = vld [vmem:[#allocation7 + $0x270] sm:$0xff]  }
 0x81c   : > { %19242 = vmatprep.subr.bf16.mxu0 %v21252_v41 }
 0x81d   : > { %v11993_v38 = vsel %vm572_vm0, %v11988_v18, %v11992_v63  ;;  %v12004_v39 = vor.u32 %v12002_v55, %v12000_v3 }
 0x81f   : > { %19243 = vmatpush3.bf16.msra.mxu0 %v21252_v41  ;;  %v11917_v41 = vmul.bf16 %v11900_v2, %v25403_v23  ;;  %v11919_v23 = vmul.bf16 %v11902_v19, %v25405_v45  ;;  %v21262_v19 = vld [vmem:[%s25170_s1 + $0x8] sm:$0xff]  }
 0x821   : > { %v12006_v35 = vshll.u32 %v11917_v41, 16  ;;  %v12010_v14 = vshrl.u32 %v11917_v41, 16  ;;  %v12022_v8 = vshll.u32 %v11919_v23, 16  ;;  %v12026_v20 = vshrl.u32 %v11919_v23, 16 }
 0x822   : > { %19213 = vmatmul.mubr.bf16.gmra.mrb[48].mxu0 %v24146_v36  ;;  %v11920_v36 = vmul.bf16 %v24154_v4, %v25406_v30  ;;  %v11906_v30 = vld [vmem:[#allocation2 + $0x88] sm:$0xff]  ;;  %v12544_v23 = vshrl.u32 %v21262_v19, 16 }
 0x823   : > { %19216 = vmatprep.mubr.bf16.mxu0 %v21413_v57  ;;  %v11996_v57 = vor.u32 %v11994_v11, %v11992_v63  ;;  %v12008_v49 = vrot.slane %v12006_v35, 1  ;;  %v12024_v53 = vrot.slane %v12022_v8, 1  ;;  %v12070_v63 = vshll.u32 %v11925_v44, 16  ;;  %v21260_v35 = vld [vmem:[#allocation7 + $0x278] sm:$0xff]  }
 0x824   : > { %v12030_v28 = vshll.u32 %v11920_v36, 16 }
 0x825   : > { %v12001_v15 = vsel %vm572_vm0, %v11996_v57, %v12000_v3  ;;  %v12012_v33 = vor.u32 %v12010_v14, %v12008_v49  ;;  %v12009_v12 = vsel %vm572_vm0, %v12004_v39, %v12008_v49  ;;  %v12028_v54 = vor.u32 %v12026_v20, %v12024_v53  ;;  %v21258_v57 = vld [vmem:[#allocation7 + $0x268] sm:$0xff]   ;;  %v12403_v39 = vld [vmem:[#allocation3] sm:$0x80] }
 0x826   : > { %v12032_v34 = vrot.slane %v12030_v28, 1  ;;  %v12072_v3 = vrot.slane %v12070_v63, 1  ;;  %19286 = vmatprep.subr.bf16.mxu1 %v21258_v57  ;;  %v12540_v49 = vshll.u32 %v21262_v19, 16 }
 0x827   : > { %v12017_v52 = vsel %vm572_vm0, %v12012_v33, %v12016_v58  ;;  %19287 = vmatpush3.bf16.msra.mxu1 %v21258_v57 }
 0x828   : > { %19288 = vmatprep.subr.bf16.mxu1 %v21259_v21 }
 0x82a   : > { %19217 = vmatmul.mubr.bf16.gmra.mrb[52].mxu0 %v24154_v4 }
 0x82b   : > { %19220 = vmatprep.mubr.bf16.mxu0 %v24164_v0  ;;  %19289 = vmatpush3.bf16.msra.mxu1 %v21259_v21 }
 0x82c   : > { %19290 = vmatprep.subr.bf16.mxu1 %v21260_v35 }
 0x82f   : > { %19291 = vmatpush3.bf16.msra.mxu1 %v21260_v35  ;;  %v21272_v35 = vld [vmem:[%s25170_s1 + $0x40] sm:$0xff]  }
 0x832   : > { %19221 = vmatmul.mubr.bf16.gmra.mrb[56].mxu0 %v24166_v27 }
 0x833   : > { %19224 = vmatprep.mubr.bf16.mxu0 %v24099_v16  ;;  %v11960_v16 = vrot.slane %v11958_v6, 1  ;;  %v12018_v6 = vshrl.u32 %v11918_v51, 16 }
 0x835   : > { %v11964_v29 = vor.u32 %v11962_v10, %v11960_v16  ;;  %v11961_v26 = vsel %vm572_vm0, %v11956_v22, %v11960_v16  ;;  %v12020_v48 = vor.u32 %v12018_v6, %v12016_v58  ;;  %v25408_v16 = vld [vmem:[#allocation17_spill] sm:$0xff]  ;;  %v12542_v58 = vrot.slane %v12540_v49, 1 }
 0x836   : > { %v11922_v4 = vmul.bf16 %v24166_v27, %v25408_v16  ;;  %v11924_v27 = vmul.bf16 %v24235_v40, %v25410_v9 }
 0x837   : > { %v11969_v31 = vsel %vm572_vm0, %v11964_v29, %v11968_v24  ;;  %v12025_v10 = vsel %vm572_vm0, %v12020_v48, %v12024_v53  ;;  %v12033_v24 = vsel %vm572_vm0, %v12028_v54, %v12032_v34  ;;  %v25409_v29 = vld [vmem:[#allocation18_spill] sm:$0xff]  ;;  %v12546_v33 = vor.u32 %v12544_v23, %v12542_v58 }
 0x838   : > { %v12046_v5 = vshll.u32 %v11922_v4, 16  ;;  %v11923_v25 = vmul.bf16 %v11906_v30, %v25409_v29  ;;  %v12062_v7 = vshll.u32 %v11924_v27, 16  ;;  %v12050_v42 = vshrl.u32 %v11922_v4, 16  ;;  %v21266_v4 = vld [vmem:[%s25170_s1 + $0x20] sm:$0xff]  }
 0x839   : > { %v12066_v60 = vshrl.u32 %v11924_v27, 16  ;;  %v12568_v27 = vshrl.u32 %v21266_v4, 16 }
 0x83a   : > { %19225 = vmatmul.mubr.bf16.gmra.mrb[60].mxu0 %v24235_v40  ;;  %v12048_v32 = vrot.slane %v12046_v5, 1  ;;  %v12054_v50 = vshll.u32 %v11923_v25, 16  ;;  %v12064_v59 = vrot.slane %v12062_v7, 1  ;;  %v24330_v5 = vld [vmem:[%s25170_s1 + $0x28] sm:$0xff]  }
 0x83b   : > { %19244 = vmatprep.mubr.bf16.mxu0 %v11953_v17  ;;  %v25407_v17 = vld [vmem:[#allocation16_spill] sm:$0xff] }
 0x83c   : > { %v11921_v45 = vmul.bf16 %v24164_v0, %v25407_v17  ;;  %v12056_v1 = vrot.slane %v12054_v50, 1  ;;  %v12052_v2 = vor.u32 %v12050_v42, %v12048_v32  ;;  %v12068_v11 = vor.u32 %v12066_v60, %v12064_v59 }
 0x83e   : > { %v12038_v22 = vshll.u32 %v11921_v45, 16  ;;  %v12057_v41 = vsel %vm572_vm0, %v12052_v2, %v12056_v1  ;;  %v12073_v51 = vsel %vm572_vm0, %v12068_v11, %v12072_v3 }
 0x840   : > { %v12040_v0 = vrot.slane %v12038_v22, 1 }
 0x842   : > { %19245 = vmatmul.mubr.bf16.vlgmr.msra.gmra.mrb[32].mxu0 %v11961_v26  ;;  %v12034_v26 = vshrl.u32 %v11920_v36, 16 }
 0x843   : > { %19248 = vmatprep.mubr.bf16.mxu0 %v11969_v31  ;;  %v12042_v31 = vshrl.u32 %v11921_v45, 16 }
 0x844   : > { %v12036_v47 = vor.u32 %v12034_v26, %v12032_v34  ;;  %v21263_v34 = vld [vmem:[%s25170_s1 + $0x10] sm:$0xff]  }
 0x845   : > { %v12044_v37 = vor.u32 %v12042_v31, %v12040_v0  ;;  %v12548_v16 = vshll.u32 %v21263_v34, 16  ;;  %v12552_v54 = vshrl.u32 %v21263_v34, 16 }
 0x846   : > { %v12041_v61 = vsel %vm572_vm0, %v12036_v47, %v12040_v0 }
 0x847   : > { %v12049_v56 = vsel %vm572_vm0, %v12044_v37, %v12048_v32  ;;  %v12550_v30 = vrot.slane %v12548_v16, 1  ;;  %v12572_v37 = vshll.u32 %v24330_v5, 16 }
 0x849   : > { %v12554_v47 = vor.u32 %v12552_v54, %v12550_v30  ;;  %v12574_v63 = vrot.slane %v12572_v37, 1 }
 0x84a   : > { %19249 = vmatmul.mubr.bf16.gmra.mrb[36].mxu0 %v11977_v43  ;;  %v12058_v43 = vshrl.u32 %v11923_v25, 16  ;;  %v21269_v25 = vld [vmem:[%s25170_s1 + $0x30] sm:$0xff]  }
 0x84b   : > { %19252 = vmatprep.mubr.bf16.mxu0 %v11985_v13  ;;  %v12580_v7 = vshll.u32 %v21269_v25, 16  ;;  %v12584_v21 = vshrl.u32 %v21269_v25, 16 }
 0x84c   : > { %v12060_v13 = vor.u32 %v12058_v43, %v12056_v1 }
 0x84d   : > { %v24356_v57 = vrot.slane %v12580_v7, 1 }
 0x84e   : > { %v12065_v18 = vsel %vm572_vm0, %v12060_v13, %v12064_v59 }
 0x852   : > { %19253 = vmatmul.mubr.bf16.gmra.mrb[40].mxu0 %v11993_v38  ;;  %v21261_v38 = vld [vmem:[%s25170_s1] sm:$0xff]  }
 0x853   : > { %19256 = vmatprep.mubr.bf16.mxu0 %v12001_v15  ;;  %v24297_v15 = vld [vmem:[#allocation7 + $0x280] sm:$0xff]   ;;  %v12533_v62 = vshll.u32 %v21261_v38, 16  ;;  %v12536_v55 = vshrl.u32 %v21261_v38, 16 }
 0x854   : > { %19324 = vmatprep.subr.bf16.mxu1 %v24297_v15 }
 0x855   : > { %v24300_v14 = vrot.slane %v12533_v62, 1 }
 0x857   : > { %v12538_v36 = vor.u32 %v12536_v55, %v24300_v14  ;;  %v12676_v8 = vmul.bf16 %v24300_v14, %v12403_v39 }
 0x859   : > { %v12711_v28 = vshrl.u32 %v12676_v8, 16 }
 0x85a   : > { %19257 = vmatmul.mubr.bf16.gmra.mrb[44].mxu0 %v12009_v12  ;;  %v24305_v12 = vsel %vm572_vm0, %v12538_v36, %v12542_v58 }
 0x85b   : > { %19260 = vmatprep.mubr.bf16.mxu0 %v12017_v52  ;;  %v12677_v52 = vmul.bf16 %v24235_v40, %v24305_v12  ;;  %v12713_v17 = vrot.slane %v12711_v28, 7  ;;  %v21265_v40 = vld [vmem:[%s25170_s1 + $0x18] sm:$0xff]  }
 0x85c   : > { %v12556_v22 = vshll.u32 %v21265_v40, 16  ;;  %v12560_v2 = vshrl.u32 %v21265_v40, 16 }
 0x85d   : > { %v12715_v6 = vshrl.u32 %v12677_v52, 16  ;;  %v12718_v53 = vshll.u32 %v12677_v52, 16  ;;  %v12576_v52 = vshrl.u32 %v24330_v5, 16 }
 0x85e   : > { %v12558_v31 = vrot.slane %v12556_v22, 1 }
 0x85f   : > { %v24309_v45 = vrot.slane %v12715_v6, 7 }
 0x860   : > { %v24346_v43 = vsel %vm572_vm0, %v12554_v47, %v12558_v31  ;;  %v12562_v39 = vor.u32 %v12560_v2, %v12558_v31 }
 0x861   : > { %v12720_v48 = vor.u32 %v12718_v53, %v24309_v45 }
 0x862   : > { %19261 = vmatmul.mubr.bf16.gmra.mrb[48].mxu0 %v12025_v10  ;;  %v24325_v10 = vld [vmem:[%s25172_s3 + $0x1] ss:$0 sm:$0xff] }
 0x863   : > { %19264 = vmatprep.mubr.bf16.mxu0 %v12033_v24  ;;  %v12721_v20 = vsel %vm750_vm1, %v12713_v17, %v12720_v48  ;;  %v12564_v24 = vshll.u32 %v21266_v4, 16  ;;  %v12586_v17 = vor.u32 %v12584_v21, %v24356_v57  ;;  %v12596_v48 = vshll.u32 %v21272_v35, 16 }
 0x864   : > { %19292 = vmatprep.mubr.bf16.mxu1 %v12721_v20  ;;  %v24381_v20 = vld [vmem:[%s25170_s1 + $0x48] sm:$0xff]  }
 0x865   : > { %v12566_v9 = vrot.slane %v12564_v24, 1 }
 0x867   : > { %v12570_v60 = vor.u32 %v12568_v27, %v12566_v9  ;;  %v24389_v25 = vsel %vm572_vm0, %v12562_v39, %v12566_v9  ;;  %v12578_v9 = vor.u32 %v12576_v52, %v12574_v63 }
 0x869   : > { %v24370_v58 = vsel %vm572_vm0, %v12570_v60, %v12574_v63  ;;  %v24430_v52 = vsel %vm572_vm0, %v12578_v9, %v24356_v57 }
 0x86a   : > { %19265 = vmatmul.mubr.bf16.gmra.mrb[52].mxu0 %v12041_v61 }
 0x86b   : > { %19268 = vmatprep.mubr.bf16.mxu0 %v12049_v56  ;;  %v24342_v56 = vld [vmem:[%s25170_s1 + $0x38] sm:$0xff]  }
 0x86c   : > { %v12588_v11 = vshll.u32 %v24342_v56, 16 }
 0x86e   : > { %v24374_v28 = vrot.slane %v12588_v11, 1  ;;  %v12592_v11 = vshrl.u32 %v24342_v56, 16 }
 0x870   : > { %v24408_v2 = vsel %vm572_vm0, %v12586_v17, %v24374_v28 }
 0x872   : > { %19269 = vmatmul.mubr.bf16.gmra.mrb[56].mxu0 %v12057_v41 }
 0x873   : > { %19272 = vmatprep.mubr.bf16.mxu0 %v12065_v18  ;;  %v24351_v18 = vsel %vm572_vm0, %v12546_v33, %v12550_v30 }
 0x87a   : > { %19273 = vmatmul.mubr.bf16.gmra.mrb[60].mxu0 %v12073_v51 }
 0x915   : > { %v19246_v29 = vpop.f32.mrb[32].mxu0 }
 0x916   : > { %v19772_v26 = vadd.f32 %v19246_v29, %v24325_v10  ;;  %v12172_v0 = vpop.f32.mrb[33].mxu0 }
 0x917   : > { %v19773_v32 = vadd.f32 %v24325_v10, %v12172_v0  ;;  %v19247_v50 = vpop.f32.mrb[34].mxu0 }
 0x918   : > { %v19774_v46 = vadd.f32 %v19247_v50, %v24325_v10  ;;  %v12175_v61 = vpop.f32.mrb[35].mxu0  ;;  %v12333_v42 = vmax.f32 %v19772_v26, 0.0  ;;  %v12600_v26 = vshrl.u32 %v21272_v35, 16  ;;  %v12604_v50 = vshll.u32 %v24381_v20, 16 }
 0x919   : > { %v19775_v1 = vadd.f32 %v24325_v10, %v12175_v61  ;;  %v12331_v13 = vmax.f32 %v19773_v32, 0.0  ;;  %v24393_v32 = vrot.slane %v12596_v48, 1 }
 0x91a   : > { %v12334_v44 = vmax.f32 %v19774_v46, 0.0  ;;  %v21267_v46 = vld [vmem:[#allocation7 + $0x288] sm:$0xff]   ;;  %v24416_v35 = vrot.slane %v12604_v50, 1 }
 0x91b   : > { %v12332_v59 = vmax.f32 %v19775_v1, 0.0  ;;  %v12602_v21 = vor.u32 %v12600_v26, %v24393_v32 }
 0x91c   : > { %v24348_v41 = vpack.c.bf16 %v12334_v44, %v12333_v42 }
 0x91d   : > { %v24354_v3 = vpack.c.bf16 %v12332_v59, %v12331_v13  ;;  %v19250_v51 = vpop.f32.mrb[36].mxu0 }
 0x91e   : > { %12380 = vst [vmem:[#allocation3 + $0x18] sm:$0xff] %v24348_v41  ;;  %v19776_v38 = vadd.f32 %v19250_v51, %v24325_v10  ;;  %v12188_v19 = vpop.f32.mrb[37].mxu0  ;;  %v12679_v62 = vmul.bf16 %v24346_v43, %v24348_v41 }
 0x91f   : > { %12379 = vst [vmem:[#allocation3 + $0x10] sm:$0xff] %v24354_v3  ;;  %v19777_v55 = vadd.f32 %v24325_v10, %v12188_v19  ;;  %v19251_v49 = vpop.f32.mrb[38].mxu0  ;;  %v12678_v23 = vmul.bf16 %v24351_v18, %v24354_v3 }
 0x920   : > { %v19778_v36 = vadd.f32 %v19251_v49, %v24325_v10  ;;  %v12191_v33 = vpop.f32.mrb[39].mxu0  ;;  %v12731_v8 = vshrl.u32 %v12679_v62, 16  ;;  %v12337_v34 = vmax.f32 %v19776_v38, 0.0  ;;  %v12734_v4 = vshll.u32 %v12679_v62, 16  ;;  %v24421_v38 = vld [vmem:[%s25170_s1 + $0x50] sm:$0xff]  }
 0x921   : > { %v19779_v6 = vadd.f32 %v24325_v10, %v12191_v33  ;;  %v12723_v53 = vshrl.u32 %v12678_v23, 16  ;;  %v12335_v30 = vmax.f32 %v19777_v55, 0.0  ;;  %v12726_v24 = vshll.u32 %v12678_v23, 16  ;;  %v21270_v49 = vld [vmem:[#allocation7 + $0x290] sm:$0xff]  }
 0x922   : > { %v12338_v16 = vmax.f32 %v19778_v36, 0.0  ;;  %v24383_v40 = vrot.slane %v12731_v8, 7  ;;  %v12612_v48 = vshll.u32 %v24421_v38, 16 }
 0x923   : > { %v12336_v54 = vmax.f32 %v19779_v6, 0.0  ;;  %v12725_v22 = vrot.slane %v12723_v53, 7 }
 0x924   : > { %v24385_v5 = vpack.c.bf16 %v12338_v16, %v12337_v34  ;;  %v12736_v29 = vor.u32 %v12734_v4, %v24383_v40  ;;  %v24438_v34 = vld [vmem:[%s25170_s1 + $0x58] sm:$0xff]  }
 0x925   : > { %v24391_v0 = vpack.c.bf16 %v12336_v54, %v12335_v30  ;;  %v19254_v47 = vpop.f32.mrb[40].mxu0  ;;  %v12728_v31 = vor.u32 %v12726_v24, %v12725_v22  ;;  %v12594_v30 = vor.u32 %v12592_v11, %v24374_v28  ;;  %v21273_v54 = vld [vmem:[#allocation7 + $0x298] sm:$0xff]  }
 0x926   : > { %12382 = vst [vmem:[#allocation3 + $0x28] sm:$0xff] %v24385_v5  ;;  %v19780_v27 = vadd.f32 %v19254_v47, %v24325_v10  ;;  %v12204_v37 = vpop.f32.mrb[41].mxu0  ;;  %v12681_v61 = vmul.bf16 %v24370_v58, %v24385_v5  ;;  %v12737_v60 = vsel %vm750_vm1, %v12725_v22, %v12736_v29  ;;  %v24447_v22 = vsel %vm572_vm0, %v12602_v21, %v24416_v35 }
 0x927   : > { %12381 = vst [vmem:[#allocation3 + $0x20] sm:$0xff] %v24391_v0  ;;  %v19781_v1 = vadd.f32 %v24325_v10, %v12204_v37  ;;  %v19255_v7 = vpop.f32.mrb[42].mxu0  ;;  %v12729_v42 = vsel %vm750_vm1, %v24309_v45, %v12728_v31  ;;  %v12680_v44 = vmul.bf16 %v24389_v25, %v24391_v0  ;;  %v12608_v31 = vshrl.u32 %v24381_v20, 16 }
 0x928   : > { %v19782_v13 = vadd.f32 %v19255_v7, %v24325_v10  ;;  %v12207_v59 = vpop.f32.mrb[43].mxu0  ;;  %19293 = vmatmul.mubr.bf16.vlgmr.msra.gmra.mrb[32].mxu1 %v12729_v42  ;;  %v12747_v63 = vshrl.u32 %v12681_v61, 16  ;;  %v12341_v19 = vmax.f32 %v19780_v27, 0.0  ;;  %v12750_v56 = vshll.u32 %v12681_v61, 16  ;;  %v24462_v61 = vld [vmem:[%s25170_s1 + $0x60] sm:$0xff]  }
 0x929   : > { %v19783_v51 = vadd.f32 %v24325_v10, %v12207_v59  ;;  %19296 = vmatprep.mubr.bf16.mxu1 %v12737_v60  ;;  %19325 = vmatpush3.bf16.msra.mxu1 %v24297_v15  ;;  %v12739_v45 = vshrl.u32 %v12680_v44, 16  ;;  %v12339_v23 = vmax.f32 %v19781_v1, 0.0  ;;  %v12742_v36 = vshll.u32 %v12680_v44, 16  ;;  %v21276_v59 = vld [vmem:[#allocation7 + $0x2a0] sm:$0xff]  }
 0x92a   : > { %v12342_v62 = vmax.f32 %v19782_v13, 0.0  ;;  %19326 = vmatprep.subr.bf16.mxu1 %v21267_v46  ;;  %v24423_v55 = vrot.slane %v12747_v63, 7  ;;  %v24465_v20 = vrot.slane %v12612_v48, 1  ;;  %v12620_v1 = vshll.u32 %v24438_v34, 16  ;;  %v21279_v48 = vld [vmem:[#allocation7 + $0x2a8] sm:$0xff]  }
 0x92b   : > { %v12340_v39 = vmax.f32 %v19783_v51, 0.0  ;;  %v12741_v15 = vrot.slane %v12739_v45, 7 }
 0x92c   : > { %v24425_v33 = vpack.c.bf16 %v12342_v62, %v12341_v19  ;;  %v12752_v8 = vor.u32 %v12750_v56, %v24423_v55  ;;  %v12628_v19 = vshll.u32 %v24462_v61, 16  ;;  %v24481_v62 = vld [vmem:[%s25170_s1 + $0x68] sm:$0xff]  }
 0x92d   : > { %v24432_v6 = vpack.c.bf16 %v12340_v39, %v12339_v23  ;;  %v19258_v53 = vpop.f32.mrb[44].mxu0  ;;  %v12744_v17 = vor.u32 %v12742_v36, %v12741_v15  ;;  %19327 = vmatpush3.bf16.msra.mxu1 %v21267_v46  ;;  %v12616_v46 = vshrl.u32 %v24421_v38, 16  ;;  %v24475_v38 = vsel %vm572_vm0, %v12594_v30, %v24393_v32 }
 0x92e   : > { %12384 = vst [vmem:[#allocation3 + $0x38] sm:$0xff] %v24425_v33  ;;  %v19784_v16 = vadd.f32 %v19258_v53, %v24325_v10  ;;  %v12220_v4 = vpop.f32.mrb[45].mxu0  ;;  %19328 = vmatprep.subr.bf16.mxu1 %v21270_v49  ;;  %v12683_v57 = vmul.bf16 %v24408_v2, %v24425_v33  ;;  %v12753_v27 = vsel %vm750_vm1, %v12741_v15, %v12752_v8  ;;  %v24486_v15 = vrot.slane %v12620_v1, 1 }
 0x92f   : > { %12383 = vst [vmem:[#allocation3 + $0x30] sm:$0xff] %v24432_v6  ;;  %v19785_v24 = vadd.f32 %v24325_v10, %v12220_v4  ;;  %v19259_v29 = vpop.f32.mrb[46].mxu0  ;;  %v12745_v26 = vsel %vm750_vm1, %v24383_v40, %v12744_v17  ;;  %v12682_v47 = vmul.bf16 %v24430_v52, %v24432_v6  ;;  %v12618_v39 = vor.u32 %v12616_v46, %v24465_v20 }
 0x930   : > { %v19786_v28 = vadd.f32 %v19259_v29, %v24325_v10  ;;  %v12223_v50 = vpop.f32.mrb[47].mxu0  ;;  %19297 = vmatmul.mubr.bf16.gmra.mrb[36].mxu1 %v12745_v26  ;;  %v12763_v37 = vshrl.u32 %v12683_v57, 16  ;;  %v12345_v7 = vmax.f32 %v19784_v16, 0.0  ;;  %v12766_v13 = vshll.u32 %v12683_v57, 16 }
 0x931   : > { %v19787_v40 = vadd.f32 %v24325_v10, %v12223_v50  ;;  %19300 = vmatprep.mubr.bf16.mxu1 %v12753_v27  ;;  %v12755_v9 = vshrl.u32 %v12682_v47, 16  ;;  %19329 = vmatpush3.bf16.msra.mxu1 %v21270_v49  ;;  %v12343_v60 = vmax.f32 %v19785_v24, 0.0  ;;  %v12758_v51 = vshll.u32 %v12682_v47, 16  ;;  %v24507_v47 = vld [vmem:[%s25170_s1 + $0x70] sm:$0xff]  }
 0x932   : > { %v12346_v42 = vmax.f32 %v19786_v28, 0.0  ;;  %v24468_v44 = vrot.slane %v12763_v37, 7  ;;  %19330 = vmatprep.subr.bf16.mxu1 %v21273_v54  ;;  %v12610_v53 = vor.u32 %v12608_v31, %v24416_v35  ;;  %v12624_v17 = vshrl.u32 %v24438_v34, 16 }
 0x933   : > { %v12344_v63 = vmax.f32 %v19787_v40, 0.0  ;;  %v12757_v11 = vrot.slane %v12755_v9, 7  ;;  %v12636_v26 = vshll.u32 %v24481_v62, 16  ;;  %v24512_v28 = vsel %vm572_vm0, %v12618_v39, %v24486_v15  ;;  %v21282_v40 = vld [vmem:[#allocation7 + $0x2b0] sm:$0xff]  }
 0x934   : > { %v24470_v45 = vpack.c.bf16 %v12346_v42, %v12345_v7  ;;  %v12768_v21 = vor.u32 %v12766_v13, %v24468_v44  ;;  %v12630_v50 = vrot.slane %v12628_v19, 1  ;;  %v24519_v13 = vld [vmem:[%s25170_s1 + $0x78] sm:$0xff]  }
 0x935   : > { %v24483_v56 = vpack.c.bf16 %v12344_v63, %v12343_v60  ;;  %v19262_v49 = vpop.f32.mrb[48].mxu0  ;;  %v12760_v23 = vor.u32 %v12758_v51, %v12757_v11  ;;  %19331 = vmatpush3.bf16.msra.mxu1 %v21273_v54  ;;  %v12632_v54 = vshrl.u32 %v24462_v61, 16  ;;  %v24526_v63 = vsel %vm572_vm0, %v12610_v53, %v24465_v20 }
 0x936   : > { %12386 = vst [vmem:[#allocation3 + $0x48] sm:$0xff] %v24470_v45  ;;  %v19788_v32 = vadd.f32 %v19262_v49, %v24325_v10  ;;  %v12236_v36 = vpop.f32.mrb[49].mxu0  ;;  %v12685_v8 = vmul.bf16 %v24447_v22, %v24470_v45  ;;  %19332 = vmatprep.subr.bf16.mxu1 %v21276_v59  ;;  %v12769_v34 = vsel %vm750_vm1, %v12757_v11, %v12768_v21  ;;  %v12644_v11 = vshll.u32 %v24507_v47, 16 }
 0x937   : > { %12385 = vst [vmem:[#allocation3 + $0x40] sm:$0xff] %v24483_v56  ;;  %v19789_v16 = vadd.f32 %v24325_v10, %v12236_v36  ;;  %v19263_v4 = vpop.f32.mrb[50].mxu0  ;;  %v12761_v57 = vsel %vm750_vm1, %v24423_v55, %v12760_v23  ;;  %v12684_v30 = vmul.bf16 %v24475_v38, %v24483_v56  ;;  %v12634_v49 = vor.u32 %v12632_v54, %v12630_v50 }
 0x938   : > { %v19790_v24 = vadd.f32 %v19263_v4, %v24325_v10  ;;  %v12239_v35 = vpop.f32.mrb[51].mxu0  ;;  %19301 = vmatmul.mubr.bf16.gmra.mrb[40].mxu1 %v12761_v57  ;;  %v12779_v29 = vshrl.u32 %v12685_v8, 16  ;;  %v12349_v27 = vmax.f32 %v19788_v32, 0.0  ;;  %v12782_v61 = vshll.u32 %v12685_v8, 16  ;;  %v21284_v8 = vld [vmem:[#allocation7 + $0x2b8] sm:$0xff]  }
 0x939   : > { %v19791_v55 = vadd.f32 %v24325_v10, %v12239_v35  ;;  %19304 = vmatprep.mubr.bf16.mxu1 %v12769_v34  ;;  %v12771_v31 = vshrl.u32 %v12684_v30, 16  ;;  %19333 = vmatpush3.bf16.msra.mxu1 %v21276_v59  ;;  %v12347_v9 = vmax.f32 %v19789_v16, 0.0  ;;  %v12774_v42 = vshll.u32 %v12684_v30, 16 }
 0x93a   : > { %v12350_v37 = vmax.f32 %v19790_v24, 0.0  ;;  %v24514_v46 = vrot.slane %v12779_v29, 7  ;;  %19334 = vmatprep.subr.bf16.mxu1 %v21279_v48  ;;  %v12638_v23 = vrot.slane %v12636_v26, 1  ;;  %v12648_v20 = vshrl.u32 %v24507_v47, 16 }
 0x93b   : > { %v12348_v1 = vmax.f32 %v19791_v55, 0.0  ;;  %v12773_v7 = vrot.slane %v12771_v31, 7  ;;  %v12652_v57 = vshll.u32 %v24519_v13, 16  ;;  %v12626_v34 = vor.u32 %v12624_v17, %v24486_v15 }
 0x93c   : > { %v24521_v60 = vpack.c.bf16 %v12350_v37, %v12349_v27  ;;  %v12784_v59 = vor.u32 %v12782_v61, %v24514_v46  ;;  %v12646_v47 = vrot.slane %v12644_v11, 1  ;;  %v24550_v61 = vld [vmem:[#allocation7 + $0x2c0] sm:$0xff]   ;;  %v12640_v11 = vshrl.u32 %v24481_v62, 16 }
 0x93d   : > { %v24529_v51 = vpack.c.bf16 %v12348_v1, %v12347_v9  ;;  %v19266_v21 = vpop.f32.mrb[52].mxu0  ;;  %v12776_v19 = vor.u32 %v12774_v42, %v12773_v7  ;;  %19335 = vmatpush3.bf16.msra.mxu1 %v21279_v48 }
 0x93e   : > { %12388 = vst [vmem:[#allocation3 + $0x58] sm:$0xff] %v24521_v60  ;;  %v19792_v39 = vadd.f32 %v19266_v21, %v24325_v10  ;;  %v12252_v32 = vpop.f32.mrb[53].mxu0  ;;  %v12687_v36 = vmul.bf16 %v24512_v28, %v24521_v60  ;;  %19336 = vmatprep.subr.bf16.mxu1 %v21282_v40  ;;  %v12785_v24 = vsel %vm750_vm1, %v12773_v7, %v12784_v59 }
 0x93f   : > { %12387 = vst [vmem:[#allocation3 + $0x50] sm:$0xff] %v24529_v51  ;;  %v19793_v53 = vadd.f32 %v24325_v10, %v12252_v32  ;;  %v19267_v16 = vpop.f32.mrb[54].mxu0  ;;  %v12777_v48 = vsel %vm750_vm1, %v24468_v44, %v12776_v19  ;;  %v12686_v4 = vmul.bf16 %v24526_v63, %v24529_v51  ;;  %v24548_v44 = vsel %vm572_vm0, %v12634_v49, %v12638_v23 }
 0x940   : > { %v19794_v30 = vadd.f32 %v19267_v16, %v24325_v10  ;;  %v12255_v54 = vpop.f32.mrb[55].mxu0  ;;  %19305 = vmatmul.mubr.bf16.gmra.mrb[44].mxu1 %v12777_v48  ;;  %v12795_v35 = vshrl.u32 %v12687_v36, 16  ;;  %v12353_v55 = vmax.f32 %v19792_v39, 0.0  ;;  %v12798_v37 = vshll.u32 %v12687_v36, 16 }
 0x941   : > { %v19795_v29 = vadd.f32 %v24325_v10, %v12255_v54  ;;  %19308 = vmatprep.mubr.bf16.mxu1 %v12785_v24  ;;  %v12787_v26 = vshrl.u32 %v12686_v4, 16  ;;  %19337 = vmatpush3.bf16.msra.mxu1 %v21282_v40  ;;  %v12351_v9 = vmax.f32 %v19793_v53, 0.0  ;;  %v12790_v15 = vshll.u32 %v12686_v4, 16 }
 0x942   : > { %v12354_v31 = vmax.f32 %v19794_v30, 0.0  ;;  %v12797_v27 = vrot.slane %v12795_v35, 7  ;;  %19338 = vmatprep.subr.bf16.mxu1 %v21284_v8  ;;  %v24555_v59 = vsel %vm572_vm0, %v12626_v34, %v12630_v50  ;;  %v12650_v49 = vor.u32 %v12648_v20, %v12646_v47 }
 0x943   : > { %v12352_v1 = vmax.f32 %v19795_v29, 0.0  ;;  %v12789_v7 = vrot.slane %v12787_v26, 7  ;;  %v12654_v39 = vrot.slane %v12652_v57, 1  ;;  %v12642_v30 = vor.u32 %v12640_v11, %v12638_v23 }
 0x944   : > { %v24552_v17 = vpack.c.bf16 %v12354_v31, %v12353_v55  ;;  %v12800_v42 = vor.u32 %v12798_v37, %v12797_v27 }
 0x945   : > { %v24558_v40 = vpack.c.bf16 %v12352_v1, %v12351_v9  ;;  %v19270_v21 = vpop.f32.mrb[56].mxu0  ;;  %v12792_v19 = vor.u32 %v12790_v15, %v12789_v7  ;;  %19339 = vmatpush3.bf16.msra.mxu1 %v21284_v8  ;;  %v24575_v35 = vsel %vm572_vm0, %v12650_v49, %v12654_v39  ;;  %v24580_v23 = vsel %vm572_vm0, %v12642_v30, %v12646_v47 }
 0x946   : > { %12390 = vst [vmem:[#allocation3 + $0x68] sm:$0xff] %v24552_v17  ;;  %v19796_v32 = vadd.f32 %v19270_v21, %v24325_v10  ;;  %v12268_v36 = vpop.f32.mrb[57].mxu0  ;;  %v12689_v53 = vmul.bf16 %v24548_v44, %v24552_v17  ;;  %19372 = vmatprep.subr.bf16.mxu1 %v24550_v61  ;;  %v12801_v4 = vsel %vm750_vm1, %v12789_v7, %v12800_v42  ;;  %v12656_v21 = vshrl.u32 %v24519_v13, 16 }
 0x947   : > { %12389 = vst [vmem:[#allocation3 + $0x60] sm:$0xff] %v24558_v40  ;;  %v19797_v62 = vadd.f32 %v24325_v10, %v12268_v36  ;;  %v19271_v50 = vpop.f32.mrb[58].mxu0  ;;  %v12793_v20 = vsel %vm750_vm1, %v24514_v46, %v12792_v19  ;;  %v12688_v8 = vmul.bf16 %v24555_v59, %v24558_v40 }
 0x948   : > { %v19798_v16 = vadd.f32 %v19271_v50, %v24325_v10  ;;  %v12271_v48 = vpop.f32.mrb[59].mxu0  ;;  %19309 = vmatmul.mubr.bf16.gmra.mrb[48].mxu1 %v12793_v20  ;;  %v12811_v57 = vshrl.u32 %v12689_v53, 16  ;;  %v12357_v34 = vmax.f32 %v19796_v32, 0.0  ;;  %v12814_v26 = vshll.u32 %v12689_v53, 16 }
 0x949   : > { %v19799_v54 = vadd.f32 %v24325_v10, %v12271_v48  ;;  %19312 = vmatprep.mubr.bf16.mxu1 %v12801_v4  ;;  %v12803_v24 = vshrl.u32 %v12688_v8, 16  ;;  %v12355_v55 = vmax.f32 %v19797_v62, 0.0  ;;  %v12806_v9 = vshll.u32 %v12688_v8, 16 }
 0x94a   : > { %v12358_v46 = vmax.f32 %v19798_v16, 0.0  ;;  %v12813_v29 = vrot.slane %v12811_v57, 7  ;;  %v24597_v4 = vor.u32 %v12656_v21, %v12654_v39 }
 0x94b   : > { %v12356_v31 = vmax.f32 %v19799_v54, 0.0  ;;  %v12805_v37 = vrot.slane %v12803_v24, 7 }
 0x94c   : > { %v24577_v1 = vpack.c.bf16 %v12358_v46, %v12357_v34  ;;  %v12816_v7 = vor.u32 %v12814_v26, %v12813_v29 }
 0x94d   : > { %v24582_v15 = vpack.c.bf16 %v12356_v31, %v12355_v55  ;;  %v19274_v42 = vpop.f32.mrb[60].mxu0  ;;  %v12808_v11 = vor.u32 %v12806_v9, %v12805_v37 }
 0x94e   : > { %12392 = vst [vmem:[#allocation3 + $0x78] sm:$0xff] %v24577_v1  ;;  %v19800_v19 = vadd.f32 %v19274_v42, %v24325_v10  ;;  %v12284_v49 = vpop.f32.mrb[61].mxu0  ;;  %v12691_v32 = vmul.bf16 %v24575_v35, %v24577_v1  ;;  %v12817_v20 = vsel %vm750_vm1, %v12805_v37, %v12816_v7 }
 0x94f   : > { %12391 = vst [vmem:[#allocation3 + $0x70] sm:$0xff] %v24582_v15  ;;  %v19801_v36 = vadd.f32 %v24325_v10, %v12284_v49  ;;  %v19275_v47 = vpop.f32.mrb[62].mxu0  ;;  %v12809_v53 = vsel %vm750_vm1, %v12797_v27, %v12808_v11  ;;  %v12690_v62 = vmul.bf16 %v24580_v23, %v24582_v15 }
 0x950   : > { %v19802_v13 = vadd.f32 %v19275_v47, %v24325_v10  ;;  %v12287_v50 = vpop.f32.mrb[63].mxu0  ;;  %19313 = vmatmul.mubr.bf16.gmra.mrb[52].mxu1 %v12809_v53  ;;  %v12827_v8 = vshrl.u32 %v12691_v32, 16  ;;  %v12361_v57 = vmax.f32 %v19800_v19, 0.0  ;;  %v12830_v27 = vshll.u32 %v12691_v32, 16  ;;  %v21414_v32 = vld [vmem:[#allocation2] sm:$0xff]  ;;  %v21288_v47 = vld [vmem:[#allocation7 + $0x2d8] sm:$0xff]  }
 0x951   : > { %v19803_v16 = vadd.f32 %v24325_v10, %v12287_v50  ;;  %19316 = vmatprep.mubr.bf16.mxu1 %v12817_v20  ;;  %v12819_v48 = vshrl.u32 %v12690_v62, 16  ;;  %v12359_v24 = vmax.f32 %v19801_v36, 0.0  ;;  %v12822_v26 = vshll.u32 %v12690_v62, 16  ;;  %v21286_v36 = vld [vmem:[#allocation7 + $0x2c8] sm:$0xff]   ;;  %v21289_v53 = vld [vmem:[#allocation7 + $0x2e0] sm:$0xff]   ;;  %v21295_v20 = vld [vmem:[%s25170_s1 + $0x90] sm:$0xff]  }
 0x952   : > { %v12362_v30 = vmax.f32 %v19802_v13, 0.0  ;;  %v12829_v54 = vrot.slane %v12827_v8, 7  ;;  %v21290_v62 = vld [vmem:[#allocation7 + $0x2e8] sm:$0xff]  }
 0x953   : > { %v12360_v34 = vmax.f32 %v19803_v16, 0.0  ;;  %v12821_v46 = vrot.slane %v12819_v48, 7  ;;  %v21294_v13 = vld [vmem:[%s25170_s1 + $0x88] sm:$0xff]  }
 0x954   : > { %v12378_v55 = vpack.c.bf16 %v12362_v30, %v12361_v57  ;;  %v12832_v31 = vor.u32 %v12830_v27, %v12829_v54  ;;  %v13493_v50 = vshrl.u32 %v21294_v13, 16  ;;  %v13496_v48 = vshll.u32 %v21294_v13, 16  ;;  %v21297_v57 = vld [vmem:[%s25170_s1 + $0x98] sm:$0xff]  }
 0x955   : > { %v24599_v9 = vpack.c.bf16 %v12360_v34, %v12359_v24  ;;  %v12824_v37 = vor.u32 %v12822_v26, %v12821_v46  ;;  %v13504_v24 = vshll.u32 %v21295_v20, 16  ;;  %v13509_v34 = vshrl.u32 %v21297_v57, 16  ;;  %v21298_v26 = vld [vmem:[%s25170_s1 + $0xa0] sm:$0xff]  }
 0x956   : > { %12394 = vst [vmem:[#allocation3 + $0x88] sm:$0xff] %v12378_v55  ;;  %v12833_v7 = vsel %vm750_vm1, %v12821_v46, %v12832_v31  ;;  %v13495_v16 = vrot.slane %v13493_v50, 7 }
 0x957   : > { %12393 = vst [vmem:[#allocation3 + $0x80] sm:$0xff] %v24599_v9  ;;  %v12825_v10 = vsel %vm750_vm1, %v12813_v29, %v12824_v37  ;;  %v12692_v39 = vmul.bf16 %v24597_v4, %v24599_v9  ;;  %v21287_v29 = vld [vmem:[#allocation7 + $0x2d0] sm:$0xff]   ;;  %v13511_v31 = vrot.slane %v13509_v34, 7  ;;  %v13512_v37 = vshll.u32 %v21297_v57, 16  ;;  %v21304_v57 = vld [vmem:[%s25170_s1 + $0xc0] sm:$0xff]  }
 0x958   : > { %19317 = vmatmul.mubr.bf16.gmra.mrb[56].mxu1 %v12825_v10  ;;  %v21300_v10 = vld [vmem:[%s25170_s1 + $0xa8] sm:$0xff]  }
 0x959   : > { %19320 = vmatprep.mubr.bf16.mxu1 %v12833_v7  ;;  %v12835_v42 = vshrl.u32 %v12692_v39, 16  ;;  %v12838_v21 = vshll.u32 %v12692_v39, 16  ;;  %v13528_v13 = vshll.u32 %v21300_v10, 16 }
 0x95b   : > { %v12837_v11 = vrot.slane %v12835_v42, 7  ;;  %v13517_v42 = vshrl.u32 %v21298_v26, 16 }
 0x95d   : > { %v12840_v19 = vor.u32 %v12838_v21, %v12837_v11  ;;  %v24649_v11 = vld [vmem:[#allocation3 + $0x18] sm:$0xff] }
 0x95f   : > { %v12841_v49 = vsel %vm750_vm1, %v12829_v54, %v12840_v19  ;;  %v13498_v54 = vor.u32 %v13496_v48, %v13495_v16  ;;  %v13514_v19 = vor.u32 %v13512_v37, %v13511_v31 }
 0x960   : > { %19321 = vmatmul.mubr.bf16.gmra.mrb[60].mxu1 %v12841_v49  ;;  %v13525_v49 = vshrl.u32 %v21300_v10, 16  ;;  %v24679_v10 = vld [vmem:[#allocation3 + $0x30] sm:$0xff] }
 0x961   : > { %19340 = vmatprep.mubr.bf16.mxu1 %v21414_v32 }
 0x968   : > { %19341 = vmatmul.mubr.bf16.vlgmr.msra.gmra.mrb[32].mxu1 %v24354_v3 }
 0x969   : > { %19344 = vmatprep.mubr.bf16.mxu1 %v24348_v41  ;;  %19373 = vmatpush3.bf16.msra.mxu1 %v24550_v61  ;;  %v21291_v41 = vld [vmem:[#allocation7 + $0x2f0] sm:$0xff]   ;;  %v21292_v61 = vld [vmem:[#allocation7 + $0x2f8] sm:$0xff]  }
 0x96a   : > { %19374 = vmatprep.subr.bf16.mxu1 %v21286_v36 }
 0x96d   : > { %19375 = vmatpush3.bf16.msra.mxu1 %v21286_v36 }
 0x96e   : > { %19376 = vmatprep.subr.bf16.mxu1 %v21287_v29 }
 0x970   : > { %19345 = vmatmul.mubr.bf16.gmra.mrb[36].mxu1 %v24391_v0 }
 0x971   : > { %19348 = vmatprep.mubr.bf16.mxu1 %v24385_v5  ;;  %19377 = vmatpush3.bf16.msra.mxu1 %v21287_v29  ;;  %v21293_v5 = vld [vmem:[%s25170_s1 + $0x80] sm:$0xff]  }
 0x972   : > { %19378 = vmatprep.subr.bf16.mxu1 %v21288_v47  ;;  %v13489_v8 = vshll.u32 %v21293_v5, 16 }
 0x975   : > { %19379 = vmatpush3.bf16.msra.mxu1 %v21288_v47  ;;  %v13519_v47 = vrot.slane %v13517_v42, 7  ;;  %v13549_v42 = vshrl.u32 %v21304_v57, 16 }
 0x976   : > { %19380 = vmatprep.subr.bf16.mxu1 %v21289_v53 }
 0x978   : > { %19349 = vmatmul.mubr.bf16.gmra.mrb[40].mxu1 %v24432_v6  ;;  %v13486_v6 = vshrl.u32 %v21293_v5, 16  ;;  %v13527_v5 = vrot.slane %v13525_v49, 7 }
 0x979   : > { %19352 = vmatprep.mubr.bf16.mxu1 %v24425_v33  ;;  %19381 = vmatpush3.bf16.msra.mxu1 %v21289_v53  ;;  %v24622_v33 = vld [vmem:[#allocation7 + $0x300] sm:$0xff]   ;;  %v13520_v53 = vshll.u32 %v21298_v26, 16 }
 0x97a   : > { %19382 = vmatprep.subr.bf16.mxu1 %v21290_v62 }
 0x97d   : > { %19383 = vmatpush3.bf16.msra.mxu1 %v21290_v62  ;;  %v21301_v62 = vld [vmem:[%s25170_s1 + $0xb0] sm:$0xff]  }
 0x97e   : > { %19384 = vmatprep.subr.bf16.mxu1 %v21291_v41 }
 0x980   : > { %19353 = vmatmul.mubr.bf16.gmra.mrb[44].mxu1 %v24483_v56  ;;  %v13488_v56 = vrot.slane %v13486_v6, 7 }
 0x981   : > { %19356 = vmatprep.mubr.bf16.mxu1 %v24470_v45  ;;  %19385 = vmatpush3.bf16.msra.mxu1 %v21291_v41  ;;  %v13501_v45 = vshrl.u32 %v21295_v20, 16  ;;  %v21303_v41 = vld [vmem:[%s25170_s1 + $0xb8] sm:$0xff]   ;;  %v13522_v20 = vor.u32 %v13520_v53, %v13519_v47 }
 0x982   : > { %19386 = vmatprep.subr.bf16.mxu1 %v21292_v61  ;;  %v24633_v30 = vor.u32 %v13489_v8, %v13488_v56  ;;  %v13541_v48 = vshrl.u32 %v21303_v41, 16  ;;  %v13544_v37 = vshll.u32 %v21303_v41, 16 }
 0x983   : > { %v13503_v27 = vrot.slane %v13501_v45, 7  ;;  %v13530_v45 = vor.u32 %v13528_v13, %v13527_v5 }
 0x984   : > { %v13629_v46 = vmul.bf16 %v21414_v32, %v24633_v30 }
 0x985   : > { %19387 = vmatpush3.bf16.msra.mxu1 %v21292_v61  ;;  %v13506_v55 = vor.u32 %v13504_v24, %v13503_v27  ;;  %v24665_v61 = vsel %vm750_vm1, %v13503_v27, %v13514_v19  ;;  %v24673_v27 = vld [vmem:[#allocation3 + $0x28] sm:$0xff]  ;;  %v24676_v24 = vsel %vm750_vm1, %v13511_v31, %v13522_v20 }
 0x986   : > { %19420 = vmatprep.subr.bf16.mxu1 %v24622_v33  ;;  %v13665_v7 = vshll.u32 %v13629_v46, 16  ;;  %v13663_v32 = vshrl.u32 %v13629_v46, 16  ;;  %25411 = vst [vmem:[#allocation20_spill] sm:$0xff] %v24676_v24  ;;  %v13536_v46 = vshll.u32 %v21301_v62, 16  ;;  %v21306_v31 = vld [vmem:[%s25170_s1 + $0xc8] sm:$0xff]   ;;  %v13633_v49 = vmul.bf16 %v24676_v24, %v24673_v27 }
 0x987   : > { %v24652_v21 = vsel %vm750_vm1, %v13495_v16, %v13506_v55  ;;  %v13632_v16 = vmul.bf16 %v24665_v61, %v24391_v0  ;;  %v13543_v0 = vrot.slane %v13541_v48, 7  ;;  %v13557_v20 = vshrl.u32 %v21306_v31, 16 }
 0x988   : > { %19357 = vmatmul.mubr.bf16.gmra.mrb[48].mxu1 %v24529_v51  ;;  %v13667_v36 = vrot.slane %v13665_v7, 1  ;;  %v24682_v7 = vsel %vm750_vm1, %v13519_v47, %v13530_v45  ;;  %v13551_v47 = vrot.slane %v13549_v42, 7  ;;  %v13560_v42 = vshll.u32 %v21306_v31, 16  ;;  %v24716_v31 = vld [vmem:[#allocation3 + $0x48] sm:$0xff] }
 0x989   : > { %19360 = vmatprep.mubr.bf16.mxu1 %v24521_v60  ;;  %v24641_v60 = vsel %vm750_vm1, %v13488_v56, %v13498_v54  ;;  %v13533_v56 = vshrl.u32 %v21301_v62, 16  ;;  %v13686_v55 = vshll.u32 %v13632_v16, 16  ;;  %25412 = vst [vmem:[#allocation21_spill] sm:$0xff] %v24682_v7  ;;  %v13634_v62 = vmul.bf16 %v24682_v7, %v24679_v10 }
 0x98a   : > { %v13630_v39 = vmul.bf16 %v24641_v60, %v24354_v3  ;;  %v13631_v3 = vmul.bf16 %v24652_v21, %v24649_v11  ;;  %v13668_v6 = vor.u32 %v13667_v36, %v13663_v32  ;;  %v13546_v41 = vor.u32 %v13544_v37, %v13543_v0 }
 0x98b   : > { %v13535_v34 = vrot.slane %v13533_v56, 7  ;;  %v13688_v53 = vrot.slane %v13686_v55, 1  ;;  %v21307_v56 = vld [vmem:[%s25170_s1 + $0xd0] sm:$0xff]   ;;  %v24705_v55 = vld [vmem:[#allocation3 + $0x40] sm:$0xff] }
 0x98c   : > { %v13670_v29 = vshll.u32 %v13630_v39, 16  ;;  %v13678_v8 = vshll.u32 %v13631_v3, 16  ;;  %v13682_v19 = vshrl.u32 %v13631_v3, 16  ;;  %v13674_v32 = vshrl.u32 %v13630_v39, 16  ;;  %v24695_v39 = vld [vmem:[#allocation3 + $0x38] sm:$0xff] }
 0x98d   : > { %v13538_v36 = vor.u32 %v13536_v46, %v13535_v34  ;;  %v13694_v3 = vshll.u32 %v13633_v49, 16  ;;  %v13702_v46 = vshll.u32 %v13634_v62, 16 }
 0x98e   : > { %v13672_v50 = vrot.slane %v13670_v29, 1  ;;  %v13680_v26 = vrot.slane %v13678_v8, 1  ;;  %v21299_v8 = vld [vmem:[#allocation7 + $0x308] sm:$0xff]  }
 0x98f   : > { %v24698_v45 = vsel %vm750_vm1, %v13527_v5, %v13538_v36  ;;  %v21309_v5 = vld [vmem:[%s25170_s1 + $0xd8] sm:$0xff]  }
 0x990   : > { %19361 = vmatmul.mubr.bf16.gmra.mrb[52].mxu1 %v24558_v40  ;;  %v13673_v54 = vsel %vm572_vm0, %v13668_v6, %v13672_v50  ;;  %v13684_v29 = vor.u32 %v13682_v19, %v13680_v26  ;;  %v13676_v13 = vor.u32 %v13674_v32, %v13672_v50  ;;  %v13552_v6 = vshll.u32 %v21304_v57, 16  ;;  %25413 = vst [vmem:[#allocation22_spill] sm:$0xff] %v24698_v45 }
 0x991   : > { %19364 = vmatprep.mubr.bf16.mxu1 %v24552_v17  ;;  %v13690_v50 = vshrl.u32 %v13632_v16, 16  ;;  %v24702_v57 = vsel %vm750_vm1, %v13535_v34, %v13546_v41  ;;  %v13565_v19 = vshrl.u32 %v21307_v56, 16  ;;  %v13696_v32 = vrot.slane %v13694_v3, 1  ;;  %v21302_v34 = vld [vmem:[#allocation7 + $0x310] sm:$0xff]  }
 0x992   : > { %v13681_v48 = vsel %vm572_vm0, %v13676_v13, %v13680_v26  ;;  %25414 = vst [vmem:[#allocation23_spill] sm:$0xff] %v24702_v57  ;;  %v13554_v37 = vor.u32 %v13552_v6, %v13551_v47  ;;  %v13559_v26 = vrot.slane %v13557_v20, 7  ;;  %v13635_v16 = vmul.bf16 %v24698_v45, %v24695_v39 }
 0x993   : > { %v13692_v36 = vor.u32 %v13690_v50, %v13688_v53  ;;  %v13704_v41 = vrot.slane %v13702_v46, 1  ;;  %v13568_v13 = vshll.u32 %v21307_v56, 16  ;;  %v13567_v3 = vrot.slane %v13565_v19, 7  ;;  %v21310_v50 = vld [vmem:[%s25170_s1 + $0xe0] sm:$0xff]  }
 0x994   : > { %v24719_v6 = vsel %vm750_vm1, %v13543_v0, %v13554_v37  ;;  %v13562_v20 = vor.u32 %v13560_v42, %v13559_v26  ;;  %v13710_v45 = vshll.u32 %v13635_v16, 16 }
 0x995   : > { %25415 = vst [vmem:[#allocation24_spill] sm:$0xff] %v24719_v6  ;;  %v13637_v46 = vmul.bf16 %v24719_v6, %v24716_v31  ;;  %v13570_v42 = vor.u32 %v13568_v13, %v13567_v3 }
 0x996   : > { %v24730_v37 = vsel %vm750_vm1, %v13551_v47, %v13562_v20  ;;  %v24739_v47 = vld [vmem:[#allocation3 + $0x58] sm:$0xff] }
 0x997   : > { %25416 = vst [vmem:[#allocation25_spill] sm:$0xff] %v24730_v37  ;;  %v13726_v6 = vshll.u32 %v13637_v46, 16 }
 0x998   : > { %19365 = vmatmul.mubr.bf16.gmra.mrb[56].mxu1 %v24582_v15 }
 0x999   : > { %19368 = vmatprep.mubr.bf16.mxu1 %v24577_v1 }
 0x9a0   : > { %19369 = vmatmul.mubr.bf16.gmra.mrb[60].mxu1 %v24599_v9 }
 0x9a1   : > { %19388 = vmatprep.mubr.bf16.mxu1 %v13673_v54  ;;  %v13689_v54 = vsel %vm572_vm0, %v13684_v29, %v13688_v53  ;;  %v13698_v29 = vshrl.u32 %v13633_v49, 16  ;;  %v21305_v53 = vld [vmem:[#allocation7 + $0x318] sm:$0xff]   ;;  %v13697_v49 = vsel %vm572_vm0, %v13692_v36, %v13696_v32  ;;  %v21312_v36 = vld [vmem:[%s25170_s1 + $0xe8] sm:$0xff]  }
 0x9a2   : > { %v13589_v20 = vshrl.u32 %v21312_v36, 16 }
 0x9a8   : > { %19389 = vmatmul.mubr.bf16.vlgmr.msra.gmra.mrb[32].mxu1 %v13681_v48  ;;  %v13573_v48 = vshrl.u32 %v21309_v5, 16 }
 0x9a9   : > { %19392 = vmatprep.mubr.bf16.mxu1 %v13689_v54  ;;  %19421 = vmatpush3.bf16.msra.mxu1 %v24622_v33  ;;  %v24714_v33 = vmul.bf16 %v24702_v57, %v24705_v55  ;;  %v13700_v54 = vor.u32 %v13698_v29, %v13696_v32  ;;  %v13576_v32 = vshll.u32 %v21309_v5, 16  ;;  %v13712_v29 = vrot.slane %v13710_v45, 1 }
 0x9aa   : > { %19422 = vmatprep.subr.bf16.mxu1 %v21299_v8  ;;  %v13575_v19 = vrot.slane %v13573_v48, 7  ;;  %v13714_v57 = vshrl.u32 %v13635_v16, 16  ;;  %v24742_v5 = vsel %vm750_vm1, %v13559_v26, %v13570_v42  ;;  %v21311_v48 = vld [vmem:[#allocation7 + $0x328] sm:$0xff]  }
 0x9ab   : > { %v13705_v56 = vsel %vm572_vm0, %v13700_v54, %v13704_v41  ;;  %v13718_v0 = vshll.u32 %v24714_v33, 16  ;;  %25417 = vst [vmem:[#allocation26_spill] sm:$0xff] %v24742_v5  ;;  %v13639_v42 = vmul.bf16 %v24742_v5, %v24739_v47 }
 0x9ac   : > { %v13578_v13 = vor.u32 %v13576_v32, %v13575_v19  ;;  %v13716_v45 = vor.u32 %v13714_v57, %v13712_v29  ;;  %v13722_v57 = vshrl.u32 %v24714_v33, 16 }
 0x9ad   : > { %19423 = vmatpush3.bf16.msra.mxu1 %v21299_v8  ;;  %v13706_v8 = vshrl.u32 %v13634_v62, 16  ;;  %v21308_v62 = vld [vmem:[#allocation7 + $0x320] sm:$0xff]   ;;  %v13720_v7 = vrot.slane %v13718_v0, 1  ;;  %v13728_v0 = vrot.slane %v13726_v6, 1  ;;  %v21314_v6 = vld [vmem:[#allocation7 + $0x330] sm:$0xff]   ;;  %v13742_v24 = vshll.u32 %v13639_v42, 16 }
 0x9ae   : > { %19424 = vmatprep.subr.bf16.mxu1 %v21302_v34  ;;  %v24754_v32 = vsel %vm750_vm1, %v13567_v3, %v13578_v13 }
 0x9af   : > { %v13708_v54 = vor.u32 %v13706_v8, %v13704_v41  ;;  %v21313_v8 = vld [vmem:[%s25170_s1 + $0xf0] sm:$0xff]   ;;  %25418 = vst [vmem:[#allocation27_spill] sm:$0xff] %v24754_v32  ;;  %v13640_v33 = vmul.bf16 %v24754_v32, %v24558_v40  ;;  %v13746_v32 = vshrl.u32 %v13639_v42, 16 }
 0x9b0   : > { %19393 = vmatmul.mubr.bf16.gmra.mrb[36].mxu1 %v13697_v49  ;;  %v13581_v49 = vshrl.u32 %v21310_v50, 16 }
 0x9b1   : > { %19396 = vmatprep.mubr.bf16.mxu1 %v13705_v56  ;;  %19425 = vmatpush3.bf16.msra.mxu1 %v21302_v34  ;;  %v24737_v34 = vmul.bf16 %v24730_v37, %v24529_v51  ;;  %v13713_v41 = vsel %vm572_vm0, %v13708_v54, %v13712_v29  ;;  %v13584_v56 = vshll.u32 %v21310_v50, 16  ;;  %v13591_v50 = vrot.slane %v13589_v20, 7  ;;  %v21315_v54 = vld [vmem:[%s25170_s1 + $0xf8] sm:$0xff]  }
 0x9b2   : > { %19426 = vmatprep.subr.bf16.mxu1 %v21305_v53  ;;  %v13583_v16 = vrot.slane %v13581_v49, 7  ;;  %v13592_v29 = vshll.u32 %v21312_v36, 16  ;;  %v13730_v49 = vshrl.u32 %v13637_v46, 16  ;;  %v13597_v37 = vshrl.u32 %v21313_v8, 16  ;;  %v21316_v36 = vld [vmem:[#allocation7 + $0x338] sm:$0xff]  }
 0x9b3   : > { %v13734_v26 = vshll.u32 %v24737_v34, 16 }
 0x9b4   : > { %v13732_v5 = vor.u32 %v13730_v49, %v13728_v0  ;;  %v13594_v3 = vor.u32 %v13592_v29, %v13591_v50  ;;  %v13599_v20 = vrot.slane %v13597_v37, 7  ;;  %v13608_v29 = vshll.u32 %v21315_v54, 16  ;;  %v24773_v37 = vld [vmem:[#allocation7 + $0x340] sm:$0xff]  }
 0x9b5   : > { %19427 = vmatpush3.bf16.msra.mxu1 %v21305_v53  ;;  %v13721_v53 = vsel %vm572_vm0, %v13716_v45, %v13720_v7  ;;  %v13724_v45 = vor.u32 %v13722_v57, %v13720_v7  ;;  %v13600_v7 = vshll.u32 %v21313_v8, 16  ;;  %v13750_v57 = vshll.u32 %v13640_v33, 16 }
 0x9b6   : > { %19428 = vmatprep.subr.bf16.mxu1 %v21308_v62  ;;  %v24767_v49 = vsel %vm750_vm1, %v13583_v16, %v13594_v3  ;;  %v13738_v8 = vshrl.u32 %v24737_v34, 16  ;;  %v13754_v3 = vshrl.u32 %v13640_v33, 16 }
 0x9b7   : > { %v13729_v13 = vsel %vm572_vm0, %v13724_v45, %v13728_v0  ;;  %25420 = vst [vmem:[#allocation29_spill] sm:$0xff] %v24767_v49  ;;  %v13752_v0 = vrot.slane %v13750_v57, 1 }
 0x9b8   : > { %19397 = vmatmul.mubr.bf16.gmra.mrb[40].mxu1 %v13713_v41  ;;  %v13586_v41 = vor.u32 %v13584_v56, %v13583_v16  ;;  %v13642_v16 = vmul.bf16 %v24767_v49, %v24582_v15 }
 0x9b9   : > { %19400 = vmatprep.mubr.bf16.mxu1 %v13721_v53  ;;  %19429 = vmatpush3.bf16.msra.mxu1 %v21308_v62  ;;  %v13736_v53 = vrot.slane %v13734_v26, 1  ;;  %v13605_v62 = vshrl.u32 %v21315_v54, 16  ;;  %v13744_v26 = vrot.slane %v13742_v24, 1 }
 0x9ba   : > { %19430 = vmatprep.subr.bf16.mxu1 %v21311_v48  ;;  %v24763_v46 = vsel %vm750_vm1, %v13575_v19, %v13586_v41 }
 0x9bb   : > { %25419 = vst [vmem:[#allocation28_spill] sm:$0xff] %v24763_v46  ;;  %v13737_v56 = vsel %vm572_vm0, %v13732_v5, %v13736_v53  ;;  %v13641_v19 = vmul.bf16 %v24763_v46, %v24552_v17  ;;  %v13602_v5 = vor.u32 %v13600_v7, %v13599_v20  ;;  %v13748_v24 = vor.u32 %v13746_v32, %v13744_v26 }
 0x9bc   : > { %v13740_v45 = vor.u32 %v13738_v8, %v13736_v53  ;;  %v13766_v32 = vshll.u32 %v13642_v16, 16 }
 0x9bd   : > { %19431 = vmatpush3.bf16.msra.mxu1 %v21311_v48  ;;  %v24769_v48 = vrot.slane %v13605_v62, 7  ;;  %v13758_v54 = vshll.u32 %v13641_v19, 16  ;;  %v13753_v34 = vsel %vm572_vm0, %v13748_v24, %v13752_v0  ;;  %v13762_v7 = vshrl.u32 %v13641_v19, 16 }
 0x9be   : > { %19432 = vmatprep.subr.bf16.mxu1 %v21314_v6  ;;  %v13745_v42 = vsel %vm572_vm0, %v13740_v45, %v13744_v26  ;;  %v13770_v19 = vshrl.u32 %v13642_v16, 16 }
 0x9bf   : > { %v13610_v41 = vor.u32 %v13608_v29, %v24769_v48  ;;  %v13760_v53 = vrot.slane %v13758_v54, 1 }
 0x9c0   : > { %19401 = vmatmul.mubr.bf16.gmra.mrb[44].mxu1 %v13729_v13  ;;  %v13756_v13 = vor.u32 %v13754_v3, %v13752_v0  ;;  %v14051_v0 = vld [vmem:[#allocation3 + $0x8] sm:$0x80] }
 0x9c1   : > { %19404 = vmatprep.mubr.bf16.mxu1 %v13737_v56  ;;  %19433 = vmatpush3.bf16.msra.mxu1 %v21314_v6  ;;  %v24782_v6 = vsel %vm750_vm1, %v13591_v50, %v13602_v5  ;;  %v24786_v62 = vsel %vm750_vm1, %v13599_v20, %v13610_v41  ;;  %v13768_v56 = vrot.slane %v13766_v32, 1  ;;  %v13764_v26 = vor.u32 %v13762_v7, %v13760_v53  ;;  %v13372_v20 = vld [vmem:[#allocation3 + $0x88] sm:$0x1]  ;;  %v24794_v5 = vld [vmem:[#allocation3 + $0x10] sm:$0xff] }
 0x9c2   : > { %19434 = vmatprep.subr.bf16.mxu1 %v21316_v36  ;;  %25421 = vst [vmem:[#allocation13_spill] sm:$0xff] %v24782_v6  ;;  %25422 = vst [vmem:[#allocation14_spill] sm:$0xff] %v24786_v62  ;;  %v13644_v50 = vmul.bf16 %v24786_v62, %v24599_v9  ;;  %v13761_v29 = vsel %vm572_vm0, %v13756_v13, %v13760_v53  ;;  %v14054_v24 = vmul.bf16 %v24794_v5, %v24305_v12 }
 0x9c3   : > { %v13769_v33 = vsel %vm572_vm0, %v13764_v26, %v13768_v56  ;;  %v13772_v41 = vor.u32 %v13770_v19, %v13768_v56  ;;  %v13645_v54 = vmul.bf16 %v24769_v48, %v13372_v20  ;;  %v14053_v32 = vmul.bf16 %v14051_v0, %v24300_v14  ;;  %v24804_v56 = vld [vmem:[#allocation3 + $0x20] sm:$0xff] }
 0x9c4   : > { %v13782_v8 = vshll.u32 %v13644_v50, 16  ;;  %v14091_v3 = vshrl.u32 %v14054_v24, 16  ;;  %v14055_v26 = vmul.bf16 %v24649_v11, %v24351_v18 }
 0x9c5   : > { %19435 = vmatpush3.bf16.msra.mxu1 %v21316_v36  ;;  %v13643_v36 = vmul.bf16 %v24782_v6, %v24577_v1  ;;  %v13790_v7 = vshll.u32 %v13645_v54, 16 }
 0x9c6   : > { %19468 = vmatprep.subr.bf16.mxu1 %v24773_v37  ;;  %v14099_v19 = vshrl.u32 %v14055_v26, 16 }
 0x9c7   : > { %v13774_v57 = vshll.u32 %v13643_v36, 16  ;;  %v13792_v20 = vrot.slane %v13790_v7, 1 }
 0x9c8   : > { %19405 = vmatmul.mubr.bf16.gmra.mrb[48].mxu1 %v13745_v42  ;;  %v13778_v42 = vshrl.u32 %v13643_v36, 16  ;;  %v14056_v36 = vmul.bf16 %v24804_v56, %v24346_v43 }
 0x9c9   : > { %19408 = vmatprep.mubr.bf16.mxu1 %v13753_v34  ;;  %v13776_v45 = vrot.slane %v13774_v57, 1  ;;  %v13784_v34 = vrot.slane %v13782_v8, 1  ;;  %v14093_v57 = vrot.slane %v14091_v3, 7  ;;  %v13786_v8 = vshrl.u32 %v13644_v50, 16 }
 0x9ca   : > { %v14102_v50 = vshll.u32 %v14055_v26, 16  ;;  %v14110_v7 = vshll.u32 %v14056_v36, 16 }
 0x9cb   : > { %v13780_v53 = vor.u32 %v13778_v42, %v13776_v45  ;;  %v13777_v13 = vsel %vm572_vm0, %v13772_v41, %v13776_v45  ;;  %v14107_v41 = vshrl.u32 %v14056_v36, 16  ;;  %v13788_v54 = vor.u32 %v13786_v8, %v13784_v34  ;;  %v21318_v8 = vld [vmem:[#allocation7 + $0x348] sm:$0xff]  }
 0x9cd   : > { %v13785_v16 = vsel %vm572_vm0, %v13780_v53, %v13784_v34  ;;  %v13793_v42 = vsel %vm572_vm0, %v13788_v54, %v13792_v20  ;;  %v14109_v53 = vrot.slane %v14107_v41, 7  ;;  %v14059_v54 = vmul.bf16 %v24695_v39, %v24430_v52 }
 0x9ce   : > { %v14060_v41 = vmul.bf16 %v24705_v55, %v24408_v2 }
 0x9d0   : > { %19409 = vmatmul.mubr.bf16.gmra.mrb[52].mxu1 %v13761_v29  ;;  %v14087_v29 = vshrl.u32 %v14053_v32, 16  ;;  %v14057_v32 = vmul.bf16 %v24673_v27, %v24389_v25 }
 0x9d1   : > { %19412 = vmatprep.mubr.bf16.mxu1 %v13769_v33  ;;  %v14094_v33 = vshll.u32 %v14054_v24, 16  ;;  %v14058_v24 = vmul.bf16 %v24679_v10, %v24370_v58 }
 0x9d2   : > { %v14089_v0 = vrot.slane %v14087_v29, 7  ;;  %v14115_v29 = vshrl.u32 %v14057_v32, 16  ;;  %v14118_v26 = vshll.u32 %v14057_v32, 16 }
 0x9d3   : > { %v14096_v45 = vor.u32 %v14094_v33, %v14093_v57  ;;  %v14112_v33 = vor.u32 %v14110_v7, %v14109_v53  ;;  %v14123_v34 = vshrl.u32 %v14058_v24, 16  ;;  %v14126_v36 = vshll.u32 %v14058_v24, 16 }
 0x9d4   : > { %v14139_v7 = vshrl.u32 %v14060_v41, 16  ;;  %v14062_v24 = vmul.bf16 %v24447_v22, %v24529_v51 }
 0x9d5   : > { %v14097_v3 = vsel %vm750_vm1, %v14089_v0, %v14096_v45  ;;  %v14125_v45 = vrot.slane %v14123_v34, 7  ;;  %v14134_v34 = vshll.u32 %v14059_v54, 16 }
 0x9d6   : > { %v14141_v32 = vrot.slane %v14139_v7, 7  ;;  %v14158_v7 = vshll.u32 %v14062_v24, 16 }
 0x9d8   : > { %19413 = vmatmul.mubr.bf16.gmra.mrb[56].mxu1 %v13777_v13  ;;  %v14101_v13 = vrot.slane %v14099_v19, 7  ;;  %v14117_v19 = vrot.slane %v14115_v29, 7 }
 0x9d9   : > { %19416 = vmatprep.mubr.bf16.mxu1 %v13785_v16 }
 0x9da   : > { %v14104_v16 = vor.u32 %v14102_v50, %v14101_v13  ;;  %v14113_v0 = vsel %vm750_vm1, %v14101_v13, %v14112_v33  ;;  %v14128_v50 = vor.u32 %v14126_v36, %v14125_v45  ;;  %v14061_v33 = vmul.bf16 %v24716_v31, %v24475_v38 }
 0x9db   : > { %v14155_v36 = vshrl.u32 %v14062_v24, 16  ;;  %v14066_v24 = vmul.bf16 %v24548_v44, %v24582_v15 }
 0x9dc   : > { %v14105_v20 = vsel %vm750_vm1, %v14093_v57, %v14104_v16  ;;  %v14131_v57 = vshrl.u32 %v14059_v54, 16  ;;  %v21320_v16 = vld [vmem:[#allocation7 + $0x358] sm:$0xff]  }
 0x9dd   : > { %v14157_v54 = vrot.slane %v14155_v36, 7  ;;  %v21325_v36 = vld [vmem:[#allocation7 + $0x380] sm:$0xff]  }
 0x9de   : > { %v14133_v29 = vrot.slane %v14131_v57, 7 }
 0x9e0   : > { %19417 = vmatmul.mubr.bf16.gmra.mrb[60].mxu1 %v13793_v42  ;;  %v21319_v42 = vld [vmem:[#allocation7 + $0x350] sm:$0xff]  }
 0x9e1   : > { %19436 = vmatprep.mubr.bf16.mxu1 %v14097_v3  ;;  %v14120_v3 = vor.u32 %v14118_v26, %v14117_v19  ;;  %v14147_v26 = vshrl.u32 %v14061_v33, 16 }
 0x9e3   : > { %v14121_v13 = vsel %vm750_vm1, %v14109_v53, %v14120_v3  ;;  %v21322_v3 = vld [vmem:[#allocation7 + $0x368] sm:$0xff]  }
 0x9e8   : > { %19437 = vmatmul.mubr.bf16.vlgmr.msra.gmra.mrb[32].mxu1 %v14105_v20  ;;  %v14142_v20 = vshll.u32 %v14060_v41, 16  ;;  %v14064_v41 = vmul.bf16 %v24512_v28, %v24558_v40 }
 0x9e9   : > { %19440 = vmatprep.mubr.bf16.mxu1 %v14113_v0  ;;  %19469 = vmatpush3.bf16.msra.mxu1 %v24773_v37  ;;  %v14129_v37 = vsel %vm750_vm1, %v14117_v19, %v14128_v50  ;;  %v14136_v0 = vor.u32 %v14134_v34, %v14133_v29  ;;  %v14149_v19 = vrot.slane %v14147_v26, 7  ;;  %v14063_v50 = vmul.bf16 %v24739_v47, %v24526_v63 }
 0x9ea   : > { %19470 = vmatprep.subr.bf16.mxu1 %v21318_v8  ;;  %v14144_v53 = vor.u32 %v14142_v20, %v14141_v32  ;;  %v14171_v34 = vshrl.u32 %v14064_v41, 16  ;;  %v21324_v20 = vld [vmem:[#allocation7 + $0x378] sm:$0xff]   ;;  %v14065_v26 = vmul.bf16 %v24555_v59, %v24552_v17 }
 0x9eb   : > { %v14137_v57 = vsel %vm750_vm1, %v14125_v45, %v14136_v0  ;;  %v14160_v45 = vor.u32 %v14158_v7, %v14157_v54 }
 0x9ec   : > { %v14145_v51 = vsel %vm750_vm1, %v14133_v29, %v14144_v53  ;;  %v14174_v53 = vshll.u32 %v14064_v41, 16  ;;  %v14068_v41 = vmul.bf16 %v24575_v35, %v24599_v9 }
 0x9ed   : > { %19471 = vmatpush3.bf16.msra.mxu1 %v21318_v8  ;;  %v21321_v8 = vld [vmem:[#allocation7 + $0x360] sm:$0xff]   ;;  %v14161_v40 = vsel %vm750_vm1, %v14149_v19, %v14160_v45 }
 0x9ee   : > { %19472 = vmatprep.subr.bf16.mxu1 %v21319_v42 }
 0x9f0   : > { %19441 = vmatmul.mubr.bf16.gmra.mrb[36].mxu1 %v14121_v13 }
 0x9f1   : > { %19444 = vmatprep.mubr.bf16.mxu1 %v14129_v37  ;;  %19473 = vmatpush3.bf16.msra.mxu1 %v21319_v42  ;;  %v14150_v42 = vshll.u32 %v14061_v33, 16  ;;  %v14163_v37 = vshrl.u32 %v14063_v50, 16  ;;  %v14173_v33 = vrot.slane %v14171_v34, 7 }
 0x9f2   : > { %19474 = vmatprep.subr.bf16.mxu1 %v21320_v16 }
 0x9f3   : > { %v14152_v13 = vor.u32 %v14150_v42, %v14149_v19  ;;  %v14165_v29 = vrot.slane %v14163_v37, 7  ;;  %v14067_v19 = vmul.bf16 %v24580_v23, %v24577_v1 }
 0x9f5   : > { %19475 = vmatpush3.bf16.msra.mxu1 %v21320_v16  ;;  %v21323_v16 = vld [vmem:[#allocation7 + $0x370] sm:$0xff]   ;;  %v14153_v0 = vsel %vm750_vm1, %v14141_v32, %v14152_v13  ;;  %v14176_v32 = vor.u32 %v14174_v53, %v14173_v33  ;;  %v14190_v13 = vshll.u32 %v14066_v24, 16  ;;  %v14195_v45 = vshrl.u32 %v14067_v19, 16 }
 0x9f6   : > { %19476 = vmatprep.subr.bf16.mxu1 %v21321_v8 }
 0x9f7   : > { %v14177_v7 = vsel %vm750_vm1, %v14165_v29, %v14176_v32 }
 0x9f8   : > { %19445 = vmatmul.mubr.bf16.gmra.mrb[40].mxu1 %v14137_v57  ;;  %v14179_v57 = vshrl.u32 %v14065_v26, 16 }
 0x9f9   : > { %19448 = vmatprep.mubr.bf16.mxu1 %v14145_v51  ;;  %19477 = vmatpush3.bf16.msra.mxu1 %v21321_v8  ;;  %v14166_v8 = vshll.u32 %v14063_v50, 16  ;;  %v14187_v51 = vshrl.u32 %v14066_v24, 16 }
 0x9fa   : > { %19478 = vmatprep.subr.bf16.mxu1 %v21322_v3  ;;  %v14181_v42 = vrot.slane %v14179_v57, 7 }
 0x9fb   : > { %v14189_v50 = vrot.slane %v14187_v51, 7 }
 0x9fd   : > { %19479 = vmatpush3.bf16.msra.mxu1 %v21322_v3  ;;  %v14168_v3 = vor.u32 %v14166_v8, %v14165_v29  ;;  %v14192_v34 = vor.u32 %v14190_v13, %v14189_v50 }
 0x9fe   : > { %19480 = vmatprep.subr.bf16.mxu1 %v21323_v16 }
 0x9ff   : > { %v14169_v17 = vsel %vm750_vm1, %v14157_v54, %v14168_v3  ;;  %v14193_v29 = vsel %vm750_vm1, %v14181_v42, %v14192_v34  ;;  %v14198_v3 = vshll.u32 %v14067_v19, 16  ;;  %v21327_v19 = vld [vmem:[#allocation7 + $0x390] sm:$0xff]   ;;  %v21418_v34 = vld [vmem:[#allocation3 + $0x60] sm:$0xff] }
 0xa00   : > { %19449 = vmatmul.mubr.bf16.gmra.mrb[44].mxu1 %v14153_v0  ;;  %v24845_v0 = vld [vmem:[#allocation3 + $0x88] sm:$0xff] }
 0xa01   : > { %19452 = vmatprep.mubr.bf16.mxu1 %v14161_v40  ;;  %19481 = vmatpush3.bf16.msra.mxu1 %v21323_v16  ;;  %v14182_v16 = vshll.u32 %v14065_v26, 16  ;;  %v14197_v40 = vrot.slane %v14195_v45, 7  ;;  %v14069_v8 = vmul.bf16 %v24845_v0, %v24597_v4  ;;  %v14206_v26 = vshll.u32 %v14068_v41, 16  ;;  %v21333_v45 = vld [vmem:[#allocation7 + $0x3c0] sm:$0xff]  }
 0xa02   : > { %19482 = vmatprep.subr.bf16.mxu1 %v21324_v20 }
 0xa03   : > { %v14184_v37 = vor.u32 %v14182_v16, %v14181_v42  ;;  %v14200_v24 = vor.u32 %v14198_v3, %v14197_v40  ;;  %v14211_v57 = vshrl.u32 %v14069_v8, 16  ;;  %v21326_v42 = vld [vmem:[#allocation7 + $0x388] sm:$0xff]  }
 0xa05   : > { %19483 = vmatpush3.bf16.msra.mxu1 %v21324_v20  ;;  %v14203_v20 = vshrl.u32 %v14068_v41, 16  ;;  %v14185_v54 = vsel %vm750_vm1, %v14173_v33, %v14184_v37  ;;  %v14201_v51 = vsel %vm750_vm1, %v14189_v50, %v14200_v24  ;;  %v21328_v50 = vld [vmem:[#allocation7 + $0x398] sm:$0xff]   ;;  %v21329_v41 = vld [vmem:[#allocation7 + $0x3a0] sm:$0xff]   ;;  %v21417_v37 = vld [vmem:[#allocation3 + $0x50] sm:$0xff] }
 0xa06   : > { %19516 = vmatprep.subr.bf16.mxu1 %v21325_v36 }
 0xa07   : > { %v14205_v53 = vrot.slane %v14203_v20, 7  ;;  %v14732_v20 = vld [vmem:[#allocation3 + $0x10] sm:$0xff] }
 0xa08   : > { %19453 = vmatmul.mubr.bf16.gmra.mrb[48].mxu1 %v14169_v17  ;;  %v14213_v17 = vrot.slane %v14211_v57, 7 }
 0xa09   : > { %19456 = vmatprep.mubr.bf16.mxu1 %v14177_v7  ;;  %v14208_v32 = vor.u32 %v14206_v26, %v14205_v53  ;;  %v14214_v7 = vshll.u32 %v14069_v8, 16 }
 0xa0b   : > { %v14209_v33 = vsel %vm750_vm1, %v14197_v40, %v14208_v32  ;;  %v14216_v16 = vor.u32 %v14214_v7, %v14213_v17  ;;  %v14749_v40 = vmul.bf16 %v14732_v20, %v24633_v30 }
 0xa0d   : > { %v14217_v13 = vsel %vm750_vm1, %v14205_v53, %v14216_v16  ;;  %v14785_v8 = vshll.u32 %v14749_v40, 16  ;;  %v14750_v53 = vmul.bf16 %v24641_v60, %v24649_v11  ;;  %v14783_v24 = vshrl.u32 %v14749_v40, 16 }
 0xa0f   : > { %v14787_v3 = vrot.slane %v14785_v8, 1  ;;  %v14790_v57 = vshll.u32 %v14750_v53, 16  ;;  %v21335_v8 = vld [vmem:[#allocation7 + $0x3d0] sm:$0xff]  }
 0xa10   : > { %19457 = vmatmul.mubr.bf16.gmra.mrb[52].mxu1 %v14185_v54  ;;  %v21419_v54 = vld [vmem:[#allocation3 + $0x68] sm:$0xff] }
 0xa11   : > { %19460 = vmatprep.mubr.bf16.mxu1 %v14193_v29  ;;  %v24865_v29 = vld [vmem:[#allocation3 + $0x20] sm:$0xff]  ;;  %v14788_v32 = vor.u32 %v14787_v3, %v14783_v24  ;;  %v14792_v17 = vrot.slane %v14790_v57, 1  ;;  %v24885_v57 = vld [vmem:[#allocation3 + $0x50] sm:$0xff] }
 0xa12   : > { %v14751_v26 = vmul.bf16 %v24865_v29, %v24652_v21 }
 0xa14   : > { %v14802_v16 = vshrl.u32 %v14751_v26, 16 }
 0xa18   : > { %19461 = vmatmul.mubr.bf16.gmra.mrb[56].mxu1 %v14201_v51  ;;  %v14798_v51 = vshll.u32 %v14751_v26, 16 }
 0xa19   : > { %19464 = vmatprep.mubr.bf16.mxu1 %v14209_v33 }
 0xa1a   : > { %v14800_v33 = vrot.slane %v14798_v51, 1  ;;  %v25426_v51 = vld [vmem:[#allocation23_spill] sm:$0xff] }
 0xa20   : > { %19465 = vmatmul.mubr.bf16.gmra.mrb[60].mxu1 %v14217_v13 }
 0xa21   : > { %19484 = vmatprep.mubr.bf16.mxu1 %v24794_v5  ;;  %v21330_v5 = vld [vmem:[#allocation7 + $0x3a8] sm:$0xff]  }
 0xa28   : > { %19485 = vmatmul.mubr.bf16.vlgmr.msra.gmra.mrb[32].mxu1 %v24649_v11  ;;  %v14793_v11 = vsel %vm572_vm0, %v14788_v32, %v14792_v17 }
 0xa29   : > { %19488 = vmatprep.mubr.bf16.mxu1 %v24804_v56  ;;  %19517 = vmatpush3.bf16.msra.mxu1 %v21325_v36  ;;  %v21331_v56 = vld [vmem:[#allocation7 + $0x3b0] sm:$0xff]   ;;  %v21332_v36 = vld [vmem:[#allocation7 + $0x3b8] sm:$0xff]  }
 0xa2a   : > { %19518 = vmatprep.subr.bf16.mxu1 %v21326_v42 }
 0xa2d   : > { %19519 = vmatpush3.bf16.msra.mxu1 %v21326_v42  ;;  %v14804_v42 = vor.u32 %v14802_v16, %v14800_v33  ;;  %v25427_v16 = vld [vmem:[#allocation24_spill] sm:$0xff] }
 0xa2e   : > { %19520 = vmatprep.subr.bf16.mxu1 %v21327_v19 }
 0xa30   : > { %19489 = vmatmul.mubr.bf16.gmra.mrb[36].mxu1 %v24673_v27 }
 0xa31   : > { %19492 = vmatprep.mubr.bf16.mxu1 %v24679_v10  ;;  %19521 = vmatpush3.bf16.msra.mxu1 %v21327_v19 }
 0xa32   : > { %19522 = vmatprep.subr.bf16.mxu1 %v21328_v50 }
 0xa35   : > { %19523 = vmatpush3.bf16.msra.mxu1 %v21328_v50 }
 0xa36   : > { %19524 = vmatprep.subr.bf16.mxu1 %v21329_v41 }
 0xa38   : > { %19493 = vmatmul.mubr.bf16.gmra.mrb[40].mxu1 %v24695_v39 }
 0xa39   : > { %19496 = vmatprep.mubr.bf16.mxu1 %v24705_v55  ;;  %19525 = vmatpush3.bf16.msra.mxu1 %v21329_v41 }
 0xa3a   : > { %19526 = vmatprep.subr.bf16.mxu1 %v21330_v5 }
 0xa3d   : > { %19527 = vmatpush3.bf16.msra.mxu1 %v21330_v5  ;;  %v21334_v5 = vld [vmem:[#allocation7 + $0x3c8] sm:$0xff]  }
 0xa3e   : > { %19528 = vmatprep.subr.bf16.mxu1 %v21331_v56 }
 0xa40   : > { %19497 = vmatmul.mubr.bf16.gmra.mrb[44].mxu1 %v24716_v31 }
 0xa41   : > { %19500 = vmatprep.mubr.bf16.mxu1 %v21417_v37  ;;  %19529 = vmatpush3.bf16.msra.mxu1 %v21331_v56  ;;  %v25424_v56 = vld [vmem:[#allocation21_spill] sm:$0xff] }
 0xa42   : > { %19530 = vmatprep.subr.bf16.mxu1 %v21332_v36 }
 0xa45   : > { %19531 = vmatpush3.bf16.msra.mxu1 %v21332_v36 }
 0xa46   : > { %19564 = vmatprep.subr.bf16.mxu1 %v21333_v45 }
 0xa48   : > { %19501 = vmatmul.mubr.bf16.gmra.mrb[48].mxu1 %v24739_v47 }
 0xa49   : > { %19504 = vmatprep.mubr.bf16.mxu1 %v21418_v34 }
 0xa50   : > { %19505 = vmatmul.mubr.bf16.gmra.mrb[52].mxu1 %v21419_v54 }
 0xa51   : > { %19508 = vmatprep.mubr.bf16.mxu1 %v24582_v15  ;;  %v14752_v15 = vmul.bf16 %v24665_v61, %v24673_v27  ;;  %v14754_v27 = vmul.bf16 %v25424_v56, %v24695_v39 }
 0xa53   : > { %v14806_v13 = vshll.u32 %v14752_v15, 16  ;;  %v14822_v40 = vshll.u32 %v14754_v27, 16 }
 0xa55   : > { %v14808_v41 = vrot.slane %v14806_v13, 1  ;;  %v14824_v32 = vrot.slane %v14822_v40, 1  ;;  %v21338_v40 = vld [vmem:[#allocation7 + $0x3e8] sm:$0xff]  }
 0xa57   : > { %v14809_v37 = vsel %vm572_vm0, %v14804_v42, %v14808_v41  ;;  %v21337_v42 = vld [vmem:[#allocation7 + $0x3e0] sm:$0xff]  }
 0xa58   : > { %19509 = vmatmul.mubr.bf16.gmra.mrb[56].mxu1 %v24577_v1  ;;  %v25423_v1 = vld [vmem:[#allocation20_spill] sm:$0xff] }
 0xa59   : > { %19512 = vmatprep.mubr.bf16.mxu1 %v24599_v9  ;;  %v14753_v7 = vmul.bf16 %v25423_v1, %v24679_v10  ;;  %v14794_v9 = vshrl.u32 %v14750_v53, 16  ;;  %v25425_v10 = vld [vmem:[#allocation22_spill] sm:$0xff]  ;;  %v14810_v53 = vshrl.u32 %v14752_v15, 16  ;;  %v14757_v15 = vmul.bf16 %v24885_v57, %v25427_v16 }
 0xa5a   : > { %v14755_v20 = vmul.bf16 %v25425_v10, %v24705_v55 }
 0xa5b   : > { %v14814_v19 = vshll.u32 %v14753_v7, 16  ;;  %v14796_v50 = vor.u32 %v14794_v9, %v14792_v17  ;;  %v14818_v54 = vshrl.u32 %v14753_v7, 16  ;;  %v14812_v24 = vor.u32 %v14810_v53, %v14808_v41 }
 0xa5c   : > { %v14830_v26 = vshll.u32 %v14755_v20, 16  ;;  %v14756_v17 = vmul.bf16 %v25426_v51, %v24716_v31  ;;  %v14834_v13 = vshrl.u32 %v14755_v20, 16  ;;  %v14846_v41 = vshll.u32 %v14757_v15, 16 }
 0xa5d   : > { %v14801_v36 = vsel %vm572_vm0, %v14796_v50, %v14800_v33  ;;  %v14816_v34 = vrot.slane %v14814_v19, 1  ;;  %v14826_v19 = vshrl.u32 %v14754_v27, 16 }
 0xa5e   : > { %v14832_v7 = vrot.slane %v14830_v26, 1  ;;  %v14838_v9 = vshll.u32 %v14756_v17, 16  ;;  %v14850_v26 = vshrl.u32 %v14757_v15, 16 }
 0xa5f   : > { %v14820_v3 = vor.u32 %v14818_v54, %v14816_v34  ;;  %v14817_v33 = vsel %vm572_vm0, %v14812_v24, %v14816_v34  ;;  %v25428_v34 = vld [vmem:[#allocation25_spill] sm:$0xff] }
 0xa60   : > { %19513 = vmatmul.mubr.bf16.gmra.mrb[60].mxu1 %v24845_v0  ;;  %v14836_v50 = vor.u32 %v14834_v13, %v14832_v7  ;;  %v14758_v54 = vmul.bf16 %v25428_v34, %v24739_v47 }
 0xa61   : > { %19532 = vmatprep.mubr.bf16.mxu1 %v14793_v11  ;;  %v21336_v11 = vld [vmem:[#allocation7 + $0x3d8] sm:$0xff]  }
 0xa62   : > { %v14854_v24 = vshll.u32 %v14758_v54, 16 }
 0xa68   : > { %19533 = vmatmul.mubr.bf16.vlgmr.msra.gmra.mrb[32].mxu1 %v14801_v36  ;;  %v24893_v36 = vld [vmem:[#allocation3 + $0x60] sm:$0xff] }
 0xa69   : > { %19536 = vmatprep.mubr.bf16.mxu1 %v14809_v37  ;;  %19565 = vmatpush3.bf16.msra.mxu1 %v21333_v45  ;;  %v14825_v45 = vsel %vm572_vm0, %v14820_v3, %v14824_v32  ;;  %v14840_v37 = vrot.slane %v14838_v9, 1  ;;  %v25429_v3 = vld [vmem:[#allocation26_spill] sm:$0xff] }
 0xa6a   : > { %19566 = vmatprep.subr.bf16.mxu1 %v21334_v5  ;;  %v14759_v27 = vmul.bf16 %v24893_v36, %v25429_v3 }
 0xa6b   : > { %v14841_v20 = vsel %vm572_vm0, %v14836_v50, %v14840_v37  ;;  %v25430_v50 = vld [vmem:[#allocation27_spill] sm:$0xff] }
 0xa6c   : > { %v14862_v13 = vshll.u32 %v14759_v27, 16 }
 0xa6d   : > { %19567 = vmatpush3.bf16.msra.mxu1 %v21334_v5  ;;  %v14828_v5 = vor.u32 %v14826_v19, %v14824_v32  ;;  %v21339_v32 = vld [vmem:[#allocation7 + $0x3f0] sm:$0xff]   ;;  %v14856_v19 = vrot.slane %v14854_v24, 1  ;;  %v24913_v24 = vld [vmem:[#allocation3 + $0x78] sm:$0xff] }
 0xa6e   : > { %19568 = vmatprep.subr.bf16.mxu1 %v21335_v8 }
 0xa6f   : > { %v14833_v53 = vsel %vm572_vm0, %v14828_v5, %v14832_v7  ;;  %v24903_v7 = vld [vmem:[#allocation3 + $0x70] sm:$0xff]  ;;  %v21340_v5 = vld [vmem:[#allocation7 + $0x3f8] sm:$0xff]  }
 0xa70   : > { %19537 = vmatmul.mubr.bf16.gmra.mrb[36].mxu1 %v14817_v33  ;;  %v24901_v33 = vld [vmem:[#allocation3 + $0x68] sm:$0xff] }
 0xa71   : > { %19540 = vmatprep.mubr.bf16.mxu1 %v14825_v45  ;;  %19569 = vmatpush3.bf16.msra.mxu1 %v21335_v8  ;;  %v14848_v8 = vrot.slane %v14846_v41, 1  ;;  %v14760_v41 = vmul.bf16 %v24901_v33, %v25430_v50 }
 0xa72   : > { %19570 = vmatprep.subr.bf16.mxu1 %v21336_v11 }
 0xa73   : > { %v14852_v45 = vor.u32 %v14850_v26, %v14848_v8  ;;  %v14858_v26 = vshrl.u32 %v14758_v54, 16 }
 0xa75   : > { %19571 = vmatpush3.bf16.msra.mxu1 %v21336_v11  ;;  %v14842_v11 = vshrl.u32 %v14756_v17, 16  ;;  %v14864_v17 = vrot.slane %v14862_v13, 1  ;;  %v14762_v13 = vmul.bf16 %v24913_v24, %v24767_v49  ;;  %v14764_v49 = vmul.bf16 %v24845_v0, %v24786_v62 }
 0xa76   : > { %19572 = vmatprep.subr.bf16.mxu1 %v21337_v42 }
 0xa77   : > { %v14844_v9 = vor.u32 %v14842_v11, %v14840_v37  ;;  %v14866_v37 = vshrl.u32 %v14759_v27, 16 }
 0xa78   : > { %19541 = vmatmul.mubr.bf16.gmra.mrb[40].mxu1 %v14833_v53  ;;  %v14761_v53 = vmul.bf16 %v24903_v7, %v24763_v46 }
 0xa79   : > { %19544 = vmatprep.mubr.bf16.mxu1 %v14841_v20  ;;  %19573 = vmatpush3.bf16.msra.mxu1 %v21337_v42  ;;  %v14849_v15 = vsel %vm572_vm0, %v14844_v9, %v14848_v8  ;;  %v14857_v42 = vsel %vm572_vm0, %v14852_v45, %v14856_v19  ;;  %v14870_v20 = vshll.u32 %v14760_v41, 16  ;;  %v14868_v11 = vor.u32 %v14866_v37, %v14864_v17  ;;  %v24915_v9 = vld [vmem:[#allocation3 + $0x80] sm:$0xff] }
 0xa7a   : > { %19574 = vmatprep.subr.bf16.mxu1 %v21338_v40  ;;  %v14878_v50 = vshll.u32 %v14761_v53, 16  ;;  %v14860_v8 = vor.u32 %v14858_v26, %v14856_v19  ;;  %v14882_v19 = vshrl.u32 %v14761_v53, 16  ;;  %v14874_v37 = vshrl.u32 %v14760_v41, 16  ;;  %v15171_v41 = vld [vmem:[#allocation3 + $0x10] sm:$0x80] }
 0xa7b   : > { %v14872_v45 = vrot.slane %v14870_v20, 1 }
 0xa7c   : > { %v14865_v27 = vsel %vm572_vm0, %v14860_v8, %v14864_v17  ;;  %v14880_v54 = vrot.slane %v14878_v50, 1  ;;  %v14748_v8 = vld [vmem:[#allocation3 + $0x90] sm:$0x1] }
 0xa7d   : > { %19575 = vmatpush3.bf16.msra.mxu1 %v21338_v40  ;;  %v24911_v40 = vld [vmem:[#allocation7 + $0x400] sm:$0xff]   ;;  %v14876_v26 = vor.u32 %v14874_v37, %v14872_v45 }
 0xa7e   : > { %19576 = vmatprep.subr.bf16.mxu1 %v21339_v32 }
 0xa7f   : > { %v14881_v17 = vsel %vm572_vm0, %v14876_v26, %v14880_v54 }
 0xa80   : > { %19545 = vmatmul.mubr.bf16.gmra.mrb[44].mxu1 %v14849_v15  ;;  %v14763_v15 = vmul.bf16 %v24915_v9, %v24782_v6  ;;  %v15175_v6 = vmul.bf16 %v24865_v29, %v24351_v18 }
 0xa81   : > { %19548 = vmatprep.mubr.bf16.mxu1 %v14857_v42  ;;  %19577 = vmatpush3.bf16.msra.mxu1 %v21339_v32  ;;  %v14873_v32 = vsel %vm572_vm0, %v14868_v11, %v14872_v45  ;;  %v14886_v42 = vshll.u32 %v14762_v13, 16  ;;  %v14902_v45 = vshll.u32 %v14764_v49, 16 }
 0xa82   : > { %19578 = vmatprep.subr.bf16.mxu1 %v21340_v5  ;;  %v14894_v20 = vshll.u32 %v14763_v15, 16 }
 0xa83   : > { %v14888_v46 = vrot.slane %v14886_v42, 1  ;;  %v14765_v42 = vmul.bf16 %v14748_v8, %v24769_v48 }
 0xa84   : > { %v14896_v50 = vrot.slane %v14894_v20, 1 }
 0xa85   : > { %19579 = vmatpush3.bf16.msra.mxu1 %v21340_v5  ;;  %v14884_v5 = vor.u32 %v14882_v19, %v14880_v54  ;;  %v14890_v19 = vshrl.u32 %v14762_v13, 16  ;;  %v15173_v54 = vmul.bf16 %v15171_v41, %v24300_v14  ;;  %v14910_v62 = vshll.u32 %v14765_v42, 16  ;;  %v24938_v13 = vld [vmem:[#allocation3 + $0x28] sm:$0xff] }
 0xa86   : > { %19612 = vmatprep.subr.bf16.mxu1 %v24911_v40  ;;  %v15176_v8 = vmul.bf16 %v24938_v13, %v24346_v43  ;;  %v14906_v14 = vshrl.u32 %v14764_v49, 16  ;;  %v15178_v49 = vmul.bf16 %v24695_v39, %v24370_v58  ;;  %v15180_v58 = vmul.bf16 %v24716_v31, %v24408_v2 }
 0xa87   : > { %v14889_v11 = vsel %vm572_vm0, %v14884_v5, %v14888_v46  ;;  %v14904_v5 = vrot.slane %v14902_v45, 1  ;;  %v15181_v2 = vmul.bf16 %v24885_v57, %v24475_v38  ;;  %v21346_v38 = vld [vmem:[#allocation7 + $0x428] sm:$0xff]  }
 0xa88   : > { %19549 = vmatmul.mubr.bf16.gmra.mrb[48].mxu1 %v14865_v27  ;;  %v24928_v27 = vld [vmem:[#allocation3 + $0x18] sm:$0xff]  ;;  %v15227_v42 = vshrl.u32 %v15176_v8, 16 }
 0xa89   : > { %19552 = vmatprep.mubr.bf16.mxu1 %v14873_v32  ;;  %v15174_v53 = vmul.bf16 %v24928_v27, %v24305_v12  ;;  %v14898_v32 = vshrl.u32 %v14763_v15, 16  ;;  %v15207_v15 = vshrl.u32 %v15173_v54, 16  ;;  %v14908_v41 = vor.u32 %v14906_v14, %v14904_v5  ;;  %v21342_v14 = vld [vmem:[#allocation7 + $0x408] sm:$0xff]  }
 0xa8b   : > { %v14900_v37 = vor.u32 %v14898_v32, %v14896_v50  ;;  %v15211_v26 = vshrl.u32 %v15174_v53, 16  ;;  %v14912_v32 = vrot.slane %v14910_v62, 1  ;;  %v15209_v45 = vrot.slane %v15207_v15, 7 }
 0xa8c   : > { %v15222_v62 = vshll.u32 %v15175_v6, 16  ;;  %v15243_v15 = vshrl.u32 %v15178_v49, 16 }
 0xa8d   : > { %v14905_v12 = vsel %vm572_vm0, %v14900_v37, %v14904_v5  ;;  %v14913_v18 = vsel %vm572_vm0, %v14908_v41, %v14912_v32  ;;  %v24943_v37 = vld [vmem:[#allocation3 + $0x30] sm:$0xff] }
 0xa8e   : > { %v15177_v54 = vmul.bf16 %v24943_v37, %v24389_v25  ;;  %v15179_v25 = vmul.bf16 %v24705_v55, %v24430_v52  ;;  %v21344_v52 = vld [vmem:[#allocation7 + $0x418] sm:$0xff]  }
 0xa90   : > { %19553 = vmatmul.mubr.bf16.gmra.mrb[52].mxu1 %v14881_v17  ;;  %v14892_v17 = vor.u32 %v14890_v19, %v14888_v46  ;;  %v15214_v46 = vshll.u32 %v15174_v53, 16  ;;  %v15230_v53 = vshll.u32 %v15176_v8, 16  ;;  %v15238_v39 = vshll.u32 %v15177_v54, 16  ;;  %v21343_v8 = vld [vmem:[#allocation7 + $0x410] sm:$0xff]  }
 0xa91   : > { %19556 = vmatprep.mubr.bf16.mxu1 %v14889_v11  ;;  %v15213_v11 = vrot.slane %v15211_v26, 7  ;;  %v15229_v26 = vrot.slane %v15227_v42, 7  ;;  %v15259_v42 = vshrl.u32 %v15180_v58, 16 }
 0xa92   : > { %v14897_v20 = vsel %vm572_vm0, %v14892_v17, %v14896_v50  ;;  %v15219_v50 = vshrl.u32 %v15175_v6, 16  ;;  %v15246_v6 = vshll.u32 %v15178_v49, 16  ;;  %v21345_v49 = vld [vmem:[#allocation7 + $0x420] sm:$0xff]  }
 0xa93   : > { %v15216_v19 = vor.u32 %v15214_v46, %v15213_v11 }
 0xa94   : > { %v15221_v17 = vrot.slane %v15219_v50, 7  ;;  %v15245_v50 = vrot.slane %v15243_v15, 7  ;;  %v15183_v15 = vmul.bf16 %v24893_v36, %v24526_v63  ;;  %v21348_v63 = vld [vmem:[#allocation7 + $0x438] sm:$0xff]  }
 0xa95   : > { %v15217_v43 = vsel %vm750_vm1, %v15209_v45, %v15216_v19 }
 0xa96   : > { %v15224_v5 = vor.u32 %v15222_v62, %v15221_v17  ;;  %v15248_v19 = vor.u32 %v15246_v6, %v15245_v50 }
 0xa98   : > { %19557 = vmatmul.mubr.bf16.gmra.mrb[56].mxu1 %v14897_v20  ;;  %v15235_v20 = vshrl.u32 %v15177_v54, 16  ;;  %v15225_v46 = vsel %vm750_vm1, %v15213_v11, %v15224_v5  ;;  %v15251_v11 = vshrl.u32 %v15179_v25, 16  ;;  %v15254_v54 = vshll.u32 %v15179_v25, 16  ;;  %v21347_v25 = vld [vmem:[#allocation7 + $0x430] sm:$0xff]  }
 0xa99   : > { %19560 = vmatprep.mubr.bf16.mxu1 %v14905_v12  ;;  %v15232_v12 = vor.u32 %v15230_v53, %v15229_v26  ;;  %v15267_v53 = vshrl.u32 %v15181_v2, 16 }
 0xa9a   : > { %v15237_v41 = vrot.slane %v15235_v20, 7 }
 0xa9b   : > { %v15233_v32 = vsel %vm750_vm1, %v15221_v17, %v15232_v12  ;;  %v15182_v17 = vmul.bf16 %v24739_v47, %v24447_v22  ;;  %v15269_v12 = vrot.slane %v15267_v53, 7 }
 0xa9c   : > { %v15240_v45 = vor.u32 %v15238_v39, %v15237_v41  ;;  %v15249_v31 = vsel %vm750_vm1, %v15237_v41, %v15248_v19  ;;  %v15186_v19 = vmul.bf16 %v24913_v24, %v24548_v44 }
 0xa9d   : > { %v15275_v5 = vshrl.u32 %v15182_v17, 16  ;;  %v15278_v41 = vshll.u32 %v15182_v17, 16 }
 0xa9e   : > { %v15241_v55 = vsel %vm750_vm1, %v15229_v26, %v15240_v45  ;;  %v15185_v45 = vmul.bf16 %v24903_v7, %v24555_v59  ;;  %v15310_v53 = vshll.u32 %v15186_v19, 16 }
 0xa9f   : > { %v15277_v47 = vrot.slane %v15275_v5, 7 }
 0xaa0   : > { %19561 = vmatmul.mubr.bf16.gmra.mrb[60].mxu1 %v14913_v18  ;;  %v15253_v18 = vrot.slane %v15251_v11, 7 }
 0xaa1   : > { %19580 = vmatprep.mubr.bf16.mxu1 %v15217_v43  ;;  %v15262_v43 = vshll.u32 %v15180_v58, 16  ;;  %v15283_v58 = vshrl.u32 %v15183_v15, 16 }
 0xaa2   : > { %v15256_v62 = vor.u32 %v15254_v54, %v15253_v18  ;;  %v15187_v54 = vmul.bf16 %v24915_v9, %v24580_v23 }
 0xaa4   : > { %v15257_v20 = vsel %vm750_vm1, %v15245_v50, %v15256_v62  ;;  %v15280_v50 = vor.u32 %v15278_v41, %v15277_v47  ;;  %v15302_v62 = vshll.u32 %v15185_v45, 16  ;;  %v15315_v5 = vshrl.u32 %v15187_v54, 16 }
 0xaa8   : > { %19581 = vmatmul.mubr.bf16.vlgmr.msra.gmra.mrb[32].mxu1 %v15225_v46  ;;  %v15270_v46 = vshll.u32 %v15181_v2, 16  ;;  %v15299_v2 = vshrl.u32 %v15185_v45, 16  ;;  %v21351_v45 = vld [vmem:[#allocation7 + $0x450] sm:$0xff]  }
 0xaa9   : > { %19584 = vmatprep.mubr.bf16.mxu1 %v15233_v32  ;;  %19613 = vmatpush3.bf16.msra.mxu1 %v24911_v40  ;;  %v15261_v40 = vrot.slane %v15259_v42, 7  ;;  %v15286_v42 = vshll.u32 %v15183_v15, 16  ;;  %v15317_v15 = vrot.slane %v15315_v5, 7  ;;  %v15856_v5 = vld [vmem:[#allocation3 + $0x38] sm:$0xff] }
 0xaaa   : > { %19614 = vmatprep.subr.bf16.mxu1 %v21342_v14  ;;  %v15272_v32 = vor.u32 %v15270_v46, %v15269_v12  ;;  %v15301_v17 = vrot.slane %v15299_v2, 7 }
 0xaab   : > { %v15264_v26 = vor.u32 %v15262_v43, %v15261_v40 }
 0xaac   : > { %v15273_v6 = vsel %vm750_vm1, %v15261_v40, %v15272_v32  ;;  %v15307_v40 = vshrl.u32 %v15186_v19, 16  ;;  %v21353_v19 = vld [vmem:[#allocation7 + $0x460] sm:$0xff]  }
 0xaad   : > { %19615 = vmatpush3.bf16.msra.mxu1 %v21342_v14  ;;  %v15265_v22 = vsel %vm750_vm1, %v15253_v18, %v15264_v26  ;;  %v15184_v14 = vmul.bf16 %v24901_v33, %v24512_v28  ;;  %v15281_v28 = vsel %vm750_vm1, %v15269_v12, %v15280_v50  ;;  %v15304_v26 = vor.u32 %v15302_v62, %v15301_v17 }
 0xaae   : > { %19616 = vmatprep.subr.bf16.mxu1 %v21343_v8  ;;  %v15309_v43 = vrot.slane %v15307_v40, 7 }
 0xaaf   : > { %v15291_v39 = vshrl.u32 %v15184_v14, 16 }
 0xab0   : > { %19585 = vmatmul.mubr.bf16.gmra.mrb[36].mxu1 %v15241_v55  ;;  %v21349_v55 = vld [vmem:[#allocation7 + $0x440] sm:$0xff]  }
 0xab1   : > { %19588 = vmatprep.mubr.bf16.mxu1 %v15249_v31  ;;  %19617 = vmatpush3.bf16.msra.mxu1 %v21343_v8  ;;  %v15285_v8 = vrot.slane %v15283_v58, 7  ;;  %v15293_v11 = vrot.slane %v15291_v39, 7 }
 0xab2   : > { %19618 = vmatprep.subr.bf16.mxu1 %v21344_v52 }
 0xab3   : > { %v15288_v18 = vor.u32 %v15286_v42, %v15285_v8  ;;  %v15305_v12 = vsel %vm750_vm1, %v15293_v11, %v15304_v26  ;;  %v21425_v42 = vld [vmem:[#allocation3 + $0x40] sm:$0xff] }
 0xab5   : > { %19619 = vmatpush3.bf16.msra.mxu1 %v21344_v52  ;;  %v15294_v52 = vshll.u32 %v15184_v14, 16  ;;  %v15289_v59 = vsel %vm750_vm1, %v15277_v47, %v15288_v18  ;;  %v15852_v18 = vld [vmem:[#allocation3 + $0x18] sm:$0xff] }
 0xab6   : > { %19620 = vmatprep.subr.bf16.mxu1 %v21345_v49  ;;  %v15869_v2 = vmul.bf16 %v15852_v18, %v24633_v30 }
 0xab7   : > { %v15296_v31 = vor.u32 %v15294_v52, %v15293_v11  ;;  %v21424_v11 = vld [vmem:[#allocation3 + $0x38] sm:$0xff]  ;;  %v21426_v52 = vld [vmem:[#allocation3 + $0x48] sm:$0xff] }
 0xab8   : > { %19589 = vmatmul.mubr.bf16.gmra.mrb[40].mxu1 %v15257_v20  ;;  %v15905_v40 = vshll.u32 %v15869_v2, 16 }
 0xab9   : > { %19592 = vmatprep.mubr.bf16.mxu1 %v15265_v22  ;;  %19621 = vmatpush3.bf16.msra.mxu1 %v21345_v49  ;;  %v15297_v44 = vsel %vm750_vm1, %v15285_v8, %v15296_v31  ;;  %v15188_v49 = vmul.bf16 %v24845_v0, %v24575_v35  ;;  %v24982_v22 = vld [vmem:[#allocation2] sm:$0xff]  ;;  %v15318_v35 = vshll.u32 %v15187_v54, 16  ;;  %v21350_v8 = vld [vmem:[#allocation7 + $0x448] sm:$0xff]   ;;  %v15870_v31 = vmul.bf16 %v24865_v29, %v24641_v60  ;;  %v15855_v54 = vld [vmem:[#allocation3 + $0x30] sm:$0xff] }
 0xaba   : > { %19622 = vmatprep.subr.bf16.mxu1 %v21346_v38  ;;  %v15189_v23 = vmul.bf16 %v24982_v22, %v24597_v4 }
 0xabb   : > { %v15323_v20 = vshrl.u32 %v15188_v49, 16  ;;  %v15326_v46 = vshll.u32 %v15188_v49, 16  ;;  %v15320_v41 = vor.u32 %v15318_v35, %v15317_v15  ;;  %v15903_v49 = vshrl.u32 %v15869_v2, 16 }
 0xabc   : > { %v15334_v39 = vshll.u32 %v15189_v23, 16 }
 0xabd   : > { %19623 = vmatpush3.bf16.msra.mxu1 %v21346_v38  ;;  %v15312_v38 = vor.u32 %v15310_v53, %v15309_v43  ;;  %v15325_v14 = vrot.slane %v15323_v20, 7  ;;  %v15321_v58 = vsel %vm750_vm1, %v15309_v43, %v15320_v41  ;;  %v15872_v53 = vmul.bf16 %v15855_v54, %v24665_v61  ;;  %v15857_v20 = vld [vmem:[#allocation3 + $0x40] sm:$0xff] }
 0xabe   : > { %19624 = vmatprep.subr.bf16.mxu1 %v21347_v25 }
 0xabf   : > { %v15313_v47 = vsel %vm750_vm1, %v15301_v17, %v15312_v38  ;;  %v15328_v32 = vor.u32 %v15326_v46, %v15325_v14  ;;  %v15910_v17 = vshll.u32 %v15870_v31, 16  ;;  %v15914_v38 = vshrl.u32 %v15870_v31, 16  ;;  %v15858_v46 = vld [vmem:[#allocation3 + $0x48] sm:$0xff] }
 0xac0   : > { %19593 = vmatmul.mubr.bf16.gmra.mrb[44].mxu1 %v15273_v6 }
 0xac1   : > { %19596 = vmatprep.mubr.bf16.mxu1 %v15281_v28  ;;  %19625 = vmatpush3.bf16.msra.mxu1 %v21347_v25  ;;  %v15331_v25 = vshrl.u32 %v15189_v23, 16  ;;  %v21352_v28 = vld [vmem:[#allocation7 + $0x458] sm:$0xff]   ;;  %v15912_v62 = vrot.slane %v15910_v17, 1 }
 0xac2   : > { %19626 = vmatprep.subr.bf16.mxu1 %v21348_v63 }
 0xac3   : > { %v15333_v50 = vrot.slane %v15331_v25, 7 }
 0xac5   : > { %19627 = vmatpush3.bf16.msra.mxu1 %v21348_v63  ;;  %v15329_v63 = vsel %vm750_vm1, %v15317_v15, %v15328_v32  ;;  %v15336_v6 = vor.u32 %v15334_v39, %v15333_v50  ;;  %v15916_v15 = vor.u32 %v15914_v38, %v15912_v62  ;;  %v15930_v32 = vshrl.u32 %v15872_v53, 16  ;;  %v25433_v38 = vld [vmem:[#allocation29_spill] sm:$0xff] }
 0xac6   : > { %19660 = vmatprep.subr.bf16.mxu1 %v21349_v55  ;;  %v15875_v50 = vmul.bf16 %v15858_v46, %v25425_v10 }
 0xac7   : > { %v15337_v4 = vsel %vm750_vm1, %v15325_v14, %v15336_v6 }
 0xac8   : > { %19597 = vmatmul.mubr.bf16.gmra.mrb[48].mxu1 %v15289_v59  ;;  %v15854_v59 = vld [vmem:[#allocation3 + $0x28] sm:$0xff] }
 0xac9   : > { %19600 = vmatprep.mubr.bf16.mxu1 %v15297_v44  ;;  %v15907_v44 = vrot.slane %v15905_v40, 1  ;;  %v15871_v43 = vmul.bf16 %v15854_v59, %v24652_v21 }
 0xacb   : > { %v15908_v26 = vor.u32 %v15907_v44, %v15903_v49  ;;  %v15918_v30 = vshll.u32 %v15871_v43, 16  ;;  %v15922_v21 = vshrl.u32 %v15871_v43, 16  ;;  %v25431_v44 = vld [vmem:[#allocation27_spill] sm:$0xff] }
 0xacd   : > { %v15913_v60 = vsel %vm572_vm0, %v15908_v26, %v15912_v62 }
 0xad0   : > { %19601 = vmatmul.mubr.bf16.gmra.mrb[52].mxu1 %v15305_v12  ;;  %v15873_v12 = vmul.bf16 %v15856_v5, %v25423_v1  ;;  %v25432_v5 = vld [vmem:[#allocation28_spill] sm:$0xff] }
 0xad1   : > { %19604 = vmatprep.mubr.bf16.mxu1 %v15313_v47  ;;  %v15874_v47 = vmul.bf16 %v15857_v20, %v25424_v56  ;;  %v15876_v56 = vmul.bf16 %v24885_v57, %v25426_v51  ;;  %v15866_v20 = vld [vmem:[#allocation3 + $0x88] sm:$0xff] }
 0xad2   : > { %v15934_v14 = vshll.u32 %v15873_v12, 16  ;;  %v15938_v39 = vshrl.u32 %v15873_v12, 16 }
 0xad3   : > { %v15942_v25 = vshll.u32 %v15874_v47, 16  ;;  %v15962_v31 = vshrl.u32 %v15876_v56, 16 }
 0xad8   : > { %19605 = vmatmul.mubr.bf16.gmra.mrb[56].mxu1 %v15321_v58  ;;  %v15936_v58 = vrot.slane %v15934_v14, 1 }
 0xad9   : > { %19608 = vmatprep.mubr.bf16.mxu1 %v15329_v63  ;;  %v15944_v63 = vrot.slane %v15942_v25, 1 }
 0xada   : > { %v15940_v6 = vor.u32 %v15938_v39, %v15936_v58 }
 0xae0   : > { %19609 = vmatmul.mubr.bf16.gmra.mrb[60].mxu1 %v15337_v4  ;;  %v15950_v4 = vshll.u32 %v15875_v50, 16 }
 0xae1   : > { %19628 = vmatprep.mubr.bf16.mxu1 %v24928_v27  ;;  %v21354_v27 = vld [vmem:[#allocation7 + $0x468] sm:$0xff]  }
 0xae8   : > { %19629 = vmatmul.mubr.bf16.vlgmr.msra.gmra.mrb[32].mxu1 %v24865_v29  ;;  %v15926_v29 = vshll.u32 %v15872_v53, 16 }
 0xae9   : > { %19632 = vmatprep.mubr.bf16.mxu1 %v24938_v13  ;;  %19661 = vmatpush3.bf16.msra.mxu1 %v21349_v55  ;;  %v21355_v13 = vld [vmem:[#allocation7 + $0x470] sm:$0xff]   ;;  %v21356_v55 = vld [vmem:[#allocation7 + $0x478] sm:$0xff]  }
 0xaea   : > { %19662 = vmatprep.subr.bf16.mxu1 %v21350_v8  ;;  %v15928_v23 = vrot.slane %v15926_v29, 1 }
 0xaec   : > { %v15932_v1 = vor.u32 %v15930_v32, %v15928_v23  ;;  %v25435_v32 = vld [vmem:[#allocation14_spill] sm:$0xff] }
 0xaed   : > { %19663 = vmatpush3.bf16.msra.mxu1 %v21350_v8 }
 0xaee   : > { %19664 = vmatprep.subr.bf16.mxu1 %v21351_v45  ;;  %v15937_v8 = vsel %vm572_vm0, %v15932_v1, %v15936_v58 }
 0xaf0   : > { %19633 = vmatmul.mubr.bf16.gmra.mrb[36].mxu1 %v24943_v37  ;;  %v21427_v37 = vld [vmem:[#allocation3 + $0x58] sm:$0xff] }
 0xaf1   : > { %19636 = vmatprep.mubr.bf16.mxu1 %v21424_v11  ;;  %19665 = vmatpush3.bf16.msra.mxu1 %v21351_v45  ;;  %v15860_v45 = vld [vmem:[#allocation3 + $0x58] sm:$0xff]  ;;  %v15958_v11 = vshll.u32 %v15876_v56, 16 }
 0xaf2   : > { %19666 = vmatprep.subr.bf16.mxu1 %v21352_v28  ;;  %v15877_v10 = vmul.bf16 %v15860_v45, %v25427_v16  ;;  %v15879_v16 = vmul.bf16 %v24901_v33, %v25429_v3  ;;  %v15881_v3 = vmul.bf16 %v24913_v24, %v25432_v5 }
 0xaf4   : > { %v15970_v17 = vshrl.u32 %v15877_v10, 16  ;;  %v15982_v43 = vshll.u32 %v15879_v16, 16  ;;  %v15998_v12 = vshll.u32 %v15881_v3, 16  ;;  %v16002_v46 = vshrl.u32 %v15881_v3, 16  ;;  %v16293_v3 = vld [vmem:[#allocation2 + $0x20] sm:$0xff] }
 0xaf5   : > { %19667 = vmatpush3.bf16.msra.mxu1 %v21352_v28  ;;  %v15945_v28 = vsel %vm572_vm0, %v15940_v6, %v15944_v63 }
 0xaf6   : > { %19668 = vmatprep.subr.bf16.mxu1 %v21353_v19 }
 0xaf8   : > { %19637 = vmatmul.mubr.bf16.gmra.mrb[40].mxu1 %v21425_v42 }
 0xaf9   : > { %19640 = vmatprep.mubr.bf16.mxu1 %v21426_v52  ;;  %19669 = vmatpush3.bf16.msra.mxu1 %v21353_v19  ;;  %v15946_v19 = vshrl.u32 %v15874_v47, 16  ;;  %v15954_v52 = vshrl.u32 %v15875_v50, 16  ;;  %v25434_v47 = vld [vmem:[#allocation13_spill] sm:$0xff]  ;;  %v15868_v50 = vld [vmem:[#allocation3 + $0x98] sm:$0x1] }
 0xafa   : > { %19670 = vmatprep.subr.bf16.mxu1 %v21354_v27 }
 0xafb   : > { %v15948_v42 = vor.u32 %v15946_v19, %v15944_v63 }
 0xafd   : > { %19671 = vmatpush3.bf16.msra.mxu1 %v21354_v27  ;;  %v15952_v27 = vrot.slane %v15950_v4, 1  ;;  %v15885_v4 = vmul.bf16 %v15868_v50, %v24769_v48  ;;  %v25047_v48 = vld [vmem:[%s25174_s5 + $0x1] ss:$0 sm:$0xff] }
 0xafe   : > { %19672 = vmatprep.subr.bf16.mxu1 %v21355_v13 }
 0xaff   : > { %v15956_v51 = vor.u32 %v15954_v52, %v15952_v27  ;;  %v16030_v19 = vshll.u32 %v15885_v4, 16 }
 0xb00   : > { %19641 = vmatmul.mubr.bf16.gmra.mrb[44].mxu1 %v24885_v57  ;;  %v15878_v57 = vmul.bf16 %v24893_v36, %v25428_v34 }
 0xb01   : > { %19644 = vmatprep.mubr.bf16.mxu1 %v21427_v37  ;;  %19673 = vmatpush3.bf16.msra.mxu1 %v21355_v13  ;;  %v15960_v13 = vrot.slane %v15958_v11, 1  ;;  %v15953_v37 = vsel %vm572_vm0, %v15948_v42, %v15952_v27  ;;  %v16032_v52 = vrot.slane %v16030_v19, 1 }
 0xb02   : > { %19674 = vmatprep.subr.bf16.mxu1 %v21356_v55  ;;  %v15974_v2 = vshll.u32 %v15878_v57, 16  ;;  %v15978_v26 = vshrl.u32 %v15878_v57, 16  ;;  %v16292_v57 = vld [vmem:[#allocation2 + $0x18] sm:$0xff] }
 0xb03   : > { %v15961_v18 = vsel %vm572_vm0, %v15956_v51, %v15960_v13  ;;  %v15964_v59 = vor.u32 %v15962_v31, %v15960_v13  ;;  %v16291_v51 = vld [vmem:[#allocation2 + $0x10] sm:$0xff] }
 0xb04   : > { %v15976_v54 = vrot.slane %v15974_v2, 1 }
 0xb05   : > { %19675 = vmatpush3.bf16.msra.mxu1 %v21356_v55  ;;  %v15966_v55 = vshll.u32 %v15877_v10, 16 }
 0xb07   : > { %v15968_v40 = vrot.slane %v15966_v55, 1 }
 0xb08   : > { %19645 = vmatmul.mubr.bf16.gmra.mrb[48].mxu1 %v24893_v36  ;;  %v15880_v36 = vmul.bf16 %v24903_v7, %v25431_v44 }
 0xb09   : > { %19648 = vmatprep.mubr.bf16.mxu1 %v24901_v33  ;;  %v15972_v34 = vor.u32 %v15970_v17, %v15968_v40  ;;  %v15969_v49 = vsel %vm572_vm0, %v15964_v59, %v15968_v40  ;;  %v15980_v33 = vor.u32 %v15978_v26, %v15976_v54  ;;  %v16307_v40 = vunpack.c.l.bf16 %v16291_v51 }
 0xb0a   : > { %v15990_v53 = vshll.u32 %v15880_v36, 16  ;;  %v15994_v14 = vshrl.u32 %v15880_v36, 16 }
 0xb0b   : > { %v15977_v62 = vsel %vm572_vm0, %v15972_v34, %v15976_v54  ;;  %v16310_v54 = vunpack.c.h.bf16 %v16292_v57 }
 0xb0c   : > { %v15992_v29 = vrot.slane %v15990_v53, 1 }
 0xb10   : > { %19649 = vmatmul.mubr.bf16.gmra.mrb[52].mxu1 %v24903_v7  ;;  %v15882_v7 = vmul.bf16 %v24915_v9, %v25433_v38 }
 0xb11   : > { %19652 = vmatprep.mubr.bf16.mxu1 %v24913_v24  ;;  %v16000_v24 = vrot.slane %v15998_v12, 1 }
 0xb12   : > { %v16010_v6 = vshrl.u32 %v15882_v7, 16 }
 0xb13   : > { %v16004_v58 = vor.u32 %v16002_v46, %v16000_v24 }
 0xb18   : > { %19653 = vmatmul.mubr.bf16.gmra.mrb[56].mxu1 %v24915_v9  ;;  %v15884_v9 = vmul.bf16 %v24982_v22, %v25435_v32  ;;  %v16296_v32 = vld [vmem:[#allocation2 + $0x38] sm:$0xff] }
 0xb19   : > { %19656 = vmatprep.mubr.bf16.mxu1 %v24845_v0  ;;  %v15920_v0 = vrot.slane %v15918_v30, 1  ;;  %v15984_v30 = vrot.slane %v15982_v43, 1  ;;  %v16308_v43 = vunpack.c.h.bf16 %v16291_v51  ;;  %v16298_v51 = vld [vmem:[#allocation2 + $0x48] sm:$0xff] }
 0xb1a   : > { %v16022_v56 = vshll.u32 %v15884_v9, 16 }
 0xb1b   : > { %v15924_v61 = vor.u32 %v15922_v21, %v15920_v0  ;;  %v15921_v35 = vsel %vm572_vm0, %v15916_v15, %v15920_v0  ;;  %v15985_v15 = vsel %vm572_vm0, %v15980_v33, %v15984_v30 }
 0xb1c   : > { %v16024_v11 = vrot.slane %v16022_v56, 1 }
 0xb1d   : > { %v15929_v41 = vsel %vm572_vm0, %v15924_v61, %v15928_v23  ;;  %v16006_v23 = vshll.u32 %v15882_v7, 16  ;;  %v15883_v61 = vmul.bf16 %v15866_v20, %v25434_v47 }
 0xb1f   : > { %v16014_v25 = vshll.u32 %v15883_v61, 16 }
 0xb20   : > { %19657 = vmatmul.mubr.bf16.gmra.mrb[60].mxu1 %v24982_v22  ;;  %v16026_v22 = vshrl.u32 %v15884_v9, 16 }
 0xb21   : > { %19676 = vmatprep.mubr.bf16.mxu1 %v15913_v60  ;;  %v15986_v60 = vshrl.u32 %v15879_v16, 16  ;;  %v16016_v63 = vrot.slane %v16014_v25, 1 }
 0xb22   : > { %v16028_v42 = vor.u32 %v16026_v22, %v16024_v11 }
 0xb23   : > { %v15988_v0 = vor.u32 %v15986_v60, %v15984_v30  ;;  %v16294_v30 = vld [vmem:[#allocation2 + $0x28] sm:$0xff] }
 0xb24   : > { %v16033_v13 = vsel %vm572_vm0, %v16028_v42, %v16032_v52  ;;  %v16313_v38 = vunpack.c.l.bf16 %v16294_v30 }
 0xb25   : > { %v15993_v21 = vsel %vm572_vm0, %v15988_v0, %v15992_v29  ;;  %v16311_v0 = vunpack.c.l.bf16 %v16293_v3 }
 0xb28   : > { %19677 = vmatmul.mubr.bf16.vlgmr.msra.gmra.mrb[32].mxu1 %v15921_v35  ;;  %v15996_v35 = vor.u32 %v15994_v14, %v15992_v29 }
 0xb29   : > { %19680 = vmatprep.mubr.bf16.mxu1 %v15929_v41  ;;  %v16008_v41 = vrot.slane %v16006_v23, 1  ;;  %v16314_v23 = vunpack.c.h.bf16 %v16294_v30 }
 0xb2a   : > { %v16001_v1 = vsel %vm572_vm0, %v15996_v35, %v16000_v24  ;;  %v16312_v24 = vunpack.c.h.bf16 %v16293_v3 }
 0xb2b   : > { %v16009_v39 = vsel %vm572_vm0, %v16004_v58, %v16008_v41  ;;  %v16012_v45 = vor.u32 %v16010_v6, %v16008_v41  ;;  %v16295_v58 = vld [vmem:[#allocation2 + $0x30] sm:$0xff] }
 0xb2c   : > { %v16315_v4 = vunpack.c.l.bf16 %v16295_v58 }
 0xb2d   : > { %v16017_v27 = vsel %vm572_vm0, %v16012_v45, %v16016_v63 }
 0xb30   : > { %19681 = vmatmul.mubr.bf16.gmra.mrb[36].mxu1 %v15937_v8  ;;  %v16018_v8 = vshrl.u32 %v15883_v61, 16 }
 0xb31   : > { %19684 = vmatprep.mubr.bf16.mxu1 %v15945_v28 }
 0xb32   : > { %v16020_v28 = vor.u32 %v16018_v8, %v16016_v63  ;;  %v16317_v63 = vunpack.c.l.bf16 %v16296_v32 }
 0xb34   : > { %v16025_v10 = vsel %vm572_vm0, %v16020_v28, %v16024_v11  ;;  %v16318_v11 = vunpack.c.h.bf16 %v16296_v32 }
 0xb38   : > { %19685 = vmatmul.mubr.bf16.gmra.mrb[40].mxu1 %v15953_v37 }
 0xb39   : > { %19688 = vmatprep.mubr.bf16.mxu1 %v15961_v18  ;;  %v16309_v18 = vunpack.c.l.bf16 %v16292_v57 }
 0xb40   : > { %19689 = vmatmul.mubr.bf16.gmra.mrb[44].mxu1 %v15969_v49 }
 0xb41   : > { %19692 = vmatprep.mubr.bf16.mxu1 %v15977_v62 }
 0xb48   : > { %19693 = vmatmul.mubr.bf16.gmra.mrb[48].mxu1 %v15985_v15 }
 0xb49   : > { %19696 = vmatprep.mubr.bf16.mxu1 %v15993_v21 }
 0xb50   : > { %19697 = vmatmul.mubr.bf16.gmra.mrb[52].mxu1 %v16001_v1 }
 0xb51   : > { %19700 = vmatprep.mubr.bf16.mxu1 %v16009_v39 }
 0xb58   : > { %19701 = vmatmul.mubr.bf16.gmra.mrb[56].mxu1 %v16017_v27 }
 0xb59   : > { %19704 = vmatprep.mubr.bf16.mxu1 %v16025_v10  ;;  %v16316_v10 = vunpack.c.h.bf16 %v16295_v58 }
 0xb60   : > { %19705 = vmatmul.mubr.bf16.gmra.mrb[60].mxu1 %v16033_v13 }
 0xbfb   : > { %v19678_v55 = vpop.f32.mrb[32].mxu1 }
 0xbfc   : > { %v19804_v37 = vadd.f32 %v19678_v55, %v25047_v48  ;;  %v16132_v2 = vpop.f32.mrb[33].mxu1 }
 0xbfd   : > { %v19805_v31 = vadd.f32 %v25047_v48, %v16132_v2  ;;  %v19679_v16 = vpop.f32.mrb[34].mxu1 }
 0xbfe   : > { %v16341_v59 = vadd.f32 %v19804_v37, %v16309_v18  ;;  %v19806_v17 = vadd.f32 %v19679_v16, %v25047_v48  ;;  %v16135_v44 = vpop.f32.mrb[35].mxu1  ;;  %v16297_v37 = vld [vmem:[#allocation2 + $0x40] sm:$0xff] }
 0xbff   : > { %v16339_v36 = vadd.f32 %v19805_v31, %v16307_v40  ;;  %v19807_v34 = vadd.f32 %v25047_v48, %v16135_v44  ;;  %v16321_v40 = vunpack.c.l.bf16 %v16298_v51 }
 0xc00   : > { %v16373_v49 = vmax.f32 %v16341_v59, 0.0  ;;  %v16342_v62 = vadd.f32 %v19806_v17, %v16310_v54  ;;  %v16319_v17 = vunpack.c.l.bf16 %v16297_v37 }
 0xc01   : > { %v16371_v53 = vmax.f32 %v16339_v36, 0.0  ;;  %v16340_v26 = vadd.f32 %v19807_v34, %v16308_v43  ;;  %v16322_v34 = vunpack.c.h.bf16 %v16298_v51 }
 0xc02   : > { %16405 = vst [vmem:[%s25055_s29 + $0x10] sm:$0xff] %v16373_v49  ;;  %v16374_v5 = vmax.f32 %v16342_v62, 0.0 }
 0xc03   : > { %16403 = vst [vmem:[%s25055_s29] sm:$0xff] %v16371_v53  ;;  %v16372_v33 = vmax.f32 %v16340_v26, 0.0  ;;  %v19682_v60 = vpop.f32.mrb[36].mxu1  ;;  %v16320_v53 = vunpack.c.h.bf16 %v16297_v37 }
 0xc04   : > { %16406 = vst [vmem:[%s25055_s29 + $0x18] sm:$0xff] %v16374_v5  ;;  %v19808_v29 = vadd.f32 %v19682_v60, %v25047_v48  ;;  %v16148_v7 = vpop.f32.mrb[37].mxu1 }
 0xc05   : > { %16404 = vst [vmem:[%s25055_s29 + $0x8] sm:$0xff] %v16372_v33  ;;  %v19809_v20 = vadd.f32 %v25047_v48, %v16148_v7  ;;  %v19683_v12 = vpop.f32.mrb[38].mxu1  ;;  %v16300_v33 = vld [vmem:[#allocation2 + $0x58] sm:$0xff] }
 0xc06   : > { %v16345_v15 = vadd.f32 %v19808_v29, %v16313_v38  ;;  %v19810_v21 = vadd.f32 %v19683_v12, %v25047_v48  ;;  %v16151_v47 = vpop.f32.mrb[39].mxu1  ;;  %v16299_v29 = vld [vmem:[#allocation2 + $0x50] sm:$0xff] }
 0xc07   : > { %v16343_v61 = vadd.f32 %v19809_v20, %v16311_v0  ;;  %v19811_v14 = vadd.f32 %v25047_v48, %v16151_v47  ;;  %v16325_v0 = vunpack.c.l.bf16 %v16300_v33 }
 0xc08   : > { %v16377_v35 = vmax.f32 %v16345_v15, 0.0  ;;  %v16346_v46 = vadd.f32 %v19810_v21, %v16314_v23  ;;  %v16323_v21 = vunpack.c.l.bf16 %v16299_v29 }
 0xc09   : > { %v16375_v41 = vmax.f32 %v16343_v61, 0.0  ;;  %v16344_v25 = vadd.f32 %v19811_v14, %v16312_v24  ;;  %v16326_v14 = vunpack.c.h.bf16 %v16300_v33 }
 0xc0a   : > { %16409 = vst [vmem:[%s25055_s29 + $0x30] sm:$0xff] %v16377_v35  ;;  %v16378_v9 = vmax.f32 %v16346_v46, 0.0 }
 0xc0b   : > { %16407 = vst [vmem:[%s25055_s29 + $0x20] sm:$0xff] %v16375_v41  ;;  %v16376_v50 = vmax.f32 %v16344_v25, 0.0  ;;  %v19686_v1 = vpop.f32.mrb[40].mxu1  ;;  %v16324_v41 = vunpack.c.h.bf16 %v16299_v29 }
 0xc0c   : > { %16410 = vst [vmem:[%s25055_s29 + $0x38] sm:$0xff] %v16378_v9  ;;  %v19812_v39 = vadd.f32 %v19686_v1, %v25047_v48  ;;  %v16164_v56 = vpop.f32.mrb[41].mxu1 }
 0xc0d   : > { %16408 = vst [vmem:[%s25055_s29 + $0x28] sm:$0xff] %v16376_v50  ;;  %v19813_v6 = vadd.f32 %v25047_v48, %v16164_v56  ;;  %v19687_v8 = vpop.f32.mrb[42].mxu1  ;;  %v16302_v50 = vld [vmem:[#allocation2 + $0x68] sm:$0xff] }
 0xc0e   : > { %v16349_v45 = vadd.f32 %v19812_v39, %v16317_v63  ;;  %v19814_v28 = vadd.f32 %v19687_v8, %v25047_v48  ;;  %v16167_v22 = vpop.f32.mrb[43].mxu1  ;;  %v16301_v39 = vld [vmem:[#allocation2 + $0x60] sm:$0xff] }
 0xc0f   : > { %v16347_v19 = vadd.f32 %v19813_v6, %v16315_v4  ;;  %v19815_v27 = vadd.f32 %v25047_v48, %v16167_v22  ;;  %v16329_v4 = vunpack.c.l.bf16 %v16302_v50 }
 0xc10   : > { %v16381_v42 = vmax.f32 %v16349_v45, 0.0  ;;  %v16350_v52 = vadd.f32 %v19814_v28, %v16318_v11  ;;  %v16327_v28 = vunpack.c.l.bf16 %v16301_v39 }
 0xc11   : > { %v16379_v13 = vmax.f32 %v16347_v19, 0.0  ;;  %v16348_v57 = vadd.f32 %v19815_v27, %v16316_v10  ;;  %v16330_v27 = vunpack.c.h.bf16 %v16302_v50 }
 0xc12   : > { %16413 = vst [vmem:[%s25055_s29 + $0x50] sm:$0xff] %v16381_v42  ;;  %v16382_v55 = vmax.f32 %v16350_v52, 0.0 }
 0xc13   : > { %16411 = vst [vmem:[%s25055_s29 + $0x40] sm:$0xff] %v16379_v13  ;;  %v16380_v18 = vmax.f32 %v16348_v57, 0.0  ;;  %v19690_v2 = vpop.f32.mrb[44].mxu1  ;;  %v16328_v13 = vunpack.c.h.bf16 %v16301_v39 }
 0xc14   : > { %16414 = vst [vmem:[%s25055_s29 + $0x58] sm:$0xff] %v16382_v55  ;;  %v19816_v31 = vadd.f32 %v19690_v2, %v25047_v48  ;;  %v16180_v16 = vpop.f32.mrb[45].mxu1 }
 0xc15   : > { %16412 = vst [vmem:[%s25055_s29 + $0x48] sm:$0xff] %v16380_v18  ;;  %v19817_v59 = vadd.f32 %v25047_v48, %v16180_v16  ;;  %v19691_v54 = vpop.f32.mrb[46].mxu1  ;;  %v16304_v18 = vld [vmem:[#allocation2 + $0x78] sm:$0xff] }
 0xc16   : > { %v16353_v44 = vadd.f32 %v19816_v31, %v16321_v40  ;;  %v19818_v36 = vadd.f32 %v19691_v54, %v25047_v48  ;;  %v16183_v43 = vpop.f32.mrb[47].mxu1  ;;  %v16303_v31 = vld [vmem:[#allocation2 + $0x70] sm:$0xff] }
 0xc17   : > { %v16351_v49 = vadd.f32 %v19817_v59, %v16319_v17  ;;  %v19819_v62 = vadd.f32 %v25047_v48, %v16183_v43  ;;  %v16333_v17 = vunpack.c.l.bf16 %v16304_v18 }
 0xc18   : > { %v16385_v26 = vmax.f32 %v16353_v44, 0.0  ;;  %v16354_v30 = vadd.f32 %v19818_v36, %v16322_v34  ;;  %v16331_v36 = vunpack.c.l.bf16 %v16303_v31 }
 0xc19   : > { %v16383_v5 = vmax.f32 %v16351_v49, 0.0  ;;  %v16352_v3 = vadd.f32 %v19819_v62, %v16320_v53  ;;  %v16334_v62 = vunpack.c.h.bf16 %v16304_v18 }
 0xc1a   : > { %16417 = vst [vmem:[%s25055_s29 + $0x70] sm:$0xff] %v16385_v26  ;;  %v16386_v60 = vmax.f32 %v16354_v30, 0.0 }
 0xc1b   : > { %16415 = vst [vmem:[%s25055_s29 + $0x60] sm:$0xff] %v16383_v5  ;;  %v16384_v38 = vmax.f32 %v16352_v3, 0.0  ;;  %v19694_v7 = vpop.f32.mrb[48].mxu1  ;;  %v16332_v5 = vunpack.c.h.bf16 %v16303_v31 }
 0xc1c   : > { %16418 = vst [vmem:[%s25055_s29 + $0x78] sm:$0xff] %v16386_v60  ;;  %v19820_v20 = vadd.f32 %v19694_v7, %v25047_v48  ;;  %v16196_v12 = vpop.f32.mrb[49].mxu1 }
 0xc1d   : > { %16416 = vst [vmem:[%s25055_s29 + $0x68] sm:$0xff] %v16384_v38  ;;  %v19821_v15 = vadd.f32 %v25047_v48, %v16196_v12  ;;  %v19695_v23 = vpop.f32.mrb[50].mxu1  ;;  %v16306_v38 = vld [vmem:[#allocation2 + $0x88] sm:$0xff] }
 0xc1e   : > { %v16357_v47 = vadd.f32 %v19820_v20, %v16325_v0  ;;  %v19822_v61 = vadd.f32 %v19695_v23, %v25047_v48  ;;  %v16199_v24 = vpop.f32.mrb[51].mxu1  ;;  %v16305_v20 = vld [vmem:[#allocation2 + $0x80] sm:$0xff] }
 0xc1f   : > { %v16355_v35 = vadd.f32 %v19821_v15, %v16323_v21  ;;  %v19823_v46 = vadd.f32 %v25047_v48, %v16199_v24  ;;  %v16337_v21 = vunpack.c.l.bf16 %v16306_v38 }
 0xc20   : > { %v16389_v25 = vmax.f32 %v16357_v47, 0.0  ;;  %v16358_v32 = vadd.f32 %v19822_v61, %v16326_v14  ;;  %v16335_v61 = vunpack.c.l.bf16 %v16305_v20 }
 0xc21   : > { %v16387_v9 = vmax.f32 %v16355_v35, 0.0  ;;  %v16356_v58 = vadd.f32 %v19823_v46, %v16324_v41  ;;  %v16338_v46 = vunpack.c.h.bf16 %v16306_v38 }
 0xc22   : > { %16421 = vst [vmem:[%s25055_s29 + $0x90] sm:$0xff] %v16389_v25  ;;  %v16390_v1 = vmax.f32 %v16358_v32, 0.0 }
 0xc23   : > { %16419 = vst [vmem:[%s25055_s29 + $0x80] sm:$0xff] %v16387_v9  ;;  %v16388_v63 = vmax.f32 %v16356_v58, 0.0  ;;  %v19698_v56 = vpop.f32.mrb[52].mxu1  ;;  %v16336_v9 = vunpack.c.h.bf16 %v16305_v20 }
 0xc24   : > { %16422 = vst [vmem:[%s25055_s29 + $0x98] sm:$0xff] %v16390_v1  ;;  %v19824_v6 = vadd.f32 %v19698_v56, %v25047_v48  ;;  %v16212_v8 = vpop.f32.mrb[53].mxu1 }
 0xc25   : > { %16420 = vst [vmem:[%s25055_s29 + $0x88] sm:$0xff] %v16388_v63  ;;  %v19825_v45 = vadd.f32 %v25047_v48, %v16212_v8  ;;  %v19699_v11 = vpop.f32.mrb[54].mxu1 }
 0xc26   : > { %v16361_v22 = vadd.f32 %v19824_v6, %v16329_v4  ;;  %v19826_v19 = vadd.f32 %v19699_v11, %v25047_v48  ;;  %v16215_v10 = vpop.f32.mrb[55].mxu1 }
 0xc27   : > { %v16359_v42 = vadd.f32 %v19825_v45, %v16327_v28  ;;  %v19827_v52 = vadd.f32 %v25047_v48, %v16215_v10 }
 0xc28   : > { %v16393_v57 = vmax.f32 %v16361_v22, 0.0  ;;  %v16362_v51 = vadd.f32 %v19826_v19, %v16330_v27 }
 0xc29   : > { %v16391_v55 = vmax.f32 %v16359_v42, 0.0  ;;  %v16360_v37 = vadd.f32 %v19827_v52, %v16328_v13 }
 0xc2a   : > { %16425 = vst [vmem:[%s25055_s29 + $0xb0] sm:$0xff] %v16393_v57  ;;  %v16394_v2 = vmax.f32 %v16362_v51, 0.0 }
 0xc2b   : > { %16423 = vst [vmem:[%s25055_s29 + $0xa0] sm:$0xff] %v16391_v55  ;;  %v16392_v40 = vmax.f32 %v16360_v37, 0.0  ;;  %v19702_v16 = vpop.f32.mrb[56].mxu1 }
 0xc2c   : > { %16426 = vst [vmem:[%s25055_s29 + $0xb8] sm:$0xff] %v16394_v2  ;;  %v19828_v59 = vadd.f32 %v19702_v16, %v25047_v48  ;;  %v16228_v54 = vpop.f32.mrb[57].mxu1 }
 0xc2d   : > { %16424 = vst [vmem:[%s25055_s29 + $0xa8] sm:$0xff] %v16392_v40  ;;  %v19829_v44 = vadd.f32 %v25047_v48, %v16228_v54  ;;  %v19703_v34 = vpop.f32.mrb[58].mxu1 }
 0xc2e   : > { %v16365_v43 = vadd.f32 %v19828_v59, %v16333_v17  ;;  %v19830_v49 = vadd.f32 %v19703_v34, %v25047_v48  ;;  %v16231_v53 = vpop.f32.mrb[59].mxu1 }
 0xc2f   : > { %v16363_v26 = vadd.f32 %v19829_v44, %v16331_v36  ;;  %v19831_v30 = vadd.f32 %v25047_v48, %v16231_v53 }
 0xc30   : > { %v16397_v3 = vmax.f32 %v16365_v43, 0.0  ;;  %v16366_v33 = vadd.f32 %v19830_v49, %v16334_v62 }
 0xc31   : > { %v16395_v60 = vmax.f32 %v16363_v26, 0.0  ;;  %v16364_v29 = vadd.f32 %v19831_v30, %v16332_v5 }
 0xc32   : > { %16429 = vst [vmem:[%s25055_s29 + $0xd0] sm:$0xff] %v16397_v3  ;;  %v16398_v7 = vmax.f32 %v16366_v33, 0.0 }
 0xc33   : > { %16427 = vst [vmem:[%s25055_s29 + $0xc0] sm:$0xff] %v16395_v60  ;;  %v16396_v0 = vmax.f32 %v16364_v29, 0.0  ;;  %v19706_v12 = vpop.f32.mrb[60].mxu1 }
 0xc34   : > { %16430 = vst [vmem:[%s25055_s29 + $0xd8] sm:$0xff] %v16398_v7  ;;  %v19832_v15 = vadd.f32 %v19706_v12, %v25047_v48  ;;  %v16244_v23 = vpop.f32.mrb[61].mxu1 }
 0xc35   : > { %16428 = vst [vmem:[%s25055_s29 + $0xc8] sm:$0xff] %v16396_v0  ;;  %v19833_v47 = vadd.f32 %v25047_v48, %v16244_v23  ;;  %v19707_v14 = vpop.f32.mrb[62].mxu1 }
 0xc36   : > { %v16369_v24 = vadd.f32 %v19832_v15, %v16337_v21  ;;  %v19834_v35 = vadd.f32 %v19707_v14, %v25047_v48  ;;  %v16247_v41 = vpop.f32.mrb[63].mxu1 }
 0xc37   : > { %v16367_v25 = vadd.f32 %v19833_v47, %v16335_v61  ;;  %v19835_v32 = vadd.f32 %v25047_v48, %v16247_v41 }
 0xc38   : > { %v16401_v58 = vmax.f32 %v16369_v24, 0.0  ;;  %v16370_v50 = vadd.f32 %v19834_v35, %v16338_v46 }
 0xc39   : > { %v16399_v1 = vmax.f32 %v16367_v25, 0.0  ;;  %v16368_v39 = vadd.f32 %v19835_v32, %v16336_v9 }
 0xc3a   : > { %16433 = vst [vmem:[%s25055_s29 + $0xf0] sm:$0xff] %v16401_v58  ;;  %v16402_v63 = vmax.f32 %v16370_v50, 0.0 }
 0xc3b   : > { %16431 = vst [vmem:[%s25055_s29 + $0xe0] sm:$0xff] %v16399_v1  ;;  %v16400_v48 = vmax.f32 %v16368_v39, 0.0 }
 0xc3c   : > { %16434 = vst [vmem:[%s25055_s29 + $0xf8] sm:$0xff] %v16402_v63 }
 0xc3d   : > { %16432 = vst [vmem:[%s25055_s29 + $0xe8] sm:$0xff] %v16400_v48 }
 0xc3e   : > { %21497 = shalt.err (!%p21494_p11)
}
 0xc3f   : > { %s21498_s13 = scalar_lea.hbm %s25119_s10, 4096  ;;  %s21502_s12 = scalar_lea.hbm %s25175_s6, 8192 }
 0xc40   : > { %p21499_p13 = scmp.ne.s32.totalorder %s25119_s10, %s21498_s13  ;;  %p21503_p6 = scmp.lt.u32.totalorder %s25119_s10, %s25175_s6 }
 0xc41   : > { %p21504_p9 = scmp.lt.u32.totalorder %s21502_s12, %s21498_s13  ;;  %p21506_p10 = scmp.lt.u32.totalorder %s21498_s13, %s25119_s10 }
 0xc42   : > { %p21500_p5 = pnand %p21499_p13, %p25436_p1 }
 0xc43   : > { %p21505_p12 = por %p21504_p9, %p21503_p6 }
 0xc44   : > { %p21501_p0 = pneg %p21500_p5 }
 0xc45   : > { %p21507_p2 = por %p21506_p10, %p21505_p12 }
 0xc47   : > { %p21508_p3 = pnand %p21507_p2, %p21501_p0 }
 0xc49   : > { %21511 = shalt.err (!%p21508_p3)
}
 0xc4a   : > { %s21562_s16 = smov 128   ;;  %s21563_s18 = smov 8  }
 0xc4b   : > { %20868 = dma.vmem_to_hbm [thread:$0]  (%p25436_p1), %s25121_s17, 4096, %s25119_s10, %s25128_s25, %s21562_s16, %s21562_s16, %s21563_s18  }
 0xc4c PF: > { %p20885_p4 = scmp.ge.s32.totalorder %s21554_s24, 2  ;;  %s16464_s19 = sand.u32 1, %s21542_s21  }
 0xc4d   : > { %p25437_p7 = scmp.ne.s32.totalorder %s25276_s8, 0  ;;  %s16465_s20 = scalar_lea.sflag [#allocation6], %s16464_s19 }
 0xc4f   : > { %p20878_p8 = pnand %p20885_p4, %p25437_p7 }
 0xc51   : > { %21537 = dma.done.wait (!%p20878_p8), %s16465_s20, 4096  }
 0xc52   : > { %21539 = vsyncadd (!%p20878_p8), %s16465_s20, 4294963200  ;;  %p18_p11 = scmp.ge.s32.totalorder %s21624_s27, 4   ;;  %s25438_s21 = smov %s21546_s22 }
 0xc53   : > { %s25439_s22 = smov %s21550_s23  ;;  %s25440_s23 = smov %s21635_s30 }
 0xc54   : > { %s25441_s24 = smov %s21624_s27  ;;  %20 = sbr.rel (!%p18_p11) target bundleno = 5 (0x5), region = 93 }
 0xc5b   :  { %16470 = vsyncpa [#allocation5], 1 }
 0xc5c   :  { %16472 = vsyncpa [#allocation5 + $0x1], 1 }
 0xc5d   :  { %16473 = vsyncpa [#allocation8], 1 }
 0xc5e   :  { %16474 = vsyncpa [#allocation6], 1 }
 0xc5f   :  { %16476 = vsyncpa [#allocation6 + $0x1], 1 }

</bundles_post_ra>
